<compile_context>
chip_gen: v6e
topology: v6e:2x2x1
jax: 0.10.0
libtpu: 0.0.40
codegen_flags: <defaults>
</compile_context>

<pallas_src>
import functools

import jax
import jax.numpy as jnp
from jax.experimental import pallas as pl
from jax.experimental.pallas import tpu as pltpu

LATENT_DIM = 10
NGF = 64
N_HEADS = 10
BN_EPS = 1e-5


def _round_up(x, m):
    return (x + m - 1) // m * m


# ----------------------------------------------------------------------------
# Pallas kernels
# ----------------------------------------------------------------------------
def _head_matmul_kernel(z_ref, w_ref, o_ref):
    """One torch.split chunk through its head's ConvTranspose2d (1x1 input =>
    plain matmul).  z: (1, sp_pad, Kp) bf16, w: (1, Kp, 16*512) bf16."""
    o_ref[0] = jnp.dot(z_ref[0], w_ref[0], preferred_element_type=jnp.float32)


def _head_bn_relu_kernel(cnt_ref, y_ref, g_ref, b_ref, o_ref):
    """Per-head training-mode BatchNorm2d (batch statistics) + ReLU, fused in a
    single pass over the chunk.  Padded rows of y are exactly zero, so they do
    not perturb sum / sumsq; cnt is the number of *real* rows."""
    c = pl.program_id(0)
    y = y_ref[0]                                        # (rows, C) f32
    cnt = cnt_ref[c].astype(jnp.float32)
    s = jnp.sum(y, axis=0, keepdims=True)
    sq = jnp.sum(y * y, axis=0, keepdims=True)
    mean = s / cnt
    var = jnp.maximum(sq / cnt - mean * mean, 0.0)      # clamp f32 cancellation
    scale = g_ref[0] * jax.lax.rsqrt(var + BN_EPS)
    shift = b_ref[0] - mean * scale
    o_ref[0] = jnp.maximum(y * scale + shift, 0.0)


def _mm_bn_relu_kernel(a_ref, b_ref, g_ref, bt_ref, y_ref, sum_sc, sq_sc, *,
                       count):
    """Fused  Y = A @ B  +  BatchNorm (batch stats) + ReLU.

    grid = (j, phase, m): channel tile j is outermost / parallel; the Y block
    for tile j stays resident in VMEM for the whole (phase, m) loop, sum/sumsq
    accumulate in scratch, and the affine + ReLU epilogue is applied in place
    on the last (phase, m) step.  Zero rows (M padding / masked sub-pixel rows)
    contribute nothing to the statistics; `count` is the real element count.
    """
    ph = pl.program_id(1)
    m = pl.program_id(2)
    nph = pl.num_programs(1)
    nm = pl.num_programs(2)

    yt = jnp.dot(a_ref[0], b_ref[0], preferred_element_type=jnp.float32)
    tm = a_ref.shape[1]
    row0 = pl.multiple_of((ph * nm + m) * tm, 8)
    y_ref[pl.ds(row0, tm), :] = yt

    @pl.when(jnp.logical_and(ph == 0, m == 0))
    def _():
        sum_sc[...] = jnp.zeros_like(sum_sc)
        sq_sc[...] = jnp.zeros_like(sq_sc)

    sum_sc[...] += jnp.sum(yt, axis=0, keepdims=True)
    sq_sc[...] += jnp.sum(yt * yt, axis=0, keepdims=True)

    @pl.when(jnp.logical_and(ph == nph - 1, m == nm - 1))
    def _():
        mean = sum_sc[...] / count
        var = jnp.maximum(sq_sc[...] / count - mean * mean, 0.0)
        scale = g_ref[...] * jax.lax.rsqrt(var + BN_EPS)
        shift = bt_ref[...] - mean * scale
        y_ref[...] = jnp.maximum(y_ref[...] * scale + shift, 0.0)


def _mm_sigmoid_kernel(a_ref, b_ref, o_ref):
    """Last conv (no BN): matmul with the sigmoid fused into the epilogue."""
    y = jnp.dot(a_ref[0], b_ref[0], preferred_element_type=jnp.float32)
    o_ref[0] = 1.0 / (1.0 + jnp.exp(-y))


# ----------------------------------------------------------------------------
# Sub-pixel (output-parity) decomposition glue for ConvTranspose2d(k, 2, 1)
# ----------------------------------------------------------------------------
def _subpixel_patches(x, k):
    """x: (N,H,W,C) NHWC -> A: (4, N*H*W, 4*C) bf16, phases ordered (r_h, r_w).
    Each phase is a dense 2x2-tap conv; no zero-dilation dead work."""
    N, H, W, C = x.shape
    Hout = (H - 1) * 2 - 2 + k
    Wout = (W - 1) * 2 - 2 + k
    xe = jnp.pad(x, ((0, 0), (1, 1), (1, 1), (0, 0)))
    phases = []
    for r_h in (0, 1):
        for r_w in (0, 1):
            taps = []
            for a_h in (0, 1):
                for a_w in (0, 1):
                    sh = 2 - r_h - a_h
                    sw = 2 - r_w - a_w
                    taps.append(xe[:, sh:sh + H, sw:sw + W, :])
            p = jnp.concatenate(taps, axis=-1)          # cols = (a_h, a_w, ci)
            # Phase rows that fall outside the real output grid (k == 3 only)
            # are zeroed so they do not pollute the fused BN statistics.
            if 2 * (H - 1) + (1 - r_h) >= Hout:
                p = p.at[:, H - 1, :, :].set(0.0)
            if 2 * (W - 1) + (1 - r_w) >= Wout:
                p = p.at[:, :, W - 1, :].set(0.0)
            phases.append(p.reshape(N * H * W, 4 * C))
    return jnp.stack(phases, axis=0).astype(jnp.bfloat16)


def _subpixel_weights(w, k, n_cols):
    """w: (Cin, Cout, k, k) -> per-phase sub-kernels (4, 4*Cin, n_cols) bf16."""
    cin, cout = w.shape[0], w.shape[1]
    wp = w if k == 4 else jnp.pad(w, ((0, 0), (0, 0), (0, 4 - k), (0, 4 - k)))
    bs = []
    for r_h in (0, 1):
        for r_w in (0, 1):
            sub = wp[:, :, r_h::2, r_w::2]              # (Cin, Cout, a_h, a_w)
            bs.append(sub.transpose(2, 3, 0, 1).reshape(4 * cin, cout))
    b = jnp.stack(bs, axis=0)
    if n_cols != cout:
        b = jnp.pad(b, ((0, 0), (0, 0), (0, n_cols - cout)))
    return b.astype(jnp.bfloat16)


def _interleave_phases(y, N, H, W, C, Hout, Wout):
    """y: (4, N*H*W, C) phases ordered (r_h, r_w) -> NHWC (N, Hout, Wout, C)."""
    y = y.reshape(2, 2, N, H, W, C)[::-1, ::-1]         # index by output parity
    y = y.transpose(2, 3, 0, 4, 1, 5).reshape(N, 2 * H, 2 * W, C)
    return y[:, :Hout, :Wout, :]


# ----------------------------------------------------------------------------
# Layer wrappers
# ----------------------------------------------------------------------------
def heads_forward(zn, params):
    """zn: (N, latent, 1, 1) -> NHWC slab (N, 4, 4, 512) through the ten heads
    (torch.split chunking: chunk c goes through head c)."""
    N = zn.shape[0]
    ngf8 = NGF * 8
    sp = (N - 1) // N_HEADS + 1                          # torch.split chunk size
    n_chunks = (N - 1) // sp + 1                         # <= N_HEADS
    sp_pad = _round_up(sp, 8)
    rows = sp_pad * 16
    Kp = 16

    # Stacked head weights, columns ordered (kh, kw, cout) -> lane-dense 8192.
    Wh = jnp.stack([w for (w, _, _) in params["heads"]])        # (10,10,512,4,4)
    Bh = Wh.transpose(0, 1, 3, 4, 2).reshape(N_HEADS, LATENT_DIM, 16 * ngf8)
    Bh = jnp.pad(Bh, ((0, 0), (0, Kp - LATENT_DIM), (0, 0))).astype(jnp.bfloat16)
    Gh = jnp.stack([g for (_, g, _) in params["heads"]]).reshape(N_HEADS, 1, ngf8)
    Th = jnp.stack([b for (_, _, b) in params["heads"]]).reshape(N_HEADS, 1, ngf8)

    # z -> (n_chunks, sp_pad, Kp) bf16 (zero padded rows / latent cols).
    z2 = zn.reshape(N, LATENT_DIM)
    z2 = jnp.pad(z2, ((0, n_chunks * sp - N), (0, 0))).reshape(n_chunks, sp,
                                                               LATENT_DIM)
    z3 = jnp.pad(z2, ((0, 0), (0, sp_pad - sp),
                      (0, Kp - LATENT_DIM))).astype(jnp.bfloat16)

    # --- all head ConvTranspose2d's in ONE pallas_call --------------------
    y = pl.pallas_call(
        _head_matmul_kernel,
        out_shape=jax.ShapeDtypeStruct((n_chunks, sp_pad, 16 * ngf8),
                                       jnp.float32),
        grid_spec=pltpu.PrefetchScalarGridSpec(
            num_scalar_prefetch=0,
            grid=(n_chunks,),
            in_specs=[pl.BlockSpec((1, sp_pad, Kp), lambda c: (c, 0, 0)),
                      pl.BlockSpec((1, Kp, 16 * ngf8), lambda c: (c, 0, 0))],
            out_specs=pl.BlockSpec((1, sp_pad, 16 * ngf8),
                                   lambda c: (c, 0, 0))),
        compiler_params=pltpu.CompilerParams(
            dimension_semantics=("parallel",)),
    )(z3, Bh)

    # rows -> (sample, h, w), lanes -> channels (contiguous reshape, free).
    y = y.reshape(n_chunks, rows, ngf8)

    # --- per-head BatchNorm (batch stats) + ReLU, ONE fused pallas_call ----
    counts = jnp.asarray([min(sp, N - c * sp) * 16 for c in range(n_chunks)],
                         dtype=jnp.int32)
    y = pl.pallas_call(
        _head_bn_relu_kernel,
        out_shape=jax.ShapeDtypeStruct((n_chunks, rows, ngf8), jnp.float32),
        grid_spec=pltpu.PrefetchScalarGridSpec(
            num_scalar_prefetch=1,
            grid=(n_chunks,),
            in_specs=[pl.BlockSpec((1, rows, ngf8), lambda c, cnt: (c, 0, 0)),
                      pl.BlockSpec((1, 1, ngf8), lambda c, cnt: (c, 0, 0)),
                      pl.BlockSpec((1, 1, ngf8), lambda c, cnt: (c, 0, 0))],
            out_specs=pl.BlockSpec((1, rows, ngf8), lambda c, cnt: (c, 0, 0))),
        compiler_params=pltpu.CompilerParams(
            dimension_semantics=("parallel",)),
    )(counts, y, Gh, Th)

    # drop padded rows, back to NHWC slab.
    y = y.reshape(n_chunks, sp_pad, 16, ngf8)[:, :sp]
    y = y.reshape(n_chunks * sp, 16, ngf8)[:N]
    return y.reshape(N, 4, 4, ngf8)


def convt_bn_relu(x, w, gamma, beta, k):
    """ConvTranspose2d(k, stride=2, pad=1, bias=False) + BatchNorm2d (batch
    statistics) + ReLU; stats/affine/ReLU fused into the matmul kernel."""
    N, H, W, Cin = x.shape
    Cout = w.shape[1]
    Hout = (H - 1) * 2 - 2 + k
    Wout = (W - 1) * 2 - 2 + k
    M = N * H * W
    K = 4 * Cin
    assert K % 128 == 0
    Np = _round_up(Cout, 128)
    tn = 128
    tm = _round_up(M, 8) if _round_up(M, 8) <= 512 else 256
    Mp = _round_up(M, tm)

    a = _subpixel_patches(x, k)                                  # (4, M, K) bf16
    if Mp != M:
        a = jnp.pad(a, ((0, 0), (0, Mp - M), (0, 0)))
    b = _subpixel_weights(w, k, Np)                              # (4, K, Np) bf16
    g2 = gamma.reshape(1, Cout).astype(jnp.float32)
    t2 = beta.reshape(1, Cout).astype(jnp.float32)
    if Np != Cout:
        g2 = jnp.pad(g2, ((0, 0), (0, Np - Cout)))
        t2 = jnp.pad(t2, ((0, 0), (0, Np - Cout)))

    nj, nm = Np // tn, Mp // tm
    count = float(N * Hout * Wout)

    y = pl.pallas_call(
        functools.partial(_mm_bn_relu_kernel, count=count),
        out_shape=jax.ShapeDtypeStruct((4 * Mp, Np), jnp.float32),
        grid_spec=pltpu.PrefetchScalarGridSpec(
            num_scalar_prefetch=0,
            grid=(nj, 4, nm),
            in_specs=[pl.BlockSpec((1, tm, K), lambda j, p, m: (p, m, 0)),
                      pl.BlockSpec((1, K, tn), lambda j, p, m: (p, 0, j)),
                      pl.BlockSpec((1, tn), lambda j, p, m: (0, j)),
                      pl.BlockSpec((1, tn), lambda j, p, m: (0, j))],
            out_specs=pl.BlockSpec((4 * Mp, tn), lambda j, p, m: (0, j)),
            scratch_shapes=[pltpu.VMEM((1, tn), jnp.float32),
                            pltpu.VMEM((1, tn), jnp.float32)]),
        compiler_params=pltpu.CompilerParams(
            dimension_semantics=("parallel", "arbitrary", "arbitrary")),
    )(a, b, g2, t2)

    y = y.reshape(4, Mp, Np)[:, :M, :Cout]
    return _interleave_phases(y, N, H, W, Cout, Hout, Wout)


def convt_sigmoid(x, w, k):
    """Final ConvTranspose2d(k, stride=2, pad=1) + Sigmoid (fused epilogue).
    Cout=1 is padded to 128 lanes so all vector stores stay lane-dense."""
    N, H, W, Cin = x.shape
    Cout = w.shape[1]
    Hout = (H - 1) * 2 - 2 + k
    Wout = (W - 1) * 2 - 2 + k
    M = N * H * W
    K = 4 * Cin
    assert K % 128 == 0
    Np = _round_up(Cout, 128)
    tm = _round_up(M, 8) if _round_up(M, 8) <= 512 else 256
    Mp = _round_up(M, tm)

    a = _subpixel_patches(x, k)
    if Mp != M:
        a = jnp.pad(a, ((0, 0), (0, Mp - M), (0, 0)))
    b = _subpixel_weights(w, k, Np)

    nm = Mp // tm
    y = pl.pallas_call(
        _mm_sigmoid_kernel,
        out_shape=jax.ShapeDtypeStruct((4, Mp, Np), jnp.float32),
        grid_spec=pltpu.PrefetchScalarGridSpec(
            num_scalar_prefetch=0,
            grid=(4, nm),
            in_specs=[pl.BlockSpec((1, tm, K), lambda p, m: (p, m, 0)),
                      pl.BlockSpec((1, K, Np), lambda p, m: (p, 0, 0))],
            out_specs=pl.BlockSpec((1, tm, Np), lambda p, m: (p, m, 0))),
        compiler_params=pltpu.CompilerParams(
            dimension_semantics=("parallel", "parallel")),
    )(a, b)

    y = y[:, :M, :Cout]
    return _interleave_phases(y, N, H, W, Cout, Hout, Wout)


# ----------------------------------------------------------------------------
# Generator_CNN
# ----------------------------------------------------------------------------
def init_params(key):
    ngf = NGF
    params = {"heads": [], "main": {}}
    keys = jax.random.split(key, 3 * N_HEADS + 8)
    ki = 0
    for _ in range(N_HEADS):
        w = 0.02 * jax.random.normal(keys[ki], (LATENT_DIM, ngf * 8, 4, 4), jnp.float32); ki += 1
        g = 1.0 + 0.02 * jax.random.normal(keys[ki], (ngf * 8,), jnp.float32); ki += 1
        b = jnp.zeros((ngf * 8,), jnp.float32); ki += 1
        params["heads"].append((w, g, b))
    m = params["main"]
    m["w1"] = 0.02 * jax.random.normal(keys[ki], (ngf * 8, ngf * 4, 3, 3), jnp.float32); ki += 1
    m["g1"] = 1.0 + 0.02 * jax.random.normal(keys[ki], (ngf * 4,), jnp.float32); ki += 1
    m["b1"] = jnp.zeros((ngf * 4,), jnp.float32)
    m["w2"] = 0.02 * jax.random.normal(keys[ki], (ngf * 4, ngf * 2, 4, 4), jnp.float32); ki += 1
    m["g2"] = 1.0 + 0.02 * jax.random.normal(keys[ki], (ngf * 2,), jnp.float32); ki += 1
    m["b2"] = jnp.zeros((ngf * 2,), jnp.float32)
    m["w3"] = 0.02 * jax.random.normal(keys[ki], (ngf * 2, 1, 4, 4), jnp.float32); ki += 1
    return params


def generator_forward(params, zn):
    """zn: (N, latent_dim, 1, 1) -> (N, 1, 28, 28)."""
    y = heads_forward(zn, params)                               # (N, 4, 4, 512)
    m = params["main"]
    y = convt_bn_relu(y, m["w1"], m["g1"], m["b1"], k=3)        # (N, 7, 7, 256)
    y = convt_bn_relu(y, m["w2"], m["g2"], m["b2"], k=4)        # (N, 14, 14, 128)
    y = convt_sigmoid(y, m["w3"], k=4)                          # (N, 28, 28, 1)
    return y.transpose(0, 3, 1, 2)                              # NCHW


if __name__ == "__main__":
    key = jax.random.PRNGKey(0)
    k_param, k_z = jax.random.split(key)
    params = init_params(k_param)

    batch = 2
    zn = jax.random.normal(k_z, (batch, LATENT_DIM, 1, 1), jnp.float32)

    fwd = jax.jit(generator_forward)
    out = jax.block_until_ready(fwd(params, zn))

    assert out.shape == (batch, 1, 28, 28), out.shape
    assert out.dtype == jnp.float32
    assert bool(jnp.all(jnp.isfinite(out)))
    assert bool(jnp.all((out >= 0.0) & (out <= 1.0)))           # sigmoid range
    print("KERNEL_OK")
</pallas_src>

<mosaic_0001>
module attributes {stable_mosaic.version = 11 : i64} {
  func.func @_head_matmul_kernel(%arg0: i32, %arg1: memref<1x8x16xbf16, #tpu.memory_space<vmem>>, %arg2: memref<1x16x8192xbf16, #tpu.memory_space<vmem>>, %arg3: memref<1x8x8192xf32, #tpu.memory_space<vmem>>) attributes {dimension_semantics = [#tpu.dimension_semantics<parallel>], iteration_bounds = array<i64: 2>, scalar_prefetch = 0 : i64, scratch_operands = 0 : i64, tpu.core_type = #tpu.core_type<tc>, window_params = [{transform_indices = @transform_0, window_bounds = array<i64: 1, 8, 16>}, {transform_indices = @transform_1, window_bounds = array<i64: 1, 16, 8192>}, {transform_indices = @transform_2, window_bounds = array<i64: 1, 8, 8192>}]} {
    %c0 = arith.constant 0 : index
    %c0_0 = arith.constant 0 : index
    %c0_1 = arith.constant 0 : index
    %0 = vector.load %arg1[%c0, %c0_0, %c0_1] : memref<1x8x16xbf16, #tpu.memory_space<vmem>>, vector<1x8x16xbf16>
    %1 = vector.shape_cast %0 : vector<1x8x16xbf16> to vector<8x16xbf16>
    %c0_2 = arith.constant 0 : index
    %c0_3 = arith.constant 0 : index
    %c0_4 = arith.constant 0 : index
    %2 = vector.load %arg2[%c0_2, %c0_3, %c0_4] : memref<1x16x8192xbf16, #tpu.memory_space<vmem>>, vector<1x16x8192xbf16>
    %3 = vector.shape_cast %2 : vector<1x16x8192xbf16> to vector<16x8192xbf16>
    %cst = arith.constant dense<0.000000e+00> : vector<8x8192xf32>
    %4 = tpu.matmul %1, %3, %cst {dimension_numbers = #tpu.dot_dimension_numbers<[1], [0], [0], [1], [0, 0, 1, 1], [], []>} : vector<8x16xbf16>, vector<16x8192xbf16>, vector<8x8192xf32> -> vector<8x8192xf32>
    %c0_5 = arith.constant 0 : index
    %c0_6 = arith.constant 0 : index
    %c0_7 = arith.constant 0 : index
    %5 = vector.load %arg3[%c0_5, %c0_6, %c0_7] : memref<1x8x8192xf32, #tpu.memory_space<vmem>>, vector<1x8x8192xf32>
    %6 = vector.shape_cast %5 : vector<1x8x8192xf32> to vector<8x8192xf32>
    %7 = vector.shape_cast %4 : vector<8x8192xf32> to vector<1x8x8192xf32>
    tpu.vector_store %arg3[%c0_5, %c0_6, %c0_7], %7 {strides = array<i32>} : memref<1x8x8192xf32, #tpu.memory_space<vmem>>, vector<1x8x8192xf32>,
    return
  }
  func.func @transform_0(%arg0: i32) -> (i32, i32, i32) {
    %c0_i32 = arith.constant 0 : i32
    %c0_i32_0 = arith.constant 0 : i32
    %c0_i32_1 = arith.constant 0 : i32
    return %arg0, %c0_i32, %c0_i32_0 : i32, i32, i32
  }
  func.func @transform_1(%arg0: i32) -> (i32, i32, i32) {
    %c0_i32 = arith.constant 0 : i32
    %c0_i32_0 = arith.constant 0 : i32
    %c0_i32_1 = arith.constant 0 : i32
    return %arg0, %c0_i32, %c0_i32_0 : i32, i32, i32
  }
  func.func @transform_2(%arg0: i32) -> (i32, i32, i32) {
    %c0_i32 = arith.constant 0 : i32
    %c0_i32_0 = arith.constant 0 : i32
    %c0_i32_1 = arith.constant 0 : i32
    return %arg0, %c0_i32, %c0_i32_0 : i32, i32, i32
  }
}

module attributes {stable_mosaic.version = 11 : i64} {
  func.func @_head_bn_relu_kernel(%arg0: i32, %arg1: memref<2xi32, #tpu.memory_space<smem>>, %arg2: memref<1x128x512xf32, #tpu.memory_space<vmem>>, %arg3: memref<1x1x512xf32, #tpu.memory_space<vmem>>, %arg4: memref<1x1x512xf32, #tpu.memory_space<vmem>>, %arg5: memref<1x128x512xf32, #tpu.memory_space<vmem>>) attributes {dimension_semantics = [#tpu.dimension_semantics<parallel>], iteration_bounds = array<i64: 2>, scalar_prefetch = 1 : i64, scratch_operands = 0 : i64, tpu.core_type = #tpu.core_type<tc>, window_params = [{transform_indices = @transform_0, window_bounds = array<i64: 1, 128, 512>}, {transform_indices = @transform_1, window_bounds = array<i64: 1, 1, 512>}, {transform_indices = @transform_2, window_bounds = array<i64: 1, 1, 512>}, {transform_indices = @transform_3, window_bounds = array<i64: 1, 128, 512>}]} {
    %c0 = arith.constant 0 : index
    %c0_0 = arith.constant 0 : index
    %c0_1 = arith.constant 0 : index
    %0 = vector.load %arg2[%c0, %c0_0, %c0_1] : memref<1x128x512xf32, #tpu.memory_space<vmem>>, vector<1x128x512xf32>
    %1 = vector.shape_cast %0 : vector<1x128x512xf32> to vector<128x512xf32>
    %2 = arith.index_cast %arg0 : i32 to index
    %3 = memref.load %arg1[%2] : memref<2xi32, #tpu.memory_space<smem>>
    %4 = arith.sitofp %3 : i32 to f32
    %cst = arith.constant dense<0.000000e+00> : vector<512xf32>
    %5 = vector.multi_reduction <add>, %1, %cst [0] : vector<128x512xf32> to vector<512xf32>
    %6 = vector.shape_cast %5 : vector<512xf32> to vector<1x512xf32>
    %7 = arith.mulf %1, %1 : vector<128x512xf32>
    %cst_2 = arith.constant dense<0.000000e+00> : vector<512xf32>
    %8 = vector.multi_reduction <add>, %7, %cst_2 [0] : vector<128x512xf32> to vector<512xf32>
    %9 = vector.shape_cast %8 : vector<512xf32> to vector<1x512xf32>
    %10 = vector.broadcast %4 : f32 to vector<1x512xf32>
    %11 = arith.divf %6, %10 : vector<1x512xf32>
    %12 = vector.broadcast %4 : f32 to vector<1x512xf32>
    %13 = arith.divf %9, %12 : vector<1x512xf32>
    %14 = arith.mulf %11, %11 : vector<1x512xf32>
    %15 = arith.subf %13, %14 : vector<1x512xf32>
    %cst_3 = arith.constant 0.000000e+00 : f32
    %16 = vector.broadcast %cst_3 : f32 to vector<1x512xf32>
    %17 = arith.maximumf %15, %16 : vector<1x512xf32>
    %c0_4 = arith.constant 0 : index
    %c0_5 = arith.constant 0 : index
    %c0_6 = arith.constant 0 : index
    %18 = vector.load %arg3[%c0_4, %c0_5, %c0_6] : memref<1x1x512xf32, #tpu.memory_space<vmem>>, vector<1x1x512xf32>
    %19 = vector.shape_cast %18 : vector<1x1x512xf32> to vector<1x512xf32>
    %cst_7 = arith.constant 9.99999974E-6 : f32
    %20 = vector.broadcast %cst_7 : f32 to vector<1x512xf32>
    %21 = arith.addf %17, %20 : vector<1x512xf32>
    %22 = math.rsqrt %21 : vector<1x512xf32>
    %23 = arith.mulf %19, %22 : vector<1x512xf32>
    %c0_8 = arith.constant 0 : index
    %c0_9 = arith.constant 0 : index
    %c0_10 = arith.constant 0 : index
    %24 = vector.load %arg4[%c0_8, %c0_9, %c0_10] : memref<1x1x512xf32, #tpu.memory_space<vmem>>, vector<1x1x512xf32>
    %25 = vector.shape_cast %24 : vector<1x1x512xf32> to vector<1x512xf32>
    %26 = arith.mulf %11, %23 : vector<1x512xf32>
    %27 = arith.subf %25, %26 : vector<1x512xf32>
    %28 = vector.broadcast %23 : vector<1x512xf32> to vector<128x512xf32>
    %29 = arith.mulf %1, %28 : vector<128x512xf32>
    %30 = vector.broadcast %27 : vector<1x512xf32> to vector<128x512xf32>
    %31 = arith.addf %29, %30 : vector<128x512xf32>
    %cst_11 = arith.constant 0.000000e+00 : f32
    %32 = vector.broadcast %cst_11 : f32 to vector<128x512xf32>
    %33 = arith.maximumf %31, %32 : vector<128x512xf32>
    %c0_12 = arith.constant 0 : index
    %c0_13 = arith.constant 0 : index
    %c0_14 = arith.constant 0 : index
    %34 = vector.load %arg5[%c0_12, %c0_13, %c0_14] : memref<1x128x512xf32, #tpu.memory_space<vmem>>, vector<1x128x512xf32>
    %35 = vector.shape_cast %34 : vector<1x128x512xf32> to vector<128x512xf32>
    %36 = vector.shape_cast %33 : vector<128x512xf32> to vector<1x128x512xf32>
    tpu.vector_store %arg5[%c0_12, %c0_13, %c0_14], %36 {strides = array<i32>} : memref<1x128x512xf32, #tpu.memory_space<vmem>>, vector<1x128x512xf32>,
    return
  }
  func.func @transform_0(%arg0: i32, %arg1: memref<2xi32, #tpu.memory_space<smem>>) -> (i32, i32, i32) {
    %c0_i32 = arith.constant 0 : i32
    %c0_i32_0 = arith.constant 0 : i32
    %c0_i32_1 = arith.constant 0 : i32
    return %arg0, %c0_i32, %c0_i32_0 : i32, i32, i32
  }
  func.func @transform_1(%arg0: i32, %arg1: memref<2xi32, #tpu.memory_space<smem>>) -> (i32, i32, i32) {
    %c0_i32 = arith.constant 0 : i32
    %c0_i32_0 = arith.constant 0 : i32
    %c0_i32_1 = arith.constant 0 : i32
    return %arg0, %c0_i32, %c0_i32_0 : i32, i32, i32
  }
  func.func @transform_2(%arg0: i32, %arg1: memref<2xi32, #tpu.memory_space<smem>>) -> (i32, i32, i32) {
    %c0_i32 = arith.constant 0 : i32
    %c0_i32_0 = arith.constant 0 : i32
    %c0_i32_1 = arith.constant 0 : i32
    return %arg0, %c0_i32, %c0_i32_0 : i32, i32, i32
  }
  func.func @transform_3(%arg0: i32, %arg1: memref<2xi32, #tpu.memory_space<smem>>) -> (i32, i32, i32) {
    %c0_i32 = arith.constant 0 : i32
    %c0_i32_0 = arith.constant 0 : i32
    %c0_i32_1 = arith.constant 0 : i32
    return %arg0, %c0_i32, %c0_i32_0 : i32, i32, i32
  }
}

module attributes {stable_mosaic.version = 11 : i64} {
  func.func @_mm_bn_relu_kernel(%arg0: i32, %arg1: i32, %arg2: i32, %arg3: memref<1x32x2048xbf16, #tpu.memory_space<vmem>>, %arg4: memref<1x2048x128xbf16, #tpu.memory_space<vmem>>, %arg5: memref<1x128xf32, #tpu.memory_space<vmem>>, %arg6: memref<1x128xf32, #tpu.memory_space<vmem>>, %arg7: memref<128x128xf32, #tpu.memory_space<vmem>>, %arg8: memref<1x128xf32, #tpu.memory_space<vmem>>, %arg9: memref<1x128xf32, #tpu.memory_space<vmem>>) attributes {dimension_semantics = [#tpu.dimension_semantics<parallel>, #tpu.dimension_semantics<arbitrary>, #tpu.dimension_semantics<arbitrary>], iteration_bounds = array<i64: 2, 4, 1>, scalar_prefetch = 0 : i64, scratch_operands = 2 : i64, tpu.core_type = #tpu.core_type<tc>, window_params = [{transform_indices = @transform_0, window_bounds = array<i64: 1, 32, 2048>}, {transform_indices = @transform_1, window_bounds = array<i64: 1, 2048, 128>}, {transform_indices = @transform_2, window_bounds = array<i64: 1, 128>}, {transform_indices = @transform_3, window_bounds = array<i64: 1, 128>}, {transform_indices = @transform_4, window_bounds = array<i64: 128, 128>}]} {
    %c0 = arith.constant 0 : index
    %c0_0 = arith.constant 0 : index
    %c0_1 = arith.constant 0 : index
    %0 = vector.load %arg3[%c0, %c0_0, %c0_1] : memref<1x32x2048xbf16, #tpu.memory_space<vmem>>, vector<1x32x2048xbf16>
    %1 = vector.shape_cast %0 : vector<1x32x2048xbf16> to vector<32x2048xbf16>
    %c0_2 = arith.constant 0 : index
    %c0_3 = arith.constant 0 : index
    %c0_4 = arith.constant 0 : index
    %2 = vector.load %arg4[%c0_2, %c0_3, %c0_4] : memref<1x2048x128xbf16, #tpu.memory_space<vmem>>, vector<1x2048x128xbf16>
    %3 = vector.shape_cast %2 : vector<1x2048x128xbf16> to vector<2048x128xbf16>
    %cst = arith.constant dense<0.000000e+00> : vector<32x128xf32>
    %4 = tpu.matmul %1, %3, %cst {dimension_numbers = #tpu.dot_dimension_numbers<[1], [0], [0], [1], [0, 0, 1, 1], [], []>} : vector<32x2048xbf16>, vector<2048x128xbf16>, vector<32x128xf32> -> vector<32x128xf32>
    %c1_i32 = arith.constant 1 : i32
    %5 = arith.muli %arg1, %c1_i32 : i32
    %6 = arith.addi %5, %arg2 : i32
    %c32_i32 = arith.constant 32 : i32
    %7 = arith.muli %6, %c32_i32 : i32
    %8 = tpu.assume_multiple %7, 8 : i32
    %9 = arith.index_cast %8 : i32 to index
    %c0_5 = arith.constant 0 : index
    %10 = vector.load %arg7[%9, %c0_5] : memref<128x128xf32, #tpu.memory_space<vmem>>, vector<32x128xf32>
    tpu.vector_store %arg7[%9, %c0_5], %4 {strides = array<i32>} : memref<128x128xf32, #tpu.memory_space<vmem>>, vector<32x128xf32>,
    %c0_i32 = arith.constant 0 : i32
    %11 = arith.cmpi eq, %arg1, %c0_i32 : i32
    %c0_i32_6 = arith.constant 0 : i32
    %12 = arith.cmpi eq, %arg2, %c0_i32_6 : i32
    %13 = arith.andi %11, %12 : i1
    %14 = arith.extui %13 : i1 to i32
    %c0_i32_7 = arith.constant 0 : i32
    %15 = arith.cmpi ne, %14, %c0_i32_7 : i32
    scf.if %15 {
      %cst_20 = arith.constant 0.000000e+00 : f32
      %32 = vector.broadcast %cst_20 : f32 to vector<1x128xf32>
      %c0_21 = arith.constant 0 : index
      %c0_22 = arith.constant 0 : index
      %33 = vector.load %arg8[%c0_21, %c0_22] : memref<1x128xf32, #tpu.memory_space<vmem>>, vector<1x128xf32>
      tpu.vector_store %arg8[%c0_21, %c0_22], %32 {strides = array<i32>} : memref<1x128xf32, #tpu.memory_space<vmem>>, vector<1x128xf32>,
      %cst_23 = arith.constant 0.000000e+00 : f32
      %34 = vector.broadcast %cst_23 : f32 to vector<1x128xf32>
      %c0_24 = arith.constant 0 : index
      %c0_25 = arith.constant 0 : index
      %35 = vector.load %arg9[%c0_24, %c0_25] : memref<1x128xf32, #tpu.memory_space<vmem>>, vector<1x128xf32>
      tpu.vector_store %arg9[%c0_24, %c0_25], %34 {strides = array<i32>} : memref<1x128xf32, #tpu.memory_space<vmem>>, vector<1x128xf32>,
    } else {
    }
    %c0_8 = arith.constant 0 : index
    %c0_9 = arith.constant 0 : index
    %16 = vector.load %arg8[%c0_8, %c0_9] : memref<1x128xf32, #tpu.memory_space<vmem>>, vector<1x128xf32>
    %cst_10 = arith.constant dense<0.000000e+00> : vector<128xf32>
    %17 = vector.multi_reduction <add>, %4, %cst_10 [0] : vector<32x128xf32> to vector<128xf32>
    %18 = vector.shape_cast %17 : vector<128xf32> to vector<1x128xf32>
    %19 = arith.addf %16, %18 : vector<1x128xf32>
    %c0_11 = arith.constant 0 : index
    %c0_12 = arith.constant 0 : index
    %20 = vector.load %arg8[%c0_11, %c0_12] : memref<1x128xf32, #tpu.memory_space<vmem>>, vector<1x128xf32>
    tpu.vector_store %arg8[%c0_11, %c0_12], %19 {strides = array<i32>} : memref<1x128xf32, #tpu.memory_space<vmem>>, vector<1x128xf32>,
    %c0_13 = arith.constant 0 : index
    %c0_14 = arith.constant 0 : index
    %21 = vector.load %arg9[%c0_13, %c0_14] : memref<1x128xf32, #tpu.memory_space<vmem>>, vector<1x128xf32>
    %22 = arith.mulf %4, %4 : vector<32x128xf32>
    %cst_15 = arith.constant dense<0.000000e+00> : vector<128xf32>
    %23 = vector.multi_reduction <add>, %22, %cst_15 [0] : vector<32x128xf32> to vector<128xf32>
    %24 = vector.shape_cast %23 : vector<128xf32> to vector<1x128xf32>
    %25 = arith.addf %21, %24 : vector<1x128xf32>
    %c0_16 = arith.constant 0 : index
    %c0_17 = arith.constant 0 : index
    %26 = vector.load %arg9[%c0_16, %c0_17] : memref<1x128xf32, #tpu.memory_space<vmem>>, vector<1x128xf32>
    tpu.vector_store %arg9[%c0_16, %c0_17], %25 {strides = array<i32>} : memref<1x128xf32, #tpu.memory_space<vmem>>, vector<1x128xf32>,
    %c3_i32 = arith.constant 3 : i32
    %27 = arith.cmpi eq, %arg1, %c3_i32 : i32
    %c0_i32_18 = arith.constant 0 : i32
    %28 = arith.cmpi eq, %arg2, %c0_i32_18 : i32
    %29 = arith.andi %27, %28 : i1
    %30 = arith.extui %29 : i1 to i32
    %c0_i32_19 = arith.constant 0 : i32
    %31 = arith.cmpi ne, %30, %c0_i32_19 : i32
    scf.if %31 {
      %c0_20 = arith.constant 0 : index
      %c0_21 = arith.constant 0 : index
      %32 = vector.load %arg8[%c0_20, %c0_21] : memref<1x128xf32, #tpu.memory_space<vmem>>, vector<1x128xf32>
      %cst_22 = arith.constant 9.800000e+01 : f32
      %33 = vector.broadcast %cst_22 : f32 to vector<1x128xf32>
      %34 = arith.divf %32, %33 : vector<1x128xf32>
      %c0_23 = arith.constant 0 : index
      %c0_24 = arith.constant 0 : index
      %35 = vector.load %arg9[%c0_23, %c0_24] : memref<1x128xf32, #tpu.memory_space<vmem>>, vector<1x128xf32>
      %cst_25 = arith.constant 9.800000e+01 : f32
      %36 = vector.broadcast %cst_25 : f32 to vector<1x128xf32>
      %37 = arith.divf %35, %36 : vector<1x128xf32>
      %38 = arith.mulf %34, %34 : vector<1x128xf32>
      %39 = arith.subf %37, %38 : vector<1x128xf32>
      %cst_26 = arith.constant 0.000000e+00 : f32
      %40 = vector.broadcast %cst_26 : f32 to vector<1x128xf32>
      %41 = arith.maximumf %39, %40 : vector<1x128xf32>
      %c0_27 = arith.constant 0 : index
      %c0_28 = arith.constant 0 : index
      %42 = vector.load %arg5[%c0_27, %c0_28] : memref<1x128xf32, #tpu.memory_space<vmem>>, vector<1x128xf32>
      %cst_29 = arith.constant 9.99999974E-6 : f32
      %43 = vector.broadcast %cst_29 : f32 to vector<1x128xf32>
      %44 = arith.addf %41, %43 : vector<1x128xf32>
      %45 = math.rsqrt %44 : vector<1x128xf32>
      %46 = arith.mulf %42, %45 : vector<1x128xf32>
      %c0_30 = arith.constant 0 : index
      %c0_31 = arith.constant 0 : index
      %47 = vector.load %arg6[%c0_30, %c0_31] : memref<1x128xf32, #tpu.memory_space<vmem>>, vector<1x128xf32>
      %48 = arith.mulf %34, %46 : vector<1x128xf32>
      %49 = arith.subf %47, %48 : vector<1x128xf32>
      %c0_32 = arith.constant 0 : index
      %c0_33 = arith.constant 0 : index
      %50 = vector.load %arg7[%c0_32, %c0_33] : memref<128x128xf32, #tpu.memory_space<vmem>>, vector<128x128xf32>
      %51 = vector.broadcast %46 : vector<1x128xf32> to vector<128x128xf32>
      %52 = arith.mulf %50, %51 : vector<128x128xf32>
      %53 = vector.broadcast %49 : vector<1x128xf32> to vector<128x128xf32>
      %54 = arith.addf %52, %53 : vector<128x128xf32>
      %cst_34 = arith.constant 0.000000e+00 : f32
      %55 = vector.broadcast %cst_34 : f32 to vector<128x128xf32>
      %56 = arith.maximumf %54, %55 : vector<128x128xf32>
      %c0_35 = arith.constant 0 : index
      %c0_36 = arith.constant 0 : index
      %57 = vector.load %arg7[%c0_35, %c0_36] : memref<128x128xf32, #tpu.memory_space<vmem>>, vector<128x128xf32>
      tpu.vector_store %arg7[%c0_35, %c0_36], %56 {strides = array<i32>} : memref<128x128xf32, #tpu.memory_space<vmem>>, vector<128x128xf32>,
    } else {
    }
    return
  }
  func.func @transform_0(%arg0: i32, %arg1: i32, %arg2: i32) -> (i32, i32, i32) {
    %c0_i32 = arith.constant 0 : i32
    %c0_i32_0 = arith.constant 0 : i32
    return %arg1, %arg2, %c0_i32 : i32, i32, i32
  }
  func.func @transform_1(%arg0: i32, %arg1: i32, %arg2: i32) -> (i32, i32, i32) {
    %c0_i32 = arith.constant 0 : i32
    %c0_i32_0 = arith.constant 0 : i32
    return %arg1, %c0_i32, %arg0 : i32, i32, i32
  }
  func.func @transform_2(%arg0: i32, %arg1: i32, %arg2: i32) -> (i32, i32) {
    %c0_i32 = arith.constant 0 : i32
    %c0_i32_0 = arith.constant 0 : i32
    return %c0_i32, %arg0 : i32, i32
  }
  func.func @transform_3(%arg0: i32, %arg1: i32, %arg2: i32) -> (i32, i32) {
    %c0_i32 = arith.constant 0 : i32
    %c0_i32_0 = arith.constant 0 : i32
    return %c0_i32, %arg0 : i32, i32
  }
  func.func @transform_4(%arg0: i32, %arg1: i32, %arg2: i32) -> (i32, i32) {
    %c0_i32 = arith.constant 0 : i32
    %c0_i32_0 = arith.constant 0 : i32
    return %c0_i32, %arg0 : i32, i32
  }
}

module attributes {stable_mosaic.version = 11 : i64} {
  func.func @_mm_bn_relu_kernel(%arg0: i32, %arg1: i32, %arg2: i32, %arg3: memref<1x104x1024xbf16, #tpu.memory_space<vmem>>, %arg4: memref<1x1024x128xbf16, #tpu.memory_space<vmem>>, %arg5: memref<1x128xf32, #tpu.memory_space<vmem>>, %arg6: memref<1x128xf32, #tpu.memory_space<vmem>>, %arg7: memref<416x128xf32, #tpu.memory_space<vmem>>, %arg8: memref<1x128xf32, #tpu.memory_space<vmem>>, %arg9: memref<1x128xf32, #tpu.memory_space<vmem>>) attributes {dimension_semantics = [#tpu.dimension_semantics<parallel>, #tpu.dimension_semantics<arbitrary>, #tpu.dimension_semantics<arbitrary>], iteration_bounds = array<i64: 1, 4, 1>, scalar_prefetch = 0 : i64, scratch_operands = 2 : i64, tpu.core_type = #tpu.core_type<tc>, window_params = [{transform_indices = @transform_0, window_bounds = array<i64: 1, 104, 1024>}, {transform_indices = @transform_1, window_bounds = array<i64: 1, 1024, 128>}, {transform_indices = @transform_2, window_bounds = array<i64: 1, 128>}, {transform_indices = @transform_3, window_bounds = array<i64: 1, 128>}, {transform_indices = @transform_4, window_bounds = array<i64: 416, 128>}]} {
    %c0 = arith.constant 0 : index
    %c0_0 = arith.constant 0 : index
    %c0_1 = arith.constant 0 : index
    %0 = vector.load %arg3[%c0, %c0_0, %c0_1] : memref<1x104x1024xbf16, #tpu.memory_space<vmem>>, vector<1x104x1024xbf16>
    %1 = vector.shape_cast %0 : vector<1x104x1024xbf16> to vector<104x1024xbf16>
    %c0_2 = arith.constant 0 : index
    %c0_3 = arith.constant 0 : index
    %c0_4 = arith.constant 0 : index
    %2 = vector.load %arg4[%c0_2, %c0_3, %c0_4] : memref<1x1024x128xbf16, #tpu.memory_space<vmem>>, vector<1x1024x128xbf16>
    %3 = vector.shape_cast %2 : vector<1x1024x128xbf16> to vector<1024x128xbf16>
    %cst = arith.constant dense<0.000000e+00> : vector<104x128xf32>
    %4 = tpu.matmul %1, %3, %cst {dimension_numbers = #tpu.dot_dimension_numbers<[1], [0], [0], [1], [0, 0, 1, 1], [], []>} : vector<104x1024xbf16>, vector<1024x128xbf16>, vector<104x128xf32> -> vector<104x128xf32>
    %c1_i32 = arith.constant 1 : i32
    %5 = arith.muli %arg1, %c1_i32 : i32
    %6 = arith.addi %5, %arg2 : i32
    %c104_i32 = arith.constant 104 : i32
    %7 = arith.muli %6, %c104_i32 : i32
    %8 = tpu.assume_multiple %7, 8 : i32
    %9 = arith.index_cast %8 : i32 to index
    %c0_5 = arith.constant 0 : index
    %10 = vector.load %arg7[%9, %c0_5] : memref<416x128xf32, #tpu.memory_space<vmem>>, vector<104x128xf32>
    tpu.vector_store %arg7[%9, %c0_5], %4 {strides = array<i32>} : memref<416x128xf32, #tpu.memory_space<vmem>>, vector<104x128xf32>,
    %c0_i32 = arith.constant 0 : i32
    %11 = arith.cmpi eq, %arg1, %c0_i32 : i32
    %c0_i32_6 = arith.constant 0 : i32
    %12 = arith.cmpi eq, %arg2, %c0_i32_6 : i32
    %13 = arith.andi %11, %12 : i1
    %14 = arith.extui %13 : i1 to i32
    %c0_i32_7 = arith.constant 0 : i32
    %15 = arith.cmpi ne, %14, %c0_i32_7 : i32
    scf.if %15 {
      %cst_20 = arith.constant 0.000000e+00 : f32
      %32 = vector.broadcast %cst_20 : f32 to vector<1x128xf32>
      %c0_21 = arith.constant 0 : index
      %c0_22 = arith.constant 0 : index
      %33 = vector.load %arg8[%c0_21, %c0_22] : memref<1x128xf32, #tpu.memory_space<vmem>>, vector<1x128xf32>
      tpu.vector_store %arg8[%c0_21, %c0_22], %32 {strides = array<i32>} : memref<1x128xf32, #tpu.memory_space<vmem>>, vector<1x128xf32>,
      %cst_23 = arith.constant 0.000000e+00 : f32
      %34 = vector.broadcast %cst_23 : f32 to vector<1x128xf32>
      %c0_24 = arith.constant 0 : index
      %c0_25 = arith.constant 0 : index
      %35 = vector.load %arg9[%c0_24, %c0_25] : memref<1x128xf32, #tpu.memory_space<vmem>>, vector<1x128xf32>
      tpu.vector_store %arg9[%c0_24, %c0_25], %34 {strides = array<i32>} : memref<1x128xf32, #tpu.memory_space<vmem>>, vector<1x128xf32>,
    } else {
    }
    %c0_8 = arith.constant 0 : index
    %c0_9 = arith.constant 0 : index
    %16 = vector.load %arg8[%c0_8, %c0_9] : memref<1x128xf32, #tpu.memory_space<vmem>>, vector<1x128xf32>
    %cst_10 = arith.constant dense<0.000000e+00> : vector<128xf32>
    %17 = vector.multi_reduction <add>, %4, %cst_10 [0] : vector<104x128xf32> to vector<128xf32>
    %18 = vector.shape_cast %17 : vector<128xf32> to vector<1x128xf32>
    %19 = arith.addf %16, %18 : vector<1x128xf32>
    %c0_11 = arith.constant 0 : index
    %c0_12 = arith.constant 0 : index
    %20 = vector.load %arg8[%c0_11, %c0_12] : memref<1x128xf32, #tpu.memory_space<vmem>>, vector<1x128xf32>
    tpu.vector_store %arg8[%c0_11, %c0_12], %19 {strides = array<i32>} : memref<1x128xf32, #tpu.memory_space<vmem>>, vector<1x128xf32>,
    %c0_13 = arith.constant 0 : index
    %c0_14 = arith.constant 0 : index
    %21 = vector.load %arg9[%c0_13, %c0_14] : memref<1x128xf32, #tpu.memory_space<vmem>>, vector<1x128xf32>
    %22 = arith.mulf %4, %4 : vector<104x128xf32>
    %cst_15 = arith.constant dense<0.000000e+00> : vector<128xf32>
    %23 = vector.multi_reduction <add>, %22, %cst_15 [0] : vector<104x128xf32> to vector<128xf32>
    %24 = vector.shape_cast %23 : vector<128xf32> to vector<1x128xf32>
    %25 = arith.addf %21, %24 : vector<1x128xf32>
    %c0_16 = arith.constant 0 : index
    %c0_17 = arith.constant 0 : index
    %26 = vector.load %arg9[%c0_16, %c0_17] : memref<1x128xf32, #tpu.memory_space<vmem>>, vector<1x128xf32>
    tpu.vector_store %arg9[%c0_16, %c0_17], %25 {strides = array<i32>} : memref<1x128xf32, #tpu.memory_space<vmem>>, vector<1x128xf32>,
    %c3_i32 = arith.constant 3 : i32
    %27 = arith.cmpi eq, %arg1, %c3_i32 : i32
    %c0_i32_18 = arith.constant 0 : i32
    %28 = arith.cmpi eq, %arg2, %c0_i32_18 : i32
    %29 = arith.andi %27, %28 : i1
    %30 = arith.extui %29 : i1 to i32
    %c0_i32_19 = arith.constant 0 : i32
    %31 = arith.cmpi ne, %30, %c0_i32_19 : i32
    scf.if %31 {
      %c0_20 = arith.constant 0 : index
      %c0_21 = arith.constant 0 : index
      %32 = vector.load %arg8[%c0_20, %c0_21] : memref<1x128xf32, #tpu.memory_space<vmem>>, vector<1x128xf32>
      %cst_22 = arith.constant 3.920000e+02 : f32
      %33 = vector.broadcast %cst_22 : f32 to vector<1x128xf32>
      %34 = arith.divf %32, %33 : vector<1x128xf32>
      %c0_23 = arith.constant 0 : index
      %c0_24 = arith.constant 0 : index
      %35 = vector.load %arg9[%c0_23, %c0_24] : memref<1x128xf32, #tpu.memory_space<vmem>>, vector<1x128xf32>
      %cst_25 = arith.constant 3.920000e+02 : f32
      %36 = vector.broadcast %cst_25 : f32 to vector<1x128xf32>
      %37 = arith.divf %35, %36 : vector<1x128xf32>
      %38 = arith.mulf %34, %34 : vector<1x128xf32>
      %39 = arith.subf %37, %38 : vector<1x128xf32>
      %cst_26 = arith.constant 0.000000e+00 : f32
      %40 = vector.broadcast %cst_26 : f32 to vector<1x128xf32>
      %41 = arith.maximumf %39, %40 : vector<1x128xf32>
      %c0_27 = arith.constant 0 : index
      %c0_28 = arith.constant 0 : index
      %42 = vector.load %arg5[%c0_27, %c0_28] : memref<1x128xf32, #tpu.memory_space<vmem>>, vector<1x128xf32>
      %cst_29 = arith.constant 9.99999974E-6 : f32
      %43 = vector.broadcast %cst_29 : f32 to vector<1x128xf32>
      %44 = arith.addf %41, %43 : vector<1x128xf32>
      %45 = math.rsqrt %44 : vector<1x128xf32>
      %46 = arith.mulf %42, %45 : vector<1x128xf32>
      %c0_30 = arith.constant 0 : index
      %c0_31 = arith.constant 0 : index
      %47 = vector.load %arg6[%c0_30, %c0_31] : memref<1x128xf32, #tpu.memory_space<vmem>>, vector<1x128xf32>
      %48 = arith.mulf %34, %46 : vector<1x128xf32>
      %49 = arith.subf %47, %48 : vector<1x128xf32>
      %c0_32 = arith.constant 0 : index
      %c0_33 = arith.constant 0 : index
      %50 = vector.load %arg7[%c0_32, %c0_33] : memref<416x128xf32, #tpu.memory_space<vmem>>, vector<416x128xf32>
      %51 = vector.broadcast %46 : vector<1x128xf32> to vector<416x128xf32>
      %52 = arith.mulf %50, %51 : vector<416x128xf32>
      %53 = vector.broadcast %49 : vector<1x128xf32> to vector<416x128xf32>
      %54 = arith.addf %52, %53 : vector<416x128xf32>
      %cst_34 = arith.constant 0.000000e+00 : f32
      %55 = vector.broadcast %cst_34 : f32 to vector<416x128xf32>
      %56 = arith.maximumf %54, %55 : vector<416x128xf32>
      %c0_35 = arith.constant 0 : index
      %c0_36 = arith.constant 0 : index
      %57 = vector.load %arg7[%c0_35, %c0_36] : memref<416x128xf32, #tpu.memory_space<vmem>>, vector<416x128xf32>
      tpu.vector_store %arg7[%c0_35, %c0_36], %56 {strides = array<i32>} : memref<416x128xf32, #tpu.memory_space<vmem>>, vector<416x128xf32>,
    } else {
    }
    return
  }
  func.func @transform_0(%arg0: i32, %arg1: i32, %arg2: i32) -> (i32, i32, i32) {
    %c0_i32 = arith.constant 0 : i32
    %c0_i32_0 = arith.constant 0 : i32
    return %arg1, %arg2, %c0_i32 : i32, i32, i32
  }
  func.func @transform_1(%arg0: i32, %arg1: i32, %arg2: i32) -> (i32, i32, i32) {
    %c0_i32 = arith.constant 0 : i32
    %c0_i32_0 = arith.constant 0 : i32
    return %arg1, %c0_i32, %arg0 : i32, i32, i32
  }
  func.func @transform_2(%arg0: i32, %arg1: i32, %arg2: i32) -> (i32, i32) {
    %c0_i32 = arith.constant 0 : i32
    %c0_i32_0 = arith.constant 0 : i32
    return %c0_i32, %arg0 : i32, i32
  }
  func.func @transform_3(%arg0: i32, %arg1: i32, %arg2: i32) -> (i32, i32) {
    %c0_i32 = arith.constant 0 : i32
    %c0_i32_0 = arith.constant 0 : i32
    return %c0_i32, %arg0 : i32, i32
  }
  func.func @transform_4(%arg0: i32, %arg1: i32, %arg2: i32) -> (i32, i32) {
    %c0_i32 = arith.constant 0 : i32
    %c0_i32_0 = arith.constant 0 : i32
    return %c0_i32, %arg0 : i32, i32
  }
}

module attributes {stable_mosaic.version = 11 : i64} {
  func.func @_mm_sigmoid_kernel(%arg0: i32, %arg1: i32, %arg2: memref<1x392x512xbf16, #tpu.memory_space<vmem>>, %arg3: memref<1x512x128xbf16, #tpu.memory_space<vmem>>, %arg4: memref<1x392x128xf32, #tpu.memory_space<vmem>>) attributes {dimension_semantics = [#tpu.dimension_semantics<parallel>, #tpu.dimension_semantics<parallel>], iteration_bounds = array<i64: 4, 1>, scalar_prefetch = 0 : i64, scratch_operands = 0 : i64, tpu.core_type = #tpu.core_type<tc>, window_params = [{transform_indices = @transform_0, window_bounds = array<i64: 1, 392, 512>}, {transform_indices = @transform_1, window_bounds = array<i64: 1, 512, 128>}, {transform_indices = @transform_2, window_bounds = array<i64: 1, 392, 128>}]} {
    %c0 = arith.constant 0 : index
    %c0_0 = arith.constant 0 : index
    %c0_1 = arith.constant 0 : index
    %0 = vector.load %arg2[%c0, %c0_0, %c0_1] : memref<1x392x512xbf16, #tpu.memory_space<vmem>>, vector<1x392x512xbf16>
    %1 = vector.shape_cast %0 : vector<1x392x512xbf16> to vector<392x512xbf16>
    %c0_2 = arith.constant 0 : index
    %c0_3 = arith.constant 0 : index
    %c0_4 = arith.constant 0 : index
    %2 = vector.load %arg3[%c0_2, %c0_3, %c0_4] : memref<1x512x128xbf16, #tpu.memory_space<vmem>>, vector<1x512x128xbf16>
    %3 = vector.shape_cast %2 : vector<1x512x128xbf16> to vector<512x128xbf16>
    %cst = arith.constant dense<0.000000e+00> : vector<392x128xf32>
    %4 = tpu.matmul %1, %3, %cst {dimension_numbers = #tpu.dot_dimension_numbers<[1], [0], [0], [1], [0, 0, 1, 1], [], []>} : vector<392x512xbf16>, vector<512x128xbf16>, vector<392x128xf32> -> vector<392x128xf32>
    %cst_5 = arith.constant 0.000000e+00 : f32
    %5 = vector.broadcast %cst_5 : f32 to vector<392x128xf32>
    %6 = arith.subf %5, %4 : vector<392x128xf32>
    %7 = math.exp %6 : vector<392x128xf32>
    %cst_6 = arith.constant 1.000000e+00 : f32
    %8 = vector.broadcast %cst_6 : f32 to vector<392x128xf32>
    %9 = arith.addf %8, %7 : vector<392x128xf32>
    %cst_7 = arith.constant 1.000000e+00 : f32
    %10 = vector.broadcast %cst_7 : f32 to vector<392x128xf32>
    %11 = arith.divf %10, %9 : vector<392x128xf32>
    %c0_8 = arith.constant 0 : index
    %c0_9 = arith.constant 0 : index
    %c0_10 = arith.constant 0 : index
    %12 = vector.load %arg4[%c0_8, %c0_9, %c0_10] : memref<1x392x128xf32, #tpu.memory_space<vmem>>, vector<1x392x128xf32>
    %13 = vector.shape_cast %12 : vector<1x392x128xf32> to vector<392x128xf32>
    %14 = vector.shape_cast %11 : vector<392x128xf32> to vector<1x392x128xf32>
    tpu.vector_store %arg4[%c0_8, %c0_9, %c0_10], %14 {strides = array<i32>} : memref<1x392x128xf32, #tpu.memory_space<vmem>>, vector<1x392x128xf32>,
    return
  }
  func.func @transform_0(%arg0: i32, %arg1: i32) -> (i32, i32, i32) {
    %c0_i32 = arith.constant 0 : i32
    %c0_i32_0 = arith.constant 0 : i32
    return %arg0, %arg1, %c0_i32 : i32, i32, i32
  }
  func.func @transform_1(%arg0: i32, %arg1: i32) -> (i32, i32, i32) {
    %c0_i32 = arith.constant 0 : i32
    %c0_i32_0 = arith.constant 0 : i32
    %c0_i32_1 = arith.constant 0 : i32
    return %arg0, %c0_i32, %c0_i32_0 : i32, i32, i32
  }
  func.func @transform_2(%arg0: i32, %arg1: i32) -> (i32, i32, i32) {
    %c0_i32 = arith.constant 0 : i32
    %c0_i32_0 = arith.constant 0 : i32
    return %arg0, %arg1, %c0_i32 : i32, i32, i32
  }
}

</mosaic_0001>

<bundles_post_ra>
// kernel: generator_forward.5
= control target key start
LH: loop header
LB: loop body
LE: loop exit
PB: predicated region body
PF: predicated region fallthrough
CT: control target
= control target key end

     0   :  { %s2137_s9 = smov 0   ;;  %s2391_s0 = inlined_call_operand.vmem [shape: bf16[2,8,16], index: 0, kind: input, shape index: {}]   ;;  %s2392_s1 = inlined_call_operand.vmem [shape: bf16[10,16,8192], index: 1, kind: input, shape index: {}]   ;;  %s2393_s2 = inlined_call_operand.vmem [shape: f32[2,8,8192], index: 2, kind: output, shape index: {}]  }
   0x1 LB: > { %s1994_s10 = sadd.s32 4294967295, %s2119_s9   ;;  %p1998_p0 = scmp.ge.s32.totalorder %s2119_s9, 1  ;;  %s2119_s9 = sphi %s2137_s9, %s12_s9  }
   0x2   : > { %p121_p1 = scmp.lt.s32.totalorder %s2119_s9, 3 }
   0x4   : > { %p122_p2 = pnand %p1998_p0, %p121_p1 }
   0x5   : > { %p151_p3 = scmp.lt.s32.totalorder (!%p122_p2), %s1994_s10, 9  ;;  %p147_p4 = scmp.lt.s32.totalorder (!%p122_p2), %s1994_s10, 1 }
   0x6   : > { %125 = sbr.rel (%p122_p2) target bundleno = 342 (0x156), region = 28 }
   0xb   : > { %v2121_v0 = vmov 0   ;;  %s152_s11 = scalar_select %p151_p3, %s1994_s10, 9  ;;  %vm547_vm0 = vcmask 130048  }
   0xc   : > { %583 = vmatprep.mubr.bf16.mxu0 %v2121_v0  ;;  %624 = vmatprep.mubr.bf16.mxu1 %v2121_v0  ;;  %s2395_s10 = smov (!%p147_p4, %s1994_s10), 1 }
   0xd   : > { %s2102_s12 = sshll.u32 %s152_s11, 9  ;;  %s1999_s16 = sshll.u32 %s2395_s10, 2 }
   0xe   : > { %s2152_s15 = scalar_lea.vmem %s2392_s1, %s2102_s12  ;;  %s150_s19 = scalar_lea.vmem %s2391_s0, %s1999_s16 }
   0xf   : > { %v163_v1 = vld [vmem:[%s2152_s15] sm:$0xff]  ;;  %v164_v3 = vld [vmem:[%s2152_s15 + $0x8] sm:$0xff]  ;;  %v165_v7 = vld [vmem:[%s2152_s15 + $0x10] sm:$0xff]  ;;  %s2103_s20 = sshll.u32 %s2395_s10, 9 }
  0x10   : > { %v195_v2 = vld [vmem:[%s2152_s15 + $0x100] sm:$0xff]  ;;  %v196_v5 = vld [vmem:[%s2152_s15 + $0x108] sm:$0xff]  ;;  %v197_v10 = vld [vmem:[%s2152_s15 + $0x110] sm:$0xff]  ;;  %s2322_s23 = scalar_lea.vmem %s2393_s2, %s2103_s20 }
  0x11   : > { %v2005_v4 = vcombine.high %v163_v1, %v195_v2  ;;  %v2004_v6 = vcombine.low %v163_v1, %v195_v2  ;;  %v2007_v8 = vcombine.high %v164_v3, %v196_v5  ;;  %v2006_v9 = vcombine.low %v164_v3, %v196_v5  ;;  %v166_v11 = vld [vmem:[%s2152_s15 + $0x18] sm:$0xff]  ;;  %v167_v15 = vld [vmem:[%s2152_s15 + $0x20] sm:$0xff]  ;;  %v168_v19 = vld [vmem:[%s2152_s15 + $0x28] sm:$0xff] }
  0x12   : > { %v198_v12 = vld [vmem:[%s2152_s15 + $0x118] sm:$0xff]  ;;  %v2009_v13 = vcombine.high %v165_v7, %v197_v10  ;;  %v199_v16 = vld [vmem:[%s2152_s15 + $0x120] sm:$0xff]  ;;  %v2008_v18 = vcombine.low %v165_v7, %v197_v10  ;;  %v200_v20 = vld [vmem:[%s2152_s15 + $0x128] sm:$0xff] }
  0x13   : > { %565 = vmatprep.subr.bf16.mxu0 %v2005_v4  ;;  %v2011_v14 = vcombine.high %v166_v11, %v198_v12  ;;  %606 = vmatprep.subr.bf16.mxu1 %v2007_v8  ;;  %v2168_v17 = vld [vmem:[%s150_s19] sm:$0xf]  ;;  %v2010_v21 = vcombine.low %v166_v11, %v198_v12  ;;  %v2013_v22 = vcombine.high %v167_v15, %v199_v16  ;;  %v169_v24 = vld [vmem:[%s2152_s15 + $0x30] sm:$0xff]  ;;  %v170_v27 = vld [vmem:[%s2152_s15 + $0x38] sm:$0xff] }
  0x14   : > { %566 = vmatpush1.bf16.msra.mxu0 %v2004_v6  ;;  %607 = vmatpush1.bf16.msra.mxu1 %v2006_v9  ;;  %v2015_v23 = vcombine.high %v168_v19, %v200_v20  ;;  %v201_v25 = vld [vmem:[%s2152_s15 + $0x130] sm:$0xff]  ;;  %v2012_v26 = vcombine.low %v167_v15, %v199_v16  ;;  %v202_v28 = vld [vmem:[%s2152_s15 + $0x138] sm:$0xff]  ;;  %v2014_v29 = vcombine.low %v168_v19, %v200_v20  ;;  %v171_v32 = vld [vmem:[%s2152_s15 + $0x40] sm:$0xff] }
  0x15   : > { %647 = vmatprep.subr.bf16.mxu0 %v2009_v13  ;;  %688 = vmatprep.subr.bf16.mxu1 %v2011_v14  ;;  %v2017_v30 = vcombine.high %v169_v24, %v201_v25  ;;  %v2019_v31 = vcombine.high %v170_v27, %v202_v28  ;;  %v203_v33 = vld [vmem:[%s2152_s15 + $0x140] sm:$0xff]  ;;  %v2016_v34 = vcombine.low %v169_v24, %v201_v25  ;;  %v172_v35 = vld [vmem:[%s2152_s15 + $0x48] sm:$0xff]  ;;  %v173_v40 = vld [vmem:[%s2152_s15 + $0x50] sm:$0xff] }
  0x16   : > { %v204_v36 = vld [vmem:[%s2152_s15 + $0x148] sm:$0xff]  ;;  %v2018_v37 = vcombine.low %v170_v27, %v202_v28  ;;  %v2021_v38 = vcombine.high %v171_v32, %v203_v33  ;;  %v205_v41 = vld [vmem:[%s2152_s15 + $0x150] sm:$0xff]  ;;  %v2020_v42 = vcombine.low %v171_v32, %v203_v33  ;;  %v174_v43 = vld [vmem:[%s2152_s15 + $0x58] sm:$0xff] }
  0x17   : > { %2068 = vmatmul.mubr.msk.bf16.vlgmr.msra.gmra.mxu0 %vm547_vm0, %v2168_v17  ;;  %2069 = vmatmul.mubr.msk.bf16.vlgmr.msra.gmra.mxu1 %vm547_vm0, %v2168_v17  ;;  %v2023_v39 = vcombine.high %v172_v35, %v204_v36  ;;  %v206_v44 = vld [vmem:[%s2152_s15 + $0x158] sm:$0xff]  ;;  %v2022_v45 = vcombine.low %v172_v35, %v204_v36  ;;  %v2025_v46 = vcombine.high %v173_v40, %v205_v41  ;;  %v175_v48 = vld [vmem:[%s2152_s15 + $0x60] sm:$0xff]  ;;  %v176_v51 = vld [vmem:[%s2152_s15 + $0x68] sm:$0xff] }
  0x18   : > { %648 = vmatpush1.bf16.msra.mxu0 %v2008_v18  ;;  %689 = vmatpush1.bf16.msra.mxu1 %v2010_v21  ;;  %v2027_v47 = vcombine.high %v174_v43, %v206_v44  ;;  %v207_v49 = vld [vmem:[%s2152_s15 + $0x160] sm:$0xff]  ;;  %v2024_v50 = vcombine.low %v173_v40, %v205_v41  ;;  %v208_v52 = vld [vmem:[%s2152_s15 + $0x168] sm:$0xff]  ;;  %v2026_v53 = vcombine.low %v174_v43, %v206_v44  ;;  %v177_v56 = vld [vmem:[%s2152_s15 + $0x70] sm:$0xff] }
  0x19   : > { %665 = vmatprep.mubr.bf16.mxu0 %v2121_v0  ;;  %706 = vmatprep.mubr.bf16.mxu1 %v2121_v0  ;;  %v2029_v54 = vcombine.high %v175_v48, %v207_v49  ;;  %v2031_v55 = vcombine.high %v176_v51, %v208_v52  ;;  %v209_v57 = vld [vmem:[%s2152_s15 + $0x170] sm:$0xff]  ;;  %v2028_v58 = vcombine.low %v175_v48, %v207_v49  ;;  %v178_v59 = vld [vmem:[%s2152_s15 + $0x78] sm:$0xff]  ;;  %v179_v1 = vld [vmem:[%s2152_s15 + $0x80] sm:$0xff] }
  0x1a   : > { %729 = vmatprep.subr.bf16.mxu0 %v2013_v22  ;;  %770 = vmatprep.subr.bf16.mxu1 %v2015_v23  ;;  %v210_v60 = vld [vmem:[%s2152_s15 + $0x178] sm:$0xff]  ;;  %v2030_v61 = vcombine.low %v176_v51, %v208_v52  ;;  %v2033_v62 = vcombine.high %v177_v56, %v209_v57  ;;  %v211_v2 = vld [vmem:[%s2152_s15 + $0x180] sm:$0xff]  ;;  %v2032_v3 = vcombine.low %v177_v56, %v209_v57  ;;  %v180_v4 = vld [vmem:[%s2152_s15 + $0x88] sm:$0xff] }
  0x1b   : > { %v2035_v63 = vcombine.high %v178_v59, %v210_v60  ;;  %v212_v5 = vld [vmem:[%s2152_s15 + $0x188] sm:$0xff]  ;;  %v2034_v6 = vcombine.low %v178_v59, %v210_v60  ;;  %v2037_v7 = vcombine.high %v179_v1, %v211_v2  ;;  %v181_v9 = vld [vmem:[%s2152_s15 + $0x90] sm:$0xff]  ;;  %v2036_v11 = vcombine.low %v179_v1, %v211_v2  ;;  %v182_v12 = vld [vmem:[%s2152_s15 + $0x98] sm:$0xff] }
  0x1c   : > { %v2039_v8 = vcombine.high %v180_v4, %v212_v5  ;;  %v213_v10 = vld [vmem:[%s2152_s15 + $0x190] sm:$0xff]  ;;  %v214_v13 = vld [vmem:[%s2152_s15 + $0x198] sm:$0xff]  ;;  %v2038_v14 = vcombine.low %v180_v4, %v212_v5  ;;  %v183_v18 = vld [vmem:[%s2152_s15 + $0xa0] sm:$0xff] }
  0x1d   : > { %v2041_v15 = vcombine.high %v181_v9, %v213_v10  ;;  %v2043_v16 = vcombine.high %v182_v12, %v214_v13  ;;  %v215_v19 = vld [vmem:[%s2152_s15 + $0x1a0] sm:$0xff]  ;;  %v2040_v20 = vcombine.low %v181_v9, %v213_v10  ;;  %v184_v21 = vld [vmem:[%s2152_s15 + $0xa8] sm:$0xff]  ;;  %v2042_v23 = vcombine.low %v182_v12, %v214_v13  ;;  %v217_v27 = vld [vmem:[%s2152_s15 + $0x1b0] sm:$0xff] }
  0x1e   : > { %v216_v22 = vld [vmem:[%s2152_s15 + $0x1a8] sm:$0xff]  ;;  %v2045_v24 = vcombine.high %v183_v18, %v215_v19  ;;  %v2044_v28 = vcombine.low %v183_v18, %v215_v19  ;;  %v219_v35 = vld [vmem:[%s2152_s15 + $0x1c0] sm:$0xff]  ;;  %v221_v43 = vld [vmem:[%s2152_s15 + $0x1d0] sm:$0xff] }
  0x1f   : > { %2070 = vmatmul.mubr.msk.bf16.vlgmr.msra.gmra.mxu0 %vm547_vm0, %v2168_v17  ;;  %2071 = vmatmul.mubr.msk.bf16.vlgmr.msra.gmra.mxu1 %vm547_vm0, %v2168_v17  ;;  %v2047_v25 = vcombine.high %v184_v21, %v216_v22  ;;  %v223_v51 = vld [vmem:[%s2152_s15 + $0x1e0] sm:$0xff]  ;;  %v225_v59 = vld [vmem:[%s2152_s15 + $0x1f0] sm:$0xff] }
  0x20   : > { %730 = vmatpush1.bf16.msra.mxu0 %v2012_v26  ;;  %771 = vmatpush1.bf16.msra.mxu1 %v2014_v29  ;;  %v185_v26 = vld [vmem:[%s2152_s15 + $0xb0] sm:$0xff]  ;;  %v186_v29 = vld [vmem:[%s2152_s15 + $0xb8] sm:$0xff] }
  0x21   : > { %747 = vmatprep.mubr.bf16.mxu0 %v2121_v0  ;;  %788 = vmatprep.mubr.bf16.mxu1 %v2121_v0  ;;  %v2049_v32 = vcombine.high %v185_v26, %v217_v27  ;;  %v2048_v36 = vcombine.low %v185_v26, %v217_v27 }
  0x22   : > { %811 = vmatprep.subr.bf16.mxu0 %v2017_v30  ;;  %852 = vmatprep.subr.bf16.mxu1 %v2019_v31  ;;  %v218_v30 = vld [vmem:[%s2152_s15 + $0x1b8] sm:$0xff]  ;;  %v2046_v31 = vcombine.low %v184_v21, %v216_v22 }
  0x23   : > { %v2051_v33 = vcombine.high %v186_v29, %v218_v30 }
  0x27   : > { %2072 = vmatmul.mubr.msk.bf16.vlgmr.msra.gmra.mxu0 %vm547_vm0, %v2168_v17  ;;  %2073 = vmatmul.mubr.msk.bf16.vlgmr.msra.gmra.mxu1 %vm547_vm0, %v2168_v17 }
  0x28   : > { %812 = vmatpush1.bf16.msra.mxu0 %v2016_v34  ;;  %853 = vmatpush1.bf16.msra.mxu1 %v2018_v37  ;;  %v187_v34 = vld [vmem:[%s2152_s15 + $0xc0] sm:$0xff]  ;;  %v188_v37 = vld [vmem:[%s2152_s15 + $0xc8] sm:$0xff] }
  0x29   : > { %829 = vmatprep.mubr.bf16.mxu0 %v2121_v0  ;;  %870 = vmatprep.mubr.bf16.mxu1 %v2121_v0  ;;  %v2053_v40 = vcombine.high %v187_v34, %v219_v35  ;;  %v2052_v44 = vcombine.low %v187_v34, %v219_v35 }
  0x2a   : > { %893 = vmatprep.subr.bf16.mxu0 %v2021_v38  ;;  %934 = vmatprep.subr.bf16.mxu1 %v2023_v39  ;;  %v220_v38 = vld [vmem:[%s2152_s15 + $0x1c8] sm:$0xff]  ;;  %v2050_v39 = vcombine.low %v186_v29, %v218_v30 }
  0x2b   : > { %v2055_v41 = vcombine.high %v188_v37, %v220_v38 }
  0x2f   : > { %2074 = vmatmul.mubr.msk.bf16.vlgmr.msra.gmra.mxu0 %vm547_vm0, %v2168_v17  ;;  %2075 = vmatmul.mubr.msk.bf16.vlgmr.msra.gmra.mxu1 %vm547_vm0, %v2168_v17 }
  0x30   : > { %894 = vmatpush1.bf16.msra.mxu0 %v2020_v42  ;;  %935 = vmatpush1.bf16.msra.mxu1 %v2022_v45  ;;  %v189_v42 = vld [vmem:[%s2152_s15 + $0xd0] sm:$0xff]  ;;  %v190_v45 = vld [vmem:[%s2152_s15 + $0xd8] sm:$0xff] }
  0x31   : > { %911 = vmatprep.mubr.bf16.mxu0 %v2121_v0  ;;  %952 = vmatprep.mubr.bf16.mxu1 %v2121_v0  ;;  %v2057_v48 = vcombine.high %v189_v42, %v221_v43  ;;  %v2056_v52 = vcombine.low %v189_v42, %v221_v43 }
  0x32   : > { %975 = vmatprep.subr.bf16.mxu0 %v2025_v46  ;;  %1016 = vmatprep.subr.bf16.mxu1 %v2027_v47  ;;  %v222_v46 = vld [vmem:[%s2152_s15 + $0x1d8] sm:$0xff]  ;;  %v2054_v47 = vcombine.low %v188_v37, %v220_v38 }
  0x33   : > { %v2059_v49 = vcombine.high %v190_v45, %v222_v46 }
  0x37   : > { %2076 = vmatmul.mubr.msk.bf16.vlgmr.msra.gmra.mxu0 %vm547_vm0, %v2168_v17  ;;  %2077 = vmatmul.mubr.msk.bf16.vlgmr.msra.gmra.mxu1 %vm547_vm0, %v2168_v17 }
  0x38   : > { %976 = vmatpush1.bf16.msra.mxu0 %v2024_v50  ;;  %1017 = vmatpush1.bf16.msra.mxu1 %v2026_v53  ;;  %v191_v50 = vld [vmem:[%s2152_s15 + $0xe0] sm:$0xff]  ;;  %v192_v53 = vld [vmem:[%s2152_s15 + $0xe8] sm:$0xff] }
  0x39   : > { %993 = vmatprep.mubr.bf16.mxu0 %v2121_v0  ;;  %1034 = vmatprep.mubr.bf16.mxu1 %v2121_v0  ;;  %v2061_v56 = vcombine.high %v191_v50, %v223_v51  ;;  %v2060_v60 = vcombine.low %v191_v50, %v223_v51 }
  0x3a   : > { %1057 = vmatprep.subr.bf16.mxu0 %v2029_v54  ;;  %1098 = vmatprep.subr.bf16.mxu1 %v2031_v55  ;;  %v224_v54 = vld [vmem:[%s2152_s15 + $0x1e8] sm:$0xff]  ;;  %v2058_v55 = vcombine.low %v190_v45, %v222_v46 }
  0x3b   : > { %v2063_v57 = vcombine.high %v192_v53, %v224_v54 }
  0x3f   : > { %2078 = vmatmul.mubr.msk.bf16.vlgmr.msra.gmra.mxu0 %vm547_vm0, %v2168_v17  ;;  %2079 = vmatmul.mubr.msk.bf16.vlgmr.msra.gmra.mxu1 %vm547_vm0, %v2168_v17 }
  0x40   : > { %1058 = vmatpush1.bf16.msra.mxu0 %v2028_v58  ;;  %1099 = vmatpush1.bf16.msra.mxu1 %v2030_v61  ;;  %v193_v58 = vld [vmem:[%s2152_s15 + $0xf0] sm:$0xff]  ;;  %v194_v61 = vld [vmem:[%s2152_s15 + $0xf8] sm:$0xff] }
  0x41   : > { %1075 = vmatprep.mubr.bf16.mxu0 %v2121_v0  ;;  %1116 = vmatprep.mubr.bf16.mxu1 %v2121_v0  ;;  %v2065_v1 = vcombine.high %v193_v58, %v225_v59 }
  0x42   : > { %1139 = vmatprep.subr.bf16.mxu0 %v2033_v62  ;;  %1180 = vmatprep.subr.bf16.mxu1 %v2035_v63  ;;  %v226_v62 = vld [vmem:[%s2152_s15 + $0x1f8] sm:$0xff]  ;;  %v2062_v63 = vcombine.low %v192_v53, %v224_v54 }
  0x43   : > { %v2067_v2 = vcombine.high %v194_v61, %v226_v62  ;;  %v2066_v4 = vcombine.low %v194_v61, %v226_v62 }
  0x47   : > { %2080 = vmatmul.mubr.msk.bf16.vlgmr.msra.gmra.mxu0 %vm547_vm0, %v2168_v17  ;;  %2081 = vmatmul.mubr.msk.bf16.vlgmr.msra.gmra.mxu1 %vm547_vm0, %v2168_v17 }
  0x48   : > { %1140 = vmatpush1.bf16.msra.mxu0 %v2032_v3  ;;  %1181 = vmatpush1.bf16.msra.mxu1 %v2034_v6  ;;  %v2064_v3 = vcombine.low %v193_v58, %v225_v59 }
  0x49   : > { %1157 = vmatprep.mubr.bf16.mxu0 %v2121_v0  ;;  %1198 = vmatprep.mubr.bf16.mxu1 %v2121_v0 }
  0x4a   : > { %1221 = vmatprep.subr.bf16.mxu0 %v2037_v7  ;;  %1262 = vmatprep.subr.bf16.mxu1 %v2039_v8 }
  0x4f   : > { %2082 = vmatmul.mubr.msk.bf16.vlgmr.msra.gmra.mxu0 %vm547_vm0, %v2168_v17  ;;  %2083 = vmatmul.mubr.msk.bf16.vlgmr.msra.gmra.mxu1 %vm547_vm0, %v2168_v17 }
  0x50   : > { %1222 = vmatpush1.bf16.msra.mxu0 %v2036_v11  ;;  %1263 = vmatpush1.bf16.msra.mxu1 %v2038_v14 }
  0x51   : > { %1239 = vmatprep.mubr.bf16.mxu0 %v2121_v0  ;;  %1280 = vmatprep.mubr.bf16.mxu1 %v2121_v0 }
  0x52   : > { %1303 = vmatprep.subr.bf16.mxu0 %v2041_v15  ;;  %1344 = vmatprep.subr.bf16.mxu1 %v2043_v16 }
  0x57   : > { %2084 = vmatmul.mubr.msk.bf16.vlgmr.msra.gmra.mxu0 %vm547_vm0, %v2168_v17  ;;  %2085 = vmatmul.mubr.msk.bf16.vlgmr.msra.gmra.mxu1 %vm547_vm0, %v2168_v17 }
  0x58   : > { %1304 = vmatpush1.bf16.msra.mxu0 %v2040_v20  ;;  %1345 = vmatpush1.bf16.msra.mxu1 %v2042_v23 }
  0x59   : > { %1321 = vmatprep.mubr.bf16.mxu0 %v2121_v0  ;;  %1362 = vmatprep.mubr.bf16.mxu1 %v2121_v0 }
  0x5a   : > { %1385 = vmatprep.subr.bf16.mxu0 %v2045_v24  ;;  %1426 = vmatprep.subr.bf16.mxu1 %v2047_v25 }
  0x5f   : > { %2086 = vmatmul.mubr.msk.bf16.vlgmr.msra.gmra.mxu0 %vm547_vm0, %v2168_v17  ;;  %2087 = vmatmul.mubr.msk.bf16.vlgmr.msra.gmra.mxu1 %vm547_vm0, %v2168_v17 }
  0x60   : > { %1386 = vmatpush1.bf16.msra.mxu0 %v2044_v28  ;;  %1427 = vmatpush1.bf16.msra.mxu1 %v2046_v31 }
  0x61   : > { %1403 = vmatprep.mubr.bf16.mxu0 %v2121_v0  ;;  %1444 = vmatprep.mubr.bf16.mxu1 %v2121_v0 }
  0x62   : > { %1467 = vmatprep.subr.bf16.mxu0 %v2049_v32  ;;  %1508 = vmatprep.subr.bf16.mxu1 %v2051_v33 }
  0x67   : > { %2088 = vmatmul.mubr.msk.bf16.vlgmr.msra.gmra.mxu0 %vm547_vm0, %v2168_v17  ;;  %2089 = vmatmul.mubr.msk.bf16.vlgmr.msra.gmra.mxu1 %vm547_vm0, %v2168_v17 }
  0x68   : > { %1468 = vmatpush1.bf16.msra.mxu0 %v2048_v36  ;;  %1509 = vmatpush1.bf16.msra.mxu1 %v2050_v39 }
  0x69   : > { %1485 = vmatprep.mubr.bf16.mxu0 %v2121_v0  ;;  %1526 = vmatprep.mubr.bf16.mxu1 %v2121_v0 }
  0x6a   : > { %1549 = vmatprep.subr.bf16.mxu0 %v2053_v40  ;;  %1590 = vmatprep.subr.bf16.mxu1 %v2055_v41 }
  0x6f   : > { %2090 = vmatmul.mubr.msk.bf16.vlgmr.msra.gmra.mxu0 %vm547_vm0, %v2168_v17  ;;  %2091 = vmatmul.mubr.msk.bf16.vlgmr.msra.gmra.mxu1 %vm547_vm0, %v2168_v17 }
  0x70   : > { %1550 = vmatpush1.bf16.msra.mxu0 %v2052_v44  ;;  %1591 = vmatpush1.bf16.msra.mxu1 %v2054_v47 }
  0x71   : > { %1567 = vmatprep.mubr.bf16.mxu0 %v2121_v0  ;;  %1608 = vmatprep.mubr.bf16.mxu1 %v2121_v0 }
  0x72   : > { %1631 = vmatprep.subr.bf16.mxu0 %v2057_v48  ;;  %1672 = vmatprep.subr.bf16.mxu1 %v2059_v49 }
  0x77   : > { %2092 = vmatmul.mubr.msk.bf16.vlgmr.msra.gmra.mxu0 %vm547_vm0, %v2168_v17  ;;  %2093 = vmatmul.mubr.msk.bf16.vlgmr.msra.gmra.mxu1 %vm547_vm0, %v2168_v17 }
  0x78   : > { %1632 = vmatpush1.bf16.msra.mxu0 %v2056_v52  ;;  %1673 = vmatpush1.bf16.msra.mxu1 %v2058_v55 }
  0x79   : > { %1649 = vmatprep.mubr.bf16.mxu0 %v2121_v0  ;;  %1690 = vmatprep.mubr.bf16.mxu1 %v2121_v0 }
  0x7a   : > { %1713 = vmatprep.subr.bf16.mxu0 %v2061_v56  ;;  %1754 = vmatprep.subr.bf16.mxu1 %v2063_v57 }
  0x7f   : > { %2094 = vmatmul.mubr.msk.bf16.vlgmr.msra.gmra.mxu0 %vm547_vm0, %v2168_v17  ;;  %2095 = vmatmul.mubr.msk.bf16.vlgmr.msra.gmra.mxu1 %vm547_vm0, %v2168_v17 }
  0x80   : > { %1714 = vmatpush1.bf16.msra.mxu0 %v2060_v60  ;;  %1755 = vmatpush1.bf16.msra.mxu1 %v2062_v63 }
  0x81   : > { %1731 = vmatprep.mubr.bf16.mxu0 %v2121_v0  ;;  %1772 = vmatprep.mubr.bf16.mxu1 %v2121_v0 }
  0x82   : > { %1795 = vmatprep.subr.bf16.mxu0 %v2065_v1  ;;  %1836 = vmatprep.subr.bf16.mxu1 %v2067_v2 }
  0x87   : > { %2096 = vmatmul.mubr.msk.bf16.vlgmr.msra.gmra.mxu0 %vm547_vm0, %v2168_v17  ;;  %2097 = vmatmul.mubr.msk.bf16.vlgmr.msra.gmra.mxu1 %vm547_vm0, %v2168_v17 }
  0x88   : > { %1796 = vmatpush1.bf16.msra.mxu0 %v2064_v3  ;;  %1837 = vmatpush1.bf16.msra.mxu1 %v2066_v4 }
  0x89   : > { %1813 = vmatprep.mubr.bf16.mxu0 %v2121_v0  ;;  %1854 = vmatprep.mubr.bf16.mxu1 %v2121_v0 }
  0x8f   : > { %2098 = vmatmul.mubr.msk.bf16.vlgmr.msra.gmra.mxu0 %vm547_vm0, %v2168_v17  ;;  %2099 = vmatmul.mubr.msk.bf16.vlgmr.msra.gmra.mxu1 %vm547_vm0, %v2168_v17 }
  0xd7   : > { %v585_v5 = vpop.f32.mrf.mxu0  ;;  %v626_v0 = vpop.f32.mrf.mxu1 }
  0xd8   : > { %1863 = vst [vmem:[%s2322_s23] sm:$0xff] %v585_v5  ;;  %1865 = vst [vmem:[%s2322_s23 + $0x10] sm:$0xff] %v626_v0 }
  0xd9   : > { %v587_v6 = vpop.f32.mrf.mxu0  ;;  %v628_v17 = vpop.f32.mrf.mxu1 }
  0xda   : > { %1864 = vst [vmem:[%s2322_s23 + $0x8] sm:$0xff] %v587_v6  ;;  %1866 = vst [vmem:[%s2322_s23 + $0x18] sm:$0xff] %v628_v17 }
  0xdb   : > { %v589_v7 = vpop.f32.mrf.mxu0  ;;  %v630_v8 = vpop.f32.mrf.mxu1 }
  0xdd   : > { %v590_v9 = vpop.f32.mrf.mxu0  ;;  %v631_v10 = vpop.f32.mrf.mxu1 }
  0xdf   : > { %v667_v11 = vpop.f32.mrf.mxu0  ;;  %v708_v12 = vpop.f32.mrf.mxu1 }
  0xe0   : > { %1867 = vst [vmem:[%s2322_s23 + $0x20] sm:$0xff] %v667_v11  ;;  %1869 = vst [vmem:[%s2322_s23 + $0x30] sm:$0xff] %v708_v12 }
  0xe1   : > { %v669_v13 = vpop.f32.mrf.mxu0  ;;  %v710_v14 = vpop.f32.mrf.mxu1 }
  0xe2   : > { %1868 = vst [vmem:[%s2322_s23 + $0x28] sm:$0xff] %v669_v13  ;;  %1870 = vst [vmem:[%s2322_s23 + $0x38] sm:$0xff] %v710_v14 }
  0xe3   : > { %v671_v15 = vpop.f32.mrf.mxu0  ;;  %v712_v16 = vpop.f32.mrf.mxu1 }
  0xe5   : > { %v672_v18 = vpop.f32.mrf.mxu0  ;;  %v713_v19 = vpop.f32.mrf.mxu1 }
  0xe7   : > { %v749_v20 = vpop.f32.mrf.mxu0  ;;  %v790_v21 = vpop.f32.mrf.mxu1 }
  0xe8   : > { %1871 = vst [vmem:[%s2322_s23 + $0x40] sm:$0xff] %v749_v20  ;;  %1873 = vst [vmem:[%s2322_s23 + $0x50] sm:$0xff] %v790_v21 }
  0xe9   : > { %v751_v22 = vpop.f32.mrf.mxu0  ;;  %v792_v23 = vpop.f32.mrf.mxu1 }
  0xea   : > { %1872 = vst [vmem:[%s2322_s23 + $0x48] sm:$0xff] %v751_v22  ;;  %1874 = vst [vmem:[%s2322_s23 + $0x58] sm:$0xff] %v792_v23 }
  0xeb   : > { %v753_v24 = vpop.f32.mrf.mxu0  ;;  %v794_v25 = vpop.f32.mrf.mxu1 }
  0xed   : > { %v754_v26 = vpop.f32.mrf.mxu0  ;;  %v795_v27 = vpop.f32.mrf.mxu1 }
  0xef   : > { %v831_v28 = vpop.f32.mrf.mxu0  ;;  %v872_v29 = vpop.f32.mrf.mxu1 }
  0xf0   : > { %1875 = vst [vmem:[%s2322_s23 + $0x60] sm:$0xff] %v831_v28  ;;  %1877 = vst [vmem:[%s2322_s23 + $0x70] sm:$0xff] %v872_v29 }
  0xf1   : > { %v833_v30 = vpop.f32.mrf.mxu0  ;;  %v874_v31 = vpop.f32.mrf.mxu1 }
  0xf2   : > { %1876 = vst [vmem:[%s2322_s23 + $0x68] sm:$0xff] %v833_v30  ;;  %1878 = vst [vmem:[%s2322_s23 + $0x78] sm:$0xff] %v874_v31 }
  0xf3   : > { %v835_v32 = vpop.f32.mrf.mxu0  ;;  %v876_v33 = vpop.f32.mrf.mxu1 }
  0xf5   : > { %v836_v34 = vpop.f32.mrf.mxu0  ;;  %v877_v35 = vpop.f32.mrf.mxu1 }
  0xf7   : > { %v913_v36 = vpop.f32.mrf.mxu0  ;;  %v954_v37 = vpop.f32.mrf.mxu1 }
  0xf8   : > { %1879 = vst [vmem:[%s2322_s23 + $0x80] sm:$0xff] %v913_v36  ;;  %1881 = vst [vmem:[%s2322_s23 + $0x90] sm:$0xff] %v954_v37 }
  0xf9   : > { %v915_v38 = vpop.f32.mrf.mxu0  ;;  %v956_v39 = vpop.f32.mrf.mxu1 }
  0xfa   : > { %1880 = vst [vmem:[%s2322_s23 + $0x88] sm:$0xff] %v915_v38  ;;  %1882 = vst [vmem:[%s2322_s23 + $0x98] sm:$0xff] %v956_v39 }
  0xfb   : > { %v917_v40 = vpop.f32.mrf.mxu0  ;;  %v958_v41 = vpop.f32.mrf.mxu1 }
  0xfd   : > { %v918_v42 = vpop.f32.mrf.mxu0  ;;  %v959_v43 = vpop.f32.mrf.mxu1 }
  0xff   : > { %v995_v44 = vpop.f32.mrf.mxu0  ;;  %v1036_v45 = vpop.f32.mrf.mxu1 }
 0x100   : > { %1883 = vst [vmem:[%s2322_s23 + $0xa0] sm:$0xff] %v995_v44  ;;  %1885 = vst [vmem:[%s2322_s23 + $0xb0] sm:$0xff] %v1036_v45 }
 0x101   : > { %v997_v46 = vpop.f32.mrf.mxu0  ;;  %v1038_v47 = vpop.f32.mrf.mxu1 }
 0x102   : > { %1884 = vst [vmem:[%s2322_s23 + $0xa8] sm:$0xff] %v997_v46  ;;  %1886 = vst [vmem:[%s2322_s23 + $0xb8] sm:$0xff] %v1038_v47 }
 0x103   : > { %v999_v48 = vpop.f32.mrf.mxu0  ;;  %v1040_v49 = vpop.f32.mrf.mxu1 }
 0x105   : > { %v1000_v50 = vpop.f32.mrf.mxu0  ;;  %v1041_v51 = vpop.f32.mrf.mxu1 }
 0x107   : > { %v1077_v52 = vpop.f32.mrf.mxu0  ;;  %v1118_v53 = vpop.f32.mrf.mxu1 }
 0x108   : > { %1887 = vst [vmem:[%s2322_s23 + $0xc0] sm:$0xff] %v1077_v52  ;;  %1889 = vst [vmem:[%s2322_s23 + $0xd0] sm:$0xff] %v1118_v53 }
 0x109   : > { %v1079_v54 = vpop.f32.mrf.mxu0  ;;  %v1120_v55 = vpop.f32.mrf.mxu1 }
 0x10a   : > { %1888 = vst [vmem:[%s2322_s23 + $0xc8] sm:$0xff] %v1079_v54  ;;  %1890 = vst [vmem:[%s2322_s23 + $0xd8] sm:$0xff] %v1120_v55 }
 0x10b   : > { %v1081_v56 = vpop.f32.mrf.mxu0  ;;  %v1122_v57 = vpop.f32.mrf.mxu1 }
 0x10d   : > { %v1082_v58 = vpop.f32.mrf.mxu0  ;;  %v1123_v59 = vpop.f32.mrf.mxu1 }
 0x10f   : > { %v1159_v60 = vpop.f32.mrf.mxu0  ;;  %v1200_v61 = vpop.f32.mrf.mxu1 }
 0x110   : > { %1891 = vst [vmem:[%s2322_s23 + $0xe0] sm:$0xff] %v1159_v60  ;;  %1893 = vst [vmem:[%s2322_s23 + $0xf0] sm:$0xff] %v1200_v61 }
 0x111   : > { %v1161_v62 = vpop.f32.mrf.mxu0  ;;  %v1202_v63 = vpop.f32.mrf.mxu1 }
 0x112   : > { %1892 = vst [vmem:[%s2322_s23 + $0xe8] sm:$0xff] %v1161_v62  ;;  %1894 = vst [vmem:[%s2322_s23 + $0xf8] sm:$0xff] %v1202_v63 }
 0x113   : > { %v1163_v1 = vpop.f32.mrf.mxu0  ;;  %v1204_v2 = vpop.f32.mrf.mxu1 }
 0x115   : > { %v1164_v3 = vpop.f32.mrf.mxu0  ;;  %v1205_v4 = vpop.f32.mrf.mxu1 }
 0x117   : > { %v1241_v5 = vpop.f32.mrf.mxu0  ;;  %v1282_v0 = vpop.f32.mrf.mxu1 }
 0x118   : > { %1895 = vst [vmem:[%s2322_s23 + $0x100] sm:$0xff] %v1241_v5  ;;  %1897 = vst [vmem:[%s2322_s23 + $0x110] sm:$0xff] %v1282_v0 }
 0x119   : > { %v1243_v6 = vpop.f32.mrf.mxu0  ;;  %v1284_v17 = vpop.f32.mrf.mxu1 }
 0x11a   : > { %1896 = vst [vmem:[%s2322_s23 + $0x108] sm:$0xff] %v1243_v6  ;;  %1898 = vst [vmem:[%s2322_s23 + $0x118] sm:$0xff] %v1284_v17 }
 0x11b   : > { %v1245_v7 = vpop.f32.mrf.mxu0  ;;  %v1286_v8 = vpop.f32.mrf.mxu1 }
 0x11d   : > { %v1246_v9 = vpop.f32.mrf.mxu0  ;;  %v1287_v10 = vpop.f32.mrf.mxu1 }
 0x11f   : > { %v1323_v11 = vpop.f32.mrf.mxu0  ;;  %v1364_v12 = vpop.f32.mrf.mxu1 }
 0x120   : > { %1899 = vst [vmem:[%s2322_s23 + $0x120] sm:$0xff] %v1323_v11  ;;  %1901 = vst [vmem:[%s2322_s23 + $0x130] sm:$0xff] %v1364_v12 }
 0x121   : > { %v1325_v13 = vpop.f32.mrf.mxu0  ;;  %v1366_v14 = vpop.f32.mrf.mxu1 }
 0x122   : > { %1900 = vst [vmem:[%s2322_s23 + $0x128] sm:$0xff] %v1325_v13  ;;  %1902 = vst [vmem:[%s2322_s23 + $0x138] sm:$0xff] %v1366_v14 }
 0x123   : > { %v1327_v15 = vpop.f32.mrf.mxu0  ;;  %v1368_v16 = vpop.f32.mrf.mxu1 }
 0x125   : > { %v1328_v18 = vpop.f32.mrf.mxu0  ;;  %v1369_v19 = vpop.f32.mrf.mxu1 }
 0x127   : > { %v1405_v20 = vpop.f32.mrf.mxu0  ;;  %v1446_v21 = vpop.f32.mrf.mxu1 }
 0x128   : > { %1903 = vst [vmem:[%s2322_s23 + $0x140] sm:$0xff] %v1405_v20  ;;  %1905 = vst [vmem:[%s2322_s23 + $0x150] sm:$0xff] %v1446_v21 }
 0x129   : > { %v1407_v22 = vpop.f32.mrf.mxu0  ;;  %v1448_v23 = vpop.f32.mrf.mxu1 }
 0x12a   : > { %1904 = vst [vmem:[%s2322_s23 + $0x148] sm:$0xff] %v1407_v22  ;;  %1906 = vst [vmem:[%s2322_s23 + $0x158] sm:$0xff] %v1448_v23 }
 0x12b   : > { %v1409_v24 = vpop.f32.mrf.mxu0  ;;  %v1450_v25 = vpop.f32.mrf.mxu1 }
 0x12d   : > { %v1410_v26 = vpop.f32.mrf.mxu0  ;;  %v1451_v27 = vpop.f32.mrf.mxu1 }
 0x12f   : > { %v1487_v28 = vpop.f32.mrf.mxu0  ;;  %v1528_v29 = vpop.f32.mrf.mxu1 }
 0x130   : > { %1907 = vst [vmem:[%s2322_s23 + $0x160] sm:$0xff] %v1487_v28  ;;  %1909 = vst [vmem:[%s2322_s23 + $0x170] sm:$0xff] %v1528_v29 }
 0x131   : > { %v1489_v30 = vpop.f32.mrf.mxu0  ;;  %v1530_v31 = vpop.f32.mrf.mxu1 }
 0x132   : > { %1908 = vst [vmem:[%s2322_s23 + $0x168] sm:$0xff] %v1489_v30  ;;  %1910 = vst [vmem:[%s2322_s23 + $0x178] sm:$0xff] %v1530_v31 }
 0x133   : > { %v1491_v32 = vpop.f32.mrf.mxu0  ;;  %v1532_v33 = vpop.f32.mrf.mxu1 }
 0x135   : > { %v1492_v34 = vpop.f32.mrf.mxu0  ;;  %v1533_v35 = vpop.f32.mrf.mxu1 }
 0x137   : > { %v1569_v36 = vpop.f32.mrf.mxu0  ;;  %v1610_v37 = vpop.f32.mrf.mxu1 }
 0x138   : > { %1911 = vst [vmem:[%s2322_s23 + $0x180] sm:$0xff] %v1569_v36  ;;  %1913 = vst [vmem:[%s2322_s23 + $0x190] sm:$0xff] %v1610_v37 }
 0x139   : > { %v1571_v38 = vpop.f32.mrf.mxu0  ;;  %v1612_v39 = vpop.f32.mrf.mxu1 }
 0x13a   : > { %1912 = vst [vmem:[%s2322_s23 + $0x188] sm:$0xff] %v1571_v38  ;;  %1914 = vst [vmem:[%s2322_s23 + $0x198] sm:$0xff] %v1612_v39 }
 0x13b   : > { %v1573_v40 = vpop.f32.mrf.mxu0  ;;  %v1614_v41 = vpop.f32.mrf.mxu1 }
 0x13d   : > { %v1574_v42 = vpop.f32.mrf.mxu0  ;;  %v1615_v43 = vpop.f32.mrf.mxu1 }
 0x13f   : > { %v1651_v44 = vpop.f32.mrf.mxu0  ;;  %v1692_v45 = vpop.f32.mrf.mxu1 }
 0x140   : > { %1915 = vst [vmem:[%s2322_s23 + $0x1a0] sm:$0xff] %v1651_v44  ;;  %1917 = vst [vmem:[%s2322_s23 + $0x1b0] sm:$0xff] %v1692_v45 }
 0x141   : > { %v1653_v46 = vpop.f32.mrf.mxu0  ;;  %v1694_v47 = vpop.f32.mrf.mxu1 }
 0x142   : > { %1916 = vst [vmem:[%s2322_s23 + $0x1a8] sm:$0xff] %v1653_v46  ;;  %1918 = vst [vmem:[%s2322_s23 + $0x1b8] sm:$0xff] %v1694_v47 }
 0x143   : > { %v1655_v48 = vpop.f32.mrf.mxu0  ;;  %v1696_v49 = vpop.f32.mrf.mxu1 }
 0x145   : > { %v1656_v50 = vpop.f32.mrf.mxu0  ;;  %v1697_v51 = vpop.f32.mrf.mxu1 }
 0x147   : > { %v1733_v52 = vpop.f32.mrf.mxu0  ;;  %v1774_v53 = vpop.f32.mrf.mxu1 }
 0x148   : > { %1919 = vst [vmem:[%s2322_s23 + $0x1c0] sm:$0xff] %v1733_v52  ;;  %1921 = vst [vmem:[%s2322_s23 + $0x1d0] sm:$0xff] %v1774_v53 }
 0x149   : > { %v1735_v54 = vpop.f32.mrf.mxu0  ;;  %v1776_v55 = vpop.f32.mrf.mxu1 }
 0x14a   : > { %1920 = vst [vmem:[%s2322_s23 + $0x1c8] sm:$0xff] %v1735_v54  ;;  %1922 = vst [vmem:[%s2322_s23 + $0x1d8] sm:$0xff] %v1776_v55 }
 0x14b   : > { %v1737_v56 = vpop.f32.mrf.mxu0  ;;  %v1778_v57 = vpop.f32.mrf.mxu1 }
 0x14d   : > { %v1738_v58 = vpop.f32.mrf.mxu0  ;;  %v1779_v59 = vpop.f32.mrf.mxu1 }
 0x14f   : > { %v1815_v60 = vpop.f32.mrf.mxu0  ;;  %v1856_v61 = vpop.f32.mrf.mxu1 }
 0x150   : > { %1923 = vst [vmem:[%s2322_s23 + $0x1e0] sm:$0xff] %v1815_v60  ;;  %1925 = vst [vmem:[%s2322_s23 + $0x1f0] sm:$0xff] %v1856_v61 }
 0x151   : > { %v1817_v62 = vpop.f32.mrf.mxu0  ;;  %v1858_v63 = vpop.f32.mrf.mxu1 }
 0x152   : > { %1924 = vst [vmem:[%s2322_s23 + $0x1e8] sm:$0xff] %v1817_v62  ;;  %1926 = vst [vmem:[%s2322_s23 + $0x1f8] sm:$0xff] %v1858_v63 }
 0x153   : > { %v1819_v1 = vpop.f32.mrf.mxu0  ;;  %v1860_v2 = vpop.f32.mrf.mxu1 }
 0x155   : > { %v1820_v3 = vpop.f32.mrf.mxu0  ;;  %v1861_v4 = vpop.f32.mrf.mxu1 }
 0x156 PF: > { %s12_s9 = sadd.s32 1, %s2119_s9  }
 0x157   : > { %p9_p5 = scmp.ge.s32.totalorder %s12_s9, 4  }
 0x159   :  { %11 = sbr.rel (!%p9_p5) target bundleno = 1 (0x1), region = 61 }

// kernel: generator_forward.6
= control target key start
LH: loop header
LB: loop body
LE: loop exit
PB: predicated region body
PF: predicated region fallthrough
CT: control target
= control target key end

     0   :  { %s2030_s0 = inlined_call_operand.vmem [shape: s32[2], index: 0, kind: input, shape index: {}]   ;;  %s2031_s1 = inlined_call_operand.vmem [shape: f32[2,128,512], index: 1, kind: input, shape index: {}]   ;;  %s2032_s2 = inlined_call_operand.vmem [shape: f32[10,1,512], index: 2, kind: input, shape index: {}]   ;;  %s2033_s3 = inlined_call_operand.vmem [shape: f32[10,1,512], index: 3, kind: input, shape index: {}]   ;;  %s2034_s4 = inlined_call_operand.vmem [shape: f32[2,128,512], index: 4, kind: output, shape index: {}]  }
   0x1   :  { %s9_s17 = sshll.u32 %s2030_s0, 4  ;;  %s10_s17 = int_to_ptr.vmem [resolvable:$true] %s9_s17 }
   0x2   :  { %s1018_s18 = scalar_lea.vmem %s10_s17, 16  ;;  %p1023_p1 = scmp.lt.s32.totalorder %s10_s17, %s10_s17 }
   0x3   :  { %p1019_p0 = scmp.ne.s32.totalorder %s10_s17, %s1018_s18  ;;  %p1024_p2 = scmp.lt.s32.totalorder %s1018_s18, %s1018_s18 }
   0x5   :  { %p1025_p3 = por %p1024_p2, %p1023_p1 }
   0x7   :  { %p1026_p4 = pnand %p1025_p3, %p1019_p0 }
   0x9   :  { %1029 = shalt.err (!%p1026_p4)  }
   0xa   :  { %s1040_s19 = smov [#allocation3]  }
   0xb   :  { %12 = dma.vmem_to_smem %s10_s17, 16, %s1040_s19, [#allocation2] }
   0xc   :  { %1034 = dma.done.wait [#allocation2], 16 }
   0xd   :  { %1035 = vsyncadd [#allocation2], 4294967280 }
   0xe   :  { %14 = sfence }
   0xf   :  { %s1070_s20 = smov 0  }
  0x10 LB: > { %s1076_s0 = sadd.s32 4294967295, %s1038_s20   ;;  %p987_p5 = scmp.ge.s32.totalorder %s1038_s20, 1  ;;  %s1038_s20 = sphi %s1070_s20, %s20_s20  }
  0x11   : > { %p162_p6 = scmp.lt.s32.totalorder %s1038_s20, 3 }
  0x13   : > { %p163_p7 = pnand %p987_p5, %p162_p6 }
  0x15   : > { %166 = sbr.rel (%p163_p7) target bundleno = 202 (0xca), region = 32 }
  0x1a   : > { %p194_p8 = scmp.lt.s32.totalorder %s1076_s0, 1  ;;  %s1514_s26 = sld [smem:[#allocation3 + %s1076_s0]] }
  0x1b   : > { %p199_p9 = scmp.lt.s32.totalorder %s1076_s0, 9 }
  0x1c   : > { %s1082_s21 = scalar_select %p194_p8, %s1076_s0, 1 }
  0x1d   : > { %s2229_s0 = smov (!%p199_p9, %s1076_s0), 9 }
  0x1e   : > { %s996_s22 = sshll.u32 %s1082_s21, 9  ;;  %s990_s28 = sshll.u32 %s2229_s0, 2 }
  0x1f   : > { %s1090_s25 = scalar_lea.vmem %s2031_s1, %s996_s22  ;;  %s202_s5 = scalar_lea.vmem %s2032_s2, %s990_s28 }
  0x20   : > { %v1093_v0 = vld [vmem:[%s1090_s25] sm:$0xff]  ;;  %v1096_v1 = vld [vmem:[%s1090_s25 + $0x8] sm:$0xff]  ;;  %v1099_v2 = vld [vmem:[%s1090_s25 + $0x10] sm:$0xff]  ;;  %s277_s27 = scvt.s32.f32 %s1514_s26  ;;  %s206_s8 = scalar_lea.vmem %s2033_s3, %s990_s28 }
  0x21   : > { %2096 = vst [vmem:[#allocation5_spill] sm:$0xff] %v1093_v0  ;;  %2097 = vst [vmem:[#allocation6_spill] sm:$0xff] %v1096_v1  ;;  %v1102_v3 = vld [vmem:[%s1090_s25 + $0x18] sm:$0xff]  ;;  %v1105_v4 = vld [vmem:[%s1090_s25 + $0x20] sm:$0xff]  ;;  %s1824_s11 = scalar_lea.vmem %s2034_s4, %s996_s22 }
  0x22   : > { %2098 = vst [vmem:[#allocation7_spill] sm:$0xff] %v1099_v2  ;;  %2099 = vst [vmem:[#allocation8_spill] sm:$0xff] %v1102_v3  ;;  %v1108_v5 = vld [vmem:[%s1090_s25 + $0x28] sm:$0xff]  ;;  %v1111_v6 = vld [vmem:[%s1090_s25 + $0x30] sm:$0xff]  ;;  %v278_v9 = vadd.f32 %v1105_v4, %v1093_v0 }
  0x23   : > { %2100 = vst [vmem:[#allocation9_spill] sm:$0xff] %v1105_v4  ;;  %2101 = vst [vmem:[#allocation10_spill] sm:$0xff] %v1108_v5  ;;  %v1114_v7 = vld [vmem:[%s1090_s25 + $0x38] sm:$0xff]  ;;  %v1117_v8 = vld [vmem:[%s1090_s25 + $0x40] sm:$0xff]  ;;  %v299_v10 = vadd.f32 %v1108_v5, %v1096_v1  ;;  %v320_v14 = vadd.f32 %v1111_v6, %v1099_v2 }
  0x24   : > { %2102 = vst [vmem:[#allocation11_spill] sm:$0xff] %v1111_v6  ;;  %2103 = vst [vmem:[#allocation12_spill] sm:$0xff] %v1114_v7  ;;  %v1124_v11 = vld [vmem:[%s1090_s25 + $0x48] sm:$0xff]  ;;  %v1127_v12 = vld [vmem:[%s1090_s25 + $0x50] sm:$0xff]  ;;  %v341_v15 = vadd.f32 %v1114_v7, %v1102_v3  ;;  %v279_v19 = vadd.f32 %v278_v9, %v1117_v8 }
  0x25   : > { %2104 = vst [vmem:[#allocation13_spill] sm:$0xff] %v1117_v8  ;;  %2105 = vst [vmem:[#allocation14_spill] sm:$0xff] %v1124_v11  ;;  %v1130_v13 = vld [vmem:[%s1090_s25 + $0x58] sm:$0xff]  ;;  %v1137_v16 = vld [vmem:[%s1090_s25 + $0x60] sm:$0xff]  ;;  %v300_v20 = vadd.f32 %v299_v10, %v1124_v11  ;;  %v321_v24 = vadd.f32 %v320_v14, %v1127_v12 }
  0x26   : > { %2106 = vst [vmem:[#allocation15_spill] sm:$0xff] %v1127_v12  ;;  %2107 = vst [vmem:[#allocation16_spill] sm:$0xff] %v1130_v13  ;;  %v1140_v17 = vld [vmem:[%s1090_s25 + $0x68] sm:$0xff]  ;;  %v1143_v18 = vld [vmem:[%s1090_s25 + $0x70] sm:$0xff]  ;;  %v342_v25 = vadd.f32 %v341_v15, %v1130_v13  ;;  %v280_v28 = vadd.f32 %v279_v19, %v1137_v16 }
  0x27   : > { %2108 = vst [vmem:[#allocation17_spill] sm:$0xff] %v1137_v16  ;;  %2109 = vst [vmem:[#allocation18_spill] sm:$0xff] %v1140_v17  ;;  %v1148_v21 = vld [vmem:[%s1090_s25 + $0x78] sm:$0xff]  ;;  %v1151_v22 = vld [vmem:[%s1090_s25 + $0x80] sm:$0xff]  ;;  %v301_v29 = vadd.f32 %v300_v20, %v1140_v17  ;;  %v322_v32 = vadd.f32 %v321_v24, %v1143_v18 }
  0x28   : > { %2110 = vst [vmem:[#allocation19_spill] sm:$0xff] %v1143_v18  ;;  %2111 = vst [vmem:[#allocation20_spill] sm:$0xff] %v1148_v21  ;;  %v1154_v23 = vld [vmem:[%s1090_s25 + $0x88] sm:$0xff]  ;;  %v1159_v26 = vld [vmem:[%s1090_s25 + $0x90] sm:$0xff]  ;;  %v343_v33 = vadd.f32 %v342_v25, %v1148_v21  ;;  %v281_v36 = vadd.f32 %v280_v28, %v1151_v22 }
  0x29   : > { %2112 = vst [vmem:[#allocation21_spill] sm:$0xff] %v1151_v22  ;;  %2113 = vst [vmem:[#allocation22_spill] sm:$0xff] %v1154_v23  ;;  %v1162_v27 = vld [vmem:[%s1090_s25 + $0x98] sm:$0xff]  ;;  %v1167_v30 = vld [vmem:[%s1090_s25 + $0xa0] sm:$0xff]  ;;  %v302_v37 = vadd.f32 %v301_v29, %v1154_v23  ;;  %v323_v40 = vadd.f32 %v322_v32, %v1159_v26 }
  0x2a   : > { %2114 = vst [vmem:[#allocation23_spill] sm:$0xff] %v1159_v26  ;;  %2115 = vst [vmem:[#allocation24_spill] sm:$0xff] %v1162_v27  ;;  %v1170_v31 = vld [vmem:[%s1090_s25 + $0xa8] sm:$0xff]  ;;  %v1175_v34 = vld [vmem:[%s1090_s25 + $0xb0] sm:$0xff]  ;;  %v344_v41 = vadd.f32 %v343_v33, %v1162_v27  ;;  %v282_v44 = vadd.f32 %v281_v36, %v1167_v30 }
  0x2b   : > { %2116 = vst [vmem:[#allocation25_spill] sm:$0xff] %v1167_v30  ;;  %2117 = vst [vmem:[#allocation26_spill] sm:$0xff] %v1170_v31  ;;  %v1178_v35 = vld [vmem:[%s1090_s25 + $0xb8] sm:$0xff]  ;;  %v1183_v38 = vld [vmem:[%s1090_s25 + $0xc0] sm:$0xff]  ;;  %v303_v45 = vadd.f32 %v302_v37, %v1170_v31  ;;  %v324_v48 = vadd.f32 %v323_v40, %v1175_v34  ;;  %v1261_v37 = vmul.f32 %v1093_v0, %v1093_v0 }
  0x2c   : > { %2118 = vst [vmem:[#allocation27_spill] sm:$0xff] %v1175_v34  ;;  %2119 = vst [vmem:[#allocation28_spill] sm:$0xff] %v1178_v35  ;;  %v1186_v39 = vld [vmem:[%s1090_s25 + $0xc8] sm:$0xff]  ;;  %v1191_v42 = vld [vmem:[%s1090_s25 + $0xd0] sm:$0xff]  ;;  %v345_v49 = vadd.f32 %v344_v41, %v1178_v35  ;;  %v283_v52 = vadd.f32 %v282_v44, %v1183_v38 }
  0x2d   : > { %2120 = vst [vmem:[#allocation29_spill] sm:$0xff] %v1183_v38  ;;  %2121 = vst [vmem:[#allocation30_spill] sm:$0xff] %v1186_v39  ;;  %v1194_v43 = vld [vmem:[%s1090_s25 + $0xd8] sm:$0xff]  ;;  %v1199_v46 = vld [vmem:[%s1090_s25 + $0xe0] sm:$0xff]  ;;  %v304_v53 = vadd.f32 %v303_v45, %v1186_v39  ;;  %v325_v56 = vadd.f32 %v324_v48, %v1191_v42  ;;  %v1270_v45 = vmul.f32 %v1096_v1, %v1096_v1 }
  0x2e   : > { %2122 = vst [vmem:[#allocation31_spill] sm:$0xff] %v1191_v42  ;;  %2123 = vst [vmem:[#allocation32_spill] sm:$0xff] %v1194_v43  ;;  %v1202_v47 = vld [vmem:[%s1090_s25 + $0xe8] sm:$0xff]  ;;  %v1207_v50 = vld [vmem:[%s1090_s25 + $0xf0] sm:$0xff]  ;;  %v346_v57 = vadd.f32 %v345_v49, %v1194_v43  ;;  %v284_v60 = vadd.f32 %v283_v52, %v1199_v46  ;;  %v1274_v48 = vmul.f32 %v1099_v2, %v1099_v2 }
  0x2f   : > { %2124 = vst [vmem:[#allocation33_spill] sm:$0xff] %v1199_v46  ;;  %2125 = vst [vmem:[#allocation34_spill] sm:$0xff] %v1202_v47  ;;  %v1210_v51 = vld [vmem:[%s1090_s25 + $0xf8] sm:$0xff]  ;;  %v1215_v54 = vld [vmem:[%s1090_s25 + $0x100] sm:$0xff]  ;;  %v305_v61 = vadd.f32 %v304_v53, %v1202_v47  ;;  %v326_v9 = vadd.f32 %v325_v56, %v1207_v50  ;;  %v1280_v53 = vmul.f32 %v1102_v3, %v1102_v3 }
  0x30   : > { %2126 = vst [vmem:[#allocation35_spill] sm:$0xff] %v1207_v50  ;;  %2127 = vst [vmem:[#allocation36_spill] sm:$0xff] %v1210_v51  ;;  %v1218_v55 = vld [vmem:[%s1090_s25 + $0x108] sm:$0xff]  ;;  %v1223_v58 = vld [vmem:[%s1090_s25 + $0x110] sm:$0xff]  ;;  %v347_v10 = vadd.f32 %v346_v57, %v1210_v51  ;;  %v285_v19 = vadd.f32 %v284_v60, %v1215_v54  ;;  %v366_v56 = vmul.f32 %v1105_v4, %v1105_v4 }
  0x31   : > { %2128 = vst [vmem:[#allocation37_spill] sm:$0xff] %v1215_v54  ;;  %2129 = vst [vmem:[#allocation38_spill] sm:$0xff] %v1218_v55  ;;  %v1226_v59 = vld [vmem:[%s1090_s25 + $0x118] sm:$0xff]  ;;  %v1231_v62 = vld [vmem:[%s1090_s25 + $0x120] sm:$0xff]  ;;  %v306_v20 = vadd.f32 %v305_v61, %v1218_v55  ;;  %v327_v28 = vadd.f32 %v326_v9, %v1223_v58  ;;  %v367_v9 = vmul.f32 %v1108_v5, %v1108_v5 }
  0x32   : > { %2130 = vst [vmem:[#allocation39_spill] sm:$0xff] %v1223_v58  ;;  %2131 = vst [vmem:[#allocation40_spill] sm:$0xff] %v1226_v59  ;;  %v1234_v63 = vld [vmem:[%s1090_s25 + $0x128] sm:$0xff]  ;;  %v1239_v14 = vld [vmem:[%s1090_s25 + $0x130] sm:$0xff]  ;;  %v348_v29 = vadd.f32 %v347_v10, %v1226_v59  ;;  %v286_v33 = vadd.f32 %v285_v19, %v1231_v62  ;;  %v368_v10 = vmul.f32 %v1111_v6, %v1111_v6 }
  0x33   : > { %2132 = vst [vmem:[#allocation41_spill] sm:$0xff] %v1231_v62  ;;  %2133 = vst [vmem:[#allocation42_spill] sm:$0xff] %v1234_v63  ;;  %v1242_v15 = vld [vmem:[%s1090_s25 + $0x138] sm:$0xff]  ;;  %v1247_v24 = vld [vmem:[%s1090_s25 + $0x140] sm:$0xff]  ;;  %v307_v36 = vadd.f32 %v306_v20, %v1234_v63  ;;  %v328_v41 = vadd.f32 %v327_v28, %v1239_v14  ;;  %v1297_v19 = vmul.f32 %v1114_v7, %v1114_v7 }
  0x34   : > { %2134 = vst [vmem:[#allocation43_spill] sm:$0xff] %v1239_v14  ;;  %2135 = vst [vmem:[#allocation44_spill] sm:$0xff] %v1242_v15  ;;  %v1250_v25 = vld [vmem:[%s1090_s25 + $0x148] sm:$0xff]  ;;  %v1255_v32 = vld [vmem:[%s1090_s25 + $0x150] sm:$0xff]  ;;  %v349_v44 = vadd.f32 %v348_v29, %v1242_v15  ;;  %v287_v49 = vadd.f32 %v286_v33, %v1247_v24  ;;  %v370_v29 = vmul.f32 %v1117_v8, %v1117_v8 }
  0x35   : > { %2136 = vst [vmem:[#allocation45_spill] sm:$0xff] %v1247_v24  ;;  %2137 = vst [vmem:[#allocation46_spill] sm:$0xff] %v1255_v32  ;;  %v1264_v40 = vld [vmem:[%s1090_s25 + $0x158] sm:$0xff]  ;;  %v308_v52 = vadd.f32 %v307_v36, %v1250_v25  ;;  %v1285_v57 = vld [vmem:[%s1090_s25 + $0x160] sm:$0xff]  ;;  %v329_v61 = vadd.f32 %v328_v41, %v1255_v32  ;;  %v1307_v33 = vmul.f32 %v1124_v11, %v1124_v11 }
  0x36   : > { %2138 = vst [vmem:[#allocation47_spill] sm:$0xff] %v1264_v40  ;;  %v1288_v60 = vld [vmem:[%s1090_s25 + $0x168] sm:$0xff]  ;;  %v1300_v20 = vld [vmem:[%s1090_s25 + $0x170] sm:$0xff]  ;;  %v350_v28 = vadd.f32 %v349_v44, %v1264_v40  ;;  %v1311_v36 = vmul.f32 %v1127_v12, %v1127_v12  ;;  %v1314_v41 = vld [vmem:[%s1090_s25 + $0x178] sm:$0xff]  ;;  %v1318_v7 = vmul.f32 %v1130_v13, %v1130_v13  ;;  %v1322_v44 = vmul.f32 %v1137_v16, %v1137_v16 }
  0x37   : > { %2139 = vst [vmem:[#allocation48_spill] sm:$0xff] %v1300_v20  ;;  %2140 = vst [vmem:[#allocation49_spill] sm:$0xff] %v1314_v41  ;;  %v1326_v8 = vmul.f32 %v1140_v17, %v1140_v17  ;;  %v1330_v11 = vmul.f32 %v1143_v18, %v1143_v18  ;;  %v288_v12 = vadd.f32 %v287_v49, %v1285_v57  ;;  %v1343_v5 = vld [vmem:[%s1090_s25 + $0x180] sm:$0xff]  ;;  %v1346_v17 = vld [vmem:[%s1090_s25 + $0x188] sm:$0xff] }
  0x38   : > { %v309_v6 = vadd.f32 %v308_v52, %v1288_v60  ;;  %v1336_v13 = vmul.f32 %v1148_v21, %v1148_v21  ;;  %v1340_v16 = vmul.f32 %v1151_v22, %v1151_v22  ;;  %2141 = vst [vmem:[#allocation50_spill] sm:$0xff] %v1343_v5  ;;  %2142 = vst [vmem:[#allocation51_spill] sm:$0xff] %v1346_v17  ;;  %v1362_v22 = vld [vmem:[%s1090_s25 + $0x190] sm:$0xff]  ;;  %v1407_v1 = vld [vmem:[%s1090_s25 + $0x1a0] sm:$0xff] }
  0x39   : > { %v330_v18 = vadd.f32 %v329_v61, %v1300_v20  ;;  %v1351_v4 = vmul.f32 %v1154_v23, %v1154_v23  ;;  %v1355_v49 = vmul.f32 %v1159_v26, %v1159_v26  ;;  %v1359_v52 = vmul.f32 %v1162_v27, %v1162_v27  ;;  %2143 = vst [vmem:[#allocation52_spill] sm:$0xff] %v1362_v22  ;;  %v1378_v27 = vld [vmem:[%s1090_s25 + $0x198] sm:$0xff] }
  0x3a   : > { %v351_v21 = vadd.f32 %v350_v28, %v1314_v41  ;;  %v1367_v61 = vmul.f32 %v1167_v30, %v1167_v30  ;;  %v1371_v23 = vmul.f32 %v1170_v31, %v1170_v31  ;;  %v1375_v26 = vmul.f32 %v1175_v34, %v1175_v34  ;;  %2144 = vst [vmem:[#allocation53_spill] sm:$0xff] %v1378_v27 }
  0x3b   : > { %v1382_v3 = vmul.f32 %v1178_v35, %v1178_v35  ;;  %v1386_v28 = vmul.f32 %v1183_v38, %v1183_v38  ;;  %v1390_v30 = vmul.f32 %v1186_v39, %v1186_v39  ;;  %v1394_v31 = vmul.f32 %v1191_v42, %v1191_v42  ;;  %2145 = vst [vmem:[#allocation54_spill] sm:$0xff] %v1407_v1  ;;  %v1410_v39 = vld [vmem:[%s1090_s25 + $0x1a8] sm:$0xff] }
  0x3c   : > { %v289_v34 = vadd.f32 %v288_v12, %v1343_v5  ;;  %v310_v2 = vadd.f32 %v309_v6, %v1346_v17  ;;  %v1400_v35 = vmul.f32 %v1194_v43, %v1194_v43  ;;  %v1404_v38 = vmul.f32 %v1199_v46, %v1199_v46  ;;  %2146 = vst [vmem:[#allocation55_spill] sm:$0xff] %v1410_v39  ;;  %v1426_v46 = vld [vmem:[%s1090_s25 + $0x1b0] sm:$0xff] }
  0x3d   : > { %v331_v42 = vadd.f32 %v330_v18, %v1362_v22  ;;  %v1415_v0 = vmul.f32 %v1202_v47, %v1202_v47  ;;  %v1419_v6 = vmul.f32 %v1207_v50, %v1207_v50  ;;  %v1423_v12 = vmul.f32 %v1210_v51, %v1210_v51  ;;  %2148 = vst [vmem:[#allocation57_spill] sm:$0xff] %v1426_v46  ;;  %v1442_v51 = vld [vmem:[%s1090_s25 + $0x1b8] sm:$0xff] }
  0x3e   : > { %v352_v43 = vadd.f32 %v351_v21, %v1378_v27  ;;  %v1431_v18 = vmul.f32 %v1215_v54, %v1215_v54  ;;  %v1435_v47 = vmul.f32 %v1218_v55, %v1218_v55  ;;  %v1439_v50 = vmul.f32 %v1223_v58, %v1223_v58  ;;  %2150 = vst [vmem:[#allocation59_spill] sm:$0xff] %v1442_v51 }
  0x3f   : > { %2147 = vst [vmem:[#allocation56_spill] sm:$0xff] %v1423_v12  ;;  %v1446_v12 = vmul.f32 %v1226_v59, %v1226_v59  ;;  %v1450_v21 = vmul.f32 %v1231_v62, %v1231_v62  ;;  %v1454_v54 = vmul.f32 %v1234_v63, %v1234_v63  ;;  %v1458_v55 = vmul.f32 %v1239_v14, %v1239_v14 }
  0x40   : > { %2149 = vst [vmem:[#allocation58_spill] sm:$0xff] %v1439_v50  ;;  %v290_v58 = vadd.f32 %v289_v34, %v1407_v1  ;;  %v311_v50 = vadd.f32 %v310_v2, %v1410_v39  ;;  %v1464_v59 = vmul.f32 %v1242_v15, %v1242_v15  ;;  %v426_v62 = vadd.f32 %v366_v56, %v1261_v37  ;;  %v1481_v15 = vld [vmem:[%s1090_s25 + $0x1d0] sm:$0xff] }
  0x41   : > { %2151 = vst [vmem:[#allocation60_spill] sm:$0xff] %v1446_v12  ;;  %2152 = vst [vmem:[#allocation61_spill] sm:$0xff] %v1450_v21  ;;  %v1468_v12 = vld [vmem:[%s1090_s25 + $0x1c0] sm:$0xff]  ;;  %v1471_v21 = vld [vmem:[%s1090_s25 + $0x1c8] sm:$0xff]  ;;  %v332_v63 = vadd.f32 %v331_v42, %v1426_v46  ;;  %v1476_v14 = vmul.f32 %v1247_v24, %v1247_v24  ;;  %v447_v34 = vadd.f32 %v367_v9, %v1270_v45 }
  0x42   : > { %2153 = vst [vmem:[#allocation62_spill] sm:$0xff] %v1464_v59  ;;  %2154 = vst [vmem:[#allocation63_spill] sm:$0xff] %v1468_v12  ;;  %v468_v2 = vadd.f32 %v368_v10, %v1274_v48  ;;  %v353_v37 = vadd.f32 %v352_v43, %v1442_v51  ;;  %v1486_v56 = vmul.f32 %v1250_v25, %v1250_v25  ;;  %v1491_v59 = vld [vmem:[%s1090_s25 + $0x1d8] sm:$0xff] }
  0x43   : > { %2155 = vst [vmem:[#allocation64_spill] sm:$0xff] %v1471_v21  ;;  %2156 = vst [vmem:[#allocation65_spill] sm:$0xff] %v1481_v15  ;;  %v427_v42 = vadd.f32 %v426_v62, %v370_v29  ;;  %v489_v24 = vadd.f32 %v1297_v19, %v1280_v53  ;;  %v1495_v45 = vmul.f32 %v1255_v32, %v1255_v32  ;;  %v1508_v29 = vld [vmem:[%s1090_s25 + $0x1e0] sm:$0xff]  ;;  %v1511_v32 = vld [vmem:[%s1090_s25 + $0x1e8] sm:$0xff] }
  0x44   : > { %2157 = vst [vmem:[#allocation66_spill] sm:$0xff] %v1491_v59  ;;  %v1499_v48 = vmul.f32 %v1264_v40, %v1264_v40  ;;  %v448_v43 = vadd.f32 %v447_v34, %v1307_v33  ;;  %v469_v9 = vadd.f32 %v468_v2, %v1311_v36  ;;  %v291_v62 = vadd.f32 %v290_v58, %v1468_v12  ;;  %v1524_v36 = vld [vmem:[%s1090_s25 + $0x1f0] sm:$0xff]  ;;  %v1534_v34 = vld [vmem:[%s1090_s25 + $0x1f8] sm:$0xff] }
  0x45   : > { %v312_v53 = vadd.f32 %v311_v50, %v1471_v21  ;;  %v428_v10 = vadd.f32 %v427_v42, %v1322_v44  ;;  %v490_v19 = vadd.f32 %v489_v24, %v1318_v7  ;;  %2158 = vst [vmem:[#allocation67_spill] sm:$0xff] %v1508_v29  ;;  %2159 = vst [vmem:[#allocation68_spill] sm:$0xff] %v1511_v32 }
  0x46   : > { %v333_v40 = vadd.f32 %v332_v63, %v1481_v15  ;;  %v1519_v33 = vmul.f32 %v1285_v57, %v1285_v57  ;;  %v449_v58 = vadd.f32 %v448_v43, %v1326_v8  ;;  %v470_v50 = vadd.f32 %v469_v9, %v1330_v11  ;;  %2160 = vst [vmem:[#allocation69_spill] sm:$0xff] %v1524_v36 }
  0x47   : > { %v354_v7 = vadd.f32 %v353_v37, %v1491_v59  ;;  %v1529_v24 = vmul.f32 %v1288_v60, %v1288_v60  ;;  %v429_v44 = vadd.f32 %v428_v10, %v1340_v16  ;;  %v491_v63 = vadd.f32 %v490_v19, %v1336_v13  ;;  %2161 = vst [vmem:[#allocation70_spill] sm:$0xff] %v1534_v34 }
  0x48   : > { %v408_v2 = vmul.f32 %v1300_v20, %v1300_v20  ;;  %v1540_v8 = vmul.f32 %v1314_v41, %v1314_v41  ;;  %v450_v11 = vadd.f32 %v449_v58, %v1351_v4  ;;  %v471_v37 = vadd.f32 %v470_v50, %v1355_v49 }
  0x49   : > { %v292_v42 = vadd.f32 %v291_v62, %v1508_v29  ;;  %v313_v43 = vadd.f32 %v312_v53, %v1511_v32  ;;  %v430_v16 = vadd.f32 %v429_v44, %v1367_v61  ;;  %v492_v13 = vadd.f32 %v491_v63, %v1359_v52 }
  0x4a   : > { %v334_v9 = vadd.f32 %v333_v40, %v1524_v36  ;;  %v410_v10 = vmul.f32 %v1343_v5, %v1343_v5  ;;  %v451_v19 = vadd.f32 %v450_v11, %v1371_v23  ;;  %v472_v4 = vadd.f32 %v471_v37, %v1375_v26 }
  0x4b   : > { %v355_v49 = vadd.f32 %v354_v7, %v1534_v34  ;;  %v411_v62 = vmul.f32 %v1346_v17, %v1346_v17  ;;  %v431_v53 = vadd.f32 %v430_v16, %v1386_v28  ;;  %v493_v61 = vadd.f32 %v492_v13, %v1382_v3  ;;  %v2162_v16 = vld [vmem:[#allocation56_spill] sm:$0xff] }
  0x4c   : > { %v412_v40 = vmul.f32 %v1362_v22, %v1362_v22  ;;  %v413_v52 = vmul.f32 %v1378_v27, %v1378_v27  ;;  %v452_v58 = vadd.f32 %v451_v19, %v1390_v30  ;;  %v473_v23 = vadd.f32 %v472_v4, %v1394_v31  ;;  %v2163_v4 = vld [vmem:[#allocation58_spill] sm:$0xff]  ;;  %v2206_v27 = vld [vmem:[#allocation44_spill] sm:$0xff] }
  0x4d   : > { %v293_v26 = vrot.slane %v292_v42, 4  ;;  %v314_v50 = vrot.slane %v313_v43, 4  ;;  %v432_v7 = vadd.f32 %v431_v53, %v1404_v38  ;;  %v494_v44 = vadd.f32 %v493_v61, %v1400_v35  ;;  %v2164_v61 = vld [vmem:[#allocation61_spill] sm:$0xff] }
  0x4e   : > { %v335_v28 = vrot.slane %v334_v9, 4  ;;  %v414_v3 = vmul.f32 %v1407_v1, %v1407_v1  ;;  %v453_v63 = vadd.f32 %v452_v58, %v1415_v0  ;;  %v474_v11 = vadd.f32 %v473_v23, %v1419_v6  ;;  %v2165_v23 = vld [vmem:[#allocation60_spill] sm:$0xff] }
  0x4f   : > { %v356_v37 = vrot.slane %v355_v49, 4  ;;  %v415_v30 = vmul.f32 %v1410_v39, %v1410_v39  ;;  %v433_v31 = vadd.f32 %v432_v7, %v1431_v18  ;;  %v495_v13 = vadd.f32 %v494_v44, %v2162_v16 }
  0x50   : > { %v416_v35 = vmul.f32 %v1426_v46, %v1426_v46  ;;  %v417_v38 = vmul.f32 %v1442_v51, %v1442_v51  ;;  %v454_v19 = vadd.f32 %v453_v63, %v1435_v47  ;;  %v475_v0 = vadd.f32 %v474_v11, %v2163_v4  ;;  %v2166_v63 = vld [vmem:[#allocation62_spill] sm:$0xff]  ;;  %v2205_v46 = vld [vmem:[#allocation43_spill] sm:$0xff] }
  0x51   : > { %v294_v53 = vadd.f32 %v293_v26, %v292_v42  ;;  %v315_v6 = vadd.f32 %v314_v50, %v313_v43  ;;  %v434_v58 = vadd.f32 %v433_v31, %v2164_v61  ;;  %v496_v39 = vadd.f32 %v495_v13, %v2165_v23 }
  0x52   : > { %v336_v1 = vadd.f32 %v335_v28, %v334_v9  ;;  %v455_v18 = vadd.f32 %v454_v19, %v1454_v54  ;;  %v476_v7 = vadd.f32 %v475_v0, %v1458_v55  ;;  %v510_v44 = vstv %s277_s27 }
  0x53   : > { %v357_v16 = vadd.f32 %v356_v37, %v355_v49  ;;  %v418_v51 = vmul.f32 %v1468_v12, %v1468_v12  ;;  %v435_v47 = vadd.f32 %v434_v58, %v1476_v14  ;;  %v497_v11 = vadd.f32 %v496_v39, %v2166_v63  ;;  %v2204_v12 = vld [vmem:[#allocation42_spill] sm:$0xff] }
  0x54   : > { %v419_v42 = vmul.f32 %v1471_v21, %v1471_v21  ;;  %v420_v43 = vmul.f32 %v1481_v15, %v1481_v15  ;;  %v456_v9 = vadd.f32 %v455_v18, %v1486_v56  ;;  %v477_v54 = vadd.f32 %v476_v7, %v1495_v45 }
  0x55   : > { %v295_v55 = vrot.slane %v294_v53, 2  ;;  %v436_v49 = vadd.f32 %v435_v47, %v1519_v33  ;;  %v498_v26 = vadd.f32 %v497_v11, %v1499_v48  ;;  %1008 = vrcp.f32 %v510_v44 }
  0x56   : > { %v316_v50 = vrot.slane %v315_v6, 2  ;;  %v337_v14 = vrot.slane %v336_v1, 2  ;;  %v457_v39 = vadd.f32 %v456_v9, %v1529_v24  ;;  %v478_v28 = vadd.f32 %v477_v54, %v408_v2 }
  0x57   : > { %v358_v37 = vrot.slane %v357_v16, 2  ;;  %v421_v31 = vmul.f32 %v1491_v59, %v1491_v59  ;;  %v437_v13 = vadd.f32 %v436_v49, %v410_v10  ;;  %v499_v56 = vadd.f32 %v498_v26, %v1540_v8  ;;  %v2201_v59 = vld [vmem:[#allocation39_spill] sm:$0xff] }
  0x58   : > { %v422_v45 = vmul.f32 %v1508_v29, %v1508_v29  ;;  %v423_v33 = vmul.f32 %v1511_v32, %v1511_v32  ;;  %v458_v48 = vadd.f32 %v457_v39, %v411_v62  ;;  %v479_v19 = vadd.f32 %v478_v28, %v412_v40  ;;  %v2199_v32 = vld [vmem:[#allocation37_spill] sm:$0xff]  ;;  %v2200_v29 = vld [vmem:[#allocation38_spill] sm:$0xff] }
  0x59   : > { %v296_v4 = vadd.f32 %v295_v55, %v294_v53  ;;  %v424_v24 = vmul.f32 %v1524_v36, %v1524_v36  ;;  %v438_v2 = vadd.f32 %v437_v13, %v414_v3  ;;  %v500_v0 = vadd.f32 %v499_v56, %v413_v52  ;;  %v2198_v36 = vld [vmem:[#allocation36_spill] sm:$0xff] }
  0x5a   : > { %v317_v61 = vadd.f32 %v316_v50, %v315_v6  ;;  %v338_v58 = vadd.f32 %v337_v14, %v336_v1  ;;  %v459_v23 = vadd.f32 %v458_v48, %v415_v30  ;;  %v480_v10 = vadd.f32 %v479_v19, %v416_v35 }
  0x5b   : > { %v359_v18 = vadd.f32 %v358_v37, %v357_v16  ;;  %v425_v8 = vmul.f32 %v1534_v34, %v1534_v34  ;;  %v439_v7 = vadd.f32 %v438_v2, %v418_v51  ;;  %v501_v44 = vadd.f32 %v500_v0, %v417_v38  ;;  %v2197_v34 = vld [vmem:[#allocation35_spill] sm:$0xff] }
  0x5c   : > { %v460_v47 = vadd.f32 %v459_v23, %v419_v42  ;;  %v481_v63 = vadd.f32 %v480_v10, %v420_v43  ;;  %v297_v62 = vrot.slane %v296_v4, 1  ;;  %v318_v11 = vrot.slane %v317_v61, 1 }
  0x5d   : > { %v440_v40 = vadd.f32 %v439_v7, %v422_v45  ;;  %v502_v53 = vadd.f32 %v501_v44, %v421_v31  ;;  %v339_v9 = vrot.slane %v338_v58, 1  ;;  %v360_v52 = vrot.slane %v359_v18, 1 }
  0x5e   : > { %v461_v54 = vadd.f32 %v460_v47, %v423_v33  ;;  %v482_v3 = vadd.f32 %v481_v63, %v424_v24  ;;  %v298_v16 = vadd.f32 %v297_v62, %v296_v4  ;;  %v319_v51 = vadd.f32 %v318_v11, %v317_v61 }
  0x5f   : > { %v441_v6 = vrot.slane %v440_v40, 4  ;;  %v503_v1 = vadd.f32 %v502_v53, %v425_v8  ;;  %v340_v38 = vadd.f32 %v339_v9, %v338_v58  ;;  %v361_v50 = vadd.f32 %v360_v52, %v359_v18 }
  0x60   : > { %v462_v30 = vrot.slane %v461_v54, 4  ;;  %v483_v35 = vrot.slane %v482_v3, 4 }
  0x61   : > { %v442_v55 = vadd.f32 %v441_v6, %v440_v40  ;;  %v504_v49 = vrot.slane %v503_v1, 4 }
  0x62   : > { %v1009_v26 = vpop.eup %1008  ;;  %v463_v42 = vadd.f32 %v462_v30, %v461_v54  ;;  %v484_v43 = vadd.f32 %v483_v35, %v482_v3 }
  0x63   : > { %v443_v14 = vrot.slane %v442_v55, 2  ;;  %v505_v39 = vadd.f32 %v504_v49, %v503_v1  ;;  %v1609_v56 = vmul.f32 %v1009_v26, %v298_v16  ;;  %v1611_v48 = vmul.f32 %v1009_v26, %v319_v51 }
  0x64   : > { %v464_v28 = vrot.slane %v463_v42, 2  ;;  %v485_v37 = vrot.slane %v484_v43, 2  ;;  %v1613_v19 = vmul.f32 %v1009_v26, %v340_v38  ;;  %v1615_v2 = vmul.f32 %v1009_v26, %v361_v50 }
  0x65   : > { %v444_v31 = vadd.f32 %v443_v14, %v442_v55  ;;  %v506_v13 = vrot.slane %v505_v39, 2  ;;  %v520_v10 = vmul.f32 %v1609_v56, %v1609_v56  ;;  %v521_v7 = vmul.f32 %v1611_v48, %v1611_v48 }
  0x66   : > { %v465_v45 = vadd.f32 %v464_v28, %v463_v42  ;;  %v486_v33 = vadd.f32 %v485_v37, %v484_v43  ;;  %v522_v44 = vmul.f32 %v1613_v19, %v1613_v19  ;;  %v523_v62 = vmul.f32 %v1615_v2, %v1615_v2 }
  0x67   : > { %v445_v4 = vrot.slane %v444_v31, 1  ;;  %v507_v24 = vadd.f32 %v506_v13, %v505_v39  ;;  %v1041_v38 = vmov 1966171168   ;;  %v550_v42 = vlaneseq }
  0x68   : > { %v466_v0 = vrot.slane %v465_v45, 1  ;;  %v487_v61 = vrot.slane %v486_v33, 1 }
  0x69   : > { %v446_v58 = vadd.f32 %v445_v4, %v444_v31  ;;  %v508_v23 = vrot.slane %v507_v24, 1  ;;  %v1626_v50 = vshrl.u32 %v550_v42, 7  ;;  %v2175_v42 = vld [vmem:[#allocation13_spill] sm:$0xff] }
  0x6a   : > { %v467_v18 = vadd.f32 %v466_v0, %v465_v45  ;;  %v488_v8 = vadd.f32 %v487_v61, %v486_v33  ;;  %v532_v0 = vld [vmem:[%s202_s5] sm:$0xf] }
  0x6b   : > { %v509_v47 = vadd.f32 %v508_v23, %v507_v24  ;;  %v516_v63 = vmul.f32 %v1009_v26, %v446_v58  ;;  %v575_v61 = vsub.s32 0, %v1626_v50  ;;  %v579_v23 = vsub.s32 1, %v1626_v50 }
  0x6c   : > { %v517_v40 = vmul.f32 %v1009_v26, %v467_v18  ;;  %v518_v53 = vmul.f32 %v1009_v26, %v488_v8  ;;  %v587_v18 = vsub.s32 3, %v1626_v50 }
  0x6d   : > { %v519_v11 = vmul.f32 %v1009_v26, %v509_v47  ;;  %v524_v9 = vsub.f32 %v516_v63, %v520_v10  ;;  %v548_v26 = vunpack.c.l.s4 %v1041_v38  ;;  %v583_v10 = vsub.s32 2, %v1626_v50  ;;  %v2174_v38 = vld [vmem:[#allocation12_spill] sm:$0xff] }
  0x6e   : > { %v525_v54 = vsub.f32 %v517_v40, %v521_v7  ;;  %v526_v3 = vsub.f32 %v518_v53, %v522_v44 }
  0x6f   : > { %v527_v52 = vsub.f32 %v519_v11, %v523_v62  ;;  %v528_v6 = vmax.f32 %v524_v9, 0.0  ;;  %v549_v43 = vunpack.c.0.s8 %v548_v26  ;;  %v2167_v9 = vld [vmem:[#allocation5_spill] sm:$0xff] }
  0x70   : > { %v529_v1 = vmax.f32 %v525_v54, 0.0  ;;  %v530_v30 = vmax.f32 %v526_v3, 0.0  ;;  %v2168_v3 = vld [vmem:[#allocation6_spill] sm:$0xff] }
  0x71   : > { %v531_v35 = vmax.f32 %v527_v52, 0.0  ;;  %v533_v16 = vadd.f32 1e-05, %v528_v6  ;;  %v552_v39 = vsub.s32 %v549_v43, %v1626_v50  ;;  %v2169_v6 = vld [vmem:[#allocation7_spill] sm:$0xff]  ;;  %v2176_v50 = vld [vmem:[#allocation14_spill] sm:$0xff] }
  0x72   : > { %v534_v55 = vadd.f32 1e-05, %v529_v1  ;;  %v535_v49 = vadd.f32 1e-05, %v530_v30 }
  0x73   : > { %v536_v51 = vadd.f32 1e-05, %v531_v35  ;;  %1010 = vrsqrt.f32 %v533_v16  ;;  %v2171_v16 = vld [vmem:[#allocation9_spill] sm:$0xff] }
  0x74   : > { %1012 = vrsqrt.f32 %v534_v55  ;;  %v2172_v55 = vld [vmem:[#allocation10_spill] sm:$0xff] }
  0x75   : > { %1014 = vrsqrt.f32 %v535_v49  ;;  %v2173_v49 = vld [vmem:[#allocation11_spill] sm:$0xff] }
  0x76   : > { %1016 = vrsqrt.f32 %v536_v51 }
  0x80   : > { %v1011_v14 = vpop.eup %1010 }
  0x81   : > { %v1013_v28 = vpop.eup %1012 }
  0x82   : > { %v1015_v37 = vpop.eup %1014  ;;  %v545_v31 = vcombine.low %v1011_v14, %v1013_v28 }
  0x83   : > { %v1017_v13 = vpop.eup %1016 }
  0x84   : > { %v546_v45 = vcombine.low %v1015_v37, %v1017_v13  ;;  %v553_v33 = vrot.slane %v545_v31, %v552_v39  ;;  %v2177_v31 = vld [vmem:[#allocation15_spill] sm:$0xff] }
  0x86   : > { %v560_v4 = vrot.slane %v546_v45, %v552_v39  ;;  %v2178_v45 = vld [vmem:[#allocation16_spill] sm:$0xff] }
  0x88   : > { %v561_v24 = vcombine.low %v553_v33, %v560_v4  ;;  %v2179_v4 = vld [vmem:[#allocation17_spill] sm:$0xff] }
  0x8a   : > { %v568_v58 = vrot.slane %v561_v24, %v552_v39 }
  0x8c   : > { %v570_v8 = vmul.f32 %v568_v58, %v532_v0  ;;  %v2180_v0 = vld [vmem:[#allocation18_spill] sm:$0xff] }
  0x8e   : > { %v1642_v7 = vrot.slane %v570_v8, %v575_v61  ;;  %v1644_v44 = vrot.slane %v570_v8, %v579_v23  ;;  %v1646_v47 = vrot.slane %v570_v8, %v583_v10  ;;  %v1648_v63 = vrot.slane %v570_v8, %v587_v18  ;;  %v2181_v8 = vld [vmem:[#allocation19_spill] sm:$0xff] }
  0x90   : > { %v593_v62 = vmul.f32 %v1642_v7, %v1609_v56  ;;  %v594_v40 = vmul.f32 %v1644_v44, %v1611_v48  ;;  %v595_v53 = vmul.f32 %v1646_v47, %v1613_v19  ;;  %v596_v11 = vmul.f32 %v1648_v63, %v1615_v2  ;;  %v2170_v56 = vld [vmem:[#allocation8_spill] sm:$0xff] }
  0x91   : > { %v627_v54 = vmul.f32 %v1642_v7, %v2167_v9  ;;  %v628_v52 = vmul.f32 %v1644_v44, %v2168_v3  ;;  %v629_v1 = vmul.f32 %v1646_v47, %v2169_v6  ;;  %v630_v30 = vmul.f32 %v1648_v63, %v2170_v56  ;;  %v2183_v9 = vld [vmem:[#allocation21_spill] sm:$0xff]  ;;  %v2184_v6 = vld [vmem:[#allocation22_spill] sm:$0xff] }
  0x92   : > { %v601_v35 = vcombine.low %v593_v62, %v594_v40  ;;  %v602_v48 = vcombine.low %v595_v53, %v596_v11  ;;  %v631_v19 = vmul.f32 %v1642_v7, %v2171_v16  ;;  %v632_v2 = vmul.f32 %v1644_v44, %v2172_v55  ;;  %v2182_v40 = vld [vmem:[#allocation20_spill] sm:$0xff]  ;;  %v571_v16 = vld [vmem:[%s206_s8] sm:$0xf] }
  0x93   : > { %v633_v51 = vmul.f32 %v1646_v47, %v2173_v49  ;;  %v634_v26 = vmul.f32 %v1648_v63, %v2174_v38  ;;  %v1676_v43 = vmul.f32 %v1642_v7, %v2175_v42  ;;  %v1680_v14 = vmul.f32 %v1644_v44, %v2176_v50  ;;  %v2186_v55 = vld [vmem:[#allocation24_spill] sm:$0xff]  ;;  %v2187_v38 = vld [vmem:[#allocation25_spill] sm:$0xff]  ;;  %v2188_v50 = vld [vmem:[#allocation26_spill] sm:$0xff] }
  0x94   : > { %v609_v28 = vrot.slane %v601_v35, %v552_v39  ;;  %v616_v37 = vrot.slane %v602_v48, %v552_v39  ;;  %v637_v13 = vmul.f32 %v1646_v47, %v2177_v31  ;;  %v638_v33 = vmul.f32 %v1648_v63, %v2178_v45  ;;  %v2185_v35 = vld [vmem:[#allocation23_spill] sm:$0xff] }
  0x95   : > { %v1693_v24 = vmul.f32 %v1642_v7, %v2179_v4  ;;  %v1697_v58 = vmul.f32 %v1644_v44, %v2180_v0  ;;  %v1701_v62 = vmul.f32 %v1646_v47, %v2181_v8  ;;  %v1705_v53 = vmul.f32 %v1648_v63, %v2182_v40  ;;  %v2190_v4 = vld [vmem:[#allocation28_spill] sm:$0xff]  ;;  %v2191_v8 = vld [vmem:[#allocation29_spill] sm:$0xff] }
  0x96   : > { %v617_v11 = vcombine.low %v609_v28, %v616_v37  ;;  %v1709_v3 = vmul.f32 %v1642_v7, %v2183_v9  ;;  %v1713_v56 = vmul.f32 %v1644_v44, %v2184_v6  ;;  %v1717_v48 = vmul.f32 %v1646_v47, %v2185_v35  ;;  %v2189_v37 = vld [vmem:[#allocation27_spill] sm:$0xff]  ;;  %v2192_v9 = vld [vmem:[#allocation30_spill] sm:$0xff] }
  0x97   : > { %v1721_v49 = vmul.f32 %v1648_v63, %v2186_v55  ;;  %v1725_v42 = vmul.f32 %v1642_v7, %v2187_v38  ;;  %v1729_v28 = vmul.f32 %v1644_v44, %v2188_v50  ;;  %v1733_v31 = vmul.f32 %v1646_v47, %v2189_v37  ;;  %v2193_v35 = vld [vmem:[#allocation31_spill] sm:$0xff]  ;;  %v2194_v38 = vld [vmem:[#allocation32_spill] sm:$0xff]  ;;  %v2196_v37 = vld [vmem:[#allocation34_spill] sm:$0xff] }
  0x98   : > { %v624_v45 = vrot.slane %v617_v11, %v552_v39  ;;  %v1737_v0 = vmul.f32 %v1648_v63, %v2190_v4  ;;  %v1741_v40 = vmul.f32 %v1642_v7, %v2191_v8  ;;  %v1745_v6 = vmul.f32 %v1644_v44, %v2192_v9  ;;  %v2195_v39 = vld [vmem:[#allocation33_spill] sm:$0xff] }
  0x99   : > { %v1749_v55 = vmul.f32 %v1646_v47, %v2193_v35  ;;  %v1753_v50 = vmul.f32 %v1648_v63, %v2194_v38  ;;  %v1757_v11 = vmul.f32 %v1642_v7, %v2195_v39  ;;  %v1761_v4 = vmul.f32 %v1644_v44, %v2196_v37  ;;  %v2203_v37 = vld [vmem:[#allocation41_spill] sm:$0xff] }
  0x9a   : > { %v626_v8 = vsub.f32 %v571_v16, %v624_v45  ;;  %v1765_v9 = vmul.f32 %v1646_v47, %v2197_v34  ;;  %v1769_v35 = vmul.f32 %v1648_v63, %v2198_v36  ;;  %v1773_v38 = vmul.f32 %v1642_v7, %v2199_v32  ;;  %v2202_v45 = vld [vmem:[#allocation40_spill] sm:$0xff] }
  0x9b   : > { %v1777_v39 = vmul.f32 %v1644_v44, %v2200_v29  ;;  %v1781_v16 = vmul.f32 %v1646_v47, %v2201_v59  ;;  %v1785_v34 = vmul.f32 %v1648_v63, %v2202_v45  ;;  %v1789_v36 = vmul.f32 %v1642_v7, %v2203_v37 }
  0x9c   : > { %v1791_v15 = vrot.slane %v626_v8, %v575_v61  ;;  %v1793_v32 = vrot.slane %v626_v8, %v579_v23  ;;  %v1795_v21 = vrot.slane %v626_v8, %v583_v10  ;;  %v1797_v29 = vrot.slane %v626_v8, %v587_v18  ;;  %v2207_v61 = vld [vmem:[#allocation45_spill] sm:$0xff] }
  0x9d   : > { %v1801_v59 = vmul.f32 %v1644_v44, %v2204_v12  ;;  %v1805_v45 = vmul.f32 %v1646_v47, %v2205_v46  ;;  %v1809_v37 = vmul.f32 %v1648_v63, %v2206_v27  ;;  %v1813_v23 = vmul.f32 %v1642_v7, %v2207_v61 }
  0x9e   : > { %v712_v10 = vadd.f32 %v1791_v15, %v627_v54  ;;  %v713_v18 = vadd.f32 %v1793_v32, %v628_v52  ;;  %v714_v8 = vadd.f32 %v1795_v21, %v629_v1  ;;  %v715_v12 = vadd.f32 %v1797_v29, %v630_v30 }
  0x9f   : > { %v716_v27 = vadd.f32 %v1791_v15, %v631_v19  ;;  %v717_v46 = vadd.f32 %v1793_v32, %v632_v2  ;;  %v718_v54 = vadd.f32 %v1795_v21, %v633_v51  ;;  %v719_v52 = vadd.f32 %v1797_v29, %v634_v26 }
  0xa0   : > { %v776_v1 = vmax.f32 %v712_v10, 0.0  ;;  %v777_v30 = vmax.f32 %v713_v18, 0.0  ;;  %v778_v61 = vmax.f32 %v714_v8, 0.0  ;;  %v779_v22 = vmax.f32 %v715_v12, 0.0 }
  0xa1   : > { %v780_v17 = vmax.f32 %v716_v27, 0.0  ;;  %v781_v5 = vmax.f32 %v717_v46, 0.0  ;;  %v782_v41 = vmax.f32 %v718_v54, 0.0  ;;  %v783_v20 = vmax.f32 %v719_v52, 0.0 }
  0xa2   : > { %840 = vst [vmem:[%s1824_s11] sm:$0xff] %v776_v1  ;;  %841 = vst [vmem:[%s1824_s11 + $0x8] sm:$0xff] %v777_v30  ;;  %v720_v19 = vadd.f32 %v1791_v15, %v1676_v43  ;;  %v721_v2 = vadd.f32 %v1793_v32, %v1680_v14  ;;  %v722_v51 = vadd.f32 %v1795_v21, %v637_v13 }
  0xa3   : > { %842 = vst [vmem:[%s1824_s11 + $0x10] sm:$0xff] %v778_v61  ;;  %843 = vst [vmem:[%s1824_s11 + $0x18] sm:$0xff] %v779_v22  ;;  %v723_v26 = vadd.f32 %v1797_v29, %v638_v33  ;;  %v724_v22 = vadd.f32 %v1791_v15, %v1693_v24  ;;  %v725_v43 = vadd.f32 %v1793_v32, %v1697_v58 }
  0xa4   : > { %844 = vst [vmem:[%s1824_s11 + $0x20] sm:$0xff] %v780_v17  ;;  %845 = vst [vmem:[%s1824_s11 + $0x28] sm:$0xff] %v781_v5  ;;  %v726_v14 = vadd.f32 %v1795_v21, %v1701_v62  ;;  %v727_v13 = vadd.f32 %v1797_v29, %v1705_v53  ;;  %v784_v17 = vmax.f32 %v720_v19, 0.0  ;;  %v785_v5 = vmax.f32 %v721_v2, 0.0 }
  0xa5   : > { %846 = vst [vmem:[%s1824_s11 + $0x30] sm:$0xff] %v782_v41  ;;  %847 = vst [vmem:[%s1824_s11 + $0x38] sm:$0xff] %v783_v20  ;;  %v786_v41 = vmax.f32 %v722_v51, 0.0  ;;  %v787_v20 = vmax.f32 %v723_v26, 0.0  ;;  %v788_v33 = vmax.f32 %v724_v22, 0.0  ;;  %v789_v10 = vmax.f32 %v725_v43, 0.0 }
  0xa6   : > { %v790_v24 = vmax.f32 %v726_v14, 0.0  ;;  %v791_v18 = vmax.f32 %v727_v13, 0.0  ;;  %848 = vst [vmem:[%s1824_s11 + $0x40] sm:$0xff] %v784_v17  ;;  %849 = vst [vmem:[%s1824_s11 + $0x48] sm:$0xff] %v785_v5  ;;  %v728_v58 = vadd.f32 %v1791_v15, %v1709_v3  ;;  %v729_v62 = vadd.f32 %v1793_v32, %v1713_v56 }
  0xa7   : > { %850 = vst [vmem:[%s1824_s11 + $0x50] sm:$0xff] %v786_v41  ;;  %851 = vst [vmem:[%s1824_s11 + $0x58] sm:$0xff] %v787_v20  ;;  %v730_v53 = vadd.f32 %v1795_v21, %v1717_v48  ;;  %v731_v8 = vadd.f32 %v1797_v29, %v1721_v49  ;;  %v732_v3 = vadd.f32 %v1791_v15, %v1725_v42 }
  0xa8   : > { %852 = vst [vmem:[%s1824_s11 + $0x60] sm:$0xff] %v788_v33  ;;  %853 = vst [vmem:[%s1824_s11 + $0x68] sm:$0xff] %v789_v10  ;;  %v733_v56 = vadd.f32 %v1793_v32, %v1729_v28  ;;  %v734_v48 = vadd.f32 %v1795_v21, %v1733_v31  ;;  %v735_v49 = vadd.f32 %v1797_v29, %v1737_v0  ;;  %v792_v12 = vmax.f32 %v728_v58, 0.0  ;;  %v2209_v58 = vld [vmem:[#allocation47_spill] sm:$0xff] }
  0xa9   : > { %854 = vst [vmem:[%s1824_s11 + $0x70] sm:$0xff] %v790_v24  ;;  %855 = vst [vmem:[%s1824_s11 + $0x78] sm:$0xff] %v791_v18  ;;  %v793_v27 = vmax.f32 %v729_v62, 0.0  ;;  %v794_v46 = vmax.f32 %v730_v53, 0.0  ;;  %v795_v54 = vmax.f32 %v731_v8, 0.0  ;;  %v796_v52 = vmax.f32 %v732_v3, 0.0 }
  0xaa   : > { %v797_v1 = vmax.f32 %v733_v56, 0.0  ;;  %v798_v42 = vmax.f32 %v734_v48, 0.0  ;;  %v799_v30 = vmax.f32 %v735_v49, 0.0  ;;  %856 = vst [vmem:[%s1824_s11 + $0x80] sm:$0xff] %v792_v12  ;;  %v736_v28 = vadd.f32 %v1791_v15, %v1741_v40  ;;  %v2210_v8 = vld [vmem:[#allocation48_spill] sm:$0xff]  ;;  %v2211_v3 = vld [vmem:[#allocation49_spill] sm:$0xff] }
  0xab   : > { %857 = vst [vmem:[%s1824_s11 + $0x88] sm:$0xff] %v793_v27  ;;  %858 = vst [vmem:[%s1824_s11 + $0x90] sm:$0xff] %v794_v46  ;;  %v737_v31 = vadd.f32 %v1793_v32, %v1745_v6  ;;  %v738_v0 = vadd.f32 %v1795_v21, %v1749_v55  ;;  %v739_v61 = vadd.f32 %v1797_v29, %v1753_v50 }
  0xac   : > { %859 = vst [vmem:[%s1824_s11 + $0x98] sm:$0xff] %v795_v54  ;;  %860 = vst [vmem:[%s1824_s11 + $0xa0] sm:$0xff] %v796_v52  ;;  %v740_v40 = vadd.f32 %v1791_v15, %v1757_v11  ;;  %v741_v6 = vadd.f32 %v1793_v32, %v1761_v4  ;;  %v742_v55 = vadd.f32 %v1795_v21, %v1765_v9  ;;  %v800_v19 = vmax.f32 %v736_v28, 0.0 }
  0xad   : > { %861 = vst [vmem:[%s1824_s11 + $0xa8] sm:$0xff] %v797_v1  ;;  %862 = vst [vmem:[%s1824_s11 + $0xb0] sm:$0xff] %v798_v42  ;;  %v743_v50 = vadd.f32 %v1797_v29, %v1769_v35  ;;  %v801_v2 = vmax.f32 %v737_v31, 0.0  ;;  %v802_v51 = vmax.f32 %v738_v0, 0.0  ;;  %v803_v26 = vmax.f32 %v739_v61, 0.0 }
  0xae   : > { %863 = vst [vmem:[%s1824_s11 + $0xb8] sm:$0xff] %v799_v30  ;;  %v804_v22 = vmax.f32 %v740_v40, 0.0  ;;  %v805_v43 = vmax.f32 %v741_v6, 0.0  ;;  %v806_v11 = vmax.f32 %v742_v55, 0.0  ;;  %864 = vst [vmem:[%s1824_s11 + $0xc0] sm:$0xff] %v800_v19  ;;  %v744_v4 = vadd.f32 %v1791_v15, %v1773_v38  ;;  %v2212_v30 = vld [vmem:[#allocation50_spill] sm:$0xff] }
  0xaf   : > { %v807_v14 = vmax.f32 %v743_v50, 0.0  ;;  %865 = vst [vmem:[%s1824_s11 + $0xc8] sm:$0xff] %v801_v2  ;;  %866 = vst [vmem:[%s1824_s11 + $0xd0] sm:$0xff] %v802_v51  ;;  %v745_v9 = vadd.f32 %v1793_v32, %v1777_v39  ;;  %v746_v35 = vadd.f32 %v1795_v21, %v1781_v16  ;;  %v747_v13 = vadd.f32 %v1797_v29, %v1785_v34  ;;  %v2213_v55 = vld [vmem:[#allocation51_spill] sm:$0xff]  ;;  %v2214_v19 = vld [vmem:[#allocation52_spill] sm:$0xff] }
  0xb0   : > { %867 = vst [vmem:[%s1824_s11 + $0xd8] sm:$0xff] %v803_v26  ;;  %868 = vst [vmem:[%s1824_s11 + $0xe0] sm:$0xff] %v804_v22  ;;  %v748_v38 = vadd.f32 %v1791_v15, %v1789_v36  ;;  %v749_v39 = vadd.f32 %v1793_v32, %v1801_v59  ;;  %v750_v16 = vadd.f32 %v1795_v21, %v1805_v45  ;;  %v808_v17 = vmax.f32 %v744_v4, 0.0  ;;  %v2215_v51 = vld [vmem:[#allocation53_spill] sm:$0xff]  ;;  %v2216_v22 = vld [vmem:[#allocation54_spill] sm:$0xff] }
  0xb1   : > { %869 = vst [vmem:[%s1824_s11 + $0xe8] sm:$0xff] %v805_v43  ;;  %870 = vst [vmem:[%s1824_s11 + $0xf0] sm:$0xff] %v806_v11  ;;  %v751_v34 = vadd.f32 %v1797_v29, %v1809_v37  ;;  %v809_v5 = vmax.f32 %v745_v9, 0.0  ;;  %v810_v41 = vmax.f32 %v746_v35, 0.0  ;;  %v811_v20 = vmax.f32 %v747_v13, 0.0  ;;  %v2208_v37 = vld [vmem:[#allocation46_spill] sm:$0xff] }
  0xb2   : > { %871 = vst [vmem:[%s1824_s11 + $0xf8] sm:$0xff] %v807_v14  ;;  %v812_v33 = vmax.f32 %v748_v38, 0.0  ;;  %v813_v10 = vmax.f32 %v749_v39, 0.0  ;;  %v814_v36 = vmax.f32 %v750_v16, 0.0  ;;  %872 = vst [vmem:[%s1824_s11 + $0x100] sm:$0xff] %v808_v17  ;;  %v752_v59 = vadd.f32 %v1791_v15, %v1813_v23  ;;  %v2217_v11 = vld [vmem:[#allocation55_spill] sm:$0xff] }
  0xb3   : > { %v815_v24 = vmax.f32 %v751_v34, 0.0  ;;  %873 = vst [vmem:[%s1824_s11 + $0x108] sm:$0xff] %v809_v5  ;;  %874 = vst [vmem:[%s1824_s11 + $0x110] sm:$0xff] %v810_v41  ;;  %v668_v45 = vmul.f32 %v1644_v44, %v1250_v25  ;;  %v669_v18 = vmul.f32 %v1646_v47, %v2208_v37  ;;  %v670_v62 = vmul.f32 %v1648_v63, %v2209_v58  ;;  %v2218_v4 = vld [vmem:[#allocation57_spill] sm:$0xff]  ;;  %v2219_v35 = vld [vmem:[#allocation59_spill] sm:$0xff] }
  0xb4   : > { %875 = vst [vmem:[%s1824_s11 + $0x118] sm:$0xff] %v811_v20  ;;  %876 = vst [vmem:[%s1824_s11 + $0x120] sm:$0xff] %v812_v33  ;;  %v671_v53 = vmul.f32 %v1642_v7, %v1285_v57  ;;  %v672_v23 = vmul.f32 %v1644_v44, %v1288_v60  ;;  %v673_v25 = vmul.f32 %v1646_v47, %v2210_v8  ;;  %v816_v48 = vmax.f32 %v752_v59, 0.0  ;;  %v2222_v8 = vld [vmem:[#allocation65_spill] sm:$0xff] }
  0xb5   : > { %877 = vst [vmem:[%s1824_s11 + $0x128] sm:$0xff] %v813_v10  ;;  %878 = vst [vmem:[%s1824_s11 + $0x130] sm:$0xff] %v814_v36  ;;  %v674_v56 = vmul.f32 %v1648_v63, %v2211_v3  ;;  %v753_v49 = vadd.f32 %v1793_v32, %v668_v45  ;;  %v754_v12 = vadd.f32 %v1795_v21, %v669_v18  ;;  %v2223_v3 = vld [vmem:[#allocation66_spill] sm:$0xff] }
  0xb6   : > { %879 = vst [vmem:[%s1824_s11 + $0x138] sm:$0xff] %v815_v24  ;;  %v755_v27 = vadd.f32 %v1797_v29, %v670_v62  ;;  %v756_v57 = vadd.f32 %v1791_v15, %v671_v53  ;;  %v757_v60 = vadd.f32 %v1793_v32, %v672_v23  ;;  %v758_v46 = vadd.f32 %v1795_v21, %v673_v25  ;;  %v2220_v24 = vld [vmem:[#allocation63_spill] sm:$0xff]  ;;  %v2221_v53 = vld [vmem:[#allocation64_spill] sm:$0xff] }
  0xb7   : > { %v759_v54 = vadd.f32 %v1797_v29, %v674_v56  ;;  %880 = vst [vmem:[%s1824_s11 + $0x140] sm:$0xff] %v816_v48  ;;  %v817_v52 = vmax.f32 %v753_v49, 0.0  ;;  %v818_v1 = vmax.f32 %v754_v12, 0.0  ;;  %v675_v28 = vmul.f32 %v1642_v7, %v2212_v30  ;;  %v2224_v48 = vld [vmem:[#allocation67_spill] sm:$0xff]  ;;  %v2225_v12 = vld [vmem:[#allocation68_spill] sm:$0xff] }
  0xb8   : > { %v819_v42 = vmax.f32 %v755_v27, 0.0  ;;  %v820_v31 = vmax.f32 %v756_v57, 0.0  ;;  %v821_v0 = vmax.f32 %v757_v60, 0.0  ;;  %v822_v61 = vmax.f32 %v758_v46, 0.0  ;;  %v2226_v57 = vld [vmem:[#allocation69_spill] sm:$0xff]  ;;  %v2227_v46 = vld [vmem:[#allocation70_spill] sm:$0xff] }
  0xb9   : > { %v823_v40 = vmax.f32 %v759_v54, 0.0  ;;  %881 = vst [vmem:[%s1824_s11 + $0x148] sm:$0xff] %v817_v52  ;;  %882 = vst [vmem:[%s1824_s11 + $0x150] sm:$0xff] %v818_v1  ;;  %v760_v6 = vadd.f32 %v1791_v15, %v675_v28  ;;  %v676_v50 = vmul.f32 %v1644_v44, %v2213_v55  ;;  %v677_v2 = vmul.f32 %v1646_v47, %v2214_v19 }
  0xba   : > { %883 = vst [vmem:[%s1824_s11 + $0x158] sm:$0xff] %v819_v42  ;;  %v678_v26 = vmul.f32 %v1648_v63, %v2215_v51  ;;  %884 = vst [vmem:[%s1824_s11 + $0x160] sm:$0xff] %v820_v31  ;;  %v679_v43 = vmul.f32 %v1642_v7, %v2216_v22  ;;  %v680_v14 = vmul.f32 %v1644_v44, %v2217_v11 }
  0xbb   : > { %885 = vst [vmem:[%s1824_s11 + $0x168] sm:$0xff] %v821_v0  ;;  %886 = vst [vmem:[%s1824_s11 + $0x170] sm:$0xff] %v822_v61  ;;  %v681_v9 = vmul.f32 %v1646_v47, %v2218_v4  ;;  %v682_v13 = vmul.f32 %v1648_v63, %v2219_v35  ;;  %v824_v38 = vmax.f32 %v760_v6, 0.0  ;;  %v761_v39 = vadd.f32 %v1793_v32, %v676_v50 }
  0xbc   : > { %887 = vst [vmem:[%s1824_s11 + $0x178] sm:$0xff] %v823_v40  ;;  %v762_v16 = vadd.f32 %v1795_v21, %v677_v2  ;;  %v763_v34 = vadd.f32 %v1797_v29, %v678_v26  ;;  %v764_v17 = vadd.f32 %v1791_v15, %v679_v43  ;;  %v765_v5 = vadd.f32 %v1793_v32, %v680_v14 }
  0xbd   : > { %v766_v41 = vadd.f32 %v1795_v21, %v681_v9  ;;  %v767_v20 = vadd.f32 %v1797_v29, %v682_v13  ;;  %888 = vst [vmem:[%s1824_s11 + $0x180] sm:$0xff] %v824_v38  ;;  %v825_v33 = vmax.f32 %v761_v39, 0.0  ;;  %v683_v59 = vmul.f32 %v1642_v7, %v2220_v24 }
  0xbe   : > { %v826_v10 = vmax.f32 %v762_v16, 0.0  ;;  %v827_v36 = vmax.f32 %v763_v34, 0.0  ;;  %v828_v45 = vmax.f32 %v764_v17, 0.0  ;;  %v829_v37 = vmax.f32 %v765_v5, 0.0 }
  0xbf   : > { %v830_v18 = vmax.f32 %v766_v41, 0.0  ;;  %v831_v58 = vmax.f32 %v767_v20, 0.0  ;;  %889 = vst [vmem:[%s1824_s11 + $0x188] sm:$0xff] %v825_v33  ;;  %v768_v62 = vadd.f32 %v1791_v15, %v683_v59  ;;  %v684_v23 = vmul.f32 %v1644_v44, %v2221_v53 }
  0xc0   : > { %890 = vst [vmem:[%s1824_s11 + $0x190] sm:$0xff] %v826_v10  ;;  %891 = vst [vmem:[%s1824_s11 + $0x198] sm:$0xff] %v827_v36  ;;  %v685_v25 = vmul.f32 %v1646_v47, %v2222_v8  ;;  %v686_v56 = vmul.f32 %v1648_v63, %v2223_v3  ;;  %v687_v49 = vmul.f32 %v1642_v7, %v2224_v48 }
  0xc1   : > { %892 = vst [vmem:[%s1824_s11 + $0x1a0] sm:$0xff] %v828_v45  ;;  %893 = vst [vmem:[%s1824_s11 + $0x1a8] sm:$0xff] %v829_v37  ;;  %v688_v27 = vmul.f32 %v1644_v44, %v2225_v12  ;;  %v689_v60 = vmul.f32 %v1646_v47, %v2226_v57  ;;  %v690_v54 = vmul.f32 %v1648_v63, %v2227_v46  ;;  %v832_v52 = vmax.f32 %v768_v62, 0.0 }
  0xc2   : > { %894 = vst [vmem:[%s1824_s11 + $0x1b0] sm:$0xff] %v830_v18  ;;  %895 = vst [vmem:[%s1824_s11 + $0x1b8] sm:$0xff] %v831_v58  ;;  %v769_v1 = vadd.f32 %v1793_v32, %v684_v23  ;;  %v770_v42 = vadd.f32 %v1795_v21, %v685_v25  ;;  %v771_v30 = vadd.f32 %v1797_v29, %v686_v56 }
  0xc3   : > { %v772_v7 = vadd.f32 %v1791_v15, %v687_v49  ;;  %v773_v44 = vadd.f32 %v1793_v32, %v688_v27  ;;  %v774_v47 = vadd.f32 %v1795_v21, %v689_v60  ;;  %v775_v63 = vadd.f32 %v1797_v29, %v690_v54  ;;  %896 = vst [vmem:[%s1824_s11 + $0x1c0] sm:$0xff] %v832_v52 }
  0xc4   : > { %v833_v28 = vmax.f32 %v769_v1, 0.0  ;;  %v834_v31 = vmax.f32 %v770_v42, 0.0  ;;  %v835_v0 = vmax.f32 %v771_v30, 0.0 }
  0xc5   : > { %v836_v61 = vmax.f32 %v772_v7, 0.0  ;;  %v837_v40 = vmax.f32 %v773_v44, 0.0  ;;  %v838_v6 = vmax.f32 %v774_v47, 0.0  ;;  %v839_v55 = vmax.f32 %v775_v63, 0.0 }
  0xc6   : > { %897 = vst [vmem:[%s1824_s11 + $0x1c8] sm:$0xff] %v833_v28  ;;  %898 = vst [vmem:[%s1824_s11 + $0x1d0] sm:$0xff] %v834_v31 }
  0xc7   : > { %899 = vst [vmem:[%s1824_s11 + $0x1d8] sm:$0xff] %v835_v0  ;;  %900 = vst [vmem:[%s1824_s11 + $0x1e0] sm:$0xff] %v836_v61 }
  0xc8   : > { %901 = vst [vmem:[%s1824_s11 + $0x1e8] sm:$0xff] %v837_v40  ;;  %902 = vst [vmem:[%s1824_s11 + $0x1f0] sm:$0xff] %v838_v6 }
  0xc9   : > { %903 = vst [vmem:[%s1824_s11 + $0x1f8] sm:$0xff] %v839_v55 }
  0xca PF: > { %s20_s20 = sadd.s32 1, %s1038_s20  }
  0xcb   : > { %p17_p10 = scmp.ge.s32.totalorder %s20_s20, 4  }
  0xcd   :  { %19 = sbr.rel (!%p17_p10) target bundleno = 16 (0x10), region = 68 }

// kernel: generator_forward.7
= control target key start
LH: loop header
LB: loop body
LE: loop exit
PB: predicated region body
PF: predicated region fallthrough
CT: control target
= control target key end

     0   :  { %s4033_s15 = smov 0   ;;  %s4035_s16 = smov 0   ;;  %s4928_s0 = inlined_call_operand.vmem [shape: bf16[4,32,2048], index: 0, kind: input, shape index: {}]   ;;  %s4929_s1 = inlined_call_operand.vmem [shape: bf16[4,2048,256], index: 1, kind: input, shape index: {}]   ;;  %s4930_s2 = inlined_call_operand.vmem [shape: f32[1,256], index: 2, kind: input, shape index: {}]   ;;  %s4931_s3 = inlined_call_operand.vmem [shape: f32[1,256], index: 3, kind: input, shape index: {}]   ;;  %s4932_s4 = inlined_call_operand.vmem [shape: f32[128,256], index: 4, kind: output, shape index: {}]  }
   0x1   :  { %s4037_s17 = smov 0   ;;  %s4039_s18 = smov 0  }
   0x2   :  { %s4041_s19 = smov 0   ;;  %s4043_s20 = smov 0  }
   0x3   :  { %s4045_s21 = smov 0   ;;  %s4047_s22 = smov 0  }
   0x4   :  { %s4049_s23 = smov 0  }
   0x5 LB: > { %s29_s24 = sadd.s32 1, %s3997_s21  ;;  %s33_s25 = sadd.s32 1, %s4001_s22  ;;  %s4005_s23 = sphi %s4049_s23, %s14_s23   ;;  %s4001_s22 = sphi %s4047_s22, %s4942_s22   ;;  %s3997_s21 = sphi %s4045_s21, %s4941_s21   ;;  %s3993_s20 = sphi %s4043_s20, %s4940_s20   ;;  %s3989_s19 = sphi %s4041_s19, %s4939_s19   ;;  %s3985_s18 = sphi %s4039_s18, %s4938_s18   ;;  %s3981_s17 = sphi %s4037_s17, %s4937_s17   ;;  %s3977_s16 = sphi %s4035_s16, %s4936_s16   ;;  %s3973_s15 = sphi %s4033_s15, %s4935_s15  }
   0x6   : > { %p31_p0 = scmp.ge.s32.totalorder %s29_s24, 4  ;;  %p77_p1 = scmp.ne.s32.totalorder %s3985_s18, %s3981_s17 }
   0x7   : > { %s3326_s26 = sadd.s32 4294967295, %s4005_s23   ;;  %p78_p2 = scmp.eq.s32.totalorder %s4005_s23, 0 }
   0x8   : > { %s4944_s24 = smov (%p31_p0, %s29_s24), 0  ;;  %s4946_s25 = smov (!%p31_p0, %s33_s25), %s4001_s22 }
   0x9   : > { %p35_p3 = scmp.ge.s32.totalorder %s4946_s25, 2  ;;  %s65_s27 = ssub.s32 %s3997_s21, %s4944_s24 }
   0xa   : > { %p4089_p4 = por %p78_p2, %p77_p1  ;;  %p158_p5 = scmp.ne.s32.totalorder %s3977_s16, %s3973_s15 }
   0xb   : > { %s4948_s25 = smov (%p35_p3, %s4946_s25), 0  ;;  %s70_s29 = sadd.s32 1, %s3985_s18 }
   0xc   : > { %p159_p6 = scmp.eq.s32.totalorder %s3326_s26, 7  ;;  %s66_s30 = ssub.s32 %s4001_s22, %s4948_s25 }
   0xd   : > { %s148_s5 = sadd.s32 1, %s3977_s16  ;;  %s67_s6 = sor.u32 %s66_s30, %s65_s27 }
   0xe   : > { %p146_p7 = scmp.eq.s32.totalorder %s66_s30, 0  ;;  %p68_p8 = scmp.eq.s32.totalorder %s67_s6, 0 }
   0xf   : > { %p4101_p9 = por %p159_p6, %p158_p5  ;;  %p3329_p10 = scmp.ge.s32.totalorder %s4005_s23, 8 }
  0x10   : > { %s4106_s8 = scalar_select %p146_p7, %s3977_s16, %s148_s5  }
  0x11   : > { %s4109_s9 = scalar_select %p68_p8, %s3985_s18, %s70_s29  }
  0x12   : > { %181 = sbr.rel (%p3329_p10) target bundleno = 199 (0xc7), region = 16 }
  0x17   : > { %198 = sbr.rel (!%p4089_p4) target bundleno = 199 (0xc7), region = 24  ;;  %s200_s10 = sand.u32 (%p4089_p4), 1, %s3985_s18  }
  0x18   : > { %s3331_s11 = sshll.u32 (%p4089_p4), %s3997_s21, 9  ;;  %s3330_s12 = sshll.u32 (%p4089_p4), %s200_s10, 10 }
  0x19   : > { %s204_s13 = sadd.s32 (%p4089_p4), %s4001_s22, %s3331_s11  ;;  %s4125_s28 = scalar_lea.vmem (%p4089_p4), [#allocation4], %s3330_s12 }
  0x1a   : > { %s3332_s14 = sshll.u32 (%p4089_p4), %s204_s13, 2 }
  0x1b   : > { %s4120_s30 = scalar_lea.vmem (%p4089_p4), %s4929_s1, %s3332_s14 }
  0x1c   : > { %v223_v0 = vld [vmem:[%s4120_s30] sm:$0xf]  ;;  %v225_v1 = vld [vmem:[%s4120_s30 + $0x8] sm:$0xf]  ;;  %v227_v2 = vld [vmem:[%s4120_s30 + $0x10] sm:$0xf] }
  0x1d   : > { %224 = vst [vmem:[%s4125_s28] sm:$0xf] %v223_v0  ;;  %226 = vst [vmem:[%s4125_s28 + $0x4] sm:$0xf] %v225_v1  ;;  %v229_v3 = vld [vmem:[%s4120_s30 + $0x18] sm:$0xf] }
  0x1e   : > { %228 = vst [vmem:[%s4125_s28 + $0x8] sm:$0xf] %v227_v2  ;;  %v231_v4 = vld [vmem:[%s4120_s30 + $0x20] sm:$0xf]  ;;  %v233_v5 = vld [vmem:[%s4120_s30 + $0x28] sm:$0xf] }
  0x1f   : > { %230 = vst [vmem:[%s4125_s28 + $0xc] sm:$0xf] %v229_v3  ;;  %232 = vst [vmem:[%s4125_s28 + $0x10] sm:$0xf] %v231_v4  ;;  %v235_v6 = vld [vmem:[%s4120_s30 + $0x30] sm:$0xf] }
  0x20   : > { %234 = vst [vmem:[%s4125_s28 + $0x14] sm:$0xf] %v233_v5  ;;  %v237_v7 = vld [vmem:[%s4120_s30 + $0x38] sm:$0xf]  ;;  %v239_v8 = vld [vmem:[%s4120_s30 + $0x40] sm:$0xf] }
  0x21   : > { %236 = vst [vmem:[%s4125_s28 + $0x18] sm:$0xf] %v235_v6  ;;  %238 = vst [vmem:[%s4125_s28 + $0x1c] sm:$0xf] %v237_v7  ;;  %v241_v9 = vld [vmem:[%s4120_s30 + $0x48] sm:$0xf] }
  0x22   : > { %240 = vst [vmem:[%s4125_s28 + $0x20] sm:$0xf] %v239_v8  ;;  %v243_v10 = vld [vmem:[%s4120_s30 + $0x50] sm:$0xf]  ;;  %v245_v11 = vld [vmem:[%s4120_s30 + $0x58] sm:$0xf] }
  0x23   : > { %242 = vst [vmem:[%s4125_s28 + $0x24] sm:$0xf] %v241_v9  ;;  %244 = vst [vmem:[%s4125_s28 + $0x28] sm:$0xf] %v243_v10  ;;  %v247_v12 = vld [vmem:[%s4120_s30 + $0x60] sm:$0xf] }
  0x24   : > { %246 = vst [vmem:[%s4125_s28 + $0x2c] sm:$0xf] %v245_v11  ;;  %v249_v13 = vld [vmem:[%s4120_s30 + $0x68] sm:$0xf]  ;;  %v251_v14 = vld [vmem:[%s4120_s30 + $0x70] sm:$0xf] }
  0x25   : > { %248 = vst [vmem:[%s4125_s28 + $0x30] sm:$0xf] %v247_v12  ;;  %250 = vst [vmem:[%s4125_s28 + $0x34] sm:$0xf] %v249_v13  ;;  %v253_v15 = vld [vmem:[%s4120_s30 + $0x78] sm:$0xf] }
  0x26   : > { %252 = vst [vmem:[%s4125_s28 + $0x38] sm:$0xf] %v251_v14  ;;  %v255_v16 = vld [vmem:[%s4120_s30 + $0x80] sm:$0xf]  ;;  %v257_v17 = vld [vmem:[%s4120_s30 + $0x88] sm:$0xf] }
  0x27   : > { %254 = vst [vmem:[%s4125_s28 + $0x3c] sm:$0xf] %v253_v15  ;;  %256 = vst [vmem:[%s4125_s28 + $0x40] sm:$0xf] %v255_v16  ;;  %v259_v18 = vld [vmem:[%s4120_s30 + $0x90] sm:$0xf] }
  0x28   : > { %258 = vst [vmem:[%s4125_s28 + $0x44] sm:$0xf] %v257_v17  ;;  %v261_v19 = vld [vmem:[%s4120_s30 + $0x98] sm:$0xf]  ;;  %v263_v20 = vld [vmem:[%s4120_s30 + $0xa0] sm:$0xf] }
  0x29   : > { %260 = vst [vmem:[%s4125_s28 + $0x48] sm:$0xf] %v259_v18  ;;  %262 = vst [vmem:[%s4125_s28 + $0x4c] sm:$0xf] %v261_v19  ;;  %v265_v21 = vld [vmem:[%s4120_s30 + $0xa8] sm:$0xf] }
  0x2a   : > { %264 = vst [vmem:[%s4125_s28 + $0x50] sm:$0xf] %v263_v20  ;;  %v267_v22 = vld [vmem:[%s4120_s30 + $0xb0] sm:$0xf]  ;;  %v269_v23 = vld [vmem:[%s4120_s30 + $0xb8] sm:$0xf] }
  0x2b   : > { %266 = vst [vmem:[%s4125_s28 + $0x54] sm:$0xf] %v265_v21  ;;  %268 = vst [vmem:[%s4125_s28 + $0x58] sm:$0xf] %v267_v22  ;;  %v271_v24 = vld [vmem:[%s4120_s30 + $0xc0] sm:$0xf] }
  0x2c   : > { %270 = vst [vmem:[%s4125_s28 + $0x5c] sm:$0xf] %v269_v23  ;;  %v273_v25 = vld [vmem:[%s4120_s30 + $0xc8] sm:$0xf]  ;;  %v275_v26 = vld [vmem:[%s4120_s30 + $0xd0] sm:$0xf] }
  0x2d   : > { %272 = vst [vmem:[%s4125_s28 + $0x60] sm:$0xf] %v271_v24  ;;  %274 = vst [vmem:[%s4125_s28 + $0x64] sm:$0xf] %v273_v25  ;;  %v277_v27 = vld [vmem:[%s4120_s30 + $0xd8] sm:$0xf] }
  0x2e   : > { %276 = vst [vmem:[%s4125_s28 + $0x68] sm:$0xf] %v275_v26  ;;  %v279_v28 = vld [vmem:[%s4120_s30 + $0xe0] sm:$0xf]  ;;  %v281_v29 = vld [vmem:[%s4120_s30 + $0xe8] sm:$0xf] }
  0x2f   : > { %278 = vst [vmem:[%s4125_s28 + $0x6c] sm:$0xf] %v277_v27  ;;  %280 = vst [vmem:[%s4125_s28 + $0x70] sm:$0xf] %v279_v28  ;;  %v283_v30 = vld [vmem:[%s4120_s30 + $0xf0] sm:$0xf] }
  0x30   : > { %282 = vst [vmem:[%s4125_s28 + $0x74] sm:$0xf] %v281_v29  ;;  %v285_v31 = vld [vmem:[%s4120_s30 + $0xf8] sm:$0xf]  ;;  %v287_v32 = vld [vmem:[%s4120_s30 + $0x100] sm:$0xf] }
  0x31   : > { %284 = vst [vmem:[%s4125_s28 + $0x78] sm:$0xf] %v283_v30  ;;  %286 = vst [vmem:[%s4125_s28 + $0x7c] sm:$0xf] %v285_v31  ;;  %v289_v33 = vld [vmem:[%s4120_s30 + $0x108] sm:$0xf] }
  0x32   : > { %288 = vst [vmem:[%s4125_s28 + $0x80] sm:$0xf] %v287_v32  ;;  %v291_v34 = vld [vmem:[%s4120_s30 + $0x110] sm:$0xf]  ;;  %v293_v35 = vld [vmem:[%s4120_s30 + $0x118] sm:$0xf] }
  0x33   : > { %290 = vst [vmem:[%s4125_s28 + $0x84] sm:$0xf] %v289_v33  ;;  %292 = vst [vmem:[%s4125_s28 + $0x88] sm:$0xf] %v291_v34  ;;  %v295_v36 = vld [vmem:[%s4120_s30 + $0x120] sm:$0xf] }
  0x34   : > { %294 = vst [vmem:[%s4125_s28 + $0x8c] sm:$0xf] %v293_v35  ;;  %v297_v37 = vld [vmem:[%s4120_s30 + $0x128] sm:$0xf]  ;;  %v299_v38 = vld [vmem:[%s4120_s30 + $0x130] sm:$0xf] }
  0x35   : > { %296 = vst [vmem:[%s4125_s28 + $0x90] sm:$0xf] %v295_v36  ;;  %298 = vst [vmem:[%s4125_s28 + $0x94] sm:$0xf] %v297_v37  ;;  %v301_v39 = vld [vmem:[%s4120_s30 + $0x138] sm:$0xf] }
  0x36   : > { %300 = vst [vmem:[%s4125_s28 + $0x98] sm:$0xf] %v299_v38  ;;  %v303_v40 = vld [vmem:[%s4120_s30 + $0x140] sm:$0xf]  ;;  %v305_v41 = vld [vmem:[%s4120_s30 + $0x148] sm:$0xf] }
  0x37   : > { %302 = vst [vmem:[%s4125_s28 + $0x9c] sm:$0xf] %v301_v39  ;;  %304 = vst [vmem:[%s4125_s28 + $0xa0] sm:$0xf] %v303_v40  ;;  %v307_v42 = vld [vmem:[%s4120_s30 + $0x150] sm:$0xf] }
  0x38   : > { %306 = vst [vmem:[%s4125_s28 + $0xa4] sm:$0xf] %v305_v41  ;;  %v309_v43 = vld [vmem:[%s4120_s30 + $0x158] sm:$0xf]  ;;  %v311_v44 = vld [vmem:[%s4120_s30 + $0x160] sm:$0xf] }
  0x39   : > { %308 = vst [vmem:[%s4125_s28 + $0xa8] sm:$0xf] %v307_v42  ;;  %310 = vst [vmem:[%s4125_s28 + $0xac] sm:$0xf] %v309_v43  ;;  %v313_v45 = vld [vmem:[%s4120_s30 + $0x168] sm:$0xf] }
  0x3a   : > { %312 = vst [vmem:[%s4125_s28 + $0xb0] sm:$0xf] %v311_v44  ;;  %v315_v46 = vld [vmem:[%s4120_s30 + $0x170] sm:$0xf]  ;;  %v317_v47 = vld [vmem:[%s4120_s30 + $0x178] sm:$0xf] }
  0x3b   : > { %314 = vst [vmem:[%s4125_s28 + $0xb4] sm:$0xf] %v313_v45  ;;  %316 = vst [vmem:[%s4125_s28 + $0xb8] sm:$0xf] %v315_v46  ;;  %v319_v48 = vld [vmem:[%s4120_s30 + $0x180] sm:$0xf] }
  0x3c   : > { %318 = vst [vmem:[%s4125_s28 + $0xbc] sm:$0xf] %v317_v47  ;;  %v321_v49 = vld [vmem:[%s4120_s30 + $0x188] sm:$0xf]  ;;  %v323_v50 = vld [vmem:[%s4120_s30 + $0x190] sm:$0xf] }
  0x3d   : > { %320 = vst [vmem:[%s4125_s28 + $0xc0] sm:$0xf] %v319_v48  ;;  %322 = vst [vmem:[%s4125_s28 + $0xc4] sm:$0xf] %v321_v49  ;;  %v325_v51 = vld [vmem:[%s4120_s30 + $0x198] sm:$0xf] }
  0x3e   : > { %324 = vst [vmem:[%s4125_s28 + $0xc8] sm:$0xf] %v323_v50  ;;  %v327_v52 = vld [vmem:[%s4120_s30 + $0x1a0] sm:$0xf]  ;;  %v329_v53 = vld [vmem:[%s4120_s30 + $0x1a8] sm:$0xf] }
  0x3f   : > { %326 = vst [vmem:[%s4125_s28 + $0xcc] sm:$0xf] %v325_v51  ;;  %328 = vst [vmem:[%s4125_s28 + $0xd0] sm:$0xf] %v327_v52  ;;  %v331_v54 = vld [vmem:[%s4120_s30 + $0x1b0] sm:$0xf] }
  0x40   : > { %330 = vst [vmem:[%s4125_s28 + $0xd4] sm:$0xf] %v329_v53  ;;  %v333_v55 = vld [vmem:[%s4120_s30 + $0x1b8] sm:$0xf]  ;;  %v335_v56 = vld [vmem:[%s4120_s30 + $0x1c0] sm:$0xf] }
  0x41   : > { %332 = vst [vmem:[%s4125_s28 + $0xd8] sm:$0xf] %v331_v54  ;;  %334 = vst [vmem:[%s4125_s28 + $0xdc] sm:$0xf] %v333_v55  ;;  %v337_v57 = vld [vmem:[%s4120_s30 + $0x1c8] sm:$0xf] }
  0x42   : > { %336 = vst [vmem:[%s4125_s28 + $0xe0] sm:$0xf] %v335_v56  ;;  %v339_v58 = vld [vmem:[%s4120_s30 + $0x1d0] sm:$0xf]  ;;  %v341_v59 = vld [vmem:[%s4120_s30 + $0x1d8] sm:$0xf] }
  0x43   : > { %338 = vst [vmem:[%s4125_s28 + $0xe4] sm:$0xf] %v337_v57  ;;  %340 = vst [vmem:[%s4125_s28 + $0xe8] sm:$0xf] %v339_v58  ;;  %v343_v60 = vld [vmem:[%s4120_s30 + $0x1e0] sm:$0xf] }
  0x44   : > { %342 = vst [vmem:[%s4125_s28 + $0xec] sm:$0xf] %v341_v59  ;;  %v345_v61 = vld [vmem:[%s4120_s30 + $0x1e8] sm:$0xf]  ;;  %v347_v62 = vld [vmem:[%s4120_s30 + $0x1f0] sm:$0xf] }
  0x45   : > { %344 = vst [vmem:[%s4125_s28 + $0xf0] sm:$0xf] %v343_v60  ;;  %346 = vst [vmem:[%s4125_s28 + $0xf4] sm:$0xf] %v345_v61  ;;  %v349_v63 = vld [vmem:[%s4120_s30 + $0x1f8] sm:$0xf] }
  0x46   : > { %348 = vst [vmem:[%s4125_s28 + $0xf8] sm:$0xf] %v347_v62  ;;  %v351_v0 = vld [vmem:[%s4120_s30 + $0x200] sm:$0xf]  ;;  %v353_v1 = vld [vmem:[%s4120_s30 + $0x208] sm:$0xf] }
  0x47   : > { %350 = vst [vmem:[%s4125_s28 + $0xfc] sm:$0xf] %v349_v63  ;;  %352 = vst [vmem:[%s4125_s28 + $0x100] sm:$0xf] %v351_v0  ;;  %v355_v2 = vld [vmem:[%s4120_s30 + $0x210] sm:$0xf] }
  0x48   : > { %354 = vst [vmem:[%s4125_s28 + $0x104] sm:$0xf] %v353_v1  ;;  %v357_v3 = vld [vmem:[%s4120_s30 + $0x218] sm:$0xf]  ;;  %v359_v4 = vld [vmem:[%s4120_s30 + $0x220] sm:$0xf] }
  0x49   : > { %356 = vst [vmem:[%s4125_s28 + $0x108] sm:$0xf] %v355_v2  ;;  %358 = vst [vmem:[%s4125_s28 + $0x10c] sm:$0xf] %v357_v3  ;;  %v361_v5 = vld [vmem:[%s4120_s30 + $0x228] sm:$0xf] }
  0x4a   : > { %360 = vst [vmem:[%s4125_s28 + $0x110] sm:$0xf] %v359_v4  ;;  %v363_v6 = vld [vmem:[%s4120_s30 + $0x230] sm:$0xf]  ;;  %v365_v7 = vld [vmem:[%s4120_s30 + $0x238] sm:$0xf] }
  0x4b   : > { %362 = vst [vmem:[%s4125_s28 + $0x114] sm:$0xf] %v361_v5  ;;  %364 = vst [vmem:[%s4125_s28 + $0x118] sm:$0xf] %v363_v6  ;;  %v367_v8 = vld [vmem:[%s4120_s30 + $0x240] sm:$0xf] }
  0x4c   : > { %366 = vst [vmem:[%s4125_s28 + $0x11c] sm:$0xf] %v365_v7  ;;  %v369_v9 = vld [vmem:[%s4120_s30 + $0x248] sm:$0xf]  ;;  %v371_v10 = vld [vmem:[%s4120_s30 + $0x250] sm:$0xf] }
  0x4d   : > { %368 = vst [vmem:[%s4125_s28 + $0x120] sm:$0xf] %v367_v8  ;;  %370 = vst [vmem:[%s4125_s28 + $0x124] sm:$0xf] %v369_v9  ;;  %v373_v11 = vld [vmem:[%s4120_s30 + $0x258] sm:$0xf] }
  0x4e   : > { %372 = vst [vmem:[%s4125_s28 + $0x128] sm:$0xf] %v371_v10  ;;  %v375_v12 = vld [vmem:[%s4120_s30 + $0x260] sm:$0xf]  ;;  %v377_v13 = vld [vmem:[%s4120_s30 + $0x268] sm:$0xf] }
  0x4f   : > { %374 = vst [vmem:[%s4125_s28 + $0x12c] sm:$0xf] %v373_v11  ;;  %376 = vst [vmem:[%s4125_s28 + $0x130] sm:$0xf] %v375_v12  ;;  %v379_v14 = vld [vmem:[%s4120_s30 + $0x270] sm:$0xf] }
  0x50   : > { %378 = vst [vmem:[%s4125_s28 + $0x134] sm:$0xf] %v377_v13  ;;  %v381_v15 = vld [vmem:[%s4120_s30 + $0x278] sm:$0xf]  ;;  %v383_v16 = vld [vmem:[%s4120_s30 + $0x280] sm:$0xf] }
  0x51   : > { %380 = vst [vmem:[%s4125_s28 + $0x138] sm:$0xf] %v379_v14  ;;  %382 = vst [vmem:[%s4125_s28 + $0x13c] sm:$0xf] %v381_v15  ;;  %v385_v17 = vld [vmem:[%s4120_s30 + $0x288] sm:$0xf] }
  0x52   : > { %384 = vst [vmem:[%s4125_s28 + $0x140] sm:$0xf] %v383_v16  ;;  %v387_v18 = vld [vmem:[%s4120_s30 + $0x290] sm:$0xf]  ;;  %v389_v19 = vld [vmem:[%s4120_s30 + $0x298] sm:$0xf] }
  0x53   : > { %386 = vst [vmem:[%s4125_s28 + $0x144] sm:$0xf] %v385_v17  ;;  %388 = vst [vmem:[%s4125_s28 + $0x148] sm:$0xf] %v387_v18  ;;  %v391_v20 = vld [vmem:[%s4120_s30 + $0x2a0] sm:$0xf] }
  0x54   : > { %390 = vst [vmem:[%s4125_s28 + $0x14c] sm:$0xf] %v389_v19  ;;  %v393_v21 = vld [vmem:[%s4120_s30 + $0x2a8] sm:$0xf]  ;;  %v395_v22 = vld [vmem:[%s4120_s30 + $0x2b0] sm:$0xf] }
  0x55   : > { %392 = vst [vmem:[%s4125_s28 + $0x150] sm:$0xf] %v391_v20  ;;  %394 = vst [vmem:[%s4125_s28 + $0x154] sm:$0xf] %v393_v21  ;;  %v397_v23 = vld [vmem:[%s4120_s30 + $0x2b8] sm:$0xf] }
  0x56   : > { %396 = vst [vmem:[%s4125_s28 + $0x158] sm:$0xf] %v395_v22  ;;  %v399_v24 = vld [vmem:[%s4120_s30 + $0x2c0] sm:$0xf]  ;;  %v401_v25 = vld [vmem:[%s4120_s30 + $0x2c8] sm:$0xf] }
  0x57   : > { %398 = vst [vmem:[%s4125_s28 + $0x15c] sm:$0xf] %v397_v23  ;;  %400 = vst [vmem:[%s4125_s28 + $0x160] sm:$0xf] %v399_v24  ;;  %v403_v26 = vld [vmem:[%s4120_s30 + $0x2d0] sm:$0xf] }
  0x58   : > { %402 = vst [vmem:[%s4125_s28 + $0x164] sm:$0xf] %v401_v25  ;;  %v405_v27 = vld [vmem:[%s4120_s30 + $0x2d8] sm:$0xf]  ;;  %v407_v28 = vld [vmem:[%s4120_s30 + $0x2e0] sm:$0xf] }
  0x59   : > { %404 = vst [vmem:[%s4125_s28 + $0x168] sm:$0xf] %v403_v26  ;;  %406 = vst [vmem:[%s4125_s28 + $0x16c] sm:$0xf] %v405_v27  ;;  %v409_v29 = vld [vmem:[%s4120_s30 + $0x2e8] sm:$0xf] }
  0x5a   : > { %408 = vst [vmem:[%s4125_s28 + $0x170] sm:$0xf] %v407_v28  ;;  %v411_v30 = vld [vmem:[%s4120_s30 + $0x2f0] sm:$0xf]  ;;  %v413_v31 = vld [vmem:[%s4120_s30 + $0x2f8] sm:$0xf] }
  0x5b   : > { %410 = vst [vmem:[%s4125_s28 + $0x174] sm:$0xf] %v409_v29  ;;  %412 = vst [vmem:[%s4125_s28 + $0x178] sm:$0xf] %v411_v30  ;;  %v415_v32 = vld [vmem:[%s4120_s30 + $0x300] sm:$0xf] }
  0x5c   : > { %414 = vst [vmem:[%s4125_s28 + $0x17c] sm:$0xf] %v413_v31  ;;  %v417_v33 = vld [vmem:[%s4120_s30 + $0x308] sm:$0xf]  ;;  %v419_v34 = vld [vmem:[%s4120_s30 + $0x310] sm:$0xf] }
  0x5d   : > { %416 = vst [vmem:[%s4125_s28 + $0x180] sm:$0xf] %v415_v32  ;;  %418 = vst [vmem:[%s4125_s28 + $0x184] sm:$0xf] %v417_v33  ;;  %v421_v35 = vld [vmem:[%s4120_s30 + $0x318] sm:$0xf] }
  0x5e   : > { %420 = vst [vmem:[%s4125_s28 + $0x188] sm:$0xf] %v419_v34  ;;  %v423_v36 = vld [vmem:[%s4120_s30 + $0x320] sm:$0xf]  ;;  %v425_v37 = vld [vmem:[%s4120_s30 + $0x328] sm:$0xf] }
  0x5f   : > { %422 = vst [vmem:[%s4125_s28 + $0x18c] sm:$0xf] %v421_v35  ;;  %424 = vst [vmem:[%s4125_s28 + $0x190] sm:$0xf] %v423_v36  ;;  %v427_v38 = vld [vmem:[%s4120_s30 + $0x330] sm:$0xf] }
  0x60   : > { %426 = vst [vmem:[%s4125_s28 + $0x194] sm:$0xf] %v425_v37  ;;  %v429_v39 = vld [vmem:[%s4120_s30 + $0x338] sm:$0xf]  ;;  %v431_v40 = vld [vmem:[%s4120_s30 + $0x340] sm:$0xf] }
  0x61   : > { %428 = vst [vmem:[%s4125_s28 + $0x198] sm:$0xf] %v427_v38  ;;  %430 = vst [vmem:[%s4125_s28 + $0x19c] sm:$0xf] %v429_v39  ;;  %v433_v41 = vld [vmem:[%s4120_s30 + $0x348] sm:$0xf] }
  0x62   : > { %432 = vst [vmem:[%s4125_s28 + $0x1a0] sm:$0xf] %v431_v40  ;;  %v435_v42 = vld [vmem:[%s4120_s30 + $0x350] sm:$0xf]  ;;  %v437_v43 = vld [vmem:[%s4120_s30 + $0x358] sm:$0xf] }
  0x63   : > { %434 = vst [vmem:[%s4125_s28 + $0x1a4] sm:$0xf] %v433_v41  ;;  %436 = vst [vmem:[%s4125_s28 + $0x1a8] sm:$0xf] %v435_v42  ;;  %v439_v44 = vld [vmem:[%s4120_s30 + $0x360] sm:$0xf] }
  0x64   : > { %438 = vst [vmem:[%s4125_s28 + $0x1ac] sm:$0xf] %v437_v43  ;;  %v441_v45 = vld [vmem:[%s4120_s30 + $0x368] sm:$0xf]  ;;  %v443_v46 = vld [vmem:[%s4120_s30 + $0x370] sm:$0xf] }
  0x65   : > { %440 = vst [vmem:[%s4125_s28 + $0x1b0] sm:$0xf] %v439_v44  ;;  %442 = vst [vmem:[%s4125_s28 + $0x1b4] sm:$0xf] %v441_v45  ;;  %v445_v47 = vld [vmem:[%s4120_s30 + $0x378] sm:$0xf] }
  0x66   : > { %444 = vst [vmem:[%s4125_s28 + $0x1b8] sm:$0xf] %v443_v46  ;;  %v447_v48 = vld [vmem:[%s4120_s30 + $0x380] sm:$0xf]  ;;  %v449_v49 = vld [vmem:[%s4120_s30 + $0x388] sm:$0xf] }
  0x67   : > { %446 = vst [vmem:[%s4125_s28 + $0x1bc] sm:$0xf] %v445_v47  ;;  %448 = vst [vmem:[%s4125_s28 + $0x1c0] sm:$0xf] %v447_v48  ;;  %v451_v50 = vld [vmem:[%s4120_s30 + $0x390] sm:$0xf] }
  0x68   : > { %450 = vst [vmem:[%s4125_s28 + $0x1c4] sm:$0xf] %v449_v49  ;;  %v453_v51 = vld [vmem:[%s4120_s30 + $0x398] sm:$0xf]  ;;  %v455_v52 = vld [vmem:[%s4120_s30 + $0x3a0] sm:$0xf] }
  0x69   : > { %452 = vst [vmem:[%s4125_s28 + $0x1c8] sm:$0xf] %v451_v50  ;;  %454 = vst [vmem:[%s4125_s28 + $0x1cc] sm:$0xf] %v453_v51  ;;  %v457_v53 = vld [vmem:[%s4120_s30 + $0x3a8] sm:$0xf] }
  0x6a   : > { %456 = vst [vmem:[%s4125_s28 + $0x1d0] sm:$0xf] %v455_v52  ;;  %v459_v54 = vld [vmem:[%s4120_s30 + $0x3b0] sm:$0xf]  ;;  %v461_v55 = vld [vmem:[%s4120_s30 + $0x3b8] sm:$0xf] }
  0x6b   : > { %458 = vst [vmem:[%s4125_s28 + $0x1d4] sm:$0xf] %v457_v53  ;;  %460 = vst [vmem:[%s4125_s28 + $0x1d8] sm:$0xf] %v459_v54  ;;  %v463_v56 = vld [vmem:[%s4120_s30 + $0x3c0] sm:$0xf] }
  0x6c   : > { %462 = vst [vmem:[%s4125_s28 + $0x1dc] sm:$0xf] %v461_v55  ;;  %v465_v57 = vld [vmem:[%s4120_s30 + $0x3c8] sm:$0xf]  ;;  %v467_v58 = vld [vmem:[%s4120_s30 + $0x3d0] sm:$0xf] }
  0x6d   : > { %464 = vst [vmem:[%s4125_s28 + $0x1e0] sm:$0xf] %v463_v56  ;;  %466 = vst [vmem:[%s4125_s28 + $0x1e4] sm:$0xf] %v465_v57  ;;  %v469_v59 = vld [vmem:[%s4120_s30 + $0x3d8] sm:$0xf] }
  0x6e   : > { %468 = vst [vmem:[%s4125_s28 + $0x1e8] sm:$0xf] %v467_v58  ;;  %v471_v60 = vld [vmem:[%s4120_s30 + $0x3e0] sm:$0xf]  ;;  %v473_v61 = vld [vmem:[%s4120_s30 + $0x3e8] sm:$0xf] }
  0x6f   : > { %470 = vst [vmem:[%s4125_s28 + $0x1ec] sm:$0xf] %v469_v59  ;;  %472 = vst [vmem:[%s4125_s28 + $0x1f0] sm:$0xf] %v471_v60  ;;  %v475_v62 = vld [vmem:[%s4120_s30 + $0x3f0] sm:$0xf] }
  0x70   : > { %474 = vst [vmem:[%s4125_s28 + $0x1f4] sm:$0xf] %v473_v61  ;;  %v477_v63 = vld [vmem:[%s4120_s30 + $0x3f8] sm:$0xf]  ;;  %v479_v0 = vld [vmem:[%s4120_s30 + $0x400] sm:$0xf] }
  0x71   : > { %476 = vst [vmem:[%s4125_s28 + $0x1f8] sm:$0xf] %v475_v62  ;;  %478 = vst [vmem:[%s4125_s28 + $0x1fc] sm:$0xf] %v477_v63  ;;  %v481_v1 = vld [vmem:[%s4120_s30 + $0x408] sm:$0xf] }
  0x72   : > { %480 = vst [vmem:[%s4125_s28 + $0x200] sm:$0xf] %v479_v0  ;;  %v483_v2 = vld [vmem:[%s4120_s30 + $0x410] sm:$0xf]  ;;  %v485_v3 = vld [vmem:[%s4120_s30 + $0x418] sm:$0xf] }
  0x73   : > { %482 = vst [vmem:[%s4125_s28 + $0x204] sm:$0xf] %v481_v1  ;;  %484 = vst [vmem:[%s4125_s28 + $0x208] sm:$0xf] %v483_v2  ;;  %v487_v4 = vld [vmem:[%s4120_s30 + $0x420] sm:$0xf] }
  0x74   : > { %486 = vst [vmem:[%s4125_s28 + $0x20c] sm:$0xf] %v485_v3  ;;  %v489_v5 = vld [vmem:[%s4120_s30 + $0x428] sm:$0xf]  ;;  %v491_v6 = vld [vmem:[%s4120_s30 + $0x430] sm:$0xf] }
  0x75   : > { %488 = vst [vmem:[%s4125_s28 + $0x210] sm:$0xf] %v487_v4  ;;  %490 = vst [vmem:[%s4125_s28 + $0x214] sm:$0xf] %v489_v5  ;;  %v493_v7 = vld [vmem:[%s4120_s30 + $0x438] sm:$0xf] }
  0x76   : > { %492 = vst [vmem:[%s4125_s28 + $0x218] sm:$0xf] %v491_v6  ;;  %v495_v8 = vld [vmem:[%s4120_s30 + $0x440] sm:$0xf]  ;;  %v497_v9 = vld [vmem:[%s4120_s30 + $0x448] sm:$0xf] }
  0x77   : > { %494 = vst [vmem:[%s4125_s28 + $0x21c] sm:$0xf] %v493_v7  ;;  %496 = vst [vmem:[%s4125_s28 + $0x220] sm:$0xf] %v495_v8  ;;  %v499_v10 = vld [vmem:[%s4120_s30 + $0x450] sm:$0xf] }
  0x78   : > { %498 = vst [vmem:[%s4125_s28 + $0x224] sm:$0xf] %v497_v9  ;;  %v501_v11 = vld [vmem:[%s4120_s30 + $0x458] sm:$0xf]  ;;  %v503_v12 = vld [vmem:[%s4120_s30 + $0x460] sm:$0xf] }
  0x79   : > { %500 = vst [vmem:[%s4125_s28 + $0x228] sm:$0xf] %v499_v10  ;;  %502 = vst [vmem:[%s4125_s28 + $0x22c] sm:$0xf] %v501_v11  ;;  %v505_v13 = vld [vmem:[%s4120_s30 + $0x468] sm:$0xf] }
  0x7a   : > { %504 = vst [vmem:[%s4125_s28 + $0x230] sm:$0xf] %v503_v12  ;;  %v507_v14 = vld [vmem:[%s4120_s30 + $0x470] sm:$0xf]  ;;  %v509_v15 = vld [vmem:[%s4120_s30 + $0x478] sm:$0xf] }
  0x7b   : > { %506 = vst [vmem:[%s4125_s28 + $0x234] sm:$0xf] %v505_v13  ;;  %508 = vst [vmem:[%s4125_s28 + $0x238] sm:$0xf] %v507_v14  ;;  %v511_v16 = vld [vmem:[%s4120_s30 + $0x480] sm:$0xf] }
  0x7c   : > { %510 = vst [vmem:[%s4125_s28 + $0x23c] sm:$0xf] %v509_v15  ;;  %v513_v17 = vld [vmem:[%s4120_s30 + $0x488] sm:$0xf]  ;;  %v515_v18 = vld [vmem:[%s4120_s30 + $0x490] sm:$0xf] }
  0x7d   : > { %512 = vst [vmem:[%s4125_s28 + $0x240] sm:$0xf] %v511_v16  ;;  %514 = vst [vmem:[%s4125_s28 + $0x244] sm:$0xf] %v513_v17  ;;  %v517_v19 = vld [vmem:[%s4120_s30 + $0x498] sm:$0xf] }
  0x7e   : > { %516 = vst [vmem:[%s4125_s28 + $0x248] sm:$0xf] %v515_v18  ;;  %v519_v20 = vld [vmem:[%s4120_s30 + $0x4a0] sm:$0xf]  ;;  %v521_v21 = vld [vmem:[%s4120_s30 + $0x4a8] sm:$0xf] }
  0x7f   : > { %518 = vst [vmem:[%s4125_s28 + $0x24c] sm:$0xf] %v517_v19  ;;  %520 = vst [vmem:[%s4125_s28 + $0x250] sm:$0xf] %v519_v20  ;;  %v523_v22 = vld [vmem:[%s4120_s30 + $0x4b0] sm:$0xf] }
  0x80   : > { %522 = vst [vmem:[%s4125_s28 + $0x254] sm:$0xf] %v521_v21  ;;  %v525_v23 = vld [vmem:[%s4120_s30 + $0x4b8] sm:$0xf]  ;;  %v527_v24 = vld [vmem:[%s4120_s30 + $0x4c0] sm:$0xf] }
  0x81   : > { %524 = vst [vmem:[%s4125_s28 + $0x258] sm:$0xf] %v523_v22  ;;  %526 = vst [vmem:[%s4125_s28 + $0x25c] sm:$0xf] %v525_v23  ;;  %v529_v25 = vld [vmem:[%s4120_s30 + $0x4c8] sm:$0xf] }
  0x82   : > { %528 = vst [vmem:[%s4125_s28 + $0x260] sm:$0xf] %v527_v24  ;;  %v531_v26 = vld [vmem:[%s4120_s30 + $0x4d0] sm:$0xf]  ;;  %v533_v27 = vld [vmem:[%s4120_s30 + $0x4d8] sm:$0xf] }
  0x83   : > { %530 = vst [vmem:[%s4125_s28 + $0x264] sm:$0xf] %v529_v25  ;;  %532 = vst [vmem:[%s4125_s28 + $0x268] sm:$0xf] %v531_v26  ;;  %v535_v28 = vld [vmem:[%s4120_s30 + $0x4e0] sm:$0xf] }
  0x84   : > { %534 = vst [vmem:[%s4125_s28 + $0x26c] sm:$0xf] %v533_v27  ;;  %v537_v29 = vld [vmem:[%s4120_s30 + $0x4e8] sm:$0xf]  ;;  %v539_v30 = vld [vmem:[%s4120_s30 + $0x4f0] sm:$0xf] }
  0x85   : > { %536 = vst [vmem:[%s4125_s28 + $0x270] sm:$0xf] %v535_v28  ;;  %538 = vst [vmem:[%s4125_s28 + $0x274] sm:$0xf] %v537_v29  ;;  %v541_v31 = vld [vmem:[%s4120_s30 + $0x4f8] sm:$0xf] }
  0x86   : > { %540 = vst [vmem:[%s4125_s28 + $0x278] sm:$0xf] %v539_v30  ;;  %v543_v32 = vld [vmem:[%s4120_s30 + $0x500] sm:$0xf]  ;;  %v545_v33 = vld [vmem:[%s4120_s30 + $0x508] sm:$0xf] }
  0x87   : > { %542 = vst [vmem:[%s4125_s28 + $0x27c] sm:$0xf] %v541_v31  ;;  %544 = vst [vmem:[%s4125_s28 + $0x280] sm:$0xf] %v543_v32  ;;  %v547_v34 = vld [vmem:[%s4120_s30 + $0x510] sm:$0xf] }
  0x88   : > { %546 = vst [vmem:[%s4125_s28 + $0x284] sm:$0xf] %v545_v33  ;;  %v549_v35 = vld [vmem:[%s4120_s30 + $0x518] sm:$0xf]  ;;  %v551_v36 = vld [vmem:[%s4120_s30 + $0x520] sm:$0xf] }
  0x89   : > { %548 = vst [vmem:[%s4125_s28 + $0x288] sm:$0xf] %v547_v34  ;;  %550 = vst [vmem:[%s4125_s28 + $0x28c] sm:$0xf] %v549_v35  ;;  %v553_v37 = vld [vmem:[%s4120_s30 + $0x528] sm:$0xf] }
  0x8a   : > { %552 = vst [vmem:[%s4125_s28 + $0x290] sm:$0xf] %v551_v36  ;;  %v555_v38 = vld [vmem:[%s4120_s30 + $0x530] sm:$0xf]  ;;  %v557_v39 = vld [vmem:[%s4120_s30 + $0x538] sm:$0xf] }
  0x8b   : > { %554 = vst [vmem:[%s4125_s28 + $0x294] sm:$0xf] %v553_v37  ;;  %556 = vst [vmem:[%s4125_s28 + $0x298] sm:$0xf] %v555_v38  ;;  %v559_v40 = vld [vmem:[%s4120_s30 + $0x540] sm:$0xf] }
  0x8c   : > { %558 = vst [vmem:[%s4125_s28 + $0x29c] sm:$0xf] %v557_v39  ;;  %v561_v41 = vld [vmem:[%s4120_s30 + $0x548] sm:$0xf]  ;;  %v563_v42 = vld [vmem:[%s4120_s30 + $0x550] sm:$0xf] }
  0x8d   : > { %560 = vst [vmem:[%s4125_s28 + $0x2a0] sm:$0xf] %v559_v40  ;;  %562 = vst [vmem:[%s4125_s28 + $0x2a4] sm:$0xf] %v561_v41  ;;  %v565_v43 = vld [vmem:[%s4120_s30 + $0x558] sm:$0xf] }
  0x8e   : > { %564 = vst [vmem:[%s4125_s28 + $0x2a8] sm:$0xf] %v563_v42  ;;  %v567_v44 = vld [vmem:[%s4120_s30 + $0x560] sm:$0xf]  ;;  %v569_v45 = vld [vmem:[%s4120_s30 + $0x568] sm:$0xf] }
  0x8f   : > { %566 = vst [vmem:[%s4125_s28 + $0x2ac] sm:$0xf] %v565_v43  ;;  %568 = vst [vmem:[%s4125_s28 + $0x2b0] sm:$0xf] %v567_v44  ;;  %v571_v46 = vld [vmem:[%s4120_s30 + $0x570] sm:$0xf] }
  0x90   : > { %570 = vst [vmem:[%s4125_s28 + $0x2b4] sm:$0xf] %v569_v45  ;;  %v573_v47 = vld [vmem:[%s4120_s30 + $0x578] sm:$0xf]  ;;  %v575_v48 = vld [vmem:[%s4120_s30 + $0x580] sm:$0xf] }
  0x91   : > { %572 = vst [vmem:[%s4125_s28 + $0x2b8] sm:$0xf] %v571_v46  ;;  %574 = vst [vmem:[%s4125_s28 + $0x2bc] sm:$0xf] %v573_v47  ;;  %v577_v49 = vld [vmem:[%s4120_s30 + $0x588] sm:$0xf] }
  0x92   : > { %576 = vst [vmem:[%s4125_s28 + $0x2c0] sm:$0xf] %v575_v48  ;;  %v579_v50 = vld [vmem:[%s4120_s30 + $0x590] sm:$0xf]  ;;  %v581_v51 = vld [vmem:[%s4120_s30 + $0x598] sm:$0xf] }
  0x93   : > { %578 = vst [vmem:[%s4125_s28 + $0x2c4] sm:$0xf] %v577_v49  ;;  %580 = vst [vmem:[%s4125_s28 + $0x2c8] sm:$0xf] %v579_v50  ;;  %v583_v52 = vld [vmem:[%s4120_s30 + $0x5a0] sm:$0xf] }
  0x94   : > { %582 = vst [vmem:[%s4125_s28 + $0x2cc] sm:$0xf] %v581_v51  ;;  %v585_v53 = vld [vmem:[%s4120_s30 + $0x5a8] sm:$0xf]  ;;  %v587_v54 = vld [vmem:[%s4120_s30 + $0x5b0] sm:$0xf] }
  0x95   : > { %584 = vst [vmem:[%s4125_s28 + $0x2d0] sm:$0xf] %v583_v52  ;;  %586 = vst [vmem:[%s4125_s28 + $0x2d4] sm:$0xf] %v585_v53  ;;  %v589_v55 = vld [vmem:[%s4120_s30 + $0x5b8] sm:$0xf] }
  0x96   : > { %588 = vst [vmem:[%s4125_s28 + $0x2d8] sm:$0xf] %v587_v54  ;;  %v591_v56 = vld [vmem:[%s4120_s30 + $0x5c0] sm:$0xf]  ;;  %v593_v57 = vld [vmem:[%s4120_s30 + $0x5c8] sm:$0xf] }
  0x97   : > { %590 = vst [vmem:[%s4125_s28 + $0x2dc] sm:$0xf] %v589_v55  ;;  %592 = vst [vmem:[%s4125_s28 + $0x2e0] sm:$0xf] %v591_v56  ;;  %v595_v58 = vld [vmem:[%s4120_s30 + $0x5d0] sm:$0xf] }
  0x98   : > { %594 = vst [vmem:[%s4125_s28 + $0x2e4] sm:$0xf] %v593_v57  ;;  %v597_v59 = vld [vmem:[%s4120_s30 + $0x5d8] sm:$0xf]  ;;  %v599_v60 = vld [vmem:[%s4120_s30 + $0x5e0] sm:$0xf] }
  0x99   : > { %596 = vst [vmem:[%s4125_s28 + $0x2e8] sm:$0xf] %v595_v58  ;;  %598 = vst [vmem:[%s4125_s28 + $0x2ec] sm:$0xf] %v597_v59  ;;  %v601_v61 = vld [vmem:[%s4120_s30 + $0x5e8] sm:$0xf] }
  0x9a   : > { %600 = vst [vmem:[%s4125_s28 + $0x2f0] sm:$0xf] %v599_v60  ;;  %v603_v62 = vld [vmem:[%s4120_s30 + $0x5f0] sm:$0xf]  ;;  %v605_v63 = vld [vmem:[%s4120_s30 + $0x5f8] sm:$0xf] }
  0x9b   : > { %602 = vst [vmem:[%s4125_s28 + $0x2f4] sm:$0xf] %v601_v61  ;;  %604 = vst [vmem:[%s4125_s28 + $0x2f8] sm:$0xf] %v603_v62  ;;  %v607_v0 = vld [vmem:[%s4120_s30 + $0x600] sm:$0xf] }
  0x9c   : > { %606 = vst [vmem:[%s4125_s28 + $0x2fc] sm:$0xf] %v605_v63  ;;  %v609_v1 = vld [vmem:[%s4120_s30 + $0x608] sm:$0xf]  ;;  %v611_v2 = vld [vmem:[%s4120_s30 + $0x610] sm:$0xf] }
  0x9d   : > { %608 = vst [vmem:[%s4125_s28 + $0x300] sm:$0xf] %v607_v0  ;;  %610 = vst [vmem:[%s4125_s28 + $0x304] sm:$0xf] %v609_v1  ;;  %v613_v3 = vld [vmem:[%s4120_s30 + $0x618] sm:$0xf] }
  0x9e   : > { %612 = vst [vmem:[%s4125_s28 + $0x308] sm:$0xf] %v611_v2  ;;  %v615_v4 = vld [vmem:[%s4120_s30 + $0x620] sm:$0xf]  ;;  %v617_v5 = vld [vmem:[%s4120_s30 + $0x628] sm:$0xf] }
  0x9f   : > { %614 = vst [vmem:[%s4125_s28 + $0x30c] sm:$0xf] %v613_v3  ;;  %616 = vst [vmem:[%s4125_s28 + $0x310] sm:$0xf] %v615_v4  ;;  %v619_v6 = vld [vmem:[%s4120_s30 + $0x630] sm:$0xf] }
  0xa0   : > { %618 = vst [vmem:[%s4125_s28 + $0x314] sm:$0xf] %v617_v5  ;;  %v621_v7 = vld [vmem:[%s4120_s30 + $0x638] sm:$0xf]  ;;  %v623_v8 = vld [vmem:[%s4120_s30 + $0x640] sm:$0xf] }
  0xa1   : > { %620 = vst [vmem:[%s4125_s28 + $0x318] sm:$0xf] %v619_v6  ;;  %622 = vst [vmem:[%s4125_s28 + $0x31c] sm:$0xf] %v621_v7  ;;  %v625_v9 = vld [vmem:[%s4120_s30 + $0x648] sm:$0xf] }
  0xa2   : > { %624 = vst [vmem:[%s4125_s28 + $0x320] sm:$0xf] %v623_v8  ;;  %v627_v10 = vld [vmem:[%s4120_s30 + $0x650] sm:$0xf]  ;;  %v629_v11 = vld [vmem:[%s4120_s30 + $0x658] sm:$0xf] }
  0xa3   : > { %626 = vst [vmem:[%s4125_s28 + $0x324] sm:$0xf] %v625_v9  ;;  %628 = vst [vmem:[%s4125_s28 + $0x328] sm:$0xf] %v627_v10  ;;  %v631_v12 = vld [vmem:[%s4120_s30 + $0x660] sm:$0xf] }
  0xa4   : > { %630 = vst [vmem:[%s4125_s28 + $0x32c] sm:$0xf] %v629_v11  ;;  %v633_v13 = vld [vmem:[%s4120_s30 + $0x668] sm:$0xf]  ;;  %v635_v14 = vld [vmem:[%s4120_s30 + $0x670] sm:$0xf] }
  0xa5   : > { %632 = vst [vmem:[%s4125_s28 + $0x330] sm:$0xf] %v631_v12  ;;  %634 = vst [vmem:[%s4125_s28 + $0x334] sm:$0xf] %v633_v13  ;;  %v637_v15 = vld [vmem:[%s4120_s30 + $0x678] sm:$0xf] }
  0xa6   : > { %636 = vst [vmem:[%s4125_s28 + $0x338] sm:$0xf] %v635_v14  ;;  %v639_v16 = vld [vmem:[%s4120_s30 + $0x680] sm:$0xf]  ;;  %v641_v17 = vld [vmem:[%s4120_s30 + $0x688] sm:$0xf] }
  0xa7   : > { %638 = vst [vmem:[%s4125_s28 + $0x33c] sm:$0xf] %v637_v15  ;;  %640 = vst [vmem:[%s4125_s28 + $0x340] sm:$0xf] %v639_v16  ;;  %v643_v18 = vld [vmem:[%s4120_s30 + $0x690] sm:$0xf] }
  0xa8   : > { %642 = vst [vmem:[%s4125_s28 + $0x344] sm:$0xf] %v641_v17  ;;  %v645_v19 = vld [vmem:[%s4120_s30 + $0x698] sm:$0xf]  ;;  %v647_v20 = vld [vmem:[%s4120_s30 + $0x6a0] sm:$0xf] }
  0xa9   : > { %644 = vst [vmem:[%s4125_s28 + $0x348] sm:$0xf] %v643_v18  ;;  %646 = vst [vmem:[%s4125_s28 + $0x34c] sm:$0xf] %v645_v19  ;;  %v649_v21 = vld [vmem:[%s4120_s30 + $0x6a8] sm:$0xf] }
  0xaa   : > { %648 = vst [vmem:[%s4125_s28 + $0x350] sm:$0xf] %v647_v20  ;;  %v651_v22 = vld [vmem:[%s4120_s30 + $0x6b0] sm:$0xf]  ;;  %v653_v23 = vld [vmem:[%s4120_s30 + $0x6b8] sm:$0xf] }
  0xab   : > { %650 = vst [vmem:[%s4125_s28 + $0x354] sm:$0xf] %v649_v21  ;;  %652 = vst [vmem:[%s4125_s28 + $0x358] sm:$0xf] %v651_v22  ;;  %v655_v24 = vld [vmem:[%s4120_s30 + $0x6c0] sm:$0xf] }
  0xac   : > { %654 = vst [vmem:[%s4125_s28 + $0x35c] sm:$0xf] %v653_v23  ;;  %v657_v25 = vld [vmem:[%s4120_s30 + $0x6c8] sm:$0xf]  ;;  %v659_v26 = vld [vmem:[%s4120_s30 + $0x6d0] sm:$0xf] }
  0xad   : > { %656 = vst [vmem:[%s4125_s28 + $0x360] sm:$0xf] %v655_v24  ;;  %658 = vst [vmem:[%s4125_s28 + $0x364] sm:$0xf] %v657_v25  ;;  %v661_v27 = vld [vmem:[%s4120_s30 + $0x6d8] sm:$0xf] }
  0xae   : > { %660 = vst [vmem:[%s4125_s28 + $0x368] sm:$0xf] %v659_v26  ;;  %v663_v28 = vld [vmem:[%s4120_s30 + $0x6e0] sm:$0xf]  ;;  %v665_v29 = vld [vmem:[%s4120_s30 + $0x6e8] sm:$0xf] }
  0xaf   : > { %662 = vst [vmem:[%s4125_s28 + $0x36c] sm:$0xf] %v661_v27  ;;  %664 = vst [vmem:[%s4125_s28 + $0x370] sm:$0xf] %v663_v28  ;;  %v667_v30 = vld [vmem:[%s4120_s30 + $0x6f0] sm:$0xf] }
  0xb0   : > { %666 = vst [vmem:[%s4125_s28 + $0x374] sm:$0xf] %v665_v29  ;;  %v669_v31 = vld [vmem:[%s4120_s30 + $0x6f8] sm:$0xf]  ;;  %v671_v32 = vld [vmem:[%s4120_s30 + $0x700] sm:$0xf] }
  0xb1   : > { %668 = vst [vmem:[%s4125_s28 + $0x378] sm:$0xf] %v667_v30  ;;  %670 = vst [vmem:[%s4125_s28 + $0x37c] sm:$0xf] %v669_v31  ;;  %v673_v33 = vld [vmem:[%s4120_s30 + $0x708] sm:$0xf] }
  0xb2   : > { %672 = vst [vmem:[%s4125_s28 + $0x380] sm:$0xf] %v671_v32  ;;  %v675_v34 = vld [vmem:[%s4120_s30 + $0x710] sm:$0xf]  ;;  %v677_v35 = vld [vmem:[%s4120_s30 + $0x718] sm:$0xf] }
  0xb3   : > { %674 = vst [vmem:[%s4125_s28 + $0x384] sm:$0xf] %v673_v33  ;;  %676 = vst [vmem:[%s4125_s28 + $0x388] sm:$0xf] %v675_v34  ;;  %v679_v36 = vld [vmem:[%s4120_s30 + $0x720] sm:$0xf] }
  0xb4   : > { %678 = vst [vmem:[%s4125_s28 + $0x38c] sm:$0xf] %v677_v35  ;;  %v681_v37 = vld [vmem:[%s4120_s30 + $0x728] sm:$0xf]  ;;  %v683_v38 = vld [vmem:[%s4120_s30 + $0x730] sm:$0xf] }
  0xb5   : > { %680 = vst [vmem:[%s4125_s28 + $0x390] sm:$0xf] %v679_v36  ;;  %682 = vst [vmem:[%s4125_s28 + $0x394] sm:$0xf] %v681_v37  ;;  %v685_v39 = vld [vmem:[%s4120_s30 + $0x738] sm:$0xf] }
  0xb6   : > { %684 = vst [vmem:[%s4125_s28 + $0x398] sm:$0xf] %v683_v38  ;;  %v687_v40 = vld [vmem:[%s4120_s30 + $0x740] sm:$0xf]  ;;  %v689_v41 = vld [vmem:[%s4120_s30 + $0x748] sm:$0xf] }
  0xb7   : > { %686 = vst [vmem:[%s4125_s28 + $0x39c] sm:$0xf] %v685_v39  ;;  %688 = vst [vmem:[%s4125_s28 + $0x3a0] sm:$0xf] %v687_v40  ;;  %v691_v42 = vld [vmem:[%s4120_s30 + $0x750] sm:$0xf] }
  0xb8   : > { %690 = vst [vmem:[%s4125_s28 + $0x3a4] sm:$0xf] %v689_v41  ;;  %v693_v43 = vld [vmem:[%s4120_s30 + $0x758] sm:$0xf]  ;;  %v695_v44 = vld [vmem:[%s4120_s30 + $0x760] sm:$0xf] }
  0xb9   : > { %692 = vst [vmem:[%s4125_s28 + $0x3a8] sm:$0xf] %v691_v42  ;;  %694 = vst [vmem:[%s4125_s28 + $0x3ac] sm:$0xf] %v693_v43  ;;  %v697_v45 = vld [vmem:[%s4120_s30 + $0x768] sm:$0xf] }
  0xba   : > { %696 = vst [vmem:[%s4125_s28 + $0x3b0] sm:$0xf] %v695_v44  ;;  %v699_v46 = vld [vmem:[%s4120_s30 + $0x770] sm:$0xf]  ;;  %v701_v47 = vld [vmem:[%s4120_s30 + $0x778] sm:$0xf] }
  0xbb   : > { %698 = vst [vmem:[%s4125_s28 + $0x3b4] sm:$0xf] %v697_v45  ;;  %700 = vst [vmem:[%s4125_s28 + $0x3b8] sm:$0xf] %v699_v46  ;;  %v703_v48 = vld [vmem:[%s4120_s30 + $0x780] sm:$0xf] }
  0xbc   : > { %702 = vst [vmem:[%s4125_s28 + $0x3bc] sm:$0xf] %v701_v47  ;;  %v705_v49 = vld [vmem:[%s4120_s30 + $0x788] sm:$0xf]  ;;  %v707_v50 = vld [vmem:[%s4120_s30 + $0x790] sm:$0xf] }
  0xbd   : > { %704 = vst [vmem:[%s4125_s28 + $0x3c0] sm:$0xf] %v703_v48  ;;  %706 = vst [vmem:[%s4125_s28 + $0x3c4] sm:$0xf] %v705_v49  ;;  %v709_v51 = vld [vmem:[%s4120_s30 + $0x798] sm:$0xf] }
  0xbe   : > { %708 = vst [vmem:[%s4125_s28 + $0x3c8] sm:$0xf] %v707_v50  ;;  %v711_v52 = vld [vmem:[%s4120_s30 + $0x7a0] sm:$0xf]  ;;  %v713_v53 = vld [vmem:[%s4120_s30 + $0x7a8] sm:$0xf] }
  0xbf   : > { %710 = vst [vmem:[%s4125_s28 + $0x3cc] sm:$0xf] %v709_v51  ;;  %712 = vst [vmem:[%s4125_s28 + $0x3d0] sm:$0xf] %v711_v52  ;;  %v715_v54 = vld [vmem:[%s4120_s30 + $0x7b0] sm:$0xf] }
  0xc0   : > { %714 = vst [vmem:[%s4125_s28 + $0x3d4] sm:$0xf] %v713_v53  ;;  %v717_v55 = vld [vmem:[%s4120_s30 + $0x7b8] sm:$0xf]  ;;  %v719_v56 = vld [vmem:[%s4120_s30 + $0x7c0] sm:$0xf] }
  0xc1   : > { %716 = vst [vmem:[%s4125_s28 + $0x3d8] sm:$0xf] %v715_v54  ;;  %718 = vst [vmem:[%s4125_s28 + $0x3dc] sm:$0xf] %v717_v55  ;;  %v721_v57 = vld [vmem:[%s4120_s30 + $0x7c8] sm:$0xf] }
  0xc2   : > { %720 = vst [vmem:[%s4125_s28 + $0x3e0] sm:$0xf] %v719_v56  ;;  %v723_v58 = vld [vmem:[%s4120_s30 + $0x7d0] sm:$0xf]  ;;  %v725_v59 = vld [vmem:[%s4120_s30 + $0x7d8] sm:$0xf] }
  0xc3   : > { %722 = vst [vmem:[%s4125_s28 + $0x3e4] sm:$0xf] %v721_v57  ;;  %724 = vst [vmem:[%s4125_s28 + $0x3e8] sm:$0xf] %v723_v58  ;;  %v727_v60 = vld [vmem:[%s4120_s30 + $0x7e0] sm:$0xf] }
  0xc4   : > { %726 = vst [vmem:[%s4125_s28 + $0x3ec] sm:$0xf] %v725_v59  ;;  %v729_v61 = vld [vmem:[%s4120_s30 + $0x7e8] sm:$0xf]  ;;  %v731_v62 = vld [vmem:[%s4120_s30 + $0x7f0] sm:$0xf] }
  0xc5   : > { %728 = vst [vmem:[%s4125_s28 + $0x3f0] sm:$0xf] %v727_v60  ;;  %730 = vst [vmem:[%s4125_s28 + $0x3f4] sm:$0xf] %v729_v61  ;;  %v733_v63 = vld [vmem:[%s4120_s30 + $0x7f8] sm:$0xf] }
  0xc6   : > { %732 = vst [vmem:[%s4125_s28 + $0x3f8] sm:$0xf] %v731_v62  ;;  %734 = vst [vmem:[%s4125_s28 + $0x3fc] sm:$0xf] %v733_v63 }
  0xc7 PF: > { %p3333_p11 = scmp.ge.s32.totalorder %s4005_s23, 1  ;;  %p1281_p12 = scmp.lt.s32.totalorder %s4005_s23, 9 }
  0xc9   : > { %p1282_p13 = pnand %p3333_p11, %p1281_p12 }
  0xca   : > { %s1288_s29 = sand.u32 (!%p1282_p13), 1, %s3981_s17   ;;  %p1339_p0 = scmp.lt.s32.totalorder (!%p1282_p13), %s3993_s20, 1 }
  0xcb   : > { %1285 = sbr.rel (%p1282_p13) target bundleno = 635 (0x27b), region = 73  ;;  %s3334_s5 = sshll.u32 (!%p1282_p13), %s1288_s29, 10 }
  0xcc   : > { %s4643_s10 = scalar_lea.vmem (!%p1282_p13), [#allocation4], %s3334_s5  ;;  %p1329_p1 = scmp.lt.s32.totalorder (!%p1282_p13), %s3989_s19, 3 }
  0xcd   : > { %p2961_p2 = scmp.eq.s32.totalorder (!%p1282_p13), %s3989_s19, 0 }
  0xd0   : > { %s4641_s6 = scalar_select %p1339_p0, %s3993_s20, 1  ;;  %v3805_v0 = vld [vmem:[%s4643_s10 + $0x78] sm:$0xff]   ;;  %v3809_v4 = vld [vmem:[%s4643_s10 + $0x70] sm:$0xff]   ;;  %v3813_v8 = vld [vmem:[%s4643_s10 + $0x68] sm:$0xff]  }
  0xd1   : > { %v3806_v1 = vld [vmem:[%s4643_s10 + $0xf8] sm:$0xff]   ;;  %3508 = vmatprep.subr.bf16.mxu0 %v3805_v0  ;;  %v3810_v5 = vld [vmem:[%s4643_s10 + $0xf0] sm:$0xff]   ;;  %v3814_v9 = vld [vmem:[%s4643_s10 + $0xe8] sm:$0xff]   ;;  %s1330_s27 = scalar_select %p1329_p1, %s3989_s19, 3 }
  0xd2   : > { %s1341_s12 = scalar_lea.vmem %s4930_s2, %s4641_s6  ;;  %s1344_s26 = scalar_lea.vmem %s4931_s3, %s4641_s6  ;;  %v3807_v2 = vld [vmem:[%s4643_s10 + $0x38] sm:$0xff]   ;;  %3536 = vmatprep.subr.bf16.mxu1 %v3806_v1  ;;  %v3811_v6 = vld [vmem:[%s4643_s10 + $0x30] sm:$0xff]   ;;  %v3815_v10 = vld [vmem:[%s4643_s10 + $0x28] sm:$0xff]  }
  0xd3   : > { %v3808_v3 = vld [vmem:[%s4643_s10 + $0xb8] sm:$0xff]   ;;  %3509 = vmatpush3.bf16.msra.mxu0 %v3807_v2  ;;  %v3812_v7 = vld [vmem:[%s4643_s10 + $0xb0] sm:$0xff]   ;;  %v3816_v11 = vld [vmem:[%s4643_s10 + $0xa8] sm:$0xff]   ;;  %s3505_s30 = sshll.u32 %s1330_s27, 8 }
  0xd4   : > { %3537 = vmatpush3.bf16.msra.mxu1 %v3808_v3  ;;  %3510 = vmatprep.subr.bf16.mxu0 %v3809_v4  ;;  %v3817_v12 = vld [vmem:[%s4643_s10 + $0x60] sm:$0xff]   ;;  %v3821_v16 = vld [vmem:[%s4643_s10 + $0x58] sm:$0xff]   ;;  %v3825_v20 = vld [vmem:[%s4643_s10 + $0x50] sm:$0xff]   ;;  %s4688_s5 = scalar_lea.vmem %s4928_s0, %s3505_s30 }
  0xd5   : > { %3538 = vmatprep.subr.bf16.mxu1 %v3810_v5  ;;  %v3818_v13 = vld [vmem:[%s4643_s10 + $0xe0] sm:$0xff]   ;;  %v3822_v17 = vld [vmem:[%s4643_s10 + $0xd8] sm:$0xff]   ;;  %v3826_v21 = vld [vmem:[%s4643_s10 + $0xd0] sm:$0xff]  }
  0xd6   : > { %v3819_v14 = vld [vmem:[%s4643_s10 + $0x20] sm:$0xff]   ;;  %v3823_v18 = vld [vmem:[%s4643_s10 + $0x18] sm:$0xff]   ;;  %v3827_v22 = vld [vmem:[%s4643_s10 + $0x10] sm:$0xff]  }
  0xd7   : > { %3511 = vmatpush3.bf16.msra.mxu0 %v3811_v6  ;;  %v3820_v15 = vld [vmem:[%s4643_s10 + $0xa0] sm:$0xff]   ;;  %v3824_v19 = vld [vmem:[%s4643_s10 + $0x98] sm:$0xff]   ;;  %v3828_v23 = vld [vmem:[%s4643_s10 + $0x90] sm:$0xff]  }
  0xd8   : > { %3539 = vmatpush3.bf16.msra.mxu1 %v3812_v7  ;;  %3512 = vmatprep.subr.bf16.mxu0 %v3813_v8  ;;  %v3829_v24 = vld [vmem:[%s4643_s10 + $0x48] sm:$0xff]   ;;  %v3833_v28 = vld [vmem:[%s4643_s10 + $0x40] sm:$0xff]   ;;  %v3837_v40 = vld [vmem:[%s4643_s10 + $0x178] sm:$0xff]  }
  0xd9   : > { %3540 = vmatprep.subr.bf16.mxu1 %v3814_v9  ;;  %v3830_v25 = vld [vmem:[%s4643_s10 + $0xc8] sm:$0xff]   ;;  %v3834_v29 = vld [vmem:[%s4643_s10 + $0xc0] sm:$0xff]   ;;  %v3838_v41 = vld [vmem:[%s4643_s10 + $0x1f8] sm:$0xff]  }
  0xda   : > { %v3831_v26 = vld [vmem:[%s4643_s10 + $0x8] sm:$0xff]   ;;  %v3835_v30 = vld [vmem:[%s4643_s10] sm:$0xff]   ;;  %v3839_v42 = vld [vmem:[%s4643_s10 + $0x138] sm:$0xff]  }
  0xdb   : > { %3513 = vmatpush3.bf16.msra.mxu0 %v3815_v10  ;;  %v3832_v27 = vld [vmem:[%s4643_s10 + $0x88] sm:$0xff]   ;;  %v3836_v31 = vld [vmem:[%s4643_s10 + $0x80] sm:$0xff]   ;;  %v3840_v43 = vld [vmem:[%s4643_s10 + $0x1b8] sm:$0xff]  }
  0xdc   : > { %3541 = vmatpush3.bf16.msra.mxu1 %v3816_v11  ;;  %3514 = vmatprep.subr.bf16.mxu0 %v3817_v12  ;;  %v1346_v32 = vld [vmem:[%s4688_s5] sm:$0xff]  ;;  %v1347_v34 = vld [vmem:[%s4688_s5 + $0x8] sm:$0xff]  ;;  %v3841_v44 = vld [vmem:[%s4643_s10 + $0x170] sm:$0xff]  }
  0xdd   : > { %3542 = vmatprep.subr.bf16.mxu1 %v3818_v13  ;;  %v1354_v33 = vld [vmem:[%s4688_s5 + $0x40] sm:$0xff]  ;;  %v1355_v37 = vld [vmem:[%s4688_s5 + $0x48] sm:$0xff]  ;;  %v3842_v45 = vld [vmem:[%s4643_s10 + $0x1f0] sm:$0xff]  }
  0xde   : > { %v3338_v35 = vcombine.low %v1346_v32, %v1354_v33  ;;  %v3339_v36 = vcombine.high %v1346_v32, %v1354_v33  ;;  %v3340_v38 = vcombine.low %v1347_v34, %v1355_v37  ;;  %v3341_v39 = vcombine.high %v1347_v34, %v1355_v37  ;;  %v3843_v46 = vld [vmem:[%s4643_s10 + $0x130] sm:$0xff]   ;;  %v3845_v48 = vld [vmem:[%s4643_s10 + $0x168] sm:$0xff]   ;;  %v3849_v52 = vld [vmem:[%s4643_s10 + $0x160] sm:$0xff]  }
  0xdf   : > { %3515 = vmatpush3.bf16.msra.mxu0 %v3819_v14  ;;  %v3844_v47 = vld [vmem:[%s4643_s10 + $0x1b0] sm:$0xff]   ;;  %v3846_v49 = vld [vmem:[%s4643_s10 + $0x1e8] sm:$0xff]   ;;  %v3850_v53 = vld [vmem:[%s4643_s10 + $0x1e0] sm:$0xff]  }
  0xe0   : > { %3543 = vmatpush3.bf16.msra.mxu1 %v3820_v15  ;;  %3516 = vmatprep.subr.bf16.mxu0 %v3821_v16  ;;  %v3847_v50 = vld [vmem:[%s4643_s10 + $0x128] sm:$0xff]   ;;  %v3851_v54 = vld [vmem:[%s4643_s10 + $0x120] sm:$0xff]   ;;  %v3853_v56 = vld [vmem:[%s4643_s10 + $0x158] sm:$0xff]  }
  0xe1   : > { %3544 = vmatprep.subr.bf16.mxu1 %v3822_v17  ;;  %2594 = vmatprep.mubr.bf16.mxu0 %v3339_v36  ;;  %v3848_v51 = vld [vmem:[%s4643_s10 + $0x1a8] sm:$0xff]   ;;  %v3852_v55 = vld [vmem:[%s4643_s10 + $0x1a0] sm:$0xff]   ;;  %v3854_v57 = vld [vmem:[%s4643_s10 + $0x1d8] sm:$0xff]  }
  0xe2   : > { %2643 = vmatprep.mubr.bf16.mxu1 %v3341_v39  ;;  %v3855_v58 = vld [vmem:[%s4643_s10 + $0x118] sm:$0xff]   ;;  %v1363_v63 = vld [vmem:[%s4688_s5 + $0x88] sm:$0xff]  ;;  %v3857_v4 = vld [vmem:[%s4643_s10 + $0x150] sm:$0xff]  }
  0xe3   : > { %3517 = vmatpush3.bf16.msra.mxu0 %v3823_v18  ;;  %v3856_v59 = vld [vmem:[%s4643_s10 + $0x198] sm:$0xff]   ;;  %v1371_v0 = vld [vmem:[%s4688_s5 + $0xc8] sm:$0xff]  ;;  %v3858_v5 = vld [vmem:[%s4643_s10 + $0x1d0] sm:$0xff]  }
  0xe4   : > { %3545 = vmatpush3.bf16.msra.mxu1 %v3824_v19  ;;  %3518 = vmatprep.subr.bf16.mxu0 %v3825_v20  ;;  %v1362_v60 = vld [vmem:[%s4688_s5 + $0x80] sm:$0xff]  ;;  %v3357_v2 = vcombine.high %v1363_v63, %v1371_v0  ;;  %v3356_v3 = vcombine.low %v1363_v63, %v1371_v0  ;;  %v3859_v6 = vld [vmem:[%s4643_s10 + $0x110] sm:$0xff]   ;;  %v3861_v8 = vld [vmem:[%s4643_s10 + $0x148] sm:$0xff]  }
  0xe5   : > { %3546 = vmatprep.subr.bf16.mxu1 %v3826_v21  ;;  %v1370_v61 = vld [vmem:[%s4688_s5 + $0xc0] sm:$0xff]  ;;  %v3860_v7 = vld [vmem:[%s4643_s10 + $0x190] sm:$0xff]   ;;  %v3862_v9 = vld [vmem:[%s4643_s10 + $0x1c8] sm:$0xff]  }
  0xe6   : > { %v3355_v62 = vcombine.high %v1362_v60, %v1370_v61  ;;  %v3354_v1 = vcombine.low %v1362_v60, %v1370_v61  ;;  %v3863_v10 = vld [vmem:[%s4643_s10 + $0x108] sm:$0xff]   ;;  %v3865_v12 = vld [vmem:[%s4643_s10 + $0x140] sm:$0xff]   ;;  %v1349_v18 = vld [vmem:[%s4688_s5 + $0x18] sm:$0xff] }
  0xe7   : > { %3519 = vmatpush3.bf16.msra.mxu0 %v3827_v22  ;;  %v3864_v11 = vld [vmem:[%s4643_s10 + $0x188] sm:$0xff]   ;;  %v3866_v13 = vld [vmem:[%s4643_s10 + $0x1c0] sm:$0xff]   ;;  %v1357_v19 = vld [vmem:[%s4688_s5 + $0x58] sm:$0xff] }
  0xe8   : > { %3547 = vmatpush3.bf16.msra.mxu1 %v3828_v23  ;;  %3520 = vmatprep.subr.bf16.mxu0 %v3829_v24  ;;  %v3867_v14 = vld [vmem:[%s4643_s10 + $0x100] sm:$0xff]   ;;  %v1348_v16 = vld [vmem:[%s4688_s5 + $0x10] sm:$0xff]  ;;  %v3344_v22 = vcombine.low %v1349_v18, %v1357_v19  ;;  %v3345_v23 = vcombine.high %v1349_v18, %v1357_v19  ;;  %v3869_v24 = vld [vmem:[%s4643_s10 + $0x278] sm:$0xff]  }
  0xe9   : > { %3548 = vmatprep.subr.bf16.mxu1 %v3830_v25  ;;  %v3868_v15 = vld [vmem:[%s4643_s10 + $0x180] sm:$0xff]   ;;  %v1356_v17 = vld [vmem:[%s4688_s5 + $0x50] sm:$0xff]  ;;  %v3870_v25 = vld [vmem:[%s4643_s10 + $0x2f8] sm:$0xff]  }
  0xea   : > { %v3342_v20 = vcombine.low %v1348_v16, %v1356_v17  ;;  %v3343_v21 = vcombine.high %v1348_v16, %v1356_v17  ;;  %v1364_v32 = vld [vmem:[%s4688_s5 + $0x90] sm:$0xff]  ;;  %v1373_v39 = vld [vmem:[%s4688_s5 + $0xd8] sm:$0xff]  ;;  %v3897_v60 = vld [vmem:[%s4643_s10 + $0x240] sm:$0xff]  }
  0xeb   : > { %3521 = vmatpush3.bf16.msra.mxu0 %v3831_v26  ;;  %v3871_v26 = vld [vmem:[%s4643_s10 + $0x238] sm:$0xff]   ;;  %v1372_v33 = vld [vmem:[%s4688_s5 + $0xd0] sm:$0xff]  ;;  %v3898_v61 = vld [vmem:[%s4643_s10 + $0x2c0] sm:$0xff]  }
  0xec   : > { %3549 = vmatpush3.bf16.msra.mxu1 %v3832_v27  ;;  %3522 = vmatprep.subr.bf16.mxu0 %v3833_v28  ;;  %v3872_v27 = vld [vmem:[%s4643_s10 + $0x2b8] sm:$0xff]   ;;  %v3873_v28 = vld [vmem:[%s4643_s10 + $0x270] sm:$0xff]   ;;  %v3359_v34 = vcombine.high %v1364_v32, %v1372_v33  ;;  %v3877_v36 = vld [vmem:[%s4643_s10 + $0x268] sm:$0xff]  }
  0xed   : > { %3550 = vmatprep.subr.bf16.mxu1 %v3834_v29  ;;  %v3874_v29 = vld [vmem:[%s4643_s10 + $0x2f0] sm:$0xff]   ;;  %v3878_v37 = vld [vmem:[%s4643_s10 + $0x2e8] sm:$0xff]   ;;  %v3900_v63 = vld [vmem:[%s4643_s10 + $0x280] sm:$0xff]  }
  0xee   : > { %v1350_v0 = vld [vmem:[%s4688_s5 + $0x20] sm:$0xff] }
  0xef   : > { %3523 = vmatpush3.bf16.msra.mxu0 %v3835_v30  ;;  %v3875_v30 = vld [vmem:[%s4643_s10 + $0x230] sm:$0xff]   ;;  %v1366_v16 = vld [vmem:[%s4688_s5 + $0xa0] sm:$0xff] }
  0xf0   : > { %3551 = vmatpush3.bf16.msra.mxu1 %v3836_v31  ;;  %3564 = vmatprep.subr.bf16.mxu0 %v3837_v40  ;;  %v3876_v31 = vld [vmem:[%s4643_s10 + $0x2b0] sm:$0xff]   ;;  %v1374_v17 = vld [vmem:[%s4688_s5 + $0xe0] sm:$0xff] }
  0xf1   : > { %3592 = vmatprep.subr.bf16.mxu1 %v3838_v41  ;;  %v3879_v41 = vld [vmem:[%s4643_s10 + $0x228] sm:$0xff]   ;;  %v3363_v18 = vcombine.high %v1366_v16, %v1374_v17  ;;  %v3362_v19 = vcombine.low %v1366_v16, %v1374_v17 }
  0xf2   : > { %2595 = vmatmul.mubr.bf16.vlgmr.msra.gmra.mxu0 %v3338_v35  ;;  %v3358_v35 = vcombine.low %v1364_v32, %v1372_v33  ;;  %v3917_v32 = vld [vmem:[%s4643_s10 + $0x358] sm:$0xff]  }
  0xf3   : > { %2644 = vmatmul.mubr.bf16.vlgmr.msra.gmra.mxu1 %v3340_v38  ;;  %3565 = vmatpush3.bf16.msra.mxu0 %v3839_v42  ;;  %v1365_v38 = vld [vmem:[%s4688_s5 + $0x98] sm:$0xff] }
  0xf4   : > { %3593 = vmatpush3.bf16.msra.mxu1 %v3840_v43  ;;  %3566 = vmatprep.subr.bf16.mxu0 %v3841_v44  ;;  %v3361_v40 = vcombine.high %v1365_v38, %v1373_v39  ;;  %v3360_v42 = vcombine.low %v1365_v38, %v1373_v39  ;;  %v3880_v43 = vld [vmem:[%s4643_s10 + $0x2a8] sm:$0xff]   ;;  %v3881_v44 = vld [vmem:[%s4643_s10 + $0x260] sm:$0xff]   ;;  %v3918_v33 = vld [vmem:[%s4643_s10 + $0x3d8] sm:$0xff]  }
  0xf5   : > { %3594 = vmatprep.subr.bf16.mxu1 %v3842_v45  ;;  %2602 = vmatprep.mubr.bf16.mxu0 %v3355_v62  ;;  %v3882_v45 = vld [vmem:[%s4643_s10 + $0x2e0] sm:$0xff]   ;;  %v3923_v38 = vld [vmem:[%s4643_s10 + $0x310] sm:$0xff]  }
  0xf6   : > { %2651 = vmatprep.mubr.bf16.mxu1 %v3357_v2  ;;  %v3899_v62 = vld [vmem:[%s4643_s10 + $0x200] sm:$0xff]   ;;  %v3924_v39 = vld [vmem:[%s4643_s10 + $0x390] sm:$0xff]  }
  0xf7   : > { %3567 = vmatpush3.bf16.msra.mxu0 %v3843_v46  ;;  %v3883_v46 = vld [vmem:[%s4643_s10 + $0x220] sm:$0xff]  }
  0xf8   : > { %3595 = vmatpush3.bf16.msra.mxu1 %v3844_v47  ;;  %3568 = vmatprep.subr.bf16.mxu0 %v3845_v48  ;;  %v3884_v47 = vld [vmem:[%s4643_s10 + $0x2a0] sm:$0xff]   ;;  %v3885_v48 = vld [vmem:[%s4643_s10 + $0x258] sm:$0xff]  }
  0xf9   : > { %3596 = vmatprep.subr.bf16.mxu1 %v3846_v49  ;;  %v3886_v49 = vld [vmem:[%s4643_s10 + $0x2d8] sm:$0xff]  }
  0xfa   : > { %2603 = vmatmul.mubr.bf16.gmra.mxu0 %v3354_v1  ;;  %v1358_v1 = vld [vmem:[%s4688_s5 + $0x60] sm:$0xff] }
  0xfb   : > { %3569 = vmatpush3.bf16.msra.mxu0 %v3847_v50  ;;  %2652 = vmatmul.mubr.bf16.gmra.mxu1 %v3356_v3  ;;  %v3887_v50 = vld [vmem:[%s4643_s10 + $0x218] sm:$0xff]   ;;  %v3346_v2 = vcombine.low %v1350_v0, %v1358_v1  ;;  %v3347_v3 = vcombine.high %v1350_v0, %v1358_v1 }
  0xfc   : > { %3597 = vmatpush3.bf16.msra.mxu1 %v3848_v51  ;;  %3570 = vmatprep.subr.bf16.mxu0 %v3849_v52  ;;  %v3888_v51 = vld [vmem:[%s4643_s10 + $0x298] sm:$0xff]   ;;  %v3889_v52 = vld [vmem:[%s4643_s10 + $0x250] sm:$0xff]  }
  0xfd   : > { %3598 = vmatprep.subr.bf16.mxu1 %v3850_v53  ;;  %2692 = vmatprep.mubr.bf16.mxu0 %v3343_v21  ;;  %v3890_v53 = vld [vmem:[%s4643_s10 + $0x2d0] sm:$0xff]   ;;  %v3910_v21 = vld [vmem:[%s4643_s10 + $0x3e8] sm:$0xff]  }
  0xfe   : > { %2741 = vmatprep.mubr.bf16.mxu1 %v3345_v23  ;;  %v1375_v23 = vld [vmem:[%s4688_s5 + $0xe8] sm:$0xff] }
  0xff   : > { %3571 = vmatpush3.bf16.msra.mxu0 %v3851_v54  ;;  %v3891_v54 = vld [vmem:[%s4643_s10 + $0x210] sm:$0xff]  }
 0x100   : > { %3599 = vmatpush3.bf16.msra.mxu1 %v3852_v55  ;;  %3572 = vmatprep.subr.bf16.mxu0 %v3853_v56  ;;  %v3892_v55 = vld [vmem:[%s4643_s10 + $0x290] sm:$0xff]   ;;  %v3893_v56 = vld [vmem:[%s4643_s10 + $0x248] sm:$0xff]  }
 0x101   : > { %3600 = vmatprep.subr.bf16.mxu1 %v3854_v57  ;;  %v3894_v57 = vld [vmem:[%s4643_s10 + $0x2c8] sm:$0xff]  }
 0x103   : > { %3573 = vmatpush3.bf16.msra.mxu0 %v3855_v58  ;;  %v3895_v58 = vld [vmem:[%s4643_s10 + $0x208] sm:$0xff]  }
 0x104   : > { %3601 = vmatpush3.bf16.msra.mxu1 %v3856_v59  ;;  %3574 = vmatprep.subr.bf16.mxu0 %v3857_v4  ;;  %v3896_v59 = vld [vmem:[%s4643_s10 + $0x288] sm:$0xff]  }
 0x105   : > { %3602 = vmatprep.subr.bf16.mxu1 %v3858_v5  ;;  %v1351_v4 = vld [vmem:[%s4688_s5 + $0x28] sm:$0xff] }
 0x106   : > { %v1359_v5 = vld [vmem:[%s4688_s5 + $0x68] sm:$0xff] }
 0x107   : > { %3575 = vmatpush3.bf16.msra.mxu0 %v3859_v6  ;;  %v3348_v6 = vcombine.low %v1351_v4, %v1359_v5 }
 0x108   : > { %3603 = vmatpush3.bf16.msra.mxu1 %v3860_v7  ;;  %3576 = vmatprep.subr.bf16.mxu0 %v3861_v8  ;;  %v3349_v7 = vcombine.high %v1351_v4, %v1359_v5  ;;  %v3901_v8 = vld [vmem:[%s4643_s10 + $0x378] sm:$0xff]  }
 0x109   : > { %3604 = vmatprep.subr.bf16.mxu1 %v3862_v9  ;;  %v3902_v9 = vld [vmem:[%s4643_s10 + $0x3f8] sm:$0xff]  }
 0x10b   : > { %3577 = vmatpush3.bf16.msra.mxu0 %v3863_v10  ;;  %v3903_v10 = vld [vmem:[%s4643_s10 + $0x338] sm:$0xff]  }
 0x10c   : > { %3605 = vmatpush3.bf16.msra.mxu1 %v3864_v11  ;;  %3578 = vmatprep.subr.bf16.mxu0 %v3865_v12  ;;  %v3904_v11 = vld [vmem:[%s4643_s10 + $0x3b8] sm:$0xff]   ;;  %v3905_v12 = vld [vmem:[%s4643_s10 + $0x370] sm:$0xff]  }
 0x10d   : > { %3606 = vmatprep.subr.bf16.mxu1 %v3866_v13  ;;  %v3906_v13 = vld [vmem:[%s4643_s10 + $0x3f0] sm:$0xff]  }
 0x10f   : > { %3579 = vmatpush3.bf16.msra.mxu0 %v3867_v14  ;;  %v3907_v14 = vld [vmem:[%s4643_s10 + $0x330] sm:$0xff]  }
 0x110   : > { %3607 = vmatpush3.bf16.msra.mxu1 %v3868_v15  ;;  %3620 = vmatprep.subr.bf16.mxu0 %v3869_v24  ;;  %v3908_v15 = vld [vmem:[%s4643_s10 + $0x3b0] sm:$0xff]  }
 0x111   : > { %3648 = vmatprep.subr.bf16.mxu1 %v3870_v25  ;;  %v3911_v25 = vld [vmem:[%s4643_s10 + $0x328] sm:$0xff]  }
 0x112   : > { %2693 = vmatmul.mubr.bf16.vlgmr.msra.gmra.mxu0 %v3342_v20  ;;  %v3909_v20 = vld [vmem:[%s4643_s10 + $0x368] sm:$0xff]  }
 0x113   : > { %2742 = vmatmul.mubr.bf16.vlgmr.msra.gmra.mxu1 %v3344_v22  ;;  %3621 = vmatpush3.bf16.msra.mxu0 %v3871_v26  ;;  %v1367_v22 = vld [vmem:[%s4688_s5 + $0xa8] sm:$0xff] }
 0x114   : > { %3649 = vmatpush3.bf16.msra.mxu1 %v3872_v27  ;;  %3622 = vmatprep.subr.bf16.mxu0 %v3873_v28  ;;  %v3365_v24 = vcombine.high %v1367_v22, %v1375_v23  ;;  %v3364_v26 = vcombine.low %v1367_v22, %v1375_v23  ;;  %v3912_v27 = vld [vmem:[%s4643_s10 + $0x3a8] sm:$0xff]   ;;  %v3913_v28 = vld [vmem:[%s4643_s10 + $0x360] sm:$0xff]  }
 0x115   : > { %3650 = vmatprep.subr.bf16.mxu1 %v3874_v29  ;;  %2700 = vmatprep.mubr.bf16.mxu0 %v3359_v34  ;;  %v3914_v29 = vld [vmem:[%s4643_s10 + $0x3e0] sm:$0xff]   ;;  %v3919_v34 = vld [vmem:[%s4643_s10 + $0x318] sm:$0xff]  }
 0x116   : > { %2749 = vmatprep.mubr.bf16.mxu1 %v3361_v40  ;;  %v3925_v40 = vld [vmem:[%s4643_s10 + $0x348] sm:$0xff]  }
 0x117   : > { %3623 = vmatpush3.bf16.msra.mxu0 %v3875_v30  ;;  %v3915_v30 = vld [vmem:[%s4643_s10 + $0x320] sm:$0xff]  }
 0x118   : > { %3651 = vmatpush3.bf16.msra.mxu1 %v3876_v31  ;;  %3624 = vmatprep.subr.bf16.mxu0 %v3877_v36  ;;  %v3916_v31 = vld [vmem:[%s4643_s10 + $0x3a0] sm:$0xff]   ;;  %v3921_v36 = vld [vmem:[%s4643_s10 + $0x350] sm:$0xff]  }
 0x119   : > { %3652 = vmatprep.subr.bf16.mxu1 %v3878_v37  ;;  %v3922_v37 = vld [vmem:[%s4643_s10 + $0x3d0] sm:$0xff]  }
 0x11a   : > { %2701 = vmatmul.mubr.bf16.gmra.mxu0 %v3358_v35  ;;  %v3920_v35 = vld [vmem:[%s4643_s10 + $0x398] sm:$0xff]  }
 0x11b   : > { %3625 = vmatpush3.bf16.msra.mxu0 %v3879_v41  ;;  %2750 = vmatmul.mubr.bf16.gmra.mxu1 %v3360_v42  ;;  %v3926_v41 = vld [vmem:[%s4643_s10 + $0x3c8] sm:$0xff]  }
 0x11c   : > { %3653 = vmatpush3.bf16.msra.mxu1 %v3880_v43  ;;  %3626 = vmatprep.subr.bf16.mxu0 %v3881_v44  ;;  %v3927_v42 = vld [vmem:[%s4643_s10 + $0x308] sm:$0xff]   ;;  %v3929_v44 = vld [vmem:[%s4643_s10 + $0x340] sm:$0xff]  }
 0x11d   : > { %3654 = vmatprep.subr.bf16.mxu1 %v3882_v45  ;;  %2790 = vmatprep.mubr.bf16.mxu0 %v3347_v3  ;;  %v3928_v43 = vld [vmem:[%s4643_s10 + $0x388] sm:$0xff]   ;;  %v3930_v45 = vld [vmem:[%s4643_s10 + $0x3c0] sm:$0xff]  }
 0x11e   : > { %2839 = vmatprep.mubr.bf16.mxu1 %v3349_v7 }
 0x11f   : > { %3627 = vmatpush3.bf16.msra.mxu0 %v3883_v46  ;;  %v3931_v46 = vld [vmem:[%s4643_s10 + $0x300] sm:$0xff]  }
 0x120   : > { %3655 = vmatpush3.bf16.msra.mxu1 %v3884_v47  ;;  %3628 = vmatprep.subr.bf16.mxu0 %v3885_v48  ;;  %v3932_v47 = vld [vmem:[%s4643_s10 + $0x380] sm:$0xff]   ;;  %v1352_v48 = vld [vmem:[%s4688_s5 + $0x30] sm:$0xff]  ;;  %s1325_s10 = sand.u32 1, %s3973_s15   ;;  %s3498_s15 = sshll.u32 %s3989_s19, 5 }
 0x121   : > { %3656 = vmatprep.subr.bf16.mxu1 %v3886_v49  ;;  %v1360_v49 = vld [vmem:[%s4688_s5 + $0x70] sm:$0xff]  ;;  %s3335_s11 = sshll.u32 %s1325_s10, 7 }
 0x122   : > { %s4823_s17 = scalar_lea.vmem [#allocation5], %s3335_s11 }
 0x123   : > { %3629 = vmatpush3.bf16.msra.mxu0 %v3887_v50  ;;  %v1353_v50 = vld [vmem:[%s4688_s5 + $0x38] sm:$0xff]  ;;  %s4826_s13 = scalar_lea.vmem %s4823_s17, %s3498_s15 [#allocation5] }
 0x124   : > { %3657 = vmatpush3.bf16.msra.mxu1 %v3888_v51  ;;  %3630 = vmatprep.subr.bf16.mxu0 %v3889_v52  ;;  %v3350_v51 = vcombine.low %v1352_v48, %v1360_v49  ;;  %v3351_v52 = vcombine.high %v1352_v48, %v1360_v49 }
 0x125   : > { %3658 = vmatprep.subr.bf16.mxu1 %v3890_v53  ;;  %v1361_v53 = vld [vmem:[%s4688_s5 + $0x78] sm:$0xff] }
 0x127   : > { %3631 = vmatpush3.bf16.msra.mxu0 %v3891_v54  ;;  %v1368_v54 = vld [vmem:[%s4688_s5 + $0xb0] sm:$0xff] }
 0x128   : > { %3659 = vmatpush3.bf16.msra.mxu1 %v3892_v55  ;;  %3632 = vmatprep.subr.bf16.mxu0 %v3893_v56  ;;  %v1376_v55 = vld [vmem:[%s4688_s5 + $0xf0] sm:$0xff]  ;;  %v3352_v56 = vcombine.low %v1353_v50, %v1361_v53 }
 0x129   : > { %3660 = vmatprep.subr.bf16.mxu1 %v3894_v57  ;;  %v3353_v57 = vcombine.high %v1353_v50, %v1361_v53 }
 0x12b   : > { %3633 = vmatpush3.bf16.msra.mxu0 %v3895_v58  ;;  %v3367_v58 = vcombine.high %v1368_v54, %v1376_v55 }
 0x12c   : > { %3661 = vmatpush3.bf16.msra.mxu1 %v3896_v59  ;;  %3634 = vmatprep.subr.bf16.mxu0 %v3897_v60  ;;  %v1369_v59 = vld [vmem:[%s4688_s5 + $0xb8] sm:$0xff] }
 0x12d   : > { %3662 = vmatprep.subr.bf16.mxu1 %v3898_v61  ;;  %v1377_v60 = vld [vmem:[%s4688_s5 + $0xf8] sm:$0xff] }
 0x12e   : > { %v3369_v61 = vcombine.high %v1369_v59, %v1377_v60 }
 0x12f   : > { %3635 = vmatpush3.bf16.msra.mxu0 %v3899_v62  ;;  %v3366_v62 = vcombine.low %v1368_v54, %v1376_v55 }
 0x130   : > { %3663 = vmatpush3.bf16.msra.mxu1 %v3900_v63  ;;  %3676 = vmatprep.subr.bf16.mxu0 %v3901_v8  ;;  %v3368_v63 = vcombine.low %v1369_v59, %v1377_v60 }
 0x131   : > { %3704 = vmatprep.subr.bf16.mxu1 %v3902_v9 }
 0x132   : > { %2791 = vmatmul.mubr.bf16.vlgmr.msra.gmra.mxu0 %v3346_v2 }
 0x133   : > { %2840 = vmatmul.mubr.bf16.vlgmr.msra.gmra.mxu1 %v3348_v6  ;;  %3677 = vmatpush3.bf16.msra.mxu0 %v3903_v10 }
 0x134   : > { %3705 = vmatpush3.bf16.msra.mxu1 %v3904_v11  ;;  %3678 = vmatprep.subr.bf16.mxu0 %v3905_v12 }
 0x135   : > { %3706 = vmatprep.subr.bf16.mxu1 %v3906_v13  ;;  %2798 = vmatprep.mubr.bf16.mxu0 %v3363_v18 }
 0x136   : > { %2847 = vmatprep.mubr.bf16.mxu1 %v3365_v24 }
 0x137   : > { %3679 = vmatpush3.bf16.msra.mxu0 %v3907_v14 }
 0x138   : > { %3707 = vmatpush3.bf16.msra.mxu1 %v3908_v15  ;;  %3680 = vmatprep.subr.bf16.mxu0 %v3909_v20 }
 0x139   : > { %3708 = vmatprep.subr.bf16.mxu1 %v3910_v21 }
 0x13a   : > { %2799 = vmatmul.mubr.bf16.gmra.mxu0 %v3362_v19 }
 0x13b   : > { %3681 = vmatpush3.bf16.msra.mxu0 %v3911_v25  ;;  %2848 = vmatmul.mubr.bf16.gmra.mxu1 %v3364_v26 }
 0x13c   : > { %3709 = vmatpush3.bf16.msra.mxu1 %v3912_v27  ;;  %3682 = vmatprep.subr.bf16.mxu0 %v3913_v28 }
 0x13d   : > { %3710 = vmatprep.subr.bf16.mxu1 %v3914_v29  ;;  %2888 = vmatprep.mubr.bf16.mxu0 %v3351_v52 }
 0x13e   : > { %2937 = vmatprep.mubr.bf16.mxu1 %v3353_v57 }
 0x13f   : > { %3683 = vmatpush3.bf16.msra.mxu0 %v3915_v30 }
 0x140   : > { %3711 = vmatpush3.bf16.msra.mxu1 %v3916_v31  ;;  %3684 = vmatprep.subr.bf16.mxu0 %v3917_v32 }
 0x141   : > { %3712 = vmatprep.subr.bf16.mxu1 %v3918_v33 }
 0x143   : > { %3685 = vmatpush3.bf16.msra.mxu0 %v3919_v34 }
 0x144   : > { %3713 = vmatpush3.bf16.msra.mxu1 %v3920_v35  ;;  %3686 = vmatprep.subr.bf16.mxu0 %v3921_v36 }
 0x145   : > { %3714 = vmatprep.subr.bf16.mxu1 %v3922_v37 }
 0x147   : > { %3687 = vmatpush3.bf16.msra.mxu0 %v3923_v38 }
 0x148   : > { %3715 = vmatpush3.bf16.msra.mxu1 %v3924_v39  ;;  %3688 = vmatprep.subr.bf16.mxu0 %v3925_v40 }
 0x149   : > { %3716 = vmatprep.subr.bf16.mxu1 %v3926_v41 }
 0x14b   : > { %3689 = vmatpush3.bf16.msra.mxu0 %v3927_v42 }
 0x14c   : > { %3717 = vmatpush3.bf16.msra.mxu1 %v3928_v43  ;;  %3690 = vmatprep.subr.bf16.mxu0 %v3929_v44 }
 0x14d   : > { %3718 = vmatprep.subr.bf16.mxu1 %v3930_v45 }
 0x14f   : > { %3691 = vmatpush3.bf16.msra.mxu0 %v3931_v46 }
 0x150   : > { %3719 = vmatpush3.bf16.msra.mxu1 %v3932_v47 }
 0x152   : > { %2889 = vmatmul.mubr.bf16.vlgmr.msra.gmra.mxu0 %v3350_v51 }
 0x153   : > { %2938 = vmatmul.mubr.bf16.vlgmr.msra.gmra.mxu1 %v3352_v56  ;;  %2896 = vmatprep.mubr.bf16.mxu0 %v3367_v58 }
 0x154   : > { %2945 = vmatprep.mubr.bf16.mxu1 %v3369_v61 }
 0x15a   : > { %2897 = vmatmul.mubr.bf16.gmra.mxu0 %v3366_v62 }
 0x15b   : > { %2946 = vmatmul.mubr.bf16.gmra.mxu1 %v3368_v63 }
 0x1b2   : > { %v3524_v0 = vpop.f32.mrf.mxu0 }
 0x1b3   : > { %v3552_v2 = vpop.f32.mrf.mxu1 }
 0x1b4   : > { %v3525_v1 = vpop.f32.mrf.mxu0 }
 0x1b5   : > { %v3553_v4 = vpop.f32.mrf.mxu1  ;;  %v3526_v41 = vadd.f32 %v3525_v1, %v3524_v0 }
 0x1b6   : > { %v3527_v3 = vpop.f32.mrf.mxu0  ;;  %v3554_v42 = vadd.f32 %v3553_v4, %v3552_v2 }
 0x1b7   : > { %v3555_v6 = vpop.f32.mrf.mxu1 }
 0x1b8   : > { %v3528_v5 = vpop.f32.mrf.mxu0  ;;  %v2646_v46 = vadd.f32 %v3554_v42, %v3526_v41 }
 0x1b9   : > { %v3556_v8 = vpop.f32.mrf.mxu1  ;;  %v3529_v47 = vadd.f32 %v3528_v5, %v3527_v3 }
 0x1ba   : > { %v3530_v7 = vpop.f32.mrf.mxu0  ;;  %v3557_v48 = vadd.f32 %v3556_v8, %v3555_v6 }
 0x1bb   : > { %v3558_v10 = vpop.f32.mrf.mxu1 }
 0x1bc   : > { %v3531_v9 = vpop.f32.mrf.mxu0  ;;  %v2649_v56 = vadd.f32 %v3557_v48, %v3529_v47 }
 0x1bd   : > { %v3559_v12 = vpop.f32.mrf.mxu1  ;;  %v3532_v53 = vadd.f32 %v3531_v9, %v3530_v7 }
 0x1be   : > { %v3533_v11 = vpop.f32.mrf.mxu0  ;;  %v3560_v54 = vadd.f32 %v3559_v12, %v3558_v10 }
 0x1bf   : > { %v3561_v14 = vpop.f32.mrf.mxu1 }
 0x1c0   : > { %v3534_v13 = vpop.f32.mrf.mxu0  ;;  %v2654_v62 = vadd.f32 %v3560_v54, %v3532_v53 }
 0x1c1   : > { %v3562_v16 = vpop.f32.mrf.mxu1  ;;  %v3535_v63 = vadd.f32 %v3534_v13, %v3533_v11 }
 0x1c2   : > { %v3563_v0 = vadd.f32 %v3562_v16, %v3561_v14 }
 0x1d2   : > { %v3580_v15 = vpop.f32.mrf.mxu0 }
 0x1d3   : > { %v3608_v18 = vpop.f32.mrf.mxu1 }
 0x1d4   : > { %v3581_v17 = vpop.f32.mrf.mxu0 }
 0x1d5   : > { %v3609_v20 = vpop.f32.mrf.mxu1  ;;  %v3582_v44 = vadd.f32 %v3581_v17, %v3580_v15  ;;  %v2657_v17 = vadd.f32 %v3563_v0, %v3535_v63 }
 0x1d6   : > { %v3583_v19 = vpop.f32.mrf.mxu0  ;;  %v3610_v51 = vadd.f32 %v3609_v20, %v3608_v18 }
 0x1d7   : > { %v3611_v22 = vpop.f32.mrf.mxu1  ;;  %v2695_v50 = vadd.f32 %v3582_v44, %v2646_v46 }
 0x1d8   : > { %v3584_v21 = vpop.f32.mrf.mxu0 }
 0x1d9   : > { %v3612_v24 = vpop.f32.mrf.mxu1  ;;  %v3585_v52 = vadd.f32 %v3584_v21, %v3583_v19  ;;  %v2744_v60 = vadd.f32 %v3610_v51, %v2695_v50 }
 0x1da   : > { %v3586_v23 = vpop.f32.mrf.mxu0  ;;  %v3613_v2 = vadd.f32 %v3612_v24, %v3611_v22 }
 0x1db   : > { %v3614_v25 = vpop.f32.mrf.mxu1  ;;  %v2698_v61 = vadd.f32 %v3585_v52, %v2649_v56 }
 0x1dc   : > { %v3587_v26 = vpop.f32.mrf.mxu0 }
 0x1dd   : > { %v3615_v27 = vpop.f32.mrf.mxu1  ;;  %v3588_v59 = vadd.f32 %v3587_v26, %v3586_v23  ;;  %v2747_v12 = vadd.f32 %v3613_v2, %v2698_v61 }
 0x1de   : > { %v3589_v28 = vpop.f32.mrf.mxu0  ;;  %v3616_v8 = vadd.f32 %v3615_v27, %v3614_v25 }
 0x1df   : > { %v3617_v29 = vpop.f32.mrf.mxu1  ;;  %v2703_v7 = vadd.f32 %v3588_v59, %v2654_v62 }
 0x1e0   : > { %v3590_v30 = vpop.f32.mrf.mxu0 }
 0x1e1   : > { %v3618_v32 = vpop.f32.mrf.mxu1  ;;  %v3591_v9 = vadd.f32 %v3590_v30, %v3589_v28  ;;  %v2752_v16 = vadd.f32 %v3616_v8, %v2703_v7 }
 0x1e2   : > { %v3619_v23 = vadd.f32 %v3618_v32, %v3617_v29 }
 0x1e3   : > { %v2706_v21 = vadd.f32 %v3591_v9, %v2657_v17 }
 0x1e5   : > { %v2755_v32 = vadd.f32 %v3619_v23, %v2706_v21 }
 0x1f2   : > { %v3636_v31 = vpop.f32.mrf.mxu0 }
 0x1f3   : > { %v3664_v33 = vpop.f32.mrf.mxu1 }
 0x1f4   : > { %v3637_v34 = vpop.f32.mrf.mxu0 }
 0x1f5   : > { %v3665_v35 = vpop.f32.mrf.mxu1  ;;  %v3638_v57 = vadd.f32 %v3637_v34, %v3636_v31 }
 0x1f6   : > { %v3639_v36 = vpop.f32.mrf.mxu0  ;;  %v3666_v4 = vadd.f32 %v3665_v35, %v3664_v33 }
 0x1f7   : > { %v3667_v37 = vpop.f32.mrf.mxu1  ;;  %v2793_v3 = vadd.f32 %v3638_v57, %v2744_v60 }
 0x1f8   : > { %v3640_v38 = vpop.f32.mrf.mxu0 }
 0x1f9   : > { %v3668_v39 = vpop.f32.mrf.mxu1  ;;  %v3641_v5 = vadd.f32 %v3640_v38, %v3639_v36  ;;  %v2842_v20 = vadd.f32 %v3666_v4, %v2793_v3 }
 0x1fa   : > { %v3642_v40 = vpop.f32.mrf.mxu0  ;;  %v3669_v24 = vadd.f32 %v3668_v39, %v3667_v37 }
 0x1fb   : > { %v3670_v43 = vpop.f32.mrf.mxu1  ;;  %v2796_v11 = vadd.f32 %v3641_v5, %v2747_v12 }
 0x1fc   : > { %v3643_v45 = vpop.f32.mrf.mxu0 }
 0x1fd   : > { %v3671_v49 = vpop.f32.mrf.mxu1  ;;  %v3644_v18 = vadd.f32 %v3643_v45, %v3642_v40  ;;  %v2845_v33 = vadd.f32 %v3669_v24, %v2796_v11 }
 0x1fe   : > { %v3645_v55 = vpop.f32.mrf.mxu0  ;;  %v3672_v30 = vadd.f32 %v3671_v49, %v3670_v43 }
 0x1ff   : > { %v3673_v58 = vpop.f32.mrf.mxu1  ;;  %v2801_v28 = vadd.f32 %v3644_v18, %v2752_v16 }
 0x200   : > { %v3646_v1 = vpop.f32.mrf.mxu0 }
 0x201   : > { %v3674_v6 = vpop.f32.mrf.mxu1  ;;  %v3647_v34 = vadd.f32 %v3646_v1, %v3645_v55  ;;  %v2850_v41 = vadd.f32 %v3672_v30, %v2801_v28 }
 0x202   : > { %v3675_v44 = vadd.f32 %v3674_v6, %v3673_v58  ;;  %v4007_v58 = vmov (%p2961_p2), 0.0  }
 0x203   : > { %v2804_v43 = vadd.f32 %v3647_v34, %v2755_v32  ;;  %2967 = vst [vmem:[#allocation2] sm:$0x1] (%p2961_p2), %v4007_v58  ;;  %2968 = vst [vmem:[#allocation3] sm:$0x1] (%p2961_p2), %v4007_v58 }
 0x205   : > { %v2853_v53 = vadd.f32 %v3675_v44, %v2804_v43 }
 0x212   : > { %v3692_v10 = vpop.f32.mrf.mxu0 }
 0x213   : > { %v3720_v15 = vpop.f32.mrf.mxu1 }
 0x214   : > { %v3693_v19 = vpop.f32.mrf.mxu0 }
 0x215   : > { %v3694_v13 = vadd.f32 %v3693_v19, %v3692_v10  ;;  %v3721_v14 = vpop.f32.mrf.mxu1 }
 0x216   : > { %v3695_v22 = vpop.f32.mrf.mxu0  ;;  %v3722_v25 = vadd.f32 %v3721_v14, %v3720_v15 }
 0x217   : > { %v2891_v26 = vadd.f32 %v3694_v13, %v2842_v20  ;;  %v3723_v27 = vpop.f32.mrf.mxu1 }
 0x218   : > { %v3696_v31 = vpop.f32.mrf.mxu0 }
 0x219   : > { %v2940_v35 = vadd.f32 %v3722_v25, %v2891_v26  ;;  %v3697_v36 = vadd.f32 %v3696_v31, %v3695_v22  ;;  %v3724_v38 = vpop.f32.mrf.mxu1 }
 0x21a   : > { %v3698_v29 = vpop.f32.mrf.mxu0  ;;  %v3725_v39 = vadd.f32 %v3724_v38, %v3723_v27 }
 0x21b   : > { %2957 = vst [vmem:[%s4826_s13] sm:$0xff] %v2940_v35  ;;  %v2894_v37 = vadd.f32 %v3697_v36, %v2845_v33  ;;  %v3726_v40 = vpop.f32.mrf.mxu1 }
 0x21c   : > { %v3699_v42 = vpop.f32.mrf.mxu0 }
 0x21d   : > { %v2943_v45 = vadd.f32 %v3725_v39, %v2894_v37  ;;  %v3700_v46 = vadd.f32 %v3699_v42, %v3698_v29  ;;  %v3727_v47 = vpop.f32.mrf.mxu1 }
 0x21e   : > { %v3701_v48 = vpop.f32.mrf.mxu0  ;;  %v3728_v50 = vadd.f32 %v3727_v47, %v3726_v40 }
 0x21f   : > { %2958 = vst [vmem:[%s4826_s13 + $0x8] sm:$0xff] %v2943_v45  ;;  %v2899_v49 = vadd.f32 %v3700_v46, %v2850_v41  ;;  %v3729_v51 = vpop.f32.mrf.mxu1 }
 0x220   : > { %v3702_v52 = vpop.f32.mrf.mxu0 }
 0x221   : > { %v2948_v54 = vadd.f32 %v3728_v50, %v2899_v49  ;;  %v3703_v55 = vadd.f32 %v3702_v52, %v3701_v48  ;;  %v3730_v56 = vpop.f32.mrf.mxu1 }
 0x222   : > { %v3731_v59 = vadd.f32 %v3730_v56, %v3729_v51 }
 0x223   : > { %2959 = vst [vmem:[%s4826_s13 + $0x10] sm:$0xff] %v2948_v54  ;;  %v2902_v57 = vadd.f32 %v3703_v55, %v2853_v53  ;;  %2966 = sbr.rel (!%p2961_p2) target bundleno = 552 (0x228), region = 81 }
 0x225   : > { %v2951_v60 = vadd.f32 %v3731_v59, %v2902_v57 }
 0x227   : > { %2960 = vst [vmem:[%s4826_s13 + $0x18] sm:$0xff] %v2951_v60 }
 0x228 PF: > { %v2970_v61 = vadd.f32 %v2943_v45, %v2940_v35  ;;  %v2982_v62 = vmul.f32 %v2940_v35, %v2940_v35  ;;  %v2983_v63 = vmul.f32 %v2943_v45, %v2943_v45  ;;  %v2984_v0 = vmul.f32 %v2948_v54, %v2948_v54  ;;  %p2997_p3 = scmp.eq.s32.totalorder %s3989_s19, 3  ;;  %v2969_v20 = vld [vmem:[#allocation2] sm:$0x1]  ;;  %v2981_v14 = vld [vmem:[#allocation3] sm:$0x1] }
 0x229   : > { %v2985_v2 = vmul.f32 %v2951_v60, %v2951_v60  ;;  %v3034_v33 = vlaneseq (%p2997_p3)  ;;  %v3010_v35 = vld [vmem:[%s1341_s12] sm:$0x1] (%p2997_p3) }
 0x22a   : > { %v2971_v1 = vadd.f32 %v2970_v61, %v2948_v54  ;;  %v2986_v3 = vadd.f32 %v2983_v63, %v2982_v62  ;;  %v3014_v32 = vld [vmem:[%s1344_s26] sm:$0x1] (%p2997_p3) }
 0x22b   : > { %v3035_v34 = vshrl.u32 (%p2997_p3), %v3034_v33, 7 }
 0x22c   : > { %v2972_v4 = vadd.f32 %v2971_v1, %v2951_v60  ;;  %v2987_v5 = vadd.f32 %v2986_v3, %v2984_v0 }
 0x22d   : > { %v3036_v36 = vsub.s32 (%p2997_p3), 0, %v3035_v34 }
 0x22e   : > { %v2973_v6 = vrot.slane %v2972_v4, 4  ;;  %v2988_v7 = vadd.f32 %v2987_v5, %v2985_v2  ;;  %v3017_v37 = vld [vmem:[%s4823_s17] sm:$0xff] (%p2997_p3)  ;;  %v3018_v39 = vld [vmem:[%s4823_s17 + $0x8] sm:$0xff] (%p2997_p3)  ;;  %v3019_v40 = vld [vmem:[%s4823_s17 + $0x10] sm:$0xff] (%p2997_p3) }
 0x22f   : > { %v3020_v41 = vld [vmem:[%s4823_s17 + $0x18] sm:$0xff] (%p2997_p3)  ;;  %v3021_v42 = vld [vmem:[%s4823_s17 + $0x20] sm:$0xff] (%p2997_p3)  ;;  %v3022_v45 = vld [vmem:[%s4823_s17 + $0x28] sm:$0xff] (%p2997_p3) }
 0x230   : > { %v2974_v8 = vadd.f32 %v2973_v6, %v2972_v4  ;;  %v2989_v9 = vrot.slane %v2988_v7, 4  ;;  %v3023_v46 = vld [vmem:[%s4823_s17 + $0x30] sm:$0xff] (%p2997_p3)  ;;  %v3024_v47 = vld [vmem:[%s4823_s17 + $0x38] sm:$0xff] (%p2997_p3)  ;;  %v3025_v48 = vld [vmem:[%s4823_s17 + $0x40] sm:$0xff] (%p2997_p3) }
 0x231   : > { %v3026_v49 = vld [vmem:[%s4823_s17 + $0x48] sm:$0xff] (%p2997_p3)  ;;  %v3027_v50 = vld [vmem:[%s4823_s17 + $0x50] sm:$0xff] (%p2997_p3)  ;;  %v3028_v55 = vld [vmem:[%s4823_s17 + $0x58] sm:$0xff] (%p2997_p3) }
 0x232   : > { %v2975_v10 = vrot.slane %v2974_v8, 2  ;;  %v2990_v12 = vadd.f32 %v2989_v9, %v2988_v7  ;;  %v3029_v56 = vld [vmem:[%s4823_s17 + $0x60] sm:$0xff] (%p2997_p3)  ;;  %v3030_v57 = vld [vmem:[%s4823_s17 + $0x68] sm:$0xff] (%p2997_p3) }
 0x234   : > { %v2976_v15 = vadd.f32 %v2975_v10, %v2974_v8  ;;  %v2991_v17 = vrot.slane %v2990_v12, 2 }
 0x236   : > { %v2977_v18 = vrot.slane %v2976_v15, 1  ;;  %v2992_v19 = vadd.f32 %v2991_v17, %v2990_v12 }
 0x238   : > { %v2978_v11 = vadd.f32 %v2977_v18, %v2976_v15  ;;  %v2993_v13 = vrot.slane %v2992_v19, 1 }
 0x23a   : > { %v2979_v16 = vadd.f32 %v2978_v11, %v2969_v20  ;;  %v2994_v21 = vadd.f32 %v2993_v13, %v2992_v19  ;;  %3001 = sbr.rel (!%p2997_p3) target bundleno = 625 (0x271), region = 85  ;;  %v3031_v13 = vld [vmem:[%s4823_s17 + $0x70] sm:$0xff] (%p2997_p3) }
 0x23c   : > { %2980 = vst [vmem:[#allocation2] sm:$0x1] %v2979_v16  ;;  %v2995_v22 = vadd.f32 %v2994_v21, %v2981_v14  ;;  %v3032_v14 = vld [vmem:[%s4823_s17 + $0x78] sm:$0xff] (%p2997_p3) }
 0x23e   : > { %2996 = vst [vmem:[#allocation3] sm:$0x1] %v2995_v22 }
 0x243   : > { %v3002_v23 = vld [vmem:[#allocation2] sm:$0x1] }
 0x244   : > { %v3004_v26 = vmul.f32 0.010204081, %v3002_v23 }
 0x245   : > { %v3005_v24 = vld [vmem:[#allocation3] sm:$0x1] }
 0x246   : > { %v3006_v25 = vmul.f32 0.010204081, %v3005_v24  ;;  %v3007_v27 = vmul.f32 %v3004_v26, %v3004_v26 }
 0x248   : > { %v3008_v28 = vsub.f32 %v3006_v25, %v3007_v27 }
 0x24a   : > { %v3009_v30 = vmax.f32 %v3008_v28, 0.0 }
 0x24c   : > { %v3011_v31 = vadd.f32 1e-05, %v3009_v30 }
 0x24e   : > { %3933 = vrsqrt.f32 %v3011_v31 }
 0x25b   : > { %v3934_v38 = vpop.eup %3933 }
 0x25c   : > { %v3013_v29 = vmul.f32 %v3934_v38, %v3010_v35 }
 0x25e   : > { %v3015_v43 = vmul.f32 %v3013_v29, %v3004_v26  ;;  %v3037_v44 = vrot.slane %v3013_v29, %v3036_v36 }
 0x260   : > { %v3016_v51 = vsub.f32 %v3014_v32, %v3015_v43  ;;  %v3039_v52 = vmul.f32 %v3037_v44, %v3017_v37  ;;  %v3040_v53 = vmul.f32 %v3037_v44, %v3018_v39  ;;  %v3041_v54 = vmul.f32 %v3037_v44, %v3019_v40 }
 0x261   : > { %v3042_v59 = vmul.f32 %v3037_v44, %v3020_v41  ;;  %v3043_v60 = vmul.f32 %v3037_v44, %v3021_v42  ;;  %v3044_v58 = vmul.f32 %v3037_v44, %v3022_v45  ;;  %v3045_v61 = vmul.f32 %v3037_v44, %v3023_v46 }
 0x262   : > { %v3059_v62 = vrot.slane %v3016_v51, %v3036_v36  ;;  %v3046_v63 = vmul.f32 %v3037_v44, %v3024_v47  ;;  %v3047_v0 = vmul.f32 %v3037_v44, %v3025_v48  ;;  %v3048_v1 = vmul.f32 %v3037_v44, %v3026_v49 }
 0x263   : > { %v3049_v2 = vmul.f32 %v3037_v44, %v3027_v50  ;;  %v3050_v3 = vmul.f32 %v3037_v44, %v3028_v55  ;;  %v3051_v4 = vmul.f32 %v3037_v44, %v3029_v56  ;;  %v3052_v5 = vmul.f32 %v3037_v44, %v3030_v57 }
 0x264   : > { %v3061_v6 = vadd.f32 %v3059_v62, %v3039_v52  ;;  %v3062_v7 = vadd.f32 %v3059_v62, %v3040_v53  ;;  %v3063_v8 = vadd.f32 %v3059_v62, %v3041_v54  ;;  %v3064_v9 = vadd.f32 %v3059_v62, %v3042_v59 }
 0x265   : > { %v3065_v10 = vadd.f32 %v3059_v62, %v3043_v60  ;;  %v3066_v12 = vadd.f32 %v3059_v62, %v3044_v58  ;;  %v3067_v15 = vadd.f32 %v3059_v62, %v3045_v61  ;;  %v3068_v17 = vadd.f32 %v3059_v62, %v3046_v63 }
 0x266   : > { %v3077_v18 = vmax.f32 %v3061_v6, 0.0  ;;  %v3078_v19 = vmax.f32 %v3062_v7, 0.0  ;;  %v3079_v20 = vmax.f32 %v3063_v8, 0.0  ;;  %v3080_v11 = vmax.f32 %v3064_v9, 0.0 }
 0x267   : > { %v3081_v16 = vmax.f32 %v3065_v10, 0.0  ;;  %v3082_v21 = vmax.f32 %v3066_v12, 0.0  ;;  %v3083_v22 = vmax.f32 %v3067_v15, 0.0  ;;  %v3084_v23 = vmax.f32 %v3068_v17, 0.0 }
 0x268   : > { %3093 = vst [vmem:[%s4823_s17] sm:$0xff] %v3077_v18  ;;  %3094 = vst [vmem:[%s4823_s17 + $0x8] sm:$0xff] %v3078_v19  ;;  %v3069_v24 = vadd.f32 %v3059_v62, %v3047_v0  ;;  %v3070_v26 = vadd.f32 %v3059_v62, %v3048_v1  ;;  %v3071_v25 = vadd.f32 %v3059_v62, %v3049_v2 }
 0x269   : > { %3095 = vst [vmem:[%s4823_s17 + $0x10] sm:$0xff] %v3079_v20  ;;  %3096 = vst [vmem:[%s4823_s17 + $0x18] sm:$0xff] %v3080_v11  ;;  %v3072_v27 = vadd.f32 %v3059_v62, %v3050_v3  ;;  %v3073_v28 = vadd.f32 %v3059_v62, %v3051_v4  ;;  %v3074_v30 = vadd.f32 %v3059_v62, %v3052_v5 }
 0x26a   : > { %3097 = vst [vmem:[%s4823_s17 + $0x20] sm:$0xff] %v3081_v16  ;;  %3098 = vst [vmem:[%s4823_s17 + $0x28] sm:$0xff] %v3082_v21  ;;  %v3053_v31 = vmul.f32 %v3037_v44, %v3031_v13  ;;  %v3054_v33 = vmul.f32 %v3037_v44, %v3032_v14  ;;  %v3085_v34 = vmax.f32 %v3069_v24, 0.0  ;;  %v3086_v35 = vmax.f32 %v3070_v26, 0.0 }
 0x26b   : > { %3099 = vst [vmem:[%s4823_s17 + $0x30] sm:$0xff] %v3083_v22  ;;  %3100 = vst [vmem:[%s4823_s17 + $0x38] sm:$0xff] %v3084_v23  ;;  %v3087_v36 = vmax.f32 %v3071_v25, 0.0  ;;  %v3088_v38 = vmax.f32 %v3072_v27, 0.0  ;;  %v3089_v29 = vmax.f32 %v3073_v28, 0.0  ;;  %v3090_v32 = vmax.f32 %v3074_v30, 0.0 }
 0x26c   : > { %v3075_v37 = vadd.f32 %v3059_v62, %v3053_v31  ;;  %v3076_v39 = vadd.f32 %v3059_v62, %v3054_v33  ;;  %3101 = vst [vmem:[%s4823_s17 + $0x40] sm:$0xff] %v3085_v34  ;;  %3102 = vst [vmem:[%s4823_s17 + $0x48] sm:$0xff] %v3086_v35 }
 0x26d   : > { %3103 = vst [vmem:[%s4823_s17 + $0x50] sm:$0xff] %v3087_v36  ;;  %3104 = vst [vmem:[%s4823_s17 + $0x58] sm:$0xff] %v3088_v38 }
 0x26e   : > { %3105 = vst [vmem:[%s4823_s17 + $0x60] sm:$0xff] %v3089_v29  ;;  %3106 = vst [vmem:[%s4823_s17 + $0x68] sm:$0xff] %v3090_v32  ;;  %v3091_v40 = vmax.f32 %v3075_v37, 0.0  ;;  %v3092_v41 = vmax.f32 %v3076_v39, 0.0 }
 0x270   : > { %3107 = vst [vmem:[%s4823_s17 + $0x70] sm:$0xff] %v3091_v40  ;;  %3108 = vst [vmem:[%s4823_s17 + $0x78] sm:$0xff] %v3092_v41 }
 0x271 PF: > { %3115 = sbr.rel (!%p4101_p9) target bundleno = 635 (0x27b), region = 89  ;;  %s3502_s6 = sshll.u32 (%p4101_p9), %s3993_s20, 3  ;;  %v3176_v42 = vld [vmem:[%s4823_s17] sm:$0xff] (%p4101_p9)  ;;  %v3178_v43 = vld [vmem:[%s4823_s17 + $0x8] sm:$0xff] (%p4101_p9)  ;;  %v3180_v44 = vld [vmem:[%s4823_s17 + $0x10] sm:$0xff] (%p4101_p9) }
 0x272   : > { %s3117_s28 = scalar_lea.vmem (%p4101_p9), %s4932_s4, %s3502_s6  ;;  %v3182_v45 = vld [vmem:[%s4823_s17 + $0x18] sm:$0xff] (%p4101_p9)  ;;  %v3184_v46 = vld [vmem:[%s4823_s17 + $0x20] sm:$0xff] (%p4101_p9)  ;;  %v3186_v47 = vld [vmem:[%s4823_s17 + $0x28] sm:$0xff] (%p4101_p9) }
 0x273   : > { %3177 = vst [vmem:[%s3117_s28] sm:$0xff] (%p4101_p9), %v3176_v42  ;;  %3179 = vst [vmem:[%s3117_s28 + $0x10] sm:$0xff] (%p4101_p9), %v3178_v43  ;;  %v3188_v48 = vld [vmem:[%s4823_s17 + $0x30] sm:$0xff] (%p4101_p9)  ;;  %v3190_v49 = vld [vmem:[%s4823_s17 + $0x38] sm:$0xff] (%p4101_p9) }
 0x274   : > { %3181 = vst [vmem:[%s3117_s28 + $0x20] sm:$0xff] (%p4101_p9), %v3180_v44  ;;  %3183 = vst [vmem:[%s3117_s28 + $0x30] sm:$0xff] (%p4101_p9), %v3182_v45  ;;  %v3192_v50 = vld [vmem:[%s4823_s17 + $0x40] sm:$0xff] (%p4101_p9)  ;;  %v3194_v51 = vld [vmem:[%s4823_s17 + $0x48] sm:$0xff] (%p4101_p9) }
 0x275   : > { %3185 = vst [vmem:[%s3117_s28 + $0x40] sm:$0xff] (%p4101_p9), %v3184_v46  ;;  %3187 = vst [vmem:[%s3117_s28 + $0x50] sm:$0xff] (%p4101_p9), %v3186_v47  ;;  %v3196_v52 = vld [vmem:[%s4823_s17 + $0x50] sm:$0xff] (%p4101_p9)  ;;  %v3198_v53 = vld [vmem:[%s4823_s17 + $0x58] sm:$0xff] (%p4101_p9) }
 0x276   : > { %3189 = vst [vmem:[%s3117_s28 + $0x60] sm:$0xff] %v3188_v48  ;;  %3191 = vst [vmem:[%s3117_s28 + $0x70] sm:$0xff] %v3190_v49  ;;  %v3200_v54 = vld [vmem:[%s4823_s17 + $0x60] sm:$0xff]  ;;  %v3202_v55 = vld [vmem:[%s4823_s17 + $0x68] sm:$0xff] }
 0x277   : > { %3193 = vst [vmem:[%s3117_s28 + $0x80] sm:$0xff] %v3192_v50  ;;  %3195 = vst [vmem:[%s3117_s28 + $0x90] sm:$0xff] %v3194_v51  ;;  %v3204_v56 = vld [vmem:[%s4823_s17 + $0x70] sm:$0xff]  ;;  %v3206_v57 = vld [vmem:[%s4823_s17 + $0x78] sm:$0xff] }
 0x278   : > { %3197 = vst [vmem:[%s3117_s28 + $0xa0] sm:$0xff] %v3196_v52  ;;  %3199 = vst [vmem:[%s3117_s28 + $0xb0] sm:$0xff] %v3198_v53 }
 0x279   : > { %3201 = vst [vmem:[%s3117_s28 + $0xc0] sm:$0xff] %v3200_v54  ;;  %3203 = vst [vmem:[%s3117_s28 + $0xd0] sm:$0xff] %v3202_v55 }
 0x27a   : > { %3205 = vst [vmem:[%s3117_s28 + $0xe0] sm:$0xff] %v3204_v56  ;;  %3207 = vst [vmem:[%s3117_s28 + $0xf0] sm:$0xff] %v3206_v57 }
 0x27b PF: > { %s14_s23 = sadd.s32 1, %s4005_s23   ;;  %s4935_s15 = smov %s3977_s16 }
 0x27c   : > { %p11_p4 = scmp.ge.s32.totalorder %s14_s23, 10   ;;  %s4936_s16 = smov %s4106_s8 }
 0x27d   : > { %s4937_s17 = smov %s3985_s18  ;;  %s4938_s18 = smov %s4109_s9 }
 0x27e   : > { %s4939_s19 = smov %s3997_s21  ;;  %s4940_s20 = smov %s4001_s22 }
 0x27f   : > { %s4941_s21 = smov %s4944_s24  ;;  %s4942_s22 = smov %s4948_s25 }
 0x280   :  { %13 = sbr.rel (!%p11_p4) target bundleno = 5 (0x5), region = 168 }

// kernel: generator_forward.8
= control target key start
LH: loop header
LB: loop body
LE: loop exit
PB: predicated region body
PF: predicated region fallthrough
CT: control target
= control target key end

     0   :  { %s2484_s15 = smov 0   ;;  %s2486_s16 = smov 0   ;;  %s3288_s0 = inlined_call_operand.vmem [shape: bf16[4,104,1024], index: 0, kind: input, shape index: {}]   ;;  %s3289_s1 = inlined_call_operand.vmem [shape: bf16[4,1024,128], index: 1, kind: input, shape index: {}]   ;;  %s3290_s2 = inlined_call_operand.vmem [shape: f32[1,128], index: 2, kind: input, shape index: {}]   ;;  %s3291_s3 = inlined_call_operand.vmem [shape: f32[1,128], index: 3, kind: input, shape index: {}]   ;;  %s3292_s4 = inlined_call_operand.vmem [shape: f32[416,128], index: 4, kind: output, shape index: {}]  }
   0x1   :  { %s2488_s17 = smov 0  }
   0x2 LB: > { %s29_s18 = sadd.s32 1, %s2452_s16  ;;  %p1970_p0 = scmp.ge.s32.totalorder %s2456_s17, 1  ;;  %s2456_s17 = sphi %s2488_s17, %s14_s17   ;;  %s2452_s16 = sphi %s2486_s16, %s3308_s16   ;;  %s2448_s15 = sphi %s2484_s15, %s3307_s15  }
   0x3   : > { %p31_p1 = scmp.ge.s32.totalorder %s29_s18, 4  ;;  %p220_p2 = scmp.lt.s32.totalorder %s2456_s17, 5 }
   0x5   : > { %s3310_s18 = smov (%p31_p1, %s29_s18), 0  ;;  %p221_p3 = pnand %p1970_p0, %p220_p2 }
   0x7   : > { %224 = sbr.rel (%p221_p3) target bundleno = 477 (0x1dd), region = 36 }
   0xc   : > { %p265_p4 = scmp.lt.s32.totalorder %s2448_s15, 3  ;;  %p1494_p5 = scmp.eq.s32.totalorder %s2448_s15, 0 }
   0xd   : > { %s1479_s28 = smul.u32 104, %s2448_s15 }
   0xe   : > { %s2506_s19 = scalar_select %p265_p4, %s2448_s15, 3 }
   0xf   : > { %s2729_s5 = scalar_lea.vmem %s3292_s4, %s1479_s28 }
  0x10   : > { %s2099_s20 = sshll.u32 %s2506_s19, 9  ;;  %s2334_s24 = smul.u32 416, %s2506_s19 }
  0x11   : > { %s2512_s23 = scalar_lea.vmem %s3289_s1, %s2099_s20 }
  0x12   : > { %v2360_v0 = vld [vmem:[%s2512_s23 + $0x78] sm:$0xff]   ;;  %v2364_v4 = vld [vmem:[%s2512_s23 + $0x70] sm:$0xff]   ;;  %v2368_v8 = vld [vmem:[%s2512_s23 + $0x68] sm:$0xff]   ;;  %s2548_s27 = scalar_lea.vmem %s3288_s0, %s2334_s24 }
  0x13   : > { %v2361_v1 = vld [vmem:[%s2512_s23 + $0xf8] sm:$0xff]   ;;  %2102 = vmatprep.subr.bf16.mxu0 %v2360_v0  ;;  %v2365_v5 = vld [vmem:[%s2512_s23 + $0xf0] sm:$0xff]   ;;  %v2369_v9 = vld [vmem:[%s2512_s23 + $0xe8] sm:$0xff]  }
  0x14   : > { %v2362_v2 = vld [vmem:[%s2512_s23 + $0x38] sm:$0xff]   ;;  %2160 = vmatprep.subr.bf16.mxu1 %v2361_v1  ;;  %v2366_v6 = vld [vmem:[%s2512_s23 + $0x30] sm:$0xff]   ;;  %v2370_v10 = vld [vmem:[%s2512_s23 + $0x28] sm:$0xff]  }
  0x15   : > { %v2363_v3 = vld [vmem:[%s2512_s23 + $0xb8] sm:$0xff]   ;;  %2103 = vmatpush3.bf16.msra.mxu0 %v2362_v2  ;;  %v2367_v7 = vld [vmem:[%s2512_s23 + $0xb0] sm:$0xff]   ;;  %v2371_v11 = vld [vmem:[%s2512_s23 + $0xa8] sm:$0xff]  }
  0x16   : > { %2161 = vmatpush3.bf16.msra.mxu1 %v2363_v3  ;;  %2104 = vmatprep.subr.bf16.mxu0 %v2364_v4  ;;  %v2372_v12 = vld [vmem:[%s2512_s23 + $0x60] sm:$0xff]   ;;  %v2376_v16 = vld [vmem:[%s2512_s23 + $0x58] sm:$0xff]   ;;  %v2380_v20 = vld [vmem:[%s2512_s23 + $0x50] sm:$0xff]  }
  0x17   : > { %2162 = vmatprep.subr.bf16.mxu1 %v2365_v5  ;;  %v2373_v13 = vld [vmem:[%s2512_s23 + $0xe0] sm:$0xff]   ;;  %v2377_v17 = vld [vmem:[%s2512_s23 + $0xd8] sm:$0xff]   ;;  %v2381_v21 = vld [vmem:[%s2512_s23 + $0xd0] sm:$0xff]  }
  0x18   : > { %v2374_v14 = vld [vmem:[%s2512_s23 + $0x20] sm:$0xff]   ;;  %v2378_v18 = vld [vmem:[%s2512_s23 + $0x18] sm:$0xff]   ;;  %v2382_v22 = vld [vmem:[%s2512_s23 + $0x10] sm:$0xff]  }
  0x19   : > { %2105 = vmatpush3.bf16.msra.mxu0 %v2366_v6  ;;  %v2375_v15 = vld [vmem:[%s2512_s23 + $0xa0] sm:$0xff]   ;;  %v2379_v19 = vld [vmem:[%s2512_s23 + $0x98] sm:$0xff]   ;;  %v2383_v23 = vld [vmem:[%s2512_s23 + $0x90] sm:$0xff]  }
  0x1a   : > { %2163 = vmatpush3.bf16.msra.mxu1 %v2367_v7  ;;  %2106 = vmatprep.subr.bf16.mxu0 %v2368_v8  ;;  %v2384_v24 = vld [vmem:[%s2512_s23 + $0x48] sm:$0xff]   ;;  %v2388_v28 = vld [vmem:[%s2512_s23 + $0x40] sm:$0xff]   ;;  %v2392_v40 = vld [vmem:[%s2512_s23 + $0x178] sm:$0xff]  }
  0x1b   : > { %2164 = vmatprep.subr.bf16.mxu1 %v2369_v9  ;;  %v2385_v25 = vld [vmem:[%s2512_s23 + $0xc8] sm:$0xff]   ;;  %v2389_v29 = vld [vmem:[%s2512_s23 + $0xc0] sm:$0xff]   ;;  %v2393_v41 = vld [vmem:[%s2512_s23 + $0x138] sm:$0xff]  }
  0x1c   : > { %v2386_v26 = vld [vmem:[%s2512_s23 + $0x8] sm:$0xff]   ;;  %v2390_v30 = vld [vmem:[%s2512_s23] sm:$0xff]   ;;  %v2394_v42 = vld [vmem:[%s2512_s23 + $0x1f8] sm:$0xff]  }
  0x1d   : > { %2107 = vmatpush3.bf16.msra.mxu0 %v2370_v10  ;;  %v2387_v27 = vld [vmem:[%s2512_s23 + $0x88] sm:$0xff]   ;;  %v2391_v31 = vld [vmem:[%s2512_s23 + $0x80] sm:$0xff]   ;;  %v2395_v43 = vld [vmem:[%s2512_s23 + $0x1b8] sm:$0xff]  }
  0x1e   : > { %2165 = vmatpush3.bf16.msra.mxu1 %v2371_v11  ;;  %2108 = vmatprep.subr.bf16.mxu0 %v2372_v12  ;;  %v294_v32 = vld [vmem:[%s2548_s27] sm:$0xff]  ;;  %v295_v34 = vld [vmem:[%s2548_s27 + $0x8] sm:$0xff]  ;;  %v2396_v50 = vld [vmem:[%s2512_s23 + $0x170] sm:$0xff]  }
  0x1f   : > { %2166 = vmatprep.subr.bf16.mxu1 %v2373_v13  ;;  %v298_v33 = vld [vmem:[%s2548_s27 + $0x20] sm:$0xff]  ;;  %v299_v37 = vld [vmem:[%s2548_s27 + $0x28] sm:$0xff]  ;;  %v2397_v52 = vld [vmem:[%s2512_s23 + $0x130] sm:$0xff]  }
  0x20   : > { %v1974_v35 = vcombine.low %v294_v32, %v298_v33  ;;  %v1975_v36 = vcombine.high %v294_v32, %v298_v33  ;;  %v1976_v38 = vcombine.low %v295_v34, %v299_v37  ;;  %v1977_v39 = vcombine.high %v295_v34, %v299_v37  ;;  %v302_v44 = vld [vmem:[%s2548_s27 + $0x40] sm:$0xff]  ;;  %v303_v47 = vld [vmem:[%s2548_s27 + $0x48] sm:$0xff]  ;;  %v2398_v54 = vld [vmem:[%s2512_s23 + $0x1f0] sm:$0xff]  }
  0x21   : > { %2109 = vmatpush3.bf16.msra.mxu0 %v2374_v14  ;;  %v306_v45 = vld [vmem:[%s2548_s27 + $0x60] sm:$0xff]  ;;  %v307_v48 = vld [vmem:[%s2548_s27 + $0x68] sm:$0xff]  ;;  %v2399_v55 = vld [vmem:[%s2512_s23 + $0x1b0] sm:$0xff]  }
  0x22   : > { %2167 = vmatpush3.bf16.msra.mxu1 %v2375_v15  ;;  %2110 = vmatprep.subr.bf16.mxu0 %v2376_v16  ;;  %v1983_v46 = vcombine.high %v302_v44, %v306_v45  ;;  %v1985_v49 = vcombine.high %v303_v47, %v307_v48  ;;  %v1982_v51 = vcombine.low %v302_v44, %v306_v45  ;;  %v2400_v56 = vld [vmem:[%s2512_s23 + $0x168] sm:$0xff]   ;;  %v310_v57 = vld [vmem:[%s2548_s27 + $0x80] sm:$0xff]  ;;  %v2408_v14 = vld [vmem:[%s2512_s23 + $0x158] sm:$0xff]  }
  0x23   : > { %2168 = vmatprep.subr.bf16.mxu1 %v2377_v17  ;;  %1158 = vmatprep.mubr.bf16.mxu0 %v1975_v36  ;;  %v1984_v53 = vcombine.low %v303_v47, %v307_v48  ;;  %v314_v58 = vld [vmem:[%s2548_s27 + $0xa0] sm:$0xff]  ;;  %v311_v59 = vld [vmem:[%s2548_s27 + $0x88] sm:$0xff]  ;;  %v2409_v15 = vld [vmem:[%s2512_s23 + $0x118] sm:$0xff]  }
  0x24   : > { %1246 = vmatprep.mubr.bf16.mxu1 %v1977_v39  ;;  %v315_v60 = vld [vmem:[%s2548_s27 + $0xa8] sm:$0xff]  ;;  %v1991_v61 = vcombine.high %v310_v57, %v314_v58  ;;  %v1990_v2 = vcombine.low %v310_v57, %v314_v58  ;;  %v2404_v3 = vld [vmem:[%s2512_s23 + $0x160] sm:$0xff]   ;;  %v2410_v17 = vld [vmem:[%s2512_s23 + $0x1d8] sm:$0xff]  }
  0x25   : > { %2111 = vmatpush3.bf16.msra.mxu0 %v2378_v18  ;;  %v1993_v62 = vcombine.high %v311_v59, %v315_v60  ;;  %v2401_v63 = vld [vmem:[%s2512_s23 + $0x128] sm:$0xff]   ;;  %v1992_v4 = vcombine.low %v311_v59, %v315_v60  ;;  %v2405_v5 = vld [vmem:[%s2512_s23 + $0x120] sm:$0xff]   ;;  %v304_v60 = vld [vmem:[%s2548_s27 + $0x50] sm:$0xff] }
  0x26   : > { %2169 = vmatpush3.bf16.msra.mxu1 %v2379_v19  ;;  %2112 = vmatprep.subr.bf16.mxu0 %v2380_v20  ;;  %v2402_v0 = vld [vmem:[%s2512_s23 + $0x1e8] sm:$0xff]   ;;  %v318_v6 = vld [vmem:[%s2548_s27 + $0xc0] sm:$0xff] }
  0x27   : > { %2170 = vmatprep.subr.bf16.mxu1 %v2381_v21  ;;  %v2403_v1 = vld [vmem:[%s2512_s23 + $0x1a8] sm:$0xff]   ;;  %v322_v7 = vld [vmem:[%s2548_s27 + $0xe0] sm:$0xff] }
  0x28   : > { %v319_v8 = vld [vmem:[%s2548_s27 + $0xc8] sm:$0xff]  ;;  %v1999_v9 = vcombine.high %v318_v6, %v322_v7  ;;  %v2406_v12 = vld [vmem:[%s2512_s23 + $0x1e0] sm:$0xff]   ;;  %v1998_v16 = vcombine.low %v318_v6, %v322_v7  ;;  %v313_v6 = vld [vmem:[%s2548_s27 + $0x98] sm:$0xff] }
  0x29   : > { %2113 = vmatpush3.bf16.msra.mxu0 %v2382_v22  ;;  %v323_v10 = vld [vmem:[%s2548_s27 + $0xe8] sm:$0xff]  ;;  %v2407_v13 = vld [vmem:[%s2512_s23 + $0x1a0] sm:$0xff]   ;;  %v317_v7 = vld [vmem:[%s2548_s27 + $0xb8] sm:$0xff] }
  0x2a   : > { %2171 = vmatpush3.bf16.msra.mxu1 %v2383_v23  ;;  %2114 = vmatprep.subr.bf16.mxu0 %v2384_v24  ;;  %v2001_v11 = vcombine.high %v319_v8, %v323_v10  ;;  %v326_v18 = vld [vmem:[%s2548_s27 + $0x100] sm:$0xff]  ;;  %v2000_v20 = vcombine.low %v319_v8, %v323_v10  ;;  %v327_v22 = vld [vmem:[%s2548_s27 + $0x108] sm:$0xff] }
  0x2b   : > { %2172 = vmatprep.subr.bf16.mxu1 %v2385_v25  ;;  %v330_v19 = vld [vmem:[%s2548_s27 + $0x120] sm:$0xff]  ;;  %v331_v23 = vld [vmem:[%s2548_s27 + $0x128] sm:$0xff]  ;;  %v2411_v25 = vld [vmem:[%s2512_s23 + $0x198] sm:$0xff]  }
  0x2c   : > { %v2007_v21 = vcombine.high %v326_v18, %v330_v19  ;;  %v2009_v24 = vcombine.high %v327_v22, %v331_v23  ;;  %v335_v32 = vld [vmem:[%s2548_s27 + $0x148] sm:$0xff]  ;;  %v2006_v34 = vcombine.low %v326_v18, %v330_v19  ;;  %v2008_v36 = vcombine.low %v327_v22, %v331_v23  ;;  %v2424_v44 = vld [vmem:[%s2512_s23 + $0x140] sm:$0xff]   ;;  %v329_v22 = vld [vmem:[%s2548_s27 + $0x118] sm:$0xff] }
  0x2d   : > { %2115 = vmatpush3.bf16.msra.mxu0 %v2386_v26  ;;  %v2412_v26 = vld [vmem:[%s2512_s23 + $0x150] sm:$0xff]   ;;  %v339_v33 = vld [vmem:[%s2548_s27 + $0x168] sm:$0xff]  ;;  %v2425_v45 = vld [vmem:[%s2512_s23 + $0x100] sm:$0xff]  }
  0x2e   : > { %2173 = vmatpush3.bf16.msra.mxu1 %v2387_v27  ;;  %2116 = vmatprep.subr.bf16.mxu0 %v2388_v28  ;;  %v2413_v27 = vld [vmem:[%s2512_s23 + $0x110] sm:$0xff]   ;;  %v2017_v39 = vcombine.high %v335_v32, %v339_v33  ;;  %v2427_v48 = vld [vmem:[%s2512_s23 + $0x180] sm:$0xff]   ;;  %v333_v23 = vld [vmem:[%s2548_s27 + $0x138] sm:$0xff] }
  0x2f   : > { %2174 = vmatprep.subr.bf16.mxu1 %v2389_v29  ;;  %v2414_v28 = vld [vmem:[%s2512_s23 + $0x1d0] sm:$0xff]  }
  0x30   : > { %v2415_v29 = vld [vmem:[%s2512_s23 + $0x190] sm:$0xff]  }
  0x31   : > { %2117 = vmatpush3.bf16.msra.mxu0 %v2390_v30  ;;  %v334_v30 = vld [vmem:[%s2548_s27 + $0x140] sm:$0xff] }
  0x32   : > { %2175 = vmatpush3.bf16.msra.mxu1 %v2391_v31  ;;  %2218 = vmatprep.subr.bf16.mxu0 %v2392_v40  ;;  %v338_v31 = vld [vmem:[%s2548_s27 + $0x160] sm:$0xff]  ;;  %v2418_v40 = vld [vmem:[%s2512_s23 + $0x1c8] sm:$0xff]  }
  0x33   : > { %2276 = vmatprep.subr.bf16.mxu1 %v2394_v42  ;;  %v2015_v37 = vcombine.high %v334_v30, %v338_v31  ;;  %v342_v42 = vld [vmem:[%s2548_s27 + $0x180] sm:$0xff]  ;;  %v2014_v47 = vcombine.low %v334_v30, %v338_v31  ;;  %v337_v30 = vld [vmem:[%s2548_s27 + $0x158] sm:$0xff] }
  0x34   : > { %1159 = vmatmul.mubr.bf16.vlgmr.msra.gmra.mxu0 %v1974_v35  ;;  %v2416_v35 = vld [vmem:[%s2512_s23 + $0x148] sm:$0xff]   ;;  %v341_v31 = vld [vmem:[%s2548_s27 + $0x178] sm:$0xff] }
  0x35   : > { %1247 = vmatmul.mubr.bf16.vlgmr.msra.gmra.mxu1 %v1976_v38  ;;  %2219 = vmatpush3.bf16.msra.mxu0 %v2393_v41  ;;  %v2417_v38 = vld [vmem:[%s2512_s23 + $0x108] sm:$0xff]  }
  0x36   : > { %2277 = vmatpush3.bf16.msra.mxu1 %v2395_v43  ;;  %1166 = vmatprep.mubr.bf16.mxu0 %v1983_v46  ;;  %v2419_v41 = vld [vmem:[%s2512_s23 + $0x188] sm:$0xff]   ;;  %v2426_v46 = vld [vmem:[%s2512_s23 + $0x1c0] sm:$0xff]  }
  0x37   : > { %1254 = vmatprep.mubr.bf16.mxu1 %v1985_v49  ;;  %2220 = vmatprep.subr.bf16.mxu0 %v2396_v50  ;;  %v343_v43 = vld [vmem:[%s2548_s27 + $0x188] sm:$0xff]  ;;  %v2016_v49 = vcombine.low %v335_v32, %v339_v33  ;;  %v2023_v50 = vcombine.high %v342_v42, %v342_v42  ;;  %v2012_v33 = vcombine.low %v329_v22, %v333_v23 }
  0x38   : > { %2278 = vmatprep.subr.bf16.mxu1 %v2398_v54  ;;  %v297_v54 = vld [vmem:[%s2548_s27 + $0x18] sm:$0xff]  ;;  %v2024_v57 = vcombine.low %v343_v43, %v343_v43 }
  0x39   : > { %2221 = vmatpush3.bf16.msra.mxu0 %v2397_v52  ;;  %v296_v52 = vld [vmem:[%s2548_s27 + $0x10] sm:$0xff] }
  0x3a   : > { %2279 = vmatpush3.bf16.msra.mxu1 %v2399_v55  ;;  %2222 = vmatprep.subr.bf16.mxu0 %v2400_v56  ;;  %v301_v55 = vld [vmem:[%s2548_s27 + $0x38] sm:$0xff]  ;;  %v2022_v56 = vcombine.low %v342_v42, %v342_v42 }
  0x3b   : > { %2280 = vmatprep.subr.bf16.mxu1 %v2402_v0  ;;  %v1981_v59 = vcombine.high %v297_v54, %v301_v55 }
  0x3c   : > { %1167 = vmatmul.mubr.bf16.gmra.mxu0 %v1982_v51  ;;  %v2025_v51 = vcombine.high %v343_v43, %v343_v43 }
  0x3d   : > { %1255 = vmatmul.mubr.bf16.gmra.mxu1 %v1984_v53  ;;  %1174 = vmatprep.mubr.bf16.mxu0 %v1991_v61  ;;  %v300_v53 = vld [vmem:[%s2548_s27 + $0x30] sm:$0xff] }
  0x3e   : > { %1262 = vmatprep.mubr.bf16.mxu1 %v1993_v62  ;;  %2223 = vmatpush3.bf16.msra.mxu0 %v2401_v63  ;;  %v1979_v58 = vcombine.high %v296_v52, %v300_v53  ;;  %v308_v61 = vld [vmem:[%s2548_s27 + $0x70] sm:$0xff]  ;;  %v305_v62 = vld [vmem:[%s2548_s27 + $0x58] sm:$0xff]  ;;  %v1978_v0 = vcombine.low %v296_v52, %v300_v53 }
  0x3f   : > { %2281 = vmatpush3.bf16.msra.mxu1 %v2403_v1  ;;  %2224 = vmatprep.subr.bf16.mxu0 %v2404_v3  ;;  %v309_v63 = vld [vmem:[%s2548_s27 + $0x78] sm:$0xff]  ;;  %v1980_v1 = vcombine.low %v297_v54, %v301_v55  ;;  %v1986_v8 = vcombine.low %v304_v60, %v308_v61 }
  0x40   : > { %2282 = vmatprep.subr.bf16.mxu1 %v2406_v12  ;;  %v1989_v3 = vcombine.high %v305_v62, %v309_v63  ;;  %v320_v12 = vld [vmem:[%s2548_s27 + $0xd0] sm:$0xff] }
  0x42   : > { %2225 = vmatpush3.bf16.msra.mxu0 %v2405_v5  ;;  %v316_v5 = vld [vmem:[%s2548_s27 + $0xb0] sm:$0xff] }
  0x43   : > { %2283 = vmatpush3.bf16.msra.mxu1 %v2407_v13  ;;  %2226 = vmatprep.subr.bf16.mxu0 %v2408_v14  ;;  %v324_v13 = vld [vmem:[%s2548_s27 + $0xf0] sm:$0xff]  ;;  %v321_v14 = vld [vmem:[%s2548_s27 + $0xd8] sm:$0xff] }
  0x44   : > { %1175 = vmatmul.mubr.bf16.gmra.mxu0 %v1990_v2  ;;  %2284 = vmatprep.subr.bf16.mxu1 %v2410_v17  ;;  %v1987_v2 = vcombine.high %v304_v60, %v308_v61  ;;  %v1996_v17 = vcombine.low %v313_v6, %v317_v7  ;;  %v2003_v18 = vcombine.high %v320_v12, %v324_v13 }
  0x45   : > { %1263 = vmatmul.mubr.bf16.gmra.mxu1 %v1992_v4  ;;  %1182 = vmatprep.mubr.bf16.mxu0 %v1999_v9  ;;  %v312_v4 = vld [vmem:[%s2548_s27 + $0x90] sm:$0xff]  ;;  %v1988_v9 = vcombine.low %v305_v62, %v309_v63 }
  0x46   : > { %1270 = vmatprep.mubr.bf16.mxu1 %v2001_v11  ;;  %2227 = vmatpush3.bf16.msra.mxu0 %v2409_v15  ;;  %v1995_v10 = vcombine.high %v312_v4, %v316_v5  ;;  %v1997_v11 = vcombine.high %v313_v6, %v317_v7  ;;  %v325_v15 = vld [vmem:[%s2548_s27 + $0xf8] sm:$0xff] }
  0x47   : > { %2285 = vmatpush3.bf16.msra.mxu1 %v2411_v25  ;;  %2228 = vmatprep.subr.bf16.mxu0 %v2412_v26  ;;  %v2005_v19 = vcombine.high %v321_v14, %v325_v15  ;;  %v2004_v25 = vcombine.low %v321_v14, %v325_v15 }
  0x48   : > { %2286 = vmatprep.subr.bf16.mxu1 %v2414_v28  ;;  %v336_v28 = vld [vmem:[%s2548_s27 + $0x150] sm:$0xff] }
  0x4a   : > { %2229 = vmatpush3.bf16.msra.mxu0 %v2413_v27  ;;  %v2013_v27 = vcombine.high %v329_v22, %v333_v23 }
  0x4b   : > { %2287 = vmatpush3.bf16.msra.mxu1 %v2415_v29  ;;  %2230 = vmatprep.subr.bf16.mxu0 %v2416_v35  ;;  %v340_v29 = vld [vmem:[%s2548_s27 + $0x170] sm:$0xff]  ;;  %v2021_v35 = vcombine.high %v337_v30, %v341_v31 }
  0x4c   : > { %1183 = vmatmul.mubr.bf16.gmra.mxu0 %v1998_v16  ;;  %2288 = vmatprep.subr.bf16.mxu1 %v2418_v40  ;;  %v1994_v16 = vcombine.low %v312_v4, %v316_v5 }
  0x4d   : > { %1271 = vmatmul.mubr.bf16.gmra.mxu1 %v2000_v20  ;;  %1190 = vmatprep.mubr.bf16.mxu0 %v2007_v21  ;;  %v328_v20 = vld [vmem:[%s2548_s27 + $0x110] sm:$0xff] }
  0x4e   : > { %1278 = vmatprep.mubr.bf16.mxu1 %v2009_v24  ;;  %2231 = vmatpush3.bf16.msra.mxu0 %v2417_v38  ;;  %v332_v21 = vld [vmem:[%s2548_s27 + $0x130] sm:$0xff]  ;;  %v2002_v24 = vcombine.low %v320_v12, %v324_v13  ;;  %v2018_v38 = vcombine.low %v336_v28, %v340_v29 }
  0x4f   : > { %2289 = vmatpush3.bf16.msra.mxu1 %v2419_v41  ;;  %2232 = vmatprep.subr.bf16.mxu0 %v2424_v44  ;;  %v2011_v26 = vcombine.high %v328_v20, %v332_v21  ;;  %v2010_v32 = vcombine.low %v328_v20, %v332_v21 }
  0x50   : > { %2290 = vmatprep.subr.bf16.mxu1 %v2426_v46 }
  0x52   : > { %2233 = vmatpush3.bf16.msra.mxu0 %v2425_v45 }
  0x53   : > { %2291 = vmatpush3.bf16.msra.mxu1 %v2427_v48 }
  0x54   : > { %1191 = vmatmul.mubr.bf16.gmra.mxu0 %v2006_v34  ;;  %v2019_v34 = vcombine.high %v336_v28, %v340_v29 }
  0x55   : > { %1279 = vmatmul.mubr.bf16.gmra.mxu1 %v2008_v36  ;;  %1198 = vmatprep.mubr.bf16.mxu0 %v2015_v37  ;;  %v344_v36 = vld [vmem:[%s2548_s27 + $0x190] sm:$0xff]  ;;  %v345_v37 = vld [vmem:[%s2548_s27 + $0x198] sm:$0xff] }
  0x56   : > { %1286 = vmatprep.mubr.bf16.mxu1 %v2017_v39  ;;  %v2020_v39 = vcombine.low %v337_v30, %v341_v31  ;;  %v2027_v40 = vcombine.high %v344_v36, %v344_v36  ;;  %v2029_v41 = vcombine.high %v345_v37, %v345_v37  ;;  %v2026_v42 = vcombine.low %v344_v36, %v344_v36 }
  0x57   : > { %v2028_v43 = vcombine.low %v345_v37, %v345_v37 }
  0x5c   : > { %1199 = vmatmul.mubr.bf16.gmra.mxu0 %v2014_v47 }
  0x5d   : > { %1287 = vmatmul.mubr.bf16.gmra.mxu1 %v2016_v49  ;;  %1206 = vmatprep.mubr.bf16.mxu0 %v2023_v50 }
  0x5e   : > { %1294 = vmatprep.mubr.bf16.mxu1 %v2025_v51 }
  0x64   : > { %1207 = vmatmul.mubr.bf16.gmra.mxu0 %v2022_v56 }
  0x65   : > { %1295 = vmatmul.mubr.bf16.gmra.mxu1 %v2024_v57  ;;  %1334 = vmatprep.mubr.bf16.mxu0 %v1979_v58 }
  0x66   : > { %1422 = vmatprep.mubr.bf16.mxu1 %v1981_v59 }
  0x6c   : > { %1335 = vmatmul.mubr.bf16.vlgmr.msra.gmra.mxu0 %v1978_v0 }
  0x6d   : > { %1423 = vmatmul.mubr.bf16.vlgmr.msra.gmra.mxu1 %v1980_v1  ;;  %1342 = vmatprep.mubr.bf16.mxu0 %v1987_v2 }
  0x6e   : > { %1430 = vmatprep.mubr.bf16.mxu1 %v1989_v3 }
  0x74   : > { %1343 = vmatmul.mubr.bf16.gmra.mxu0 %v1986_v8 }
  0x75   : > { %1431 = vmatmul.mubr.bf16.gmra.mxu1 %v1988_v9  ;;  %1350 = vmatprep.mubr.bf16.mxu0 %v1995_v10 }
  0x76   : > { %1438 = vmatprep.mubr.bf16.mxu1 %v1997_v11 }
  0x7c   : > { %1351 = vmatmul.mubr.bf16.gmra.mxu0 %v1994_v16 }
  0x7d   : > { %1439 = vmatmul.mubr.bf16.gmra.mxu1 %v1996_v17  ;;  %1358 = vmatprep.mubr.bf16.mxu0 %v2003_v18 }
  0x7e   : > { %1446 = vmatprep.mubr.bf16.mxu1 %v2005_v19 }
  0x84   : > { %1359 = vmatmul.mubr.bf16.gmra.mxu0 %v2002_v24 }
  0x85   : > { %1447 = vmatmul.mubr.bf16.gmra.mxu1 %v2004_v25  ;;  %1366 = vmatprep.mubr.bf16.mxu0 %v2011_v26 }
  0x86   : > { %1454 = vmatprep.mubr.bf16.mxu1 %v2013_v27 }
  0x8c   : > { %1367 = vmatmul.mubr.bf16.gmra.mxu0 %v2010_v32 }
  0x8d   : > { %1455 = vmatmul.mubr.bf16.gmra.mxu1 %v2012_v33  ;;  %1374 = vmatprep.mubr.bf16.mxu0 %v2019_v34 }
  0x8e   : > { %1462 = vmatprep.mubr.bf16.mxu1 %v2021_v35 }
  0x94   : > { %1375 = vmatmul.mubr.bf16.gmra.mxu0 %v2018_v38 }
  0x95   : > { %1463 = vmatmul.mubr.bf16.gmra.mxu1 %v2020_v39  ;;  %1382 = vmatprep.mubr.bf16.mxu0 %v2027_v40 }
  0x96   : > { %1470 = vmatprep.mubr.bf16.mxu1 %v2029_v41 }
  0x9c   : > { %1383 = vmatmul.mubr.bf16.gmra.mxu0 %v2026_v42 }
  0x9d   : > { %1471 = vmatmul.mubr.bf16.gmra.mxu1 %v2028_v43 }
  0xf4   : > { %v2118_v44 = vpop.f32.mrf.mxu0 }
  0xf5   : > { %v2176_v45 = vpop.f32.mrf.mxu1 }
  0xf6   : > { %v2119_v46 = vpop.f32.mrf.mxu0 }
  0xf7   : > { %v2177_v47 = vpop.f32.mrf.mxu1  ;;  %v2120_v35 = vadd.f32 %v2119_v46, %v2118_v44 }
  0xf8   : > { %v2121_v48 = vpop.f32.mrf.mxu0  ;;  %v2178_v36 = vadd.f32 %v2177_v47, %v2176_v45 }
  0xf9   : > { %v2179_v49 = vpop.f32.mrf.mxu1 }
  0xfa   : > { %v2122_v50 = vpop.f32.mrf.mxu0  ;;  %v1249_v43 = vadd.f32 %v2178_v36, %v2120_v35 }
  0xfb   : > { %v2180_v51 = vpop.f32.mrf.mxu1  ;;  %v2123_v40 = vadd.f32 %v2122_v50, %v2121_v48 }
  0xfc   : > { %v2637_v52 = vpop.f32.mrf.mxu0  ;;  %v2181_v41 = vadd.f32 %v2180_v51, %v2179_v49 }
  0xfd   : > { %v2639_v53 = vpop.f32.mrf.mxu1 }
  0xfe   : > { %v2641_v54 = vpop.f32.mrf.mxu0 }
  0xff   : > { %v2643_v55 = vpop.f32.mrf.mxu1  ;;  %v2126_v45 = vadd.f32 %v2641_v54, %v2637_v52 }
 0x100   : > { %v2645_v56 = vpop.f32.mrf.mxu0  ;;  %v2184_v46 = vadd.f32 %v2643_v55, %v2639_v53 }
 0x101   : > { %v2647_v57 = vpop.f32.mrf.mxu1 }
 0x102   : > { %v2649_v58 = vpop.f32.mrf.mxu0 }
 0x103   : > { %v2651_v59 = vpop.f32.mrf.mxu1 }
 0x104   : > { %v2653_v60 = vpop.f32.mrf.mxu0  ;;  %v2187_v52 = vadd.f32 %v2651_v59, %v2647_v57 }
 0x105   : > { %v2655_v61 = vpop.f32.mrf.mxu1 }
 0x106   : > { %v2657_v62 = vpop.f32.mrf.mxu0 }
 0x107   : > { %v2659_v63 = vpop.f32.mrf.mxu1 }
 0x108   : > { %v2661_v0 = vpop.f32.mrf.mxu0  ;;  %v2190_v57 = vadd.f32 %v2659_v63, %v2655_v61 }
 0x109   : > { %v2663_v1 = vpop.f32.mrf.mxu1 }
 0x10a   : > { %v2665_v2 = vpop.f32.mrf.mxu0 }
 0x10b   : > { %v2667_v3 = vpop.f32.mrf.mxu1 }
 0x10c   : > { %v2669_v4 = vpop.f32.mrf.mxu0 }
 0x10d   : > { %v2671_v5 = vpop.f32.mrf.mxu1 }
 0x10e   : > { %v2673_v6 = vpop.f32.mrf.mxu0 }
 0x10f   : > { %v2675_v7 = vpop.f32.mrf.mxu1 }
 0x110   : > { %v2677_v8 = vpop.f32.mrf.mxu0 }
 0x111   : > { %v2679_v9 = vpop.f32.mrf.mxu1 }
 0x112   : > { %v2681_v10 = vpop.f32.mrf.mxu0 }
 0x113   : > { %v2683_v11 = vpop.f32.mrf.mxu1 }
 0x114   : > { %v2685_v12 = vpop.f32.mrf.mxu0 }
 0x115   : > { %v2687_v13 = vpop.f32.mrf.mxu1 }
 0x116   : > { %v2689_v14 = vpop.f32.mrf.mxu0 }
 0x117   : > { %v2691_v15 = vpop.f32.mrf.mxu1 }
 0x118   : > { %v2693_v16 = vpop.f32.mrf.mxu0 }
 0x119   : > { %v2695_v17 = vpop.f32.mrf.mxu1 }
 0x11a   : > { %v2697_v18 = vpop.f32.mrf.mxu0 }
 0x11b   : > { %v2699_v19 = vpop.f32.mrf.mxu1 }
 0x11c   : > { %v2701_v20 = vpop.f32.mrf.mxu0 }
 0x11d   : > { %v2703_v21 = vpop.f32.mrf.mxu1 }
 0x11e   : > { %v2705_v22 = vpop.f32.mrf.mxu0 }
 0x11f   : > { %v2707_v23 = vpop.f32.mrf.mxu1 }
 0x120   : > { %v2709_v24 = vpop.f32.mrf.mxu0 }
 0x121   : > { %v2711_v25 = vpop.f32.mrf.mxu1 }
 0x122   : > { %3293 = vst [vmem:[#allocation4_spill] sm:$0xff] %v2711_v25  ;;  %v2713_v26 = vpop.f32.mrf.mxu0 }
 0x123   : > { %3294 = vst [vmem:[#allocation5_spill] sm:$0xff] %v2713_v26  ;;  %v2715_v27 = vpop.f32.mrf.mxu1 }
 0x124   : > { %3295 = vst [vmem:[#allocation6_spill] sm:$0xff] %v2715_v27  ;;  %v2717_v28 = vpop.f32.mrf.mxu0 }
 0x125   : > { %3296 = vst [vmem:[#allocation7_spill] sm:$0xff] %v2717_v28  ;;  %v2719_v29 = vpop.f32.mrf.mxu1 }
 0x126   : > { %3297 = vst [vmem:[#allocation8_spill] sm:$0xff] %v2719_v29  ;;  %v2721_v30 = vpop.f32.mrf.mxu0 }
 0x127   : > { %3298 = vst [vmem:[#allocation9_spill] sm:$0xff] %v2721_v30  ;;  %v2723_v31 = vpop.f32.mrf.mxu1 }
 0x128   : > { %3299 = vst [vmem:[#allocation10_spill] sm:$0xff] %v2723_v31  ;;  %v2157_v32 = vpop.f32.mrf.mxu0  ;;  %v1252_v31 = vadd.f32 %v2181_v41, %v2123_v40  ;;  %v2135_v41 = vadd.f32 %v2665_v2, %v2661_v0  ;;  %v2138_v0 = vadd.f32 %v2673_v6, %v2669_v4  ;;  %v2199_v4 = vadd.f32 %v2683_v11, %v2679_v9 }
 0x129   : > { %v2215_v33 = vpop.f32.mrf.mxu1  ;;  %v2129_v32 = vadd.f32 %v2649_v58, %v2645_v56  ;;  %v2132_v56 = vadd.f32 %v2657_v62, %v2653_v60  ;;  %v2193_v60 = vadd.f32 %v2667_v3, %v2663_v1  ;;  %v2196_v1 = vadd.f32 %v2675_v7, %v2671_v5 }
 0x12a   : > { %v2158_v34 = vpop.f32.mrf.mxu0  ;;  %v1257_v33 = vadd.f32 %v2184_v46, %v2126_v45  ;;  %v2202_v9 = vadd.f32 %v2691_v15, %v2687_v13 }
 0x12b   : > { %v2216_v37 = vpop.f32.mrf.mxu1  ;;  %v1260_v34 = vadd.f32 %v2187_v52, %v2129_v32 }
 0x12c   : > { %v2234_v38 = vpop.f32.mrf.mxu0 }
 0x12d   : > { %v2292_v39 = vpop.f32.mrf.mxu1 }
 0x12e   : > { %v2235_v42 = vpop.f32.mrf.mxu0 }
 0x12f   : > { %v2236_v28 = vadd.f32 %v2235_v42, %v2234_v38  ;;  %v2293_v27 = vpop.f32.mrf.mxu1  ;;  %v1265_v42 = vadd.f32 %v2190_v57, %v2132_v56 }
 0x130   : > { %v2237_v29 = vpop.f32.mrf.mxu0  ;;  %v2294_v30 = vadd.f32 %v2293_v27, %v2292_v39 }
 0x131   : > { %v1337_v25 = vadd.f32 %v2236_v28, %v1249_v43  ;;  %v2295_v26 = vpop.f32.mrf.mxu1 }
 0x132   : > { %v2238_v44 = vpop.f32.mrf.mxu0 }
 0x133   : > { %v2735_v47 = vadd.f32 %v2294_v30, %v1337_v25  ;;  %v2239_v48 = vadd.f32 %v2238_v44, %v2237_v29  ;;  %v2296_v49 = vpop.f32.mrf.mxu1 }
 0x134   : > { %v2240_v50 = vpop.f32.mrf.mxu0  ;;  %v2297_v27 = vadd.f32 %v2296_v49, %v2295_v26  ;;  %v1268_v49 = vadd.f32 %v2193_v60, %v2135_v41 }
 0x135   : > { %1481 = vst [vmem:[%s2729_s5] sm:$0xff] %v2735_v47  ;;  %v1340_v51 = vadd.f32 %v2239_v48, %v1252_v31  ;;  %v2298_v28 = vpop.f32.mrf.mxu1 }
 0x136   : > { %v2241_v54 = vpop.f32.mrf.mxu0 }
 0x137   : > { %v2743_v53 = vadd.f32 %v2297_v27, %v1340_v51  ;;  %v2242_v55 = vadd.f32 %v2241_v54, %v2240_v50  ;;  %v2299_v25 = vpop.f32.mrf.mxu1  ;;  %v2141_v54 = vadd.f32 %v2681_v10, %v2677_v8  ;;  %v2144_v8 = vadd.f32 %v2689_v14, %v2685_v12 }
 0x138   : > { %v2243_v29 = vpop.f32.mrf.mxu0  ;;  %v2300_v31 = vadd.f32 %v2299_v25, %v2298_v28  ;;  %v2205_v12 = vadd.f32 %v2699_v19, %v2695_v17  ;;  %v2208_v17 = vadd.f32 %v2707_v23, %v2703_v21 }
 0x139   : > { %1482 = vst [vmem:[%s2729_s5 + $0x8] sm:$0xff] %v2743_v53  ;;  %v1345_v30 = vadd.f32 %v2242_v55, %v1257_v33  ;;  %v2301_v26 = vpop.f32.mrf.mxu1  ;;  %v1273_v33 = vadd.f32 %v2196_v1, %v2138_v0  ;;  %v3301_v0 = vld [vmem:[#allocation4_spill] sm:$0xff]  ;;  %v3302_v1 = vld [vmem:[#allocation6_spill] sm:$0xff] }
 0x13a   : > { %v2244_v35 = vpop.f32.mrf.mxu0 }
 0x13b   : > { %v2751_v58 = vadd.f32 %v2300_v31, %v1345_v30  ;;  %v2245_v59 = vadd.f32 %v2244_v35, %v2243_v29  ;;  %v2302_v36 = vpop.f32.mrf.mxu1 }
 0x13c   : > { %v2246_v37 = vpop.f32.mrf.mxu0  ;;  %v2303_v39 = vadd.f32 %v2302_v36, %v2301_v26  ;;  %v1276_v26 = vadd.f32 %v2199_v4, %v2141_v54 }
 0x13d   : > { %1483 = vst [vmem:[%s2729_s5 + $0x10] sm:$0xff] %v2751_v58  ;;  %v1348_v38 = vadd.f32 %v2245_v59, %v1260_v34  ;;  %v2304_v40 = vpop.f32.mrf.mxu1 }
 0x13e   : > { %v2247_v62 = vpop.f32.mrf.mxu0 }
 0x13f   : > { %v2759_v61 = vadd.f32 %v2303_v39, %v1348_v38  ;;  %v2248_v63 = vadd.f32 %v2247_v62, %v2246_v37  ;;  %v2305_v43 = vpop.f32.mrf.mxu1  ;;  %v2147_v37 = vadd.f32 %v2697_v18, %v2693_v16  ;;  %v1281_v38 = vadd.f32 %v2202_v9, %v2144_v8 }
 0x140   : > { %v2249_v44 = vpop.f32.mrf.mxu0  ;;  %v2306_v46 = vadd.f32 %v2305_v43, %v2304_v40  ;;  %v2150_v16 = vadd.f32 %v2705_v22, %v2701_v20  ;;  %v2211_v20 = vadd.f32 %v3302_v1, %v3301_v0 }
 0x141   : > { %1484 = vst [vmem:[%s2729_s5 + $0x18] sm:$0xff] %v2759_v61  ;;  %v1353_v45 = vadd.f32 %v2248_v63, %v1265_v42  ;;  %v2307_v48 = vpop.f32.mrf.mxu1  ;;  %v1284_v42 = vadd.f32 %v2205_v12, %v2147_v37 }
 0x142   : > { %v2250_v50 = vpop.f32.mrf.mxu0 }
 0x143   : > { %v2767_v2 = vadd.f32 %v2306_v46, %v1353_v45  ;;  %v2251_v3 = vadd.f32 %v2250_v50, %v2249_v44  ;;  %v2308_v51 = vpop.f32.mrf.mxu1 }
 0x144   : > { %v2252_v27 = vpop.f32.mrf.mxu0  ;;  %v2309_v32 = vadd.f32 %v2308_v51, %v2307_v48 }
 0x145   : > { %1485 = vst [vmem:[%s2729_s5 + $0x20] sm:$0xff] %v2767_v2  ;;  %v1356_v28 = vadd.f32 %v2251_v3, %v1268_v49  ;;  %v2310_v52 = vpop.f32.mrf.mxu1  ;;  %v3300_v49 = vld [vmem:[#allocation5_spill] sm:$0xff]  ;;  %v1289_v3 = vadd.f32 %v2208_v17, %v2150_v16 }
 0x146   : > { %v2253_v6 = vpop.f32.mrf.mxu0  ;;  %v2153_v50 = vadd.f32 %v3300_v49, %v2709_v24  ;;  %v3304_v24 = vld [vmem:[#allocation9_spill] sm:$0xff] }
 0x147   : > { %v2775_v5 = vadd.f32 %v2309_v32, %v1356_v28  ;;  %v2254_v7 = vadd.f32 %v2253_v6, %v2252_v27  ;;  %v2311_v55 = vpop.f32.mrf.mxu1  ;;  %v3303_v6 = vld [vmem:[#allocation7_spill] sm:$0xff] }
 0x148   : > { %v2255_v25 = vpop.f32.mrf.mxu0  ;;  %v2312_v30 = vadd.f32 %v2311_v55, %v2310_v52  ;;  %v1292_v54 = vadd.f32 %v2211_v20, %v2153_v50  ;;  %v3306_v55 = vld [vmem:[#allocation10_spill] sm:$0xff] }
 0x149   : > { %1486 = vst [vmem:[%s2729_s5 + $0x28] sm:$0xff] %v2775_v5  ;;  %v1361_v29 = vadd.f32 %v2254_v7, %v1273_v33  ;;  %v2313_v31 = vpop.f32.mrf.mxu1  ;;  %v2156_v33 = vadd.f32 %v3304_v24, %v3303_v6  ;;  %v3305_v7 = vld [vmem:[#allocation8_spill] sm:$0xff] }
 0x14a   : > { %v2256_v34 = vpop.f32.mrf.mxu0 }
 0x14b   : > { %v2783_v10 = vadd.f32 %v2312_v30, %v1361_v29  ;;  %v2257_v11 = vadd.f32 %v2256_v34, %v2255_v25  ;;  %v2314_v35 = vpop.f32.mrf.mxu1  ;;  %v2214_v25 = vadd.f32 %v3306_v55, %v3305_v7 }
 0x14c   : > { %v2258_v56 = vpop.f32.mrf.mxu0  ;;  %v2315_v59 = vadd.f32 %v2314_v35, %v2313_v31 }
 0x14d   : > { %1487 = vst [vmem:[%s2729_s5 + $0x30] sm:$0xff] %v2783_v10  ;;  %v1364_v57 = vadd.f32 %v2257_v11, %v1276_v26  ;;  %v2316_v36 = vpop.f32.mrf.mxu1  ;;  %v1297_v35 = vadd.f32 %v2214_v25, %v2156_v33 }
 0x14e   : > { %v2259_v14 = vpop.f32.mrf.mxu0 }
 0x14f   : > { %v2791_v13 = vadd.f32 %v2315_v59, %v1364_v57  ;;  %v2260_v15 = vadd.f32 %v2259_v14, %v2258_v56  ;;  %v2317_v39 = vpop.f32.mrf.mxu1 }
 0x150   : > { %v2261_v40 = vpop.f32.mrf.mxu0  ;;  %v2318_v60 = vadd.f32 %v2317_v39, %v2316_v36 }
 0x151   : > { %1488 = vst [vmem:[%s2729_s5 + $0x38] sm:$0xff] %v2791_v13  ;;  %v1369_v41 = vadd.f32 %v2260_v15, %v1281_v38  ;;  %v2319_v62 = vpop.f32.mrf.mxu1 }
 0x152   : > { %v2262_v63 = vpop.f32.mrf.mxu0 }
 0x153   : > { %v2799_v18 = vadd.f32 %v2318_v60, %v1369_v41  ;;  %v2263_v19 = vadd.f32 %v2262_v63, %v2261_v40  ;;  %v2320_v43 = vpop.f32.mrf.mxu1  ;;  %v2458_v40 = vmov (%p1494_p5), 0.0  }
 0x154   : > { %v2264_v44 = vpop.f32.mrf.mxu0  ;;  %v2321_v46 = vadd.f32 %v2320_v43, %v2319_v62  ;;  %1500 = vst [vmem:[#allocation2] sm:$0x1] (%p1494_p5), %v2458_v40  ;;  %1501 = vst [vmem:[#allocation3] sm:$0x1] (%p1494_p5), %v2458_v40 }
 0x155   : > { %1489 = vst [vmem:[%s2729_s5 + $0x40] sm:$0xff] %v2799_v18  ;;  %v1372_v45 = vadd.f32 %v2263_v19, %v1284_v42  ;;  %v2322_v48 = vpop.f32.mrf.mxu1 }
 0x156   : > { %v2265_v22 = vpop.f32.mrf.mxu0 }
 0x157   : > { %v2807_v21 = vadd.f32 %v2321_v46, %v1372_v45  ;;  %v2266_v23 = vadd.f32 %v2265_v22, %v2264_v44  ;;  %v2323_v51 = vpop.f32.mrf.mxu1 }
 0x158   : > { %v2267_v27 = vpop.f32.mrf.mxu0  ;;  %v2324_v32 = vadd.f32 %v2323_v51, %v2322_v48 }
 0x159   : > { %1490 = vst [vmem:[%s2729_s5 + $0x48] sm:$0xff] %v2807_v21  ;;  %v1377_v28 = vadd.f32 %v2266_v23, %v1289_v3  ;;  %v2325_v52 = vpop.f32.mrf.mxu1 }
 0x15a   : > { %v2268_v4 = vpop.f32.mrf.mxu0 }
 0x15b   : > { %v1465_v29 = vadd.f32 %v2324_v32, %v1377_v28  ;;  %v2269_v30 = vadd.f32 %v2268_v4, %v2267_v27  ;;  %v2326_v31 = vpop.f32.mrf.mxu1 }
 0x15c   : > { %v2270_v26 = vpop.f32.mrf.mxu0  ;;  %v2327_v8 = vadd.f32 %v2326_v31, %v2325_v52 }
 0x15d   : > { %1491 = vst [vmem:[%s2729_s5 + $0x50] sm:$0xff] %v1465_v29  ;;  %v1380_v34 = vadd.f32 %v2269_v30, %v1292_v54  ;;  %v2328_v9 = vpop.f32.mrf.mxu1 }
 0x15e   : > { %v2271_v11 = vpop.f32.mrf.mxu0 }
 0x15f   : > { %v1468_v56 = vadd.f32 %v2327_v8, %v1380_v34  ;;  %v2272_v57 = vadd.f32 %v2271_v11, %v2270_v26  ;;  %v2329_v59 = vpop.f32.mrf.mxu1 }
 0x160   : > { %v2273_v36 = vpop.f32.mrf.mxu0  ;;  %v2330_v12 = vadd.f32 %v2329_v59, %v2328_v9 }
 0x161   : > { %1492 = vst [vmem:[%s2729_s5 + $0x58] sm:$0xff] %v1468_v56  ;;  %v1385_v37 = vadd.f32 %v2272_v57, %v1297_v35  ;;  %v2331_v14 = vpop.f32.mrf.mxu1  ;;  %1499 = sbr.rel (!%p1494_p5) target bundleno = 358 (0x166), region = 40 }
 0x162   : > { %v2274_v38 = vpop.f32.mrf.mxu0 }
 0x163   : > { %v1473_v15 = vadd.f32 %v2330_v12, %v1385_v37  ;;  %v2332_v39 = vpop.f32.mrf.mxu1 }
 0x165   : > { %1493 = vst [vmem:[%s2729_s5 + $0x60] sm:$0xff] %v1473_v15 }
 0x166 PF: > { %v1503_v41 = vadd.f32 %v2743_v53, %v2735_v47  ;;  %v1524_v60 = vmul.f32 %v2735_v47, %v2735_v47  ;;  %v1525_v62 = vmul.f32 %v2743_v53, %v2743_v53  ;;  %p1557_p6 = scmp.eq.s32.totalorder %s2448_s15, 3  ;;  %v1526_v42 = vmul.f32 %v2751_v58, %v2751_v58  ;;  %v1523_v9 = vld [vmem:[#allocation3] sm:$0x1] }
 0x167   : > { %v1527_v16 = vmul.f32 %v2759_v61, %v2759_v61  ;;  %v1528_v43 = vmul.f32 %v2767_v2, %v2767_v2  ;;  %v1529_v53 = vmul.f32 %v2775_v5, %v2775_v5  ;;  %v1534_v23 = vmul.f32 %v1465_v29, %v1465_v29  ;;  %v1570_v40 = vld [vmem:[%s3290_s2] sm:$0x1] (%p1557_p6) }
 0x168   : > { %v1504_v63 = vadd.f32 %v1503_v41, %v2751_v58  ;;  %v1537_v17 = vadd.f32 %v1525_v62, %v1524_v60  ;;  %v1530_v58 = vmul.f32 %v2783_v10, %v2783_v10  ;;  %v1535_v27 = vmul.f32 %v1468_v56, %v1468_v56 }
 0x169   : > { %v1536_v52 = vmul.f32 %v1473_v15, %v1473_v15 }
 0x16a   : > { %v1505_v19 = vadd.f32 %v1504_v63, %v2759_v61  ;;  %v1538_v44 = vadd.f32 %v1537_v17, %v1526_v42  ;;  %v1531_v61 = vmul.f32 %v2791_v13, %v2791_v13  ;;  %v1574_v42 = vld [vmem:[%s3291_s3] sm:$0x1] (%p1557_p6) }
 0x16c   : > { %v1506_v47 = vadd.f32 %v1505_v19, %v2767_v2  ;;  %v1539_v45 = vadd.f32 %v1538_v44, %v1527_v16  ;;  %v1532_v2 = vmul.f32 %v2799_v18, %v2799_v18  ;;  %v1577_v63 = vld [vmem:[%s3292_s4] sm:$0xff] (%p1557_p6)  ;;  %v1578_v16 = vld [vmem:[%s3292_s4 + $0x8] sm:$0xff] (%p1557_p6)  ;;  %v1579_v17 = vld [vmem:[%s3292_s4 + $0x10] sm:$0xff] (%p1557_p6) }
 0x16d   : > { %v1580_v19 = vld [vmem:[%s3292_s4 + $0x18] sm:$0xff] (%p1557_p6) }
 0x16e   : > { %v1507_v46 = vadd.f32 %v1506_v47, %v2775_v5  ;;  %v1540_v48 = vadd.f32 %v1539_v45, %v1528_v43  ;;  %v1533_v5 = vmul.f32 %v2807_v21, %v2807_v21  ;;  %v1581_v43 = vld [vmem:[%s3292_s4 + $0x20] sm:$0xff] (%p1557_p6)  ;;  %v1583_v45 = vld [vmem:[%s3292_s4 + $0x30] sm:$0xff] (%p1557_p6) }
 0x170   : > { %v1508_v49 = vadd.f32 %v1507_v46, %v2783_v10  ;;  %v1541_v50 = vadd.f32 %v1540_v48, %v1529_v53  ;;  %v1582_v53 = vld [vmem:[%s3292_s4 + $0x28] sm:$0xff] (%p1557_p6)  ;;  %v1584_v46 = vld [vmem:[%s3292_s4 + $0x38] sm:$0xff] (%p1557_p6) }
 0x171   : > { %v1586_v48 = vld [vmem:[%s3292_s4 + $0x48] sm:$0xff] (%p1557_p6) }
 0x172   : > { %v1509_v0 = vadd.f32 %v1508_v49, %v2791_v13  ;;  %v1542_v1 = vadd.f32 %v1541_v50, %v1530_v58  ;;  %v1585_v58 = vld [vmem:[%s3292_s4 + $0x40] sm:$0xff] (%p1557_p6)  ;;  %v1587_v49 = vld [vmem:[%s3292_s4 + $0x50] sm:$0xff] (%p1557_p6) }
 0x174   : > { %v1510_v20 = vadd.f32 %v1509_v0, %v2799_v18  ;;  %v1543_v22 = vadd.f32 %v1542_v1, %v1531_v61  ;;  %v1588_v1 = vld [vmem:[%s3292_s4 + $0x58] sm:$0xff] (%p1557_p6) }
 0x176   : > { %v1511_v3 = vadd.f32 %v1510_v20, %v2807_v21  ;;  %v1544_v10 = vadd.f32 %v1543_v22, %v1532_v2  ;;  %v1502_v21 = vld [vmem:[#allocation2] sm:$0x1] }
 0x177   : > { %v1589_v20 = vld [vmem:[%s3292_s4 + $0x60] sm:$0xff] (%p1557_p6) }
 0x178   : > { %v1512_v51 = vadd.f32 %v1511_v3, %v1465_v29  ;;  %v1545_v28 = vadd.f32 %v1544_v10, %v1533_v5  ;;  %v1590_v5 = vld [vmem:[%s3292_s4 + $0x68] sm:$0xff] (%p1557_p6) }
 0x17a   : > { %v1513_v32 = vadd.f32 %v1512_v51, %v1468_v56  ;;  %v1546_v13 = vadd.f32 %v1545_v28, %v1534_v23 }
 0x17c   : > { %v1514_v54 = vadd.f32 %v1513_v32, %v1473_v15  ;;  %v1547_v4 = vadd.f32 %v1546_v13, %v1535_v27  ;;  %v1630_v15 = vlaneseq (%p1557_p6) }
 0x17e   : > { %v1515_v6 = vrot.slane %v1514_v54, 4  ;;  %v1548_v24 = vadd.f32 %v1547_v4, %v1536_v52  ;;  %v1631_v39 = vshrl.u32 (%p1557_p6), %v1630_v15, 7 }
 0x180   : > { %v1516_v33 = vadd.f32 %v1515_v6, %v1514_v54  ;;  %v1549_v18 = vrot.slane %v1548_v24, 4  ;;  %v1632_v41 = vsub.s32 (%p1557_p6), 0, %v1631_v39 }
 0x182   : > { %v1517_v7 = vrot.slane %v1516_v33, 2  ;;  %v1550_v55 = vadd.f32 %v1549_v18, %v1548_v24 }
 0x184   : > { %v1518_v25 = vadd.f32 %v1517_v7, %v1516_v33  ;;  %v1551_v30 = vrot.slane %v1550_v55, 2 }
 0x186   : > { %v1519_v31 = vrot.slane %v1518_v25, 1  ;;  %v1552_v26 = vadd.f32 %v1551_v30, %v1550_v55 }
 0x188   : > { %v1520_v34 = vadd.f32 %v1519_v31, %v1518_v25  ;;  %v1553_v29 = vrot.slane %v1552_v26, 1 }
 0x18a   : > { %v1521_v8 = vadd.f32 %v1520_v34, %v1502_v21  ;;  %v1554_v11 = vadd.f32 %v1553_v29, %v1552_v26  ;;  %1561 = sbr.rel (!%p1557_p6) target bundleno = 477 (0x1dd), region = 44  ;;  %v1591_v29 = vld [vmem:[%s3292_s4 + $0x70] sm:$0xff] (%p1557_p6) }
 0x18c   : > { %1522 = vst [vmem:[#allocation2] sm:$0x1] %v1521_v8  ;;  %v1555_v35 = vadd.f32 %v1554_v11, %v1523_v9  ;;  %v1592_v8 = vld [vmem:[%s3292_s4 + $0x78] sm:$0xff] (%p1557_p6) }
 0x18e   : > { %1556 = vst [vmem:[#allocation3] sm:$0x1] %v1555_v35 }
 0x193   : > { %v1562_v56 = vld [vmem:[#allocation2] sm:$0x1] }
 0x194   : > { %v1564_v59 = vmul.f32 0.0025510204, %v1562_v56 }
 0x195   : > { %v1565_v57 = vld [vmem:[#allocation3] sm:$0x1] }
 0x196   : > { %v1566_v36 = vmul.f32 0.0025510204, %v1565_v57  ;;  %v1567_v37 = vmul.f32 %v1564_v59, %v1564_v59 }
 0x198   : > { %v1568_v12 = vsub.f32 %v1566_v36, %v1567_v37 }
 0x19a   : > { %v1569_v14 = vmax.f32 %v1568_v12, 0.0  ;;  %v1593_v12 = vld [vmem:[%s3292_s4 + $0x80] sm:$0xff] }
 0x19c   : > { %v1571_v38 = vadd.f32 1e-05, %v1569_v14 }
 0x19e   : > { %2432 = vrsqrt.f32 %v1571_v38 }
 0x1ab   : > { %v2433_v60 = vpop.eup %2432 }
 0x1ac   : > { %v1573_v62 = vmul.f32 %v2433_v60, %v1570_v40  ;;  %v1594_v40 = vld [vmem:[%s3292_s4 + $0x88] sm:$0xff]  ;;  %v1596_v60 = vld [vmem:[%s3292_s4 + $0x98] sm:$0xff] }
 0x1ae   : > { %v1575_v44 = vmul.f32 %v1573_v62, %v1564_v59  ;;  %v2874_v47 = vrot.slane %v1573_v62, %v1632_v41 }
 0x1b0   : > { %v1576_v61 = vsub.f32 %v1574_v42, %v1575_v44  ;;  %v1635_v50 = vmul.f32 %v2874_v47, %v1577_v63  ;;  %v1636_v0 = vmul.f32 %v2874_v47, %v1578_v16  ;;  %v1637_v2 = vmul.f32 %v2874_v47, %v1579_v17  ;;  %v1597_v17 = vld [vmem:[%s3292_s4 + $0xa0] sm:$0xff] }
 0x1b1   : > { %v1638_v22 = vmul.f32 %v2874_v47, %v1580_v19  ;;  %v1639_v3 = vmul.f32 %v2874_v47, %v1581_v43  ;;  %v1640_v23 = vmul.f32 %v2874_v47, %v1582_v53  ;;  %v1641_v10 = vmul.f32 %v2874_v47, %v1583_v45  ;;  %v1598_v19 = vld [vmem:[%s3292_s4 + $0xa8] sm:$0xff] }
 0x1b2   : > { %v2910_v51 = vrot.slane %v1576_v61, %v1632_v41  ;;  %v1642_v27 = vmul.f32 %v2874_v47, %v1584_v46  ;;  %v1643_v28 = vmul.f32 %v2874_v47, %v1585_v58  ;;  %v1644_v32 = vmul.f32 %v2874_v47, %v1586_v48  ;;  %v1595_v41 = vld [vmem:[%s3292_s4 + $0x90] sm:$0xff] }
 0x1b3   : > { %v1645_v52 = vmul.f32 %v2874_v47, %v1587_v49  ;;  %v1646_v13 = vmul.f32 %v2874_v47, %v1588_v1  ;;  %v1647_v54 = vmul.f32 %v2874_v47, %v1589_v20  ;;  %v1648_v4 = vmul.f32 %v2874_v47, %v1590_v5  ;;  %v1599_v61 = vld [vmem:[%s3292_s4 + $0xb0] sm:$0xff] }
 0x1b4   : > { %v1693_v6 = vadd.f32 %v2910_v51, %v1635_v50  ;;  %v1694_v24 = vadd.f32 %v2910_v51, %v1636_v0  ;;  %v1695_v33 = vadd.f32 %v2910_v51, %v1637_v2  ;;  %v1696_v18 = vadd.f32 %v2910_v51, %v1638_v22  ;;  %v1600_v50 = vld [vmem:[%s3292_s4 + $0xb8] sm:$0xff] }
 0x1b5   : > { %v1697_v7 = vadd.f32 %v2910_v51, %v1639_v3  ;;  %v1698_v55 = vadd.f32 %v2910_v51, %v1640_v23  ;;  %v1699_v25 = vadd.f32 %v2910_v51, %v1641_v10  ;;  %v1700_v30 = vadd.f32 %v2910_v51, %v1642_v27  ;;  %v1601_v10 = vld [vmem:[%s3292_s4 + $0xc0] sm:$0xff] }
 0x1b6   : > { %v1745_v31 = vmax.f32 %v1693_v6, 0.0  ;;  %v1746_v21 = vmax.f32 %v1694_v24, 0.0  ;;  %v1747_v26 = vmax.f32 %v1695_v33, 0.0  ;;  %v1748_v34 = vmax.f32 %v1696_v18, 0.0 }
 0x1b7   : > { %v1749_v9 = vmax.f32 %v1697_v7, 0.0  ;;  %v1750_v11 = vmax.f32 %v1698_v55, 0.0  ;;  %v1751_v35 = vmax.f32 %v1699_v25, 0.0  ;;  %v1752_v56 = vmax.f32 %v1700_v30, 0.0  ;;  %v1605_v7 = vld [vmem:[%s3292_s4 + $0xe0] sm:$0xff]  ;;  %v1606_v55 = vld [vmem:[%s3292_s4 + $0xe8] sm:$0xff] }
 0x1b8   : > { %1797 = vst [vmem:[%s3292_s4] sm:$0xff] %v1745_v31  ;;  %1798 = vst [vmem:[%s3292_s4 + $0x8] sm:$0xff] %v1746_v21  ;;  %v1701_v57 = vadd.f32 %v2910_v51, %v1643_v28  ;;  %v1702_v59 = vadd.f32 %v2910_v51, %v1644_v32  ;;  %v1703_v36 = vadd.f32 %v2910_v51, %v1645_v52 }
 0x1b9   : > { %1799 = vst [vmem:[%s3292_s4 + $0x10] sm:$0xff] %v1747_v26  ;;  %1800 = vst [vmem:[%s3292_s4 + $0x18] sm:$0xff] %v1748_v34  ;;  %v1704_v37 = vadd.f32 %v2910_v51, %v1646_v13  ;;  %v1705_v14 = vadd.f32 %v2910_v51, %v1647_v54  ;;  %v1706_v38 = vadd.f32 %v2910_v51, %v1648_v4  ;;  %v1602_v13 = vld [vmem:[%s3292_s4 + $0xc8] sm:$0xff]  ;;  %v1603_v54 = vld [vmem:[%s3292_s4 + $0xd0] sm:$0xff] }
 0x1ba   : > { %1801 = vst [vmem:[%s3292_s4 + $0x20] sm:$0xff] %v1749_v9  ;;  %1802 = vst [vmem:[%s3292_s4 + $0x28] sm:$0xff] %v1750_v11  ;;  %v1649_v15 = vmul.f32 %v2874_v47, %v1591_v29  ;;  %v1650_v39 = vmul.f32 %v2874_v47, %v1592_v8  ;;  %v1753_v62 = vmax.f32 %v1701_v57, 0.0  ;;  %v1754_v42 = vmax.f32 %v1702_v59, 0.0  ;;  %v1604_v4 = vld [vmem:[%s3292_s4 + $0xd8] sm:$0xff]  ;;  %v1607_v9 = vld [vmem:[%s3292_s4 + $0xf0] sm:$0xff] }
 0x1bb   : > { %1803 = vst [vmem:[%s3292_s4 + $0x30] sm:$0xff] %v1751_v35  ;;  %1804 = vst [vmem:[%s3292_s4 + $0x38] sm:$0xff] %v1752_v56  ;;  %v1755_v63 = vmax.f32 %v1703_v36, 0.0  ;;  %v1756_v16 = vmax.f32 %v1704_v37, 0.0  ;;  %v1757_v43 = vmax.f32 %v1705_v14, 0.0  ;;  %v1758_v44 = vmax.f32 %v1706_v38, 0.0 }
 0x1bc   : > { %v1707_v53 = vadd.f32 %v2910_v51, %v1649_v15  ;;  %v1708_v45 = vadd.f32 %v2910_v51, %v1650_v39  ;;  %1805 = vst [vmem:[%s3292_s4 + $0x40] sm:$0xff] %v1753_v62  ;;  %1806 = vst [vmem:[%s3292_s4 + $0x48] sm:$0xff] %v1754_v42  ;;  %v1651_v46 = vmul.f32 %v2874_v47, %v1593_v12  ;;  %v1608_v11 = vld [vmem:[%s3292_s4 + $0xf8] sm:$0xff]  ;;  %v1609_v38 = vld [vmem:[%s3292_s4 + $0x100] sm:$0xff] }
 0x1bd   : > { %1807 = vst [vmem:[%s3292_s4 + $0x50] sm:$0xff] %v1755_v63  ;;  %1808 = vst [vmem:[%s3292_s4 + $0x58] sm:$0xff] %v1756_v16  ;;  %v1652_v58 = vmul.f32 %v2874_v47, %v1594_v40  ;;  %v1653_v48 = vmul.f32 %v2874_v47, %v1595_v41  ;;  %v1654_v49 = vmul.f32 %v2874_v47, %v1596_v60  ;;  %v1610_v60 = vld [vmem:[%s3292_s4 + $0x108] sm:$0xff]  ;;  %v1611_v62 = vld [vmem:[%s3292_s4 + $0x110] sm:$0xff] }
 0x1be   : > { %1809 = vst [vmem:[%s3292_s4 + $0x60] sm:$0xff] %v1757_v43  ;;  %1810 = vst [vmem:[%s3292_s4 + $0x68] sm:$0xff] %v1758_v44  ;;  %v1759_v0 = vmax.f32 %v1707_v53, 0.0  ;;  %v1760_v2 = vmax.f32 %v1708_v45, 0.0  ;;  %v1655_v1 = vmul.f32 %v2874_v47, %v1597_v17  ;;  %v1656_v20 = vmul.f32 %v2874_v47, %v1598_v19  ;;  %v1612_v42 = vld [vmem:[%s3292_s4 + $0x118] sm:$0xff]  ;;  %v1613_v43 = vld [vmem:[%s3292_s4 + $0x120] sm:$0xff] }
 0x1bf   : > { %v1709_v5 = vadd.f32 %v2910_v51, %v1651_v46  ;;  %v1710_v22 = vadd.f32 %v2910_v51, %v1652_v58  ;;  %v1711_v3 = vadd.f32 %v2910_v51, %v1653_v48  ;;  %v1712_v23 = vadd.f32 %v2910_v51, %v1654_v49  ;;  %v1614_v44 = vld [vmem:[%s3292_s4 + $0x128] sm:$0xff] }
 0x1c0   : > { %1811 = vst [vmem:[%s3292_s4 + $0x70] sm:$0xff] %v1759_v0  ;;  %1812 = vst [vmem:[%s3292_s4 + $0x78] sm:$0xff] %v1760_v2  ;;  %v1713_v27 = vadd.f32 %v2910_v51, %v1655_v1  ;;  %v1714_v28 = vadd.f32 %v2910_v51, %v1656_v20  ;;  %v1657_v32 = vmul.f32 %v2874_v47, %v1599_v61  ;;  %v1615_v0 = vld [vmem:[%s3292_s4 + $0x130] sm:$0xff]  ;;  %v1616_v2 = vld [vmem:[%s3292_s4 + $0x138] sm:$0xff] }
 0x1c1   : > { %v1658_v52 = vmul.f32 %v2874_v47, %v1600_v50  ;;  %v1761_v6 = vmax.f32 %v1709_v5, 0.0  ;;  %v1762_v24 = vmax.f32 %v1710_v22, 0.0  ;;  %v1763_v33 = vmax.f32 %v1711_v3, 0.0 }
 0x1c2   : > { %v1764_v18 = vmax.f32 %v1712_v23, 0.0  ;;  %v1765_v25 = vmax.f32 %v1713_v27, 0.0  ;;  %v1766_v30 = vmax.f32 %v1714_v28, 0.0  ;;  %v1715_v31 = vadd.f32 %v2910_v51, %v1657_v32  ;;  %v1617_v28 = vld [vmem:[%s3292_s4 + $0x140] sm:$0xff] }
 0x1c3   : > { %v1716_v21 = vadd.f32 %v2910_v51, %v1658_v52  ;;  %1813 = vst [vmem:[%s3292_s4 + $0x80] sm:$0xff] %v1761_v6  ;;  %1814 = vst [vmem:[%s3292_s4 + $0x88] sm:$0xff] %v1762_v24  ;;  %v1659_v26 = vmul.f32 %v2874_v47, %v1601_v10  ;;  %v1660_v34 = vmul.f32 %v2874_v47, %v1602_v13  ;;  %v1619_v6 = vld [vmem:[%s3292_s4 + $0x150] sm:$0xff]  ;;  %v1620_v24 = vld [vmem:[%s3292_s4 + $0x158] sm:$0xff] }
 0x1c4   : > { %1815 = vst [vmem:[%s3292_s4 + $0x90] sm:$0xff] %v1763_v33  ;;  %1816 = vst [vmem:[%s3292_s4 + $0x98] sm:$0xff] %v1764_v18  ;;  %v1661_v29 = vmul.f32 %v2874_v47, %v1603_v54  ;;  %v1662_v8 = vmul.f32 %v2874_v47, %v1604_v4  ;;  %v1767_v35 = vmax.f32 %v1715_v31, 0.0  ;;  %v1663_v57 = vmul.f32 %v2874_v47, %v1605_v7  ;;  %v1618_v4 = vld [vmem:[%s3292_s4 + $0x148] sm:$0xff] }
 0x1c5   : > { %1817 = vst [vmem:[%s3292_s4 + $0xa0] sm:$0xff] %v1765_v25  ;;  %1818 = vst [vmem:[%s3292_s4 + $0xa8] sm:$0xff] %v1766_v30  ;;  %v1768_v56 = vmax.f32 %v1716_v21, 0.0  ;;  %v1664_v59 = vmul.f32 %v2874_v47, %v1606_v55  ;;  %v1717_v36 = vadd.f32 %v2910_v51, %v1659_v26  ;;  %v1718_v37 = vadd.f32 %v2910_v51, %v1660_v34  ;;  %v1621_v25 = vld [vmem:[%s3292_s4 + $0x160] sm:$0xff]  ;;  %v1622_v30 = vld [vmem:[%s3292_s4 + $0x168] sm:$0xff] }
 0x1c6   : > { %v1719_v12 = vadd.f32 %v2910_v51, %v1661_v29  ;;  %v1720_v14 = vadd.f32 %v2910_v51, %v1662_v8  ;;  %1819 = vst [vmem:[%s3292_s4 + $0xb0] sm:$0xff] %v1767_v35  ;;  %v1721_v15 = vadd.f32 %v2910_v51, %v1663_v57  ;;  %v1665_v40 = vmul.f32 %v2874_v47, %v1607_v9  ;;  %v1623_v35 = vld [vmem:[%s3292_s4 + $0x170] sm:$0xff] }
 0x1c7   : > { %1820 = vst [vmem:[%s3292_s4 + $0xb8] sm:$0xff] %v1768_v56  ;;  %v1722_v39 = vadd.f32 %v2910_v51, %v1664_v59  ;;  %v1666_v41 = vmul.f32 %v2874_v47, %v1608_v11  ;;  %v1769_v63 = vmax.f32 %v1717_v36, 0.0  ;;  %v1770_v16 = vmax.f32 %v1718_v37, 0.0  ;;  %v1624_v56 = vld [vmem:[%s3292_s4 + $0x178] sm:$0xff] }
 0x1c8   : > { %v1771_v17 = vmax.f32 %v1719_v12, 0.0  ;;  %v1772_v19 = vmax.f32 %v1720_v14, 0.0  ;;  %v1773_v53 = vmax.f32 %v1721_v15, 0.0  ;;  %v1723_v46 = vadd.f32 %v2910_v51, %v1665_v40 }
 0x1c9   : > { %v1774_v45 = vmax.f32 %v1722_v39, 0.0  ;;  %v1724_v58 = vadd.f32 %v2910_v51, %v1666_v41  ;;  %1821 = vst [vmem:[%s3292_s4 + $0xc0] sm:$0xff] %v1769_v63  ;;  %1822 = vst [vmem:[%s3292_s4 + $0xc8] sm:$0xff] %v1770_v16  ;;  %v1667_v48 = vmul.f32 %v2874_v47, %v1609_v38  ;;  %v1668_v49 = vmul.f32 %v2874_v47, %v1610_v60  ;;  %v1625_v39 = vld [vmem:[%s3292_s4 + $0x180] sm:$0xff]  ;;  %v1627_v63 = vld [vmem:[%s3292_s4 + $0x190] sm:$0xff] }
 0x1ca   : > { %1823 = vst [vmem:[%s3292_s4 + $0xd0] sm:$0xff] %v1771_v17  ;;  %1824 = vst [vmem:[%s3292_s4 + $0xd8] sm:$0xff] %v1772_v19  ;;  %v1669_v61 = vmul.f32 %v2874_v47, %v1611_v62  ;;  %v1670_v50 = vmul.f32 %v2874_v47, %v1612_v42  ;;  %v1775_v1 = vmax.f32 %v1723_v46, 0.0  ;;  %v1671_v5 = vmul.f32 %v2874_v47, %v1613_v43  ;;  %v1626_v42 = vld [vmem:[%s3292_s4 + $0x188] sm:$0xff]  ;;  %v1628_v16 = vld [vmem:[%s3292_s4 + $0x198] sm:$0xff] }
 0x1cb   : > { %1825 = vst [vmem:[%s3292_s4 + $0xe0] sm:$0xff] %v1773_v53  ;;  %1826 = vst [vmem:[%s3292_s4 + $0xe8] sm:$0xff] %v1774_v45  ;;  %v1776_v20 = vmax.f32 %v1724_v58, 0.0  ;;  %v1672_v22 = vmul.f32 %v2874_v47, %v1614_v44  ;;  %v1725_v3 = vadd.f32 %v2910_v51, %v1667_v48  ;;  %v1726_v23 = vadd.f32 %v2910_v51, %v1668_v49 }
 0x1cc   : > { %v1727_v10 = vadd.f32 %v2910_v51, %v1669_v61  ;;  %v1728_v27 = vadd.f32 %v2910_v51, %v1670_v50  ;;  %1827 = vst [vmem:[%s3292_s4 + $0xf0] sm:$0xff] %v1775_v1  ;;  %v1729_v32 = vadd.f32 %v2910_v51, %v1671_v5  ;;  %v1673_v13 = vmul.f32 %v2874_v47, %v1615_v0 }
 0x1cd   : > { %1828 = vst [vmem:[%s3292_s4 + $0xf8] sm:$0xff] %v1776_v20  ;;  %v1730_v52 = vadd.f32 %v2910_v51, %v1672_v22  ;;  %v1674_v54 = vmul.f32 %v2874_v47, %v1616_v2  ;;  %v1777_v33 = vmax.f32 %v1725_v3, 0.0  ;;  %v1778_v18 = vmax.f32 %v1726_v23, 0.0 }
 0x1ce   : > { %v1779_v7 = vmax.f32 %v1727_v10, 0.0  ;;  %v1780_v55 = vmax.f32 %v1728_v27, 0.0  ;;  %v1781_v31 = vmax.f32 %v1729_v32, 0.0  ;;  %v1731_v26 = vadd.f32 %v2910_v51, %v1673_v13 }
 0x1cf   : > { %v1782_v21 = vmax.f32 %v1730_v52, 0.0  ;;  %v1732_v34 = vadd.f32 %v2910_v51, %v1674_v54  ;;  %1829 = vst [vmem:[%s3292_s4 + $0x100] sm:$0xff] %v1777_v33  ;;  %1830 = vst [vmem:[%s3292_s4 + $0x108] sm:$0xff] %v1778_v18  ;;  %v1675_v29 = vmul.f32 %v2874_v47, %v1617_v28  ;;  %v1676_v8 = vmul.f32 %v2874_v47, %v1618_v4 }
 0x1d0   : > { %1831 = vst [vmem:[%s3292_s4 + $0x110] sm:$0xff] %v1779_v7  ;;  %1832 = vst [vmem:[%s3292_s4 + $0x118] sm:$0xff] %v1780_v55  ;;  %v1677_v9 = vmul.f32 %v2874_v47, %v1619_v6  ;;  %v1678_v11 = vmul.f32 %v2874_v47, %v1620_v24  ;;  %v1783_v57 = vmax.f32 %v1731_v26, 0.0  ;;  %v1679_v36 = vmul.f32 %v2874_v47, %v1621_v25 }
 0x1d1   : > { %1833 = vst [vmem:[%s3292_s4 + $0x120] sm:$0xff] %v1781_v31  ;;  %1834 = vst [vmem:[%s3292_s4 + $0x128] sm:$0xff] %v1782_v21  ;;  %v1784_v59 = vmax.f32 %v1732_v34, 0.0  ;;  %v1680_v37 = vmul.f32 %v2874_v47, %v1622_v30  ;;  %v1733_v12 = vadd.f32 %v2910_v51, %v1675_v29  ;;  %v1734_v14 = vadd.f32 %v2910_v51, %v1676_v8 }
 0x1d2   : > { %v1735_v38 = vadd.f32 %v2910_v51, %v1677_v9  ;;  %v1736_v15 = vadd.f32 %v2910_v51, %v1678_v11  ;;  %1835 = vst [vmem:[%s3292_s4 + $0x130] sm:$0xff] %v1783_v57  ;;  %v1737_v40 = vadd.f32 %v2910_v51, %v1679_v36  ;;  %v1681_v60 = vmul.f32 %v2874_v47, %v1623_v35 }
 0x1d3   : > { %1836 = vst [vmem:[%s3292_s4 + $0x138] sm:$0xff] %v1784_v59  ;;  %v1738_v41 = vadd.f32 %v2910_v51, %v1680_v37  ;;  %v1682_v62 = vmul.f32 %v2874_v47, %v1624_v56  ;;  %v1785_v17 = vmax.f32 %v1733_v12, 0.0  ;;  %v1786_v19 = vmax.f32 %v1734_v14, 0.0 }
 0x1d4   : > { %v1787_v43 = vmax.f32 %v1735_v38, 0.0  ;;  %v1788_v44 = vmax.f32 %v1736_v15, 0.0  ;;  %v1789_v53 = vmax.f32 %v1737_v40, 0.0  ;;  %v1739_v46 = vadd.f32 %v2910_v51, %v1681_v60 }
 0x1d5   : > { %v1790_v45 = vmax.f32 %v1738_v41, 0.0  ;;  %v1740_v58 = vadd.f32 %v2910_v51, %v1682_v62  ;;  %1837 = vst [vmem:[%s3292_s4 + $0x140] sm:$0xff] %v1785_v17  ;;  %1838 = vst [vmem:[%s3292_s4 + $0x148] sm:$0xff] %v1786_v19  ;;  %v1683_v48 = vmul.f32 %v2874_v47, %v1625_v39  ;;  %v1684_v49 = vmul.f32 %v2874_v47, %v1626_v42 }
 0x1d6   : > { %1839 = vst [vmem:[%s3292_s4 + $0x150] sm:$0xff] %v1787_v43  ;;  %1840 = vst [vmem:[%s3292_s4 + $0x158] sm:$0xff] %v1788_v44  ;;  %v1685_v61 = vmul.f32 %v2874_v47, %v1627_v63  ;;  %v1686_v50 = vmul.f32 %v2874_v47, %v1628_v16  ;;  %v1791_v0 = vmax.f32 %v1739_v46, 0.0 }
 0x1d7   : > { %1841 = vst [vmem:[%s3292_s4 + $0x160] sm:$0xff] %v1789_v53  ;;  %1842 = vst [vmem:[%s3292_s4 + $0x168] sm:$0xff] %v1790_v45  ;;  %v1792_v2 = vmax.f32 %v1740_v58, 0.0  ;;  %v1741_v1 = vadd.f32 %v2910_v51, %v1683_v48  ;;  %v1742_v20 = vadd.f32 %v2910_v51, %v1684_v49 }
 0x1d8   : > { %v1743_v5 = vadd.f32 %v2910_v51, %v1685_v61  ;;  %v1744_v22 = vadd.f32 %v2910_v51, %v1686_v50  ;;  %1843 = vst [vmem:[%s3292_s4 + $0x170] sm:$0xff] %v1791_v0 }
 0x1d9   : > { %1844 = vst [vmem:[%s3292_s4 + $0x178] sm:$0xff] %v1792_v2  ;;  %v1793_v47 = vmax.f32 %v1741_v1, 0.0  ;;  %v1794_v3 = vmax.f32 %v1742_v20, 0.0 }
 0x1da   : > { %v1795_v23 = vmax.f32 %v1743_v5, 0.0  ;;  %v1796_v10 = vmax.f32 %v1744_v22, 0.0 }
 0x1db   : > { %1845 = vst [vmem:[%s3292_s4 + $0x180] sm:$0xff] %v1793_v47  ;;  %1846 = vst [vmem:[%s3292_s4 + $0x188] sm:$0xff] %v1794_v3 }
 0x1dc   : > { %1847 = vst [vmem:[%s3292_s4 + $0x190] sm:$0xff] %v1795_v23  ;;  %1848 = vst [vmem:[%s3292_s4 + $0x198] sm:$0xff] %v1796_v10 }
 0x1dd PF: > { %s14_s17 = sadd.s32 1, %s2456_s17   ;;  %s3307_s15 = smov %s2452_s16 }
 0x1de   : > { %p11_p7 = scmp.ge.s32.totalorder %s14_s17, 6   ;;  %s3308_s16 = smov %s3310_s18 }
 0x1e0   :  { %13 = sbr.rel (!%p11_p7) target bundleno = 2 (0x2), region = 84 }

// kernel: generator_forward.9
= control target key start
LH: loop header
LB: loop body
LE: loop exit
PB: predicated region body
PF: predicated region fallthrough
CT: control target
= control target key end

     0   :  { %s2551_s9 = smov 0   ;;  %s2553_s10 = smov 0   ;;  %s2809_s0 = inlined_call_operand.vmem [shape: bf16[4,392,512], index: 0, kind: input, shape index: {}]   ;;  %s2810_s1 = inlined_call_operand.vmem [shape: bf16[4,512,128], index: 1, kind: input, shape index: {}]   ;;  %s2811_s2 = inlined_call_operand.vmem [shape: f32[4,392,128], index: 2, kind: output, shape index: {}]  }
   0x1   :  { %s2555_s11 = smov 0  }
   0x2 LB: > { %s24_s12 = sadd.s32 1, %s2529_s10  ;;  %p1968_p0 = scmp.ge.s32.totalorder %s2533_s11, 1  ;;  %s2533_s11 = sphi %s2555_s11, %s12_s11   ;;  %s2529_s10 = sphi %s2553_s10, %s2813_s10   ;;  %s2525_s9 = sphi %s2551_s9, %s2812_s9  }
   0x3   : > { %p26_p1 = scmp.ge.s32.totalorder %s24_s12, 4  ;;  %p144_p2 = scmp.lt.s32.totalorder %s2533_s11, 5 }
   0x5   : > { %s2815_s12 = smov (%p26_p1, %s24_s12), 0  ;;  %p145_p3 = pnand %p1968_p0, %p144_p2 }
   0x6   : > { %p181_p4 = scmp.lt.s32.totalorder (!%p145_p3), %s2525_s9, 3 }
   0x7   : > { %148 = sbr.rel (%p145_p3) target bundleno = 502 (0x1f6), region = 28 }
   0xc   : > { %v2535_v0 = vmov 0   ;;  %s2817_s9 = smov (!%p181_p4, %s2525_s9), 3 }
   0xd   : > { %1055 = vmatprep.subr.bf16.mxu0 %v2535_v0  ;;  %1287 = vmatprep.subr.bf16.mxu1 %v2535_v0  ;;  %s2107_s13 = sshll.u32 %s2817_s9, 8  ;;  %s2108_s17 = smul.u32 784, %s2817_s9 }
   0xe   : > { %s2577_s16 = scalar_lea.vmem %s2810_s1, %s2107_s13  ;;  %s2109_s21 = smul.u32 392, %s2817_s9 }
   0xf   : > { %v2135_v1 = vld [vmem:[%s2577_s16 + $0x38] sm:$0xff]   ;;  %v2137_v3 = vld [vmem:[%s2577_s16 + $0x30] sm:$0xff]   ;;  %v2139_v5 = vld [vmem:[%s2577_s16 + $0x28] sm:$0xff]   ;;  %s2614_s20 = scalar_lea.vmem %s2809_s0, %s2108_s17 }
  0x10   : > { %v2136_v2 = vld [vmem:[%s2577_s16 + $0xb8] sm:$0xff]   ;;  %1056 = vmatpush1.bf16.msra.mxu0 %v2135_v1  ;;  %v2138_v4 = vld [vmem:[%s2577_s16 + $0xb0] sm:$0xff]   ;;  %v2140_v6 = vld [vmem:[%s2577_s16 + $0xa8] sm:$0xff]   ;;  %s2749_s24 = scalar_lea.vmem %s2811_s2, %s2109_s21 }
  0x11   : > { %1288 = vmatpush1.bf16.msra.mxu1 %v2136_v2  ;;  %1057 = vmatprep.subr.bf16.mxu0 %v2535_v0  ;;  %v2141_v7 = vld [vmem:[%s2577_s16 + $0x20] sm:$0xff]   ;;  %v2143_v9 = vld [vmem:[%s2577_s16 + $0x18] sm:$0xff]   ;;  %v2145_v11 = vld [vmem:[%s2577_s16 + $0x10] sm:$0xff]  }
  0x12   : > { %1289 = vmatprep.subr.bf16.mxu1 %v2535_v0  ;;  %v2142_v8 = vld [vmem:[%s2577_s16 + $0xa0] sm:$0xff]   ;;  %v2144_v10 = vld [vmem:[%s2577_s16 + $0x98] sm:$0xff]   ;;  %v2146_v12 = vld [vmem:[%s2577_s16 + $0x90] sm:$0xff]  }
  0x13   : > { %v2147_v13 = vld [vmem:[%s2577_s16 + $0x8] sm:$0xff]   ;;  %v2149_v15 = vld [vmem:[%s2577_s16] sm:$0xff]   ;;  %v2151_v17 = vld [vmem:[%s2577_s16 + $0x78] sm:$0xff]  }
  0x14   : > { %1058 = vmatpush1.bf16.msra.mxu0 %v2137_v3  ;;  %v2148_v14 = vld [vmem:[%s2577_s16 + $0x88] sm:$0xff]   ;;  %v2150_v16 = vld [vmem:[%s2577_s16 + $0x80] sm:$0xff]   ;;  %v2152_v18 = vld [vmem:[%s2577_s16 + $0xf8] sm:$0xff]  }
  0x15   : > { %1290 = vmatpush1.bf16.msra.mxu1 %v2138_v4  ;;  %1059 = vmatprep.subr.bf16.mxu0 %v2535_v0  ;;  %v2169_v19 = vld [vmem:[%s2614_s20 + $0x4] ss:$16 sps:$4 sm:$0xff]   ;;  %v2172_v21 = vld [vmem:[%s2614_s20 + $0xc] ss:$16 sps:$4 sm:$0xff]   ;;  %v2167_v35 = vld [vmem:[%s2614_s20] ss:$16 sps:$4 sm:$0xff]  }
  0x16   : > { %1291 = vmatprep.subr.bf16.mxu1 %v2535_v0  ;;  %v2153_v20 = vld [vmem:[%s2577_s16 + $0x70] sm:$0xff]   ;;  %1087 = vmatprep.mubr.bf16.mxu0 %v2169_v19  ;;  %v2155_v23 = vld [vmem:[%s2577_s16 + $0x68] sm:$0xff]   ;;  %v2157_v25 = vld [vmem:[%s2577_s16 + $0x60] sm:$0xff]  }
  0x17   : > { %v2154_v22 = vld [vmem:[%s2577_s16 + $0xf0] sm:$0xff]   ;;  %1319 = vmatprep.mubr.bf16.mxu1 %v2172_v21  ;;  %v2156_v24 = vld [vmem:[%s2577_s16 + $0xe8] sm:$0xff]   ;;  %v2158_v26 = vld [vmem:[%s2577_s16 + $0xe0] sm:$0xff]  }
  0x18   : > { %1060 = vmatpush1.bf16.msra.mxu0 %v2139_v5  ;;  %v2159_v27 = vld [vmem:[%s2577_s16 + $0x58] sm:$0xff]   ;;  %v2161_v29 = vld [vmem:[%s2577_s16 + $0x50] sm:$0xff]   ;;  %v2163_v31 = vld [vmem:[%s2577_s16 + $0x48] sm:$0xff]  }
  0x19   : > { %1292 = vmatpush1.bf16.msra.mxu1 %v2140_v6  ;;  %1061 = vmatprep.subr.bf16.mxu0 %v2535_v0  ;;  %v2160_v28 = vld [vmem:[%s2577_s16 + $0xd8] sm:$0xff]   ;;  %v2162_v30 = vld [vmem:[%s2577_s16 + $0xd0] sm:$0xff]   ;;  %v2164_v32 = vld [vmem:[%s2577_s16 + $0xc8] sm:$0xff]  }
  0x1a   : > { %1293 = vmatprep.subr.bf16.mxu1 %v2535_v0  ;;  %v2165_v33 = vld [vmem:[%s2577_s16 + $0x40] sm:$0xff]   ;;  %v2170_v36 = vld [vmem:[%s2614_s20 + $0x8] ss:$16 sps:$4 sm:$0xff]   ;;  %v2175_v38 = vld [vmem:[%s2614_s20 + $0x2c] ss:$16 sps:$4 sm:$0xff]  }
  0x1b   : > { %v2166_v34 = vld [vmem:[%s2577_s16 + $0xc0] sm:$0xff]   ;;  %v2178_v40 = vld [vmem:[%s2614_s20 + $0x28] ss:$16 sps:$4 sm:$0xff]   ;;  %v2181_v42 = vld [vmem:[%s2614_s20 + $0x4c] ss:$16 sps:$4 sm:$0xff]  }
  0x1c   : > { %1062 = vmatpush1.bf16.msra.mxu0 %v2141_v7  ;;  %v2173_v37 = vld [vmem:[%s2614_s20 + $0x24] ss:$16 sps:$4 sm:$0xff]   ;;  %v2177_v39 = vld [vmem:[%s2614_s20 + $0x20] ss:$16 sps:$4 sm:$0xff]   ;;  %v2184_v44 = vld [vmem:[%s2614_s20 + $0x48] ss:$16 sps:$4 sm:$0xff]  }
  0x1d   : > { %1294 = vmatpush1.bf16.msra.mxu1 %v2142_v8  ;;  %1063 = vmatprep.subr.bf16.mxu0 %v2535_v0  ;;  %v2179_v41 = vld [vmem:[%s2614_s20 + $0x44] ss:$16 sps:$4 sm:$0xff]   ;;  %v2183_v43 = vld [vmem:[%s2614_s20 + $0x40] ss:$16 sps:$4 sm:$0xff]   ;;  %v2187_v46 = vld [vmem:[%s2614_s20 + $0x6c] ss:$16 sps:$4 sm:$0xff]  }
  0x1e   : > { %1295 = vmatprep.subr.bf16.mxu1 %v2535_v0  ;;  %v2185_v45 = vld [vmem:[%s2614_s20 + $0x64] ss:$16 sps:$4 sm:$0xff]   ;;  %v2189_v47 = vld [vmem:[%s2614_s20 + $0x60] ss:$16 sps:$4 sm:$0xff]   ;;  %v2190_v48 = vld [vmem:[%s2614_s20 + $0x68] ss:$16 sps:$4 sm:$0xff]  }
  0x1f   : > { %v2191_v49 = vld [vmem:[%s2614_s20 + $0x84] ss:$16 sps:$4 sm:$0xff]   ;;  %v2193_v50 = vld [vmem:[%s2614_s20 + $0x8c] ss:$16 sps:$4 sm:$0xff]   ;;  %v2195_v51 = vld [vmem:[%s2614_s20 + $0x80] ss:$16 sps:$4 sm:$0xff]  }
  0x20   : > { %1064 = vmatpush1.bf16.msra.mxu0 %v2143_v9  ;;  %v2196_v52 = vld [vmem:[%s2614_s20 + $0x88] ss:$16 sps:$4 sm:$0xff]   ;;  %v2197_v53 = vld [vmem:[%s2614_s20 + $0xa4] ss:$16 sps:$4 sm:$0xff]   ;;  %v2199_v54 = vld [vmem:[%s2614_s20 + $0xac] ss:$16 sps:$4 sm:$0xff]  }
  0x21   : > { %1296 = vmatpush1.bf16.msra.mxu1 %v2144_v10  ;;  %1065 = vmatprep.subr.bf16.mxu0 %v2535_v0  ;;  %v2201_v55 = vld [vmem:[%s2614_s20 + $0xa0] ss:$16 sps:$4 sm:$0xff]   ;;  %v2202_v56 = vld [vmem:[%s2614_s20 + $0xa8] ss:$16 sps:$4 sm:$0xff]   ;;  %v2203_v57 = vld [vmem:[%s2614_s20 + $0xc4] ss:$16 sps:$4 sm:$0xff]  }
  0x22   : > { %1297 = vmatprep.subr.bf16.mxu1 %v2535_v0  ;;  %v2205_v58 = vld [vmem:[%s2614_s20 + $0xcc] ss:$16 sps:$4 sm:$0xff]   ;;  %v2207_v59 = vld [vmem:[%s2614_s20 + $0xc0] ss:$16 sps:$4 sm:$0xff]   ;;  %v2208_v60 = vld [vmem:[%s2614_s20 + $0xc8] ss:$16 sps:$4 sm:$0xff]  }
  0x23   : > { %v2209_v61 = vld [vmem:[%s2614_s20 + $0xe4] ss:$16 sps:$4 sm:$0xff]   ;;  %v2211_v62 = vld [vmem:[%s2614_s20 + $0xec] ss:$16 sps:$4 sm:$0xff]   ;;  %v2213_v63 = vld [vmem:[%s2614_s20 + $0xe0] ss:$16 sps:$4 sm:$0xff]  }
  0x24   : > { %1066 = vmatpush1.bf16.msra.mxu0 %v2145_v11  ;;  %v2215_v1 = vld [vmem:[%s2614_s20 + $0x104] ss:$16 sps:$4 sm:$0xff]   ;;  %v2217_v2 = vld [vmem:[%s2614_s20 + $0x10c] ss:$16 sps:$4 sm:$0xff]   ;;  %v2219_v3 = vld [vmem:[%s2614_s20 + $0x100] ss:$16 sps:$4 sm:$0xff]  }
  0x25   : > { %1298 = vmatpush1.bf16.msra.mxu1 %v2146_v12  ;;  %1067 = vmatprep.subr.bf16.mxu0 %v2535_v0  ;;  %v2220_v4 = vld [vmem:[%s2614_s20 + $0x108] ss:$16 sps:$4 sm:$0xff]   ;;  %v2221_v5 = vld [vmem:[%s2614_s20 + $0x124] ss:$16 sps:$4 sm:$0xff]   ;;  %v2223_v6 = vld [vmem:[%s2614_s20 + $0x12c] ss:$16 sps:$4 sm:$0xff]  }
  0x26   : > { %1299 = vmatprep.subr.bf16.mxu1 %v2535_v0  ;;  %v2225_v7 = vld [vmem:[%s2614_s20 + $0x120] ss:$16 sps:$4 sm:$0xff]   ;;  %v2226_v8 = vld [vmem:[%s2614_s20 + $0x128] ss:$16 sps:$4 sm:$0xff]   ;;  %v2227_v9 = vld [vmem:[%s2614_s20 + $0x144] ss:$16 sps:$4 sm:$0xff]  }
  0x27   : > { %v2229_v10 = vld [vmem:[%s2614_s20 + $0x14c] ss:$16 sps:$4 sm:$0xff]   ;;  %v2231_v11 = vld [vmem:[%s2614_s20 + $0x140] ss:$16 sps:$4 sm:$0xff]   ;;  %v2232_v12 = vld [vmem:[%s2614_s20 + $0x148] ss:$16 sps:$4 sm:$0xff]  }
  0x28   : > { %1068 = vmatpush1.bf16.msra.mxu0 %v2147_v13  ;;  %v2233_v13 = vld [vmem:[%s2614_s20 + $0x164] ss:$16 sps:$4 sm:$0xff]   ;;  %v2243_v19 = vld [vmem:[%s2614_s20 + $0x180] ss:$16 sps:$4 sm:$0xff]  }
  0x29   : > { %1300 = vmatpush1.bf16.msra.mxu1 %v2148_v14  ;;  %1069 = vmatprep.subr.bf16.mxu0 %v2535_v0  ;;  %v2235_v14 = vld [vmem:[%s2614_s20 + $0x16c] ss:$16 sps:$4 sm:$0xff]   ;;  %v2245_v21 = vld [vmem:[%s2614_s20 + $0x1a4] ss:$16 sps:$4 sm:$0xff]  }
  0x2a   : > { %1301 = vmatprep.subr.bf16.mxu1 %v2535_v0 }
  0x2c   : > { %1070 = vmatpush1.bf16.msra.mxu0 %v2149_v15  ;;  %v2237_v15 = vld [vmem:[%s2614_s20 + $0x160] ss:$16 sps:$4 sm:$0xff]  }
  0x2d   : > { %1302 = vmatpush1.bf16.msra.mxu1 %v2150_v16  ;;  %1071 = vmatprep.subr.bf16.mxu0 %v2535_v0  ;;  %v2238_v16 = vld [vmem:[%s2614_s20 + $0x168] ss:$16 sps:$4 sm:$0xff]  }
  0x2e   : > { %1303 = vmatprep.subr.bf16.mxu1 %v2535_v0 }
  0x30   : > { %1072 = vmatpush2.bf16.msra.mxu0 %v2151_v17  ;;  %v2239_v17 = vld [vmem:[%s2614_s20 + $0x184] ss:$16 sps:$4 sm:$0xff]  }
  0x31   : > { %1304 = vmatpush2.bf16.msra.mxu1 %v2152_v18  ;;  %1073 = vmatprep.subr.bf16.mxu0 %v2535_v0  ;;  %v2241_v18 = vld [vmem:[%s2614_s20 + $0x18c] ss:$16 sps:$4 sm:$0xff]  }
  0x32   : > { %1305 = vmatprep.subr.bf16.mxu1 %v2535_v0 }
  0x34   : > { %1074 = vmatpush2.bf16.msra.mxu0 %v2153_v20  ;;  %v2244_v20 = vld [vmem:[%s2614_s20 + $0x188] ss:$16 sps:$4 sm:$0xff]  }
  0x35   : > { %1306 = vmatpush2.bf16.msra.mxu1 %v2154_v22  ;;  %1075 = vmatprep.subr.bf16.mxu0 %v2535_v0  ;;  %v2247_v22 = vld [vmem:[%s2614_s20 + $0x1ac] ss:$16 sps:$4 sm:$0xff]  }
  0x36   : > { %1307 = vmatprep.subr.bf16.mxu1 %v2535_v0 }
  0x38   : > { %1076 = vmatpush2.bf16.msra.mxu0 %v2155_v23  ;;  %v2249_v23 = vld [vmem:[%s2614_s20 + $0x1a0] ss:$16 sps:$4 sm:$0xff]  }
  0x39   : > { %1308 = vmatpush2.bf16.msra.mxu1 %v2156_v24  ;;  %1077 = vmatprep.subr.bf16.mxu0 %v2535_v0  ;;  %v2250_v24 = vld [vmem:[%s2614_s20 + $0x1a8] ss:$16 sps:$4 sm:$0xff]  }
  0x3a   : > { %1309 = vmatprep.subr.bf16.mxu1 %v2535_v0 }
  0x3c   : > { %1078 = vmatpush2.bf16.msra.mxu0 %v2157_v25  ;;  %v2251_v25 = vld [vmem:[%s2614_s20 + $0x1c4] ss:$16 sps:$4 sm:$0xff]  }
  0x3d   : > { %1310 = vmatpush2.bf16.msra.mxu1 %v2158_v26  ;;  %1079 = vmatprep.subr.bf16.mxu0 %v2535_v0  ;;  %v2253_v26 = vld [vmem:[%s2614_s20 + $0x1cc] ss:$16 sps:$4 sm:$0xff]  }
  0x3e   : > { %1311 = vmatprep.subr.bf16.mxu1 %v2535_v0 }
  0x40   : > { %1080 = vmatpush2.bf16.msra.mxu0 %v2159_v27  ;;  %v2255_v27 = vld [vmem:[%s2614_s20 + $0x1c0] ss:$16 sps:$4 sm:$0xff]  }
  0x41   : > { %1312 = vmatpush2.bf16.msra.mxu1 %v2160_v28  ;;  %1081 = vmatprep.subr.bf16.mxu0 %v2535_v0  ;;  %v2256_v28 = vld [vmem:[%s2614_s20 + $0x1c8] ss:$16 sps:$4 sm:$0xff]  }
  0x42   : > { %1313 = vmatprep.subr.bf16.mxu1 %v2535_v0 }
  0x44   : > { %1082 = vmatpush2.bf16.msra.mxu0 %v2161_v29  ;;  %v2257_v29 = vld [vmem:[%s2614_s20 + $0x1e4] ss:$16 sps:$4 sm:$0xff]  }
  0x45   : > { %1314 = vmatpush2.bf16.msra.mxu1 %v2162_v30  ;;  %1083 = vmatprep.subr.bf16.mxu0 %v2535_v0  ;;  %v2259_v30 = vld [vmem:[%s2614_s20 + $0x1ec] ss:$16 sps:$4 sm:$0xff]  }
  0x46   : > { %1315 = vmatprep.subr.bf16.mxu1 %v2535_v0 }
  0x48   : > { %1084 = vmatpush2.bf16.msra.mxu0 %v2163_v31  ;;  %v2261_v31 = vld [vmem:[%s2614_s20 + $0x1e0] ss:$16 sps:$4 sm:$0xff]  }
  0x49   : > { %1316 = vmatpush2.bf16.msra.mxu1 %v2164_v32  ;;  %1085 = vmatprep.subr.bf16.mxu0 %v2535_v0  ;;  %v2262_v32 = vld [vmem:[%s2614_s20 + $0x1e8] ss:$16 sps:$4 sm:$0xff]  }
  0x4a   : > { %1317 = vmatprep.subr.bf16.mxu1 %v2535_v0  ;;  %v2214_v0 = vld [vmem:[%s2614_s20 + $0xe8] ss:$16 sps:$4 sm:$0xff]  }
  0x4c   : > { %1086 = vmatpush2.bf16.msra.mxu0 %v2165_v33  ;;  %v2263_v33 = vld [vmem:[%s2614_s20 + $0x204] ss:$16 sps:$4 sm:$0xff]  }
  0x4d   : > { %1318 = vmatpush2.bf16.msra.mxu1 %v2166_v34  ;;  %v2265_v34 = vld [vmem:[%s2614_s20 + $0x20c] ss:$16 sps:$4 sm:$0xff]  }
  0x4f   : > { %1088 = vmatmul.mubr.bf16.vlgmr.msra.gmra.mxu0 %v2167_v35  ;;  %v2267_v35 = vld [vmem:[%s2614_s20 + $0x200] ss:$16 sps:$4 sm:$0xff]  }
  0x50   : > { %1320 = vmatmul.mubr.bf16.vlgmr.msra.gmra.mxu1 %v2170_v36  ;;  %1095 = vmatprep.mubr.bf16.mxu0 %v2173_v37  ;;  %v2268_v36 = vld [vmem:[%s2614_s20 + $0x208] ss:$16 sps:$4 sm:$0xff]   ;;  %v2269_v37 = vld [vmem:[%s2614_s20 + $0x224] ss:$16 sps:$4 sm:$0xff]  }
  0x51   : > { %1327 = vmatprep.mubr.bf16.mxu1 %v2175_v38  ;;  %v2271_v38 = vld [vmem:[%s2614_s20 + $0x22c] ss:$16 sps:$4 sm:$0xff]  }
  0x57   : > { %1096 = vmatmul.mubr.bf16.gmra.mxu0 %v2177_v39  ;;  %v2273_v39 = vld [vmem:[%s2614_s20 + $0x220] ss:$16 sps:$4 sm:$0xff]  }
  0x58   : > { %1328 = vmatmul.mubr.bf16.gmra.mxu1 %v2178_v40  ;;  %1103 = vmatprep.mubr.bf16.mxu0 %v2179_v41  ;;  %v2274_v40 = vld [vmem:[%s2614_s20 + $0x228] ss:$16 sps:$4 sm:$0xff]   ;;  %v2275_v41 = vld [vmem:[%s2614_s20 + $0x244] ss:$16 sps:$4 sm:$0xff]  }
  0x59   : > { %1335 = vmatprep.mubr.bf16.mxu1 %v2181_v42  ;;  %v2277_v42 = vld [vmem:[%s2614_s20 + $0x24c] ss:$16 sps:$4 sm:$0xff]  }
  0x5f   : > { %1104 = vmatmul.mubr.bf16.gmra.mxu0 %v2183_v43  ;;  %v2279_v43 = vld [vmem:[%s2614_s20 + $0x240] ss:$16 sps:$4 sm:$0xff]  }
  0x60   : > { %1336 = vmatmul.mubr.bf16.gmra.mxu1 %v2184_v44  ;;  %1111 = vmatprep.mubr.bf16.mxu0 %v2185_v45  ;;  %v2280_v44 = vld [vmem:[%s2614_s20 + $0x248] ss:$16 sps:$4 sm:$0xff]   ;;  %v2281_v45 = vld [vmem:[%s2614_s20 + $0x264] ss:$16 sps:$4 sm:$0xff]  }
  0x61   : > { %1343 = vmatprep.mubr.bf16.mxu1 %v2187_v46  ;;  %v2283_v46 = vld [vmem:[%s2614_s20 + $0x26c] ss:$16 sps:$4 sm:$0xff]  }
  0x67   : > { %1112 = vmatmul.mubr.bf16.gmra.mxu0 %v2189_v47  ;;  %v2285_v47 = vld [vmem:[%s2614_s20 + $0x260] ss:$16 sps:$4 sm:$0xff]  }
  0x68   : > { %1344 = vmatmul.mubr.bf16.gmra.mxu1 %v2190_v48  ;;  %1119 = vmatprep.mubr.bf16.mxu0 %v2191_v49  ;;  %v2286_v48 = vld [vmem:[%s2614_s20 + $0x268] ss:$16 sps:$4 sm:$0xff]   ;;  %v2287_v49 = vld [vmem:[%s2614_s20 + $0x284] ss:$16 sps:$4 sm:$0xff]  }
  0x69   : > { %1351 = vmatprep.mubr.bf16.mxu1 %v2193_v50  ;;  %v2289_v50 = vld [vmem:[%s2614_s20 + $0x28c] ss:$16 sps:$4 sm:$0xff]  }
  0x6f   : > { %1120 = vmatmul.mubr.bf16.gmra.mxu0 %v2195_v51  ;;  %v2291_v51 = vld [vmem:[%s2614_s20 + $0x280] ss:$16 sps:$4 sm:$0xff]  }
  0x70   : > { %1352 = vmatmul.mubr.bf16.gmra.mxu1 %v2196_v52  ;;  %1127 = vmatprep.mubr.bf16.mxu0 %v2197_v53  ;;  %v2292_v52 = vld [vmem:[%s2614_s20 + $0x288] ss:$16 sps:$4 sm:$0xff]   ;;  %v2293_v53 = vld [vmem:[%s2614_s20 + $0x2a4] ss:$16 sps:$4 sm:$0xff]  }
  0x71   : > { %1359 = vmatprep.mubr.bf16.mxu1 %v2199_v54  ;;  %v2295_v54 = vld [vmem:[%s2614_s20 + $0x2ac] ss:$16 sps:$4 sm:$0xff]  }
  0x77   : > { %1128 = vmatmul.mubr.bf16.gmra.mxu0 %v2201_v55  ;;  %v2297_v55 = vld [vmem:[%s2614_s20 + $0x2a0] ss:$16 sps:$4 sm:$0xff]  }
  0x78   : > { %1360 = vmatmul.mubr.bf16.gmra.mxu1 %v2202_v56  ;;  %1135 = vmatprep.mubr.bf16.mxu0 %v2203_v57  ;;  %v2298_v56 = vld [vmem:[%s2614_s20 + $0x2a8] ss:$16 sps:$4 sm:$0xff]   ;;  %v2299_v57 = vld [vmem:[%s2614_s20 + $0x2c4] ss:$16 sps:$4 sm:$0xff]  }
  0x79   : > { %1367 = vmatprep.mubr.bf16.mxu1 %v2205_v58  ;;  %v2301_v58 = vld [vmem:[%s2614_s20 + $0x2cc] ss:$16 sps:$4 sm:$0xff]  }
  0x7f   : > { %1136 = vmatmul.mubr.bf16.gmra.mxu0 %v2207_v59  ;;  %v2303_v59 = vld [vmem:[%s2614_s20 + $0x2c0] ss:$16 sps:$4 sm:$0xff]  }
  0x80   : > { %1368 = vmatmul.mubr.bf16.gmra.mxu1 %v2208_v60  ;;  %1143 = vmatprep.mubr.bf16.mxu0 %v2209_v61  ;;  %v2304_v60 = vld [vmem:[%s2614_s20 + $0x2c8] ss:$16 sps:$4 sm:$0xff]   ;;  %v2305_v61 = vld [vmem:[%s2614_s20 + $0x2e4] ss:$16 sps:$4 sm:$0xff]  }
  0x81   : > { %1375 = vmatprep.mubr.bf16.mxu1 %v2211_v62  ;;  %v2307_v62 = vld [vmem:[%s2614_s20 + $0x2ec] ss:$16 sps:$4 sm:$0xff]  }
  0x87   : > { %1144 = vmatmul.mubr.bf16.gmra.mxu0 %v2213_v63  ;;  %v303_v63 = vld [vmem:[%s2614_s20 + $0x300] sm:$0xff] }
  0x88   : > { %1376 = vmatmul.mubr.bf16.gmra.mxu1 %v2214_v0  ;;  %1151 = vmatprep.mubr.bf16.mxu0 %v2215_v1  ;;  %v304_v0 = vld [vmem:[%s2614_s20 + $0x308] sm:$0xff]  ;;  %v2309_v1 = vld [vmem:[%s2614_s20 + $0x2e0] ss:$16 sps:$4 sm:$0xff]  }
  0x89   : > { %1383 = vmatprep.mubr.bf16.mxu1 %v2217_v2  ;;  %v2310_v2 = vld [vmem:[%s2614_s20 + $0x2e8] ss:$16 sps:$4 sm:$0xff]  }
  0x8f   : > { %1152 = vmatmul.mubr.bf16.gmra.mxu0 %v2219_v3  ;;  %v2070_v3 = vcombine.high %v303_v63, %v303_v63 }
  0x90   : > { %1384 = vmatmul.mubr.bf16.gmra.mxu1 %v2220_v4  ;;  %1159 = vmatprep.mubr.bf16.mxu0 %v2221_v5  ;;  %v2072_v4 = vcombine.high %v304_v0, %v304_v0  ;;  %v2069_v5 = vcombine.low %v303_v63, %v303_v63 }
  0x91   : > { %1391 = vmatprep.mubr.bf16.mxu1 %v2223_v6  ;;  %v2071_v6 = vcombine.low %v304_v0, %v304_v0 }
  0x97   : > { %1160 = vmatmul.mubr.bf16.gmra.mxu0 %v2225_v7 }
  0x98   : > { %1392 = vmatmul.mubr.bf16.gmra.mxu1 %v2226_v8  ;;  %1167 = vmatprep.mubr.bf16.mxu0 %v2227_v9 }
  0x99   : > { %1399 = vmatprep.mubr.bf16.mxu1 %v2229_v10 }
  0x9f   : > { %1168 = vmatmul.mubr.bf16.gmra.mxu0 %v2231_v11 }
  0xa0   : > { %1400 = vmatmul.mubr.bf16.gmra.mxu1 %v2232_v12  ;;  %1175 = vmatprep.mubr.bf16.mxu0 %v2233_v13 }
  0xa1   : > { %1407 = vmatprep.mubr.bf16.mxu1 %v2235_v14 }
  0xa7   : > { %1176 = vmatmul.mubr.bf16.gmra.mxu0 %v2237_v15 }
  0xa8   : > { %1408 = vmatmul.mubr.bf16.gmra.mxu1 %v2238_v16  ;;  %1183 = vmatprep.mubr.bf16.mxu0 %v2239_v17 }
  0xa9   : > { %1415 = vmatprep.mubr.bf16.mxu1 %v2241_v18 }
  0xaf   : > { %1184 = vmatmul.mubr.bf16.gmra.mxu0 %v2243_v19 }
  0xb0   : > { %1416 = vmatmul.mubr.bf16.gmra.mxu1 %v2244_v20  ;;  %1191 = vmatprep.mubr.bf16.mxu0 %v2245_v21 }
  0xb1   : > { %1423 = vmatprep.mubr.bf16.mxu1 %v2247_v22 }
  0xb7   : > { %1192 = vmatmul.mubr.bf16.gmra.mxu0 %v2249_v23 }
  0xb8   : > { %1424 = vmatmul.mubr.bf16.gmra.mxu1 %v2250_v24  ;;  %1199 = vmatprep.mubr.bf16.mxu0 %v2251_v25 }
  0xb9   : > { %1431 = vmatprep.mubr.bf16.mxu1 %v2253_v26 }
  0xbf   : > { %1200 = vmatmul.mubr.bf16.gmra.mxu0 %v2255_v27 }
  0xc0   : > { %1432 = vmatmul.mubr.bf16.gmra.mxu1 %v2256_v28  ;;  %1207 = vmatprep.mubr.bf16.mxu0 %v2257_v29 }
  0xc1   : > { %1439 = vmatprep.mubr.bf16.mxu1 %v2259_v30 }
  0xc7   : > { %1208 = vmatmul.mubr.bf16.gmra.mxu0 %v2261_v31 }
  0xc8   : > { %1440 = vmatmul.mubr.bf16.gmra.mxu1 %v2262_v32  ;;  %1215 = vmatprep.mubr.bf16.mxu0 %v2263_v33 }
  0xc9   : > { %1447 = vmatprep.mubr.bf16.mxu1 %v2265_v34 }
  0xcf   : > { %1216 = vmatmul.mubr.bf16.gmra.mxu0 %v2267_v35 }
  0xd0   : > { %1448 = vmatmul.mubr.bf16.gmra.mxu1 %v2268_v36  ;;  %1223 = vmatprep.mubr.bf16.mxu0 %v2269_v37 }
  0xd1   : > { %1455 = vmatprep.mubr.bf16.mxu1 %v2271_v38 }
  0xd7   : > { %1224 = vmatmul.mubr.bf16.gmra.mxu0 %v2273_v39 }
  0xd8   : > { %1456 = vmatmul.mubr.bf16.gmra.mxu1 %v2274_v40  ;;  %1231 = vmatprep.mubr.bf16.mxu0 %v2275_v41 }
  0xd9   : > { %1463 = vmatprep.mubr.bf16.mxu1 %v2277_v42 }
  0xdf   : > { %1232 = vmatmul.mubr.bf16.gmra.mxu0 %v2279_v43 }
  0xe0   : > { %1464 = vmatmul.mubr.bf16.gmra.mxu1 %v2280_v44  ;;  %1239 = vmatprep.mubr.bf16.mxu0 %v2281_v45 }
  0xe1   : > { %1471 = vmatprep.mubr.bf16.mxu1 %v2283_v46 }
  0xe7   : > { %1240 = vmatmul.mubr.bf16.gmra.mxu0 %v2285_v47 }
  0xe8   : > { %1472 = vmatmul.mubr.bf16.gmra.mxu1 %v2286_v48  ;;  %1247 = vmatprep.mubr.bf16.mxu0 %v2287_v49 }
  0xe9   : > { %1479 = vmatprep.mubr.bf16.mxu1 %v2289_v50 }
  0xef   : > { %1248 = vmatmul.mubr.bf16.gmra.mxu0 %v2291_v51 }
  0xf0   : > { %1480 = vmatmul.mubr.bf16.gmra.mxu1 %v2292_v52  ;;  %1255 = vmatprep.mubr.bf16.mxu0 %v2293_v53 }
  0xf1   : > { %1487 = vmatprep.mubr.bf16.mxu1 %v2295_v54 }
  0xf7   : > { %1256 = vmatmul.mubr.bf16.gmra.mxu0 %v2297_v55 }
  0xf8   : > { %1488 = vmatmul.mubr.bf16.gmra.mxu1 %v2298_v56  ;;  %1263 = vmatprep.mubr.bf16.mxu0 %v2299_v57 }
  0xf9   : > { %1495 = vmatprep.mubr.bf16.mxu1 %v2301_v58 }
  0xff   : > { %1264 = vmatmul.mubr.bf16.gmra.mxu0 %v2303_v59 }
 0x100   : > { %1496 = vmatmul.mubr.bf16.gmra.mxu1 %v2304_v60  ;;  %1271 = vmatprep.mubr.bf16.mxu0 %v2305_v61 }
 0x101   : > { %1503 = vmatprep.mubr.bf16.mxu1 %v2307_v62 }
 0x107   : > { %1272 = vmatmul.mubr.bf16.gmra.mxu0 %v2309_v1 }
 0x108   : > { %1504 = vmatmul.mubr.bf16.gmra.mxu1 %v2310_v2  ;;  %1279 = vmatprep.mubr.bf16.mxu0 %v2070_v3 }
 0x109   : > { %1511 = vmatprep.mubr.bf16.mxu1 %v2072_v4 }
 0x10f   : > { %v1089_v7 = vpop.f32.mrf.mxu0  ;;  %1280 = vmatmul.mubr.bf16.gmra.mxu0 %v2069_v5 }
 0x110   : > { %v1321_v8 = vpop.f32.mrf.mxu1  ;;  %1512 = vmatmul.mubr.bf16.gmra.mxu1 %v2071_v6 }
 0x111   : > { %v1322_v9 = vadd.f32 %v1321_v8, %v1089_v7  ;;  %v1091_v10 = vpop.f32.mrf.mxu0 }
 0x112   : > { %v1323_v11 = vpop.f32.mrf.mxu1 }
 0x113   : > { %v1519_v12 = vsub.f32 0.0, %v1322_v9  ;;  %v1092_v13 = vpop.f32.mrf.mxu0 }
 0x114   : > { %v1324_v14 = vpop.f32.mrf.mxu1 }
 0x115   : > { %v1568_v15 = vmul.f32 1.442695, %v1519_v12  ;;  %v1325_v16 = vadd.f32 %v1324_v14, %v1092_v13  ;;  %v1094_v17 = vpop.f32.mrf.mxu0 }
 0x116   : > { %v1326_v18 = vpop.f32.mrf.mxu1 }
 0x117   : > { %2315 = vpow2.f32 %v1568_v15  ;;  %v1520_v19 = vsub.f32 0.0, %v1325_v16  ;;  %v1097_v20 = vpop.f32.mrf.mxu0 }
 0x118   : > { %v1329_v21 = vpop.f32.mrf.mxu1 }
 0x119   : > { %v1570_v22 = vmul.f32 1.442695, %v1520_v19  ;;  %v1330_v23 = vadd.f32 %v1329_v21, %v1097_v20  ;;  %v1099_v24 = vpop.f32.mrf.mxu0 }
 0x11a   : > { %v1331_v25 = vpop.f32.mrf.mxu1 }
 0x11b   : > { %2317 = vpow2.f32 %v1570_v22  ;;  %v1521_v26 = vsub.f32 0.0, %v1330_v23  ;;  %v1100_v27 = vpop.f32.mrf.mxu0 }
 0x11c   : > { %v1332_v28 = vpop.f32.mrf.mxu1 }
 0x11d   : > { %v1572_v29 = vmul.f32 1.442695, %v1521_v26  ;;  %v1333_v30 = vadd.f32 %v1332_v28, %v1100_v27  ;;  %v1102_v31 = vpop.f32.mrf.mxu0 }
 0x11e   : > { %v1334_v32 = vpop.f32.mrf.mxu1 }
 0x11f   : > { %2319 = vpow2.f32 %v1572_v29  ;;  %v1522_v33 = vsub.f32 0.0, %v1333_v30  ;;  %v1105_v34 = vpop.f32.mrf.mxu0 }
 0x120   : > { %v1337_v35 = vpop.f32.mrf.mxu1 }
 0x121   : > { %v1574_v36 = vmul.f32 1.442695, %v1522_v33  ;;  %v1338_v37 = vadd.f32 %v1337_v35, %v1105_v34  ;;  %v1107_v38 = vpop.f32.mrf.mxu0 }
 0x122   : > { %v1339_v39 = vpop.f32.mrf.mxu1 }
 0x123   : > { %2321 = vpow2.f32 %v1574_v36  ;;  %v1523_v40 = vsub.f32 0.0, %v1338_v37  ;;  %v1108_v41 = vpop.f32.mrf.mxu0 }
 0x124   : > { %v2316_v42 = vpop.eup %2315  ;;  %v1340_v43 = vpop.f32.mrf.mxu1 }
 0x125   : > { %v1666_v44 = vadd.f32 1.0, %v2316_v42  ;;  %v1576_v45 = vmul.f32 1.442695, %v1523_v40  ;;  %v1341_v46 = vadd.f32 %v1340_v43, %v1108_v41  ;;  %v1110_v47 = vpop.f32.mrf.mxu0 }
 0x126   : > { %v1342_v48 = vpop.f32.mrf.mxu1 }
 0x127   : > { %2323 = vrcp.f32 %v1666_v44  ;;  %v1524_v49 = vsub.f32 0.0, %v1341_v46  ;;  %v1113_v50 = vpop.f32.mrf.mxu0 }
 0x128   : > { %v2318_v51 = vpop.eup %2317  ;;  %2325 = vpow2.f32 %v1576_v45  ;;  %v1345_v52 = vpop.f32.mrf.mxu1 }
 0x129   : > { %v1667_v53 = vadd.f32 1.0, %v2318_v51  ;;  %v1578_v54 = vmul.f32 1.442695, %v1524_v49  ;;  %v1346_v55 = vadd.f32 %v1345_v52, %v1113_v50  ;;  %v1115_v56 = vpop.f32.mrf.mxu0 }
 0x12a   : > { %v1347_v57 = vpop.f32.mrf.mxu1 }
 0x12b   : > { %2327 = vrcp.f32 %v1667_v53  ;;  %v1525_v58 = vsub.f32 0.0, %v1346_v55  ;;  %v1116_v59 = vpop.f32.mrf.mxu0 }
 0x12c   : > { %v2320_v60 = vpop.eup %2319  ;;  %2329 = vpow2.f32 %v1578_v54  ;;  %v1348_v61 = vpop.f32.mrf.mxu1 }
 0x12d   : > { %v1668_v62 = vadd.f32 1.0, %v2320_v60  ;;  %v1580_v63 = vmul.f32 1.442695, %v1525_v58  ;;  %v1349_v0 = vadd.f32 %v1348_v61, %v1116_v59  ;;  %v1118_v1 = vpop.f32.mrf.mxu0 }
 0x12e   : > { %v1350_v2 = vpop.f32.mrf.mxu1 }
 0x12f   : > { %2331 = vrcp.f32 %v1668_v62  ;;  %v1526_v3 = vsub.f32 0.0, %v1349_v0  ;;  %v1121_v4 = vpop.f32.mrf.mxu0 }
 0x130   : > { %v2322_v5 = vpop.eup %2321  ;;  %2333 = vpow2.f32 %v1580_v63  ;;  %v1353_v6 = vpop.f32.mrf.mxu1 }
 0x131   : > { %v1669_v7 = vadd.f32 1.0, %v2322_v5  ;;  %v1582_v8 = vmul.f32 1.442695, %v1526_v3  ;;  %v1354_v9 = vadd.f32 %v1353_v6, %v1121_v4  ;;  %v1123_v10 = vpop.f32.mrf.mxu0 }
 0x132   : > { %v1355_v11 = vpop.f32.mrf.mxu1 }
 0x133   : > { %2335 = vrcp.f32 %v1669_v7  ;;  %v1527_v12 = vsub.f32 0.0, %v1354_v9  ;;  %v1124_v13 = vpop.f32.mrf.mxu0 }
 0x134   : > { %v2324_v14 = vpop.eup %2323  ;;  %2337 = vpow2.f32 %v1582_v8  ;;  %v1356_v15 = vpop.f32.mrf.mxu1 }
 0x135   : > { %v2326_v16 = vpop.eup %2325  ;;  %1813 = vst [vmem:[%s2749_s24] sm:$0xff] %v2324_v14  ;;  %v1584_v17 = vmul.f32 1.442695, %v1527_v12  ;;  %v1357_v18 = vadd.f32 %v1356_v15, %v1124_v13  ;;  %v1126_v19 = vpop.f32.mrf.mxu0 }
 0x136   : > { %v1670_v20 = vadd.f32 1.0, %v2326_v16  ;;  %v1358_v21 = vpop.f32.mrf.mxu1 }
 0x137   : > { %2339 = vpow2.f32 %v1584_v17  ;;  %v1528_v22 = vsub.f32 0.0, %v1357_v18  ;;  %v1129_v23 = vpop.f32.mrf.mxu0 }
 0x138   : > { %v2328_v24 = vpop.eup %2327  ;;  %2341 = vrcp.f32 %v1670_v20  ;;  %v1361_v25 = vpop.f32.mrf.mxu1 }
 0x139   : > { %v2330_v26 = vpop.eup %2329  ;;  %1814 = vst [vmem:[%s2749_s24 + $0x8] sm:$0xff] %v2328_v24  ;;  %v1586_v27 = vmul.f32 1.442695, %v1528_v22  ;;  %v1362_v28 = vadd.f32 %v1361_v25, %v1129_v23  ;;  %v1131_v29 = vpop.f32.mrf.mxu0 }
 0x13a   : > { %v1671_v30 = vadd.f32 1.0, %v2330_v26  ;;  %v1363_v31 = vpop.f32.mrf.mxu1 }
 0x13b   : > { %2343 = vpow2.f32 %v1586_v27  ;;  %v1529_v32 = vsub.f32 0.0, %v1362_v28  ;;  %v1132_v33 = vpop.f32.mrf.mxu0 }
 0x13c   : > { %v2332_v34 = vpop.eup %2331  ;;  %2345 = vrcp.f32 %v1671_v30  ;;  %v1364_v35 = vpop.f32.mrf.mxu1 }
 0x13d   : > { %v2334_v36 = vpop.eup %2333  ;;  %1815 = vst [vmem:[%s2749_s24 + $0x10] sm:$0xff] %v2332_v34  ;;  %v1588_v37 = vmul.f32 1.442695, %v1529_v32  ;;  %v1365_v38 = vadd.f32 %v1364_v35, %v1132_v33  ;;  %v1134_v39 = vpop.f32.mrf.mxu0 }
 0x13e   : > { %v1672_v40 = vadd.f32 1.0, %v2334_v36  ;;  %v1366_v41 = vpop.f32.mrf.mxu1 }
 0x13f   : > { %2347 = vpow2.f32 %v1588_v37  ;;  %v1530_v42 = vsub.f32 0.0, %v1365_v38  ;;  %v1137_v43 = vpop.f32.mrf.mxu0 }
 0x140   : > { %v2336_v44 = vpop.eup %2335  ;;  %2349 = vrcp.f32 %v1672_v40  ;;  %v1369_v45 = vpop.f32.mrf.mxu1 }
 0x141   : > { %v2338_v46 = vpop.eup %2337  ;;  %1816 = vst [vmem:[%s2749_s24 + $0x18] sm:$0xff] %v2336_v44  ;;  %v1590_v47 = vmul.f32 1.442695, %v1530_v42  ;;  %v1370_v48 = vadd.f32 %v1369_v45, %v1137_v43  ;;  %v1139_v49 = vpop.f32.mrf.mxu0 }
 0x142   : > { %v1673_v50 = vadd.f32 1.0, %v2338_v46  ;;  %v1371_v51 = vpop.f32.mrf.mxu1 }
 0x143   : > { %2351 = vpow2.f32 %v1590_v47  ;;  %v1531_v52 = vsub.f32 0.0, %v1370_v48  ;;  %v1140_v53 = vpop.f32.mrf.mxu0 }
 0x144   : > { %v2340_v54 = vpop.eup %2339  ;;  %2353 = vrcp.f32 %v1673_v50  ;;  %v1372_v55 = vpop.f32.mrf.mxu1 }
 0x145   : > { %v2342_v56 = vpop.eup %2341  ;;  %v1674_v57 = vadd.f32 1.0, %v2340_v54  ;;  %v1592_v58 = vmul.f32 1.442695, %v1531_v52  ;;  %v1373_v59 = vadd.f32 %v1372_v55, %v1140_v53  ;;  %v1142_v60 = vpop.f32.mrf.mxu0 }
 0x146   : > { %1817 = vst [vmem:[%s2749_s24 + $0x20] sm:$0xff] %v2342_v56  ;;  %v1374_v61 = vpop.f32.mrf.mxu1 }
 0x147   : > { %2355 = vrcp.f32 %v1674_v57  ;;  %v1532_v62 = vsub.f32 0.0, %v1373_v59  ;;  %v1145_v63 = vpop.f32.mrf.mxu0 }
 0x148   : > { %v2344_v0 = vpop.eup %2343  ;;  %2357 = vpow2.f32 %v1592_v58  ;;  %v1377_v1 = vpop.f32.mrf.mxu1 }
 0x149   : > { %v2346_v2 = vpop.eup %2345  ;;  %v1675_v3 = vadd.f32 1.0, %v2344_v0  ;;  %v1594_v4 = vmul.f32 1.442695, %v1532_v62  ;;  %v1378_v5 = vadd.f32 %v1377_v1, %v1145_v63  ;;  %v1147_v6 = vpop.f32.mrf.mxu0 }
 0x14a   : > { %1818 = vst [vmem:[%s2749_s24 + $0x28] sm:$0xff] %v2346_v2  ;;  %v1379_v7 = vpop.f32.mrf.mxu1 }
 0x14b   : > { %2359 = vrcp.f32 %v1675_v3  ;;  %v1533_v8 = vsub.f32 0.0, %v1378_v5  ;;  %v1148_v9 = vpop.f32.mrf.mxu0 }
 0x14c   : > { %v2348_v10 = vpop.eup %2347  ;;  %2361 = vpow2.f32 %v1594_v4  ;;  %v1380_v11 = vpop.f32.mrf.mxu1 }
 0x14d   : > { %v2350_v12 = vpop.eup %2349  ;;  %v1676_v13 = vadd.f32 1.0, %v2348_v10  ;;  %v1596_v14 = vmul.f32 1.442695, %v1533_v8  ;;  %v1381_v15 = vadd.f32 %v1380_v11, %v1148_v9  ;;  %v1150_v16 = vpop.f32.mrf.mxu0 }
 0x14e   : > { %1819 = vst [vmem:[%s2749_s24 + $0x30] sm:$0xff] %v2350_v12  ;;  %v1382_v17 = vpop.f32.mrf.mxu1 }
 0x14f   : > { %2363 = vrcp.f32 %v1676_v13  ;;  %v1534_v18 = vsub.f32 0.0, %v1381_v15  ;;  %v1153_v19 = vpop.f32.mrf.mxu0 }
 0x150   : > { %v2352_v20 = vpop.eup %2351  ;;  %2365 = vpow2.f32 %v1596_v14  ;;  %v1385_v21 = vpop.f32.mrf.mxu1 }
 0x151   : > { %v2354_v22 = vpop.eup %2353  ;;  %v1677_v23 = vadd.f32 1.0, %v2352_v20  ;;  %v1598_v24 = vmul.f32 1.442695, %v1534_v18  ;;  %v1386_v25 = vadd.f32 %v1385_v21, %v1153_v19  ;;  %v1155_v26 = vpop.f32.mrf.mxu0 }
 0x152   : > { %1820 = vst [vmem:[%s2749_s24 + $0x38] sm:$0xff] %v2354_v22  ;;  %v1387_v27 = vpop.f32.mrf.mxu1 }
 0x153   : > { %2367 = vrcp.f32 %v1677_v23  ;;  %v1535_v28 = vsub.f32 0.0, %v1386_v25  ;;  %v1156_v29 = vpop.f32.mrf.mxu0 }
 0x154   : > { %v2356_v30 = vpop.eup %2355  ;;  %2369 = vpow2.f32 %v1598_v24  ;;  %v1388_v31 = vpop.f32.mrf.mxu1 }
 0x155   : > { %v2358_v32 = vpop.eup %2357  ;;  %1821 = vst [vmem:[%s2749_s24 + $0x40] sm:$0xff] %v2356_v30  ;;  %v1600_v33 = vmul.f32 1.442695, %v1535_v28  ;;  %v1389_v34 = vadd.f32 %v1388_v31, %v1156_v29  ;;  %v1158_v35 = vpop.f32.mrf.mxu0 }
 0x156   : > { %v1678_v36 = vadd.f32 1.0, %v2358_v32  ;;  %v1390_v37 = vpop.f32.mrf.mxu1 }
 0x157   : > { %2371 = vpow2.f32 %v1600_v33  ;;  %v1536_v38 = vsub.f32 0.0, %v1389_v34  ;;  %v1161_v39 = vpop.f32.mrf.mxu0 }
 0x158   : > { %v2360_v40 = vpop.eup %2359  ;;  %2373 = vrcp.f32 %v1678_v36  ;;  %v1393_v41 = vpop.f32.mrf.mxu1 }
 0x159   : > { %v2362_v42 = vpop.eup %2361  ;;  %1822 = vst [vmem:[%s2749_s24 + $0x48] sm:$0xff] %v2360_v40  ;;  %v1602_v43 = vmul.f32 1.442695, %v1536_v38  ;;  %v1394_v44 = vadd.f32 %v1393_v41, %v1161_v39  ;;  %v1163_v45 = vpop.f32.mrf.mxu0 }
 0x15a   : > { %v1679_v46 = vadd.f32 1.0, %v2362_v42  ;;  %v1395_v47 = vpop.f32.mrf.mxu1 }
 0x15b   : > { %2375 = vpow2.f32 %v1602_v43  ;;  %v1537_v48 = vsub.f32 0.0, %v1394_v44  ;;  %v1164_v49 = vpop.f32.mrf.mxu0 }
 0x15c   : > { %v2364_v50 = vpop.eup %2363  ;;  %2377 = vrcp.f32 %v1679_v46  ;;  %v1396_v51 = vpop.f32.mrf.mxu1 }
 0x15d   : > { %v2366_v52 = vpop.eup %2365  ;;  %1823 = vst [vmem:[%s2749_s24 + $0x50] sm:$0xff] %v2364_v50  ;;  %v1604_v53 = vmul.f32 1.442695, %v1537_v48  ;;  %v1397_v54 = vadd.f32 %v1396_v51, %v1164_v49  ;;  %v1166_v55 = vpop.f32.mrf.mxu0 }
 0x15e   : > { %v1680_v56 = vadd.f32 1.0, %v2366_v52  ;;  %v1398_v57 = vpop.f32.mrf.mxu1 }
 0x15f   : > { %2379 = vpow2.f32 %v1604_v53  ;;  %v1538_v58 = vsub.f32 0.0, %v1397_v54  ;;  %v1169_v59 = vpop.f32.mrf.mxu0 }
 0x160   : > { %v2368_v60 = vpop.eup %2367  ;;  %2381 = vrcp.f32 %v1680_v56  ;;  %v1401_v61 = vpop.f32.mrf.mxu1 }
 0x161   : > { %v2370_v62 = vpop.eup %2369  ;;  %1824 = vst [vmem:[%s2749_s24 + $0x58] sm:$0xff] %v2368_v60  ;;  %v1606_v63 = vmul.f32 1.442695, %v1538_v58  ;;  %v1402_v0 = vadd.f32 %v1401_v61, %v1169_v59  ;;  %v1171_v1 = vpop.f32.mrf.mxu0 }
 0x162   : > { %v1681_v2 = vadd.f32 1.0, %v2370_v62  ;;  %v1403_v3 = vpop.f32.mrf.mxu1 }
 0x163   : > { %2383 = vpow2.f32 %v1606_v63  ;;  %v1539_v4 = vsub.f32 0.0, %v1402_v0  ;;  %v1172_v5 = vpop.f32.mrf.mxu0 }
 0x164   : > { %v2372_v6 = vpop.eup %2371  ;;  %2385 = vrcp.f32 %v1681_v2  ;;  %v1404_v7 = vpop.f32.mrf.mxu1 }
 0x165   : > { %v2374_v8 = vpop.eup %2373  ;;  %v1682_v9 = vadd.f32 1.0, %v2372_v6  ;;  %v1608_v10 = vmul.f32 1.442695, %v1539_v4  ;;  %v1405_v11 = vadd.f32 %v1404_v7, %v1172_v5  ;;  %v1174_v12 = vpop.f32.mrf.mxu0 }
 0x166   : > { %1825 = vst [vmem:[%s2749_s24 + $0x60] sm:$0xff] %v2374_v8  ;;  %v1406_v13 = vpop.f32.mrf.mxu1 }
 0x167   : > { %2387 = vrcp.f32 %v1682_v9  ;;  %v1540_v14 = vsub.f32 0.0, %v1405_v11  ;;  %v1177_v15 = vpop.f32.mrf.mxu0 }
 0x168   : > { %v2376_v16 = vpop.eup %2375  ;;  %2389 = vpow2.f32 %v1608_v10  ;;  %v1409_v17 = vpop.f32.mrf.mxu1 }
 0x169   : > { %v2378_v18 = vpop.eup %2377  ;;  %v1683_v19 = vadd.f32 1.0, %v2376_v16  ;;  %v1610_v20 = vmul.f32 1.442695, %v1540_v14  ;;  %v1410_v21 = vadd.f32 %v1409_v17, %v1177_v15  ;;  %v1179_v22 = vpop.f32.mrf.mxu0 }
 0x16a   : > { %1826 = vst [vmem:[%s2749_s24 + $0x68] sm:$0xff] %v2378_v18  ;;  %v1411_v23 = vpop.f32.mrf.mxu1 }
 0x16b   : > { %2391 = vrcp.f32 %v1683_v19  ;;  %v1541_v24 = vsub.f32 0.0, %v1410_v21  ;;  %v1180_v25 = vpop.f32.mrf.mxu0 }
 0x16c   : > { %v2380_v26 = vpop.eup %2379  ;;  %2393 = vpow2.f32 %v1610_v20  ;;  %v1412_v27 = vpop.f32.mrf.mxu1 }
 0x16d   : > { %v2382_v28 = vpop.eup %2381  ;;  %v1684_v29 = vadd.f32 1.0, %v2380_v26  ;;  %v1612_v30 = vmul.f32 1.442695, %v1541_v24  ;;  %v1413_v31 = vadd.f32 %v1412_v27, %v1180_v25  ;;  %v1182_v32 = vpop.f32.mrf.mxu0 }
 0x16e   : > { %1827 = vst [vmem:[%s2749_s24 + $0x70] sm:$0xff] %v2382_v28  ;;  %v1414_v33 = vpop.f32.mrf.mxu1 }
 0x16f   : > { %2395 = vrcp.f32 %v1684_v29  ;;  %v1542_v34 = vsub.f32 0.0, %v1413_v31  ;;  %v1185_v35 = vpop.f32.mrf.mxu0 }
 0x170   : > { %v2384_v36 = vpop.eup %2383  ;;  %2397 = vpow2.f32 %v1612_v30  ;;  %v1417_v37 = vpop.f32.mrf.mxu1 }
 0x171   : > { %v2386_v38 = vpop.eup %2385  ;;  %v1685_v39 = vadd.f32 1.0, %v2384_v36  ;;  %v1614_v40 = vmul.f32 1.442695, %v1542_v34  ;;  %v1418_v41 = vadd.f32 %v1417_v37, %v1185_v35  ;;  %v1187_v42 = vpop.f32.mrf.mxu0 }
 0x172   : > { %1828 = vst [vmem:[%s2749_s24 + $0x78] sm:$0xff] %v2386_v38  ;;  %v1419_v43 = vpop.f32.mrf.mxu1 }
 0x173   : > { %2399 = vrcp.f32 %v1685_v39  ;;  %v1543_v44 = vsub.f32 0.0, %v1418_v41  ;;  %v1188_v45 = vpop.f32.mrf.mxu0 }
 0x174   : > { %v2388_v46 = vpop.eup %2387  ;;  %2401 = vpow2.f32 %v1614_v40  ;;  %v1420_v47 = vpop.f32.mrf.mxu1 }
 0x175   : > { %v2390_v48 = vpop.eup %2389  ;;  %1829 = vst [vmem:[%s2749_s24 + $0x80] sm:$0xff] %v2388_v46  ;;  %v1616_v49 = vmul.f32 1.442695, %v1543_v44  ;;  %v1421_v50 = vadd.f32 %v1420_v47, %v1188_v45  ;;  %v1190_v51 = vpop.f32.mrf.mxu0 }
 0x176   : > { %v1686_v52 = vadd.f32 1.0, %v2390_v48  ;;  %v1422_v53 = vpop.f32.mrf.mxu1 }
 0x177   : > { %2403 = vpow2.f32 %v1616_v49  ;;  %v1544_v54 = vsub.f32 0.0, %v1421_v50  ;;  %v1193_v55 = vpop.f32.mrf.mxu0 }
 0x178   : > { %v2392_v56 = vpop.eup %2391  ;;  %2405 = vrcp.f32 %v1686_v52  ;;  %v1425_v57 = vpop.f32.mrf.mxu1 }
 0x179   : > { %v2394_v58 = vpop.eup %2393  ;;  %1830 = vst [vmem:[%s2749_s24 + $0x88] sm:$0xff] %v2392_v56  ;;  %v1618_v59 = vmul.f32 1.442695, %v1544_v54  ;;  %v1426_v60 = vadd.f32 %v1425_v57, %v1193_v55  ;;  %v1195_v61 = vpop.f32.mrf.mxu0 }
 0x17a   : > { %v1687_v62 = vadd.f32 1.0, %v2394_v58  ;;  %v1427_v63 = vpop.f32.mrf.mxu1 }
 0x17b   : > { %2407 = vpow2.f32 %v1618_v59  ;;  %v1545_v0 = vsub.f32 0.0, %v1426_v60  ;;  %v1196_v1 = vpop.f32.mrf.mxu0 }
 0x17c   : > { %v2396_v2 = vpop.eup %2395  ;;  %2409 = vrcp.f32 %v1687_v62  ;;  %v1428_v3 = vpop.f32.mrf.mxu1 }
 0x17d   : > { %v2398_v4 = vpop.eup %2397  ;;  %1831 = vst [vmem:[%s2749_s24 + $0x90] sm:$0xff] %v2396_v2  ;;  %v1620_v5 = vmul.f32 1.442695, %v1545_v0  ;;  %v1429_v6 = vadd.f32 %v1428_v3, %v1196_v1  ;;  %v1198_v7 = vpop.f32.mrf.mxu0 }
 0x17e   : > { %v1688_v8 = vadd.f32 1.0, %v2398_v4  ;;  %v1430_v9 = vpop.f32.mrf.mxu1 }
 0x17f   : > { %2411 = vpow2.f32 %v1620_v5  ;;  %v1546_v10 = vsub.f32 0.0, %v1429_v6  ;;  %v1201_v11 = vpop.f32.mrf.mxu0 }
 0x180   : > { %v2400_v12 = vpop.eup %2399  ;;  %2413 = vrcp.f32 %v1688_v8  ;;  %v1433_v13 = vpop.f32.mrf.mxu1 }
 0x181   : > { %v2402_v14 = vpop.eup %2401  ;;  %1832 = vst [vmem:[%s2749_s24 + $0x98] sm:$0xff] %v2400_v12  ;;  %v1622_v15 = vmul.f32 1.442695, %v1546_v10  ;;  %v1434_v16 = vadd.f32 %v1433_v13, %v1201_v11  ;;  %v1203_v17 = vpop.f32.mrf.mxu0 }
 0x182   : > { %v1689_v18 = vadd.f32 1.0, %v2402_v14  ;;  %v1435_v19 = vpop.f32.mrf.mxu1 }
 0x183   : > { %2415 = vpow2.f32 %v1622_v15  ;;  %v1547_v20 = vsub.f32 0.0, %v1434_v16  ;;  %v1204_v21 = vpop.f32.mrf.mxu0 }
 0x184   : > { %v2404_v22 = vpop.eup %2403  ;;  %2417 = vrcp.f32 %v1689_v18  ;;  %v1436_v23 = vpop.f32.mrf.mxu1 }
 0x185   : > { %v2406_v24 = vpop.eup %2405  ;;  %v1690_v25 = vadd.f32 1.0, %v2404_v22  ;;  %v1624_v26 = vmul.f32 1.442695, %v1547_v20  ;;  %v1437_v27 = vadd.f32 %v1436_v23, %v1204_v21  ;;  %v1206_v28 = vpop.f32.mrf.mxu0 }
 0x186   : > { %1833 = vst [vmem:[%s2749_s24 + $0xa0] sm:$0xff] %v2406_v24  ;;  %v1438_v29 = vpop.f32.mrf.mxu1 }
 0x187   : > { %2419 = vrcp.f32 %v1690_v25  ;;  %v1548_v30 = vsub.f32 0.0, %v1437_v27  ;;  %v1209_v31 = vpop.f32.mrf.mxu0 }
 0x188   : > { %v2408_v32 = vpop.eup %2407  ;;  %2421 = vpow2.f32 %v1624_v26  ;;  %v1441_v33 = vpop.f32.mrf.mxu1 }
 0x189   : > { %v2410_v34 = vpop.eup %2409  ;;  %v1691_v35 = vadd.f32 1.0, %v2408_v32  ;;  %v1626_v36 = vmul.f32 1.442695, %v1548_v30  ;;  %v1442_v37 = vadd.f32 %v1441_v33, %v1209_v31  ;;  %v1211_v38 = vpop.f32.mrf.mxu0 }
 0x18a   : > { %1834 = vst [vmem:[%s2749_s24 + $0xa8] sm:$0xff] %v2410_v34  ;;  %v1443_v39 = vpop.f32.mrf.mxu1 }
 0x18b   : > { %2423 = vrcp.f32 %v1691_v35  ;;  %v1549_v40 = vsub.f32 0.0, %v1442_v37  ;;  %v1212_v41 = vpop.f32.mrf.mxu0 }
 0x18c   : > { %v2412_v42 = vpop.eup %2411  ;;  %2425 = vpow2.f32 %v1626_v36  ;;  %v1444_v43 = vpop.f32.mrf.mxu1 }
 0x18d   : > { %v2414_v44 = vpop.eup %2413  ;;  %v1692_v45 = vadd.f32 1.0, %v2412_v42  ;;  %v1628_v46 = vmul.f32 1.442695, %v1549_v40  ;;  %v1445_v47 = vadd.f32 %v1444_v43, %v1212_v41  ;;  %v1214_v48 = vpop.f32.mrf.mxu0 }
 0x18e   : > { %1835 = vst [vmem:[%s2749_s24 + $0xb0] sm:$0xff] %v2414_v44  ;;  %v1446_v49 = vpop.f32.mrf.mxu1 }
 0x18f   : > { %2427 = vrcp.f32 %v1692_v45  ;;  %v1550_v50 = vsub.f32 0.0, %v1445_v47  ;;  %v1217_v51 = vpop.f32.mrf.mxu0 }
 0x190   : > { %v2416_v52 = vpop.eup %2415  ;;  %2429 = vpow2.f32 %v1628_v46  ;;  %v1449_v53 = vpop.f32.mrf.mxu1 }
 0x191   : > { %v2418_v54 = vpop.eup %2417  ;;  %v1693_v55 = vadd.f32 1.0, %v2416_v52  ;;  %v1630_v56 = vmul.f32 1.442695, %v1550_v50  ;;  %v1450_v57 = vadd.f32 %v1449_v53, %v1217_v51  ;;  %v1219_v58 = vpop.f32.mrf.mxu0 }
 0x192   : > { %1836 = vst [vmem:[%s2749_s24 + $0xb8] sm:$0xff] %v2418_v54  ;;  %v1451_v59 = vpop.f32.mrf.mxu1 }
 0x193   : > { %2431 = vrcp.f32 %v1693_v55  ;;  %v1551_v60 = vsub.f32 0.0, %v1450_v57  ;;  %v1220_v61 = vpop.f32.mrf.mxu0 }
 0x194   : > { %v2420_v62 = vpop.eup %2419  ;;  %2433 = vpow2.f32 %v1630_v56  ;;  %v1452_v63 = vpop.f32.mrf.mxu1 }
 0x195   : > { %v2422_v0 = vpop.eup %2421  ;;  %1837 = vst [vmem:[%s2749_s24 + $0xc0] sm:$0xff] %v2420_v62  ;;  %v1632_v1 = vmul.f32 1.442695, %v1551_v60  ;;  %v1453_v2 = vadd.f32 %v1452_v63, %v1220_v61  ;;  %v1222_v3 = vpop.f32.mrf.mxu0 }
 0x196   : > { %v1694_v4 = vadd.f32 1.0, %v2422_v0  ;;  %v1454_v5 = vpop.f32.mrf.mxu1 }
 0x197   : > { %2435 = vpow2.f32 %v1632_v1  ;;  %v1552_v6 = vsub.f32 0.0, %v1453_v2  ;;  %v1225_v7 = vpop.f32.mrf.mxu0 }
 0x198   : > { %v2424_v8 = vpop.eup %2423  ;;  %2437 = vrcp.f32 %v1694_v4  ;;  %v1457_v9 = vpop.f32.mrf.mxu1 }
 0x199   : > { %v2426_v10 = vpop.eup %2425  ;;  %1838 = vst [vmem:[%s2749_s24 + $0xc8] sm:$0xff] %v2424_v8  ;;  %v1634_v11 = vmul.f32 1.442695, %v1552_v6  ;;  %v1458_v12 = vadd.f32 %v1457_v9, %v1225_v7  ;;  %v1227_v13 = vpop.f32.mrf.mxu0 }
 0x19a   : > { %v1695_v14 = vadd.f32 1.0, %v2426_v10  ;;  %v1459_v15 = vpop.f32.mrf.mxu1 }
 0x19b   : > { %2439 = vpow2.f32 %v1634_v11  ;;  %v1553_v16 = vsub.f32 0.0, %v1458_v12  ;;  %v1228_v17 = vpop.f32.mrf.mxu0 }
 0x19c   : > { %v2428_v18 = vpop.eup %2427  ;;  %2441 = vrcp.f32 %v1695_v14  ;;  %v1460_v19 = vpop.f32.mrf.mxu1 }
 0x19d   : > { %v2430_v20 = vpop.eup %2429  ;;  %1839 = vst [vmem:[%s2749_s24 + $0xd0] sm:$0xff] %v2428_v18  ;;  %v1636_v21 = vmul.f32 1.442695, %v1553_v16  ;;  %v1461_v22 = vadd.f32 %v1460_v19, %v1228_v17  ;;  %v1230_v23 = vpop.f32.mrf.mxu0 }
 0x19e   : > { %v1696_v24 = vadd.f32 1.0, %v2430_v20  ;;  %v1462_v25 = vpop.f32.mrf.mxu1 }
 0x19f   : > { %2443 = vpow2.f32 %v1636_v21  ;;  %v1554_v26 = vsub.f32 0.0, %v1461_v22  ;;  %v1233_v27 = vpop.f32.mrf.mxu0 }
 0x1a0   : > { %v2432_v28 = vpop.eup %2431  ;;  %2445 = vrcp.f32 %v1696_v24  ;;  %v1465_v29 = vpop.f32.mrf.mxu1 }
 0x1a1   : > { %v2434_v30 = vpop.eup %2433  ;;  %1840 = vst [vmem:[%s2749_s24 + $0xd8] sm:$0xff] %v2432_v28  ;;  %v1638_v31 = vmul.f32 1.442695, %v1554_v26  ;;  %v1466_v32 = vadd.f32 %v1465_v29, %v1233_v27  ;;  %v1235_v33 = vpop.f32.mrf.mxu0 }
 0x1a2   : > { %v1697_v34 = vadd.f32 1.0, %v2434_v30  ;;  %v1467_v35 = vpop.f32.mrf.mxu1 }
 0x1a3   : > { %2447 = vpow2.f32 %v1638_v31  ;;  %v1555_v36 = vsub.f32 0.0, %v1466_v32  ;;  %v1236_v37 = vpop.f32.mrf.mxu0 }
 0x1a4   : > { %v2436_v38 = vpop.eup %2435  ;;  %2449 = vrcp.f32 %v1697_v34  ;;  %v1468_v39 = vpop.f32.mrf.mxu1 }
 0x1a5   : > { %v2438_v40 = vpop.eup %2437  ;;  %v1698_v41 = vadd.f32 1.0, %v2436_v38  ;;  %v1640_v42 = vmul.f32 1.442695, %v1555_v36  ;;  %v1469_v43 = vadd.f32 %v1468_v39, %v1236_v37  ;;  %v1238_v44 = vpop.f32.mrf.mxu0 }
 0x1a6   : > { %1841 = vst [vmem:[%s2749_s24 + $0xe0] sm:$0xff] %v2438_v40  ;;  %v1470_v45 = vpop.f32.mrf.mxu1 }
 0x1a7   : > { %2451 = vrcp.f32 %v1698_v41  ;;  %v1556_v46 = vsub.f32 0.0, %v1469_v43  ;;  %v1241_v47 = vpop.f32.mrf.mxu0 }
 0x1a8   : > { %v2440_v48 = vpop.eup %2439  ;;  %2453 = vpow2.f32 %v1640_v42  ;;  %v1473_v49 = vpop.f32.mrf.mxu1 }
 0x1a9   : > { %v2442_v50 = vpop.eup %2441  ;;  %v1699_v51 = vadd.f32 1.0, %v2440_v48  ;;  %v1642_v52 = vmul.f32 1.442695, %v1556_v46  ;;  %v1474_v53 = vadd.f32 %v1473_v49, %v1241_v47  ;;  %v1243_v54 = vpop.f32.mrf.mxu0 }
 0x1aa   : > { %1842 = vst [vmem:[%s2749_s24 + $0xe8] sm:$0xff] %v2442_v50  ;;  %v1475_v55 = vpop.f32.mrf.mxu1 }
 0x1ab   : > { %2455 = vrcp.f32 %v1699_v51  ;;  %v1557_v56 = vsub.f32 0.0, %v1474_v53  ;;  %v1244_v57 = vpop.f32.mrf.mxu0 }
 0x1ac   : > { %v2444_v58 = vpop.eup %2443  ;;  %2457 = vpow2.f32 %v1642_v52  ;;  %v1476_v59 = vpop.f32.mrf.mxu1 }
 0x1ad   : > { %v2446_v60 = vpop.eup %2445  ;;  %v1700_v61 = vadd.f32 1.0, %v2444_v58  ;;  %v1644_v62 = vmul.f32 1.442695, %v1557_v56  ;;  %v1477_v63 = vadd.f32 %v1476_v59, %v1244_v57  ;;  %v1246_v0 = vpop.f32.mrf.mxu0 }
 0x1ae   : > { %1843 = vst [vmem:[%s2749_s24 + $0xf0] sm:$0xff] %v2446_v60  ;;  %v1478_v1 = vpop.f32.mrf.mxu1 }
 0x1af   : > { %2459 = vrcp.f32 %v1700_v61  ;;  %v1558_v2 = vsub.f32 0.0, %v1477_v63  ;;  %v1249_v3 = vpop.f32.mrf.mxu0 }
 0x1b0   : > { %v2448_v4 = vpop.eup %2447  ;;  %2461 = vpow2.f32 %v1644_v62  ;;  %v1481_v5 = vpop.f32.mrf.mxu1 }
 0x1b1   : > { %v2450_v6 = vpop.eup %2449  ;;  %v1701_v7 = vadd.f32 1.0, %v2448_v4  ;;  %v1646_v8 = vmul.f32 1.442695, %v1558_v2  ;;  %v1482_v9 = vadd.f32 %v1481_v5, %v1249_v3  ;;  %v1251_v10 = vpop.f32.mrf.mxu0 }
 0x1b2   : > { %1844 = vst [vmem:[%s2749_s24 + $0xf8] sm:$0xff] %v2450_v6  ;;  %v1483_v11 = vpop.f32.mrf.mxu1 }
 0x1b3   : > { %2463 = vrcp.f32 %v1701_v7  ;;  %v1559_v12 = vsub.f32 0.0, %v1482_v9  ;;  %v1252_v13 = vpop.f32.mrf.mxu0 }
 0x1b4   : > { %v2452_v14 = vpop.eup %2451  ;;  %2465 = vpow2.f32 %v1646_v8  ;;  %v1484_v15 = vpop.f32.mrf.mxu1 }
 0x1b5   : > { %v2454_v16 = vpop.eup %2453  ;;  %1845 = vst [vmem:[%s2749_s24 + $0x100] sm:$0xff] %v2452_v14  ;;  %v1648_v17 = vmul.f32 1.442695, %v1559_v12  ;;  %v1485_v18 = vadd.f32 %v1484_v15, %v1252_v13  ;;  %v1254_v19 = vpop.f32.mrf.mxu0 }
 0x1b6   : > { %v1702_v20 = vadd.f32 1.0, %v2454_v16  ;;  %v1486_v21 = vpop.f32.mrf.mxu1 }
 0x1b7   : > { %2467 = vpow2.f32 %v1648_v17  ;;  %v1560_v22 = vsub.f32 0.0, %v1485_v18  ;;  %v1257_v23 = vpop.f32.mrf.mxu0 }
 0x1b8   : > { %v2456_v24 = vpop.eup %2455  ;;  %2469 = vrcp.f32 %v1702_v20  ;;  %v1489_v25 = vpop.f32.mrf.mxu1 }
 0x1b9   : > { %v2458_v26 = vpop.eup %2457  ;;  %1846 = vst [vmem:[%s2749_s24 + $0x108] sm:$0xff] %v2456_v24  ;;  %v1650_v27 = vmul.f32 1.442695, %v1560_v22  ;;  %v1490_v28 = vadd.f32 %v1489_v25, %v1257_v23  ;;  %v1259_v29 = vpop.f32.mrf.mxu0 }
 0x1ba   : > { %v1703_v30 = vadd.f32 1.0, %v2458_v26  ;;  %v1491_v31 = vpop.f32.mrf.mxu1 }
 0x1bb   : > { %2471 = vpow2.f32 %v1650_v27  ;;  %v1561_v32 = vsub.f32 0.0, %v1490_v28  ;;  %v1260_v33 = vpop.f32.mrf.mxu0 }
 0x1bc   : > { %v2460_v34 = vpop.eup %2459  ;;  %2473 = vrcp.f32 %v1703_v30  ;;  %v1492_v35 = vpop.f32.mrf.mxu1 }
 0x1bd   : > { %v2462_v36 = vpop.eup %2461  ;;  %1847 = vst [vmem:[%s2749_s24 + $0x110] sm:$0xff] %v2460_v34  ;;  %v1652_v37 = vmul.f32 1.442695, %v1561_v32  ;;  %v1493_v38 = vadd.f32 %v1492_v35, %v1260_v33  ;;  %v1262_v39 = vpop.f32.mrf.mxu0 }
 0x1be   : > { %v1704_v40 = vadd.f32 1.0, %v2462_v36  ;;  %v1494_v41 = vpop.f32.mrf.mxu1 }
 0x1bf   : > { %2475 = vpow2.f32 %v1652_v37  ;;  %v1562_v42 = vsub.f32 0.0, %v1493_v38  ;;  %v1265_v43 = vpop.f32.mrf.mxu0 }
 0x1c0   : > { %v2464_v44 = vpop.eup %2463  ;;  %2477 = vrcp.f32 %v1704_v40  ;;  %v1497_v45 = vpop.f32.mrf.mxu1 }
 0x1c1   : > { %v2466_v46 = vpop.eup %2465  ;;  %1848 = vst [vmem:[%s2749_s24 + $0x118] sm:$0xff] %v2464_v44  ;;  %v1654_v47 = vmul.f32 1.442695, %v1562_v42  ;;  %v1498_v48 = vadd.f32 %v1497_v45, %v1265_v43  ;;  %v1267_v49 = vpop.f32.mrf.mxu0 }
 0x1c2   : > { %v1705_v50 = vadd.f32 1.0, %v2466_v46  ;;  %v1499_v51 = vpop.f32.mrf.mxu1 }
 0x1c3   : > { %2479 = vpow2.f32 %v1654_v47  ;;  %v1563_v52 = vsub.f32 0.0, %v1498_v48  ;;  %v1268_v53 = vpop.f32.mrf.mxu0 }
 0x1c4   : > { %v2468_v54 = vpop.eup %2467  ;;  %2481 = vrcp.f32 %v1705_v50  ;;  %v1500_v55 = vpop.f32.mrf.mxu1 }
 0x1c5   : > { %v2470_v56 = vpop.eup %2469  ;;  %v1706_v57 = vadd.f32 1.0, %v2468_v54  ;;  %v1656_v58 = vmul.f32 1.442695, %v1563_v52  ;;  %v1501_v59 = vadd.f32 %v1500_v55, %v1268_v53  ;;  %v1270_v60 = vpop.f32.mrf.mxu0 }
 0x1c6   : > { %1849 = vst [vmem:[%s2749_s24 + $0x120] sm:$0xff] %v2470_v56  ;;  %v1502_v61 = vpop.f32.mrf.mxu1 }
 0x1c7   : > { %2483 = vrcp.f32 %v1706_v57  ;;  %v1564_v62 = vsub.f32 0.0, %v1501_v59  ;;  %v1273_v63 = vpop.f32.mrf.mxu0 }
 0x1c8   : > { %v2472_v0 = vpop.eup %2471  ;;  %2485 = vpow2.f32 %v1656_v58  ;;  %v1505_v1 = vpop.f32.mrf.mxu1 }
 0x1c9   : > { %v2474_v2 = vpop.eup %2473  ;;  %v1707_v3 = vadd.f32 1.0, %v2472_v0  ;;  %v1658_v4 = vmul.f32 1.442695, %v1564_v62  ;;  %v1506_v5 = vadd.f32 %v1505_v1, %v1273_v63  ;;  %v1275_v6 = vpop.f32.mrf.mxu0 }
 0x1ca   : > { %1850 = vst [vmem:[%s2749_s24 + $0x128] sm:$0xff] %v2474_v2  ;;  %v1507_v7 = vpop.f32.mrf.mxu1 }
 0x1cb   : > { %2487 = vrcp.f32 %v1707_v3  ;;  %v1565_v8 = vsub.f32 0.0, %v1506_v5  ;;  %v1276_v9 = vpop.f32.mrf.mxu0 }
 0x1cc   : > { %v2476_v10 = vpop.eup %2475  ;;  %2489 = vpow2.f32 %v1658_v4  ;;  %v1508_v11 = vpop.f32.mrf.mxu1 }
 0x1cd   : > { %v2478_v12 = vpop.eup %2477  ;;  %v1708_v13 = vadd.f32 1.0, %v2476_v10  ;;  %v1660_v14 = vmul.f32 1.442695, %v1565_v8  ;;  %v1509_v15 = vadd.f32 %v1508_v11, %v1276_v9  ;;  %v1278_v16 = vpop.f32.mrf.mxu0 }
 0x1ce   : > { %1851 = vst [vmem:[%s2749_s24 + $0x130] sm:$0xff] %v2478_v12  ;;  %v1510_v17 = vpop.f32.mrf.mxu1 }
 0x1cf   : > { %2491 = vrcp.f32 %v1708_v13  ;;  %v1566_v18 = vsub.f32 0.0, %v1509_v15  ;;  %v1281_v19 = vpop.f32.mrf.mxu0 }
 0x1d0   : > { %v2480_v20 = vpop.eup %2479  ;;  %2493 = vpow2.f32 %v1660_v14  ;;  %v1513_v21 = vpop.f32.mrf.mxu1 }
 0x1d1   : > { %v2482_v22 = vpop.eup %2481  ;;  %v1709_v23 = vadd.f32 1.0, %v2480_v20  ;;  %v1662_v24 = vmul.f32 1.442695, %v1566_v18  ;;  %v1514_v25 = vadd.f32 %v1513_v21, %v1281_v19  ;;  %v1283_v26 = vpop.f32.mrf.mxu0 }
 0x1d2   : > { %1852 = vst [vmem:[%s2749_s24 + $0x138] sm:$0xff] %v2482_v22  ;;  %v1515_v27 = vpop.f32.mrf.mxu1 }
 0x1d3   : > { %2495 = vrcp.f32 %v1709_v23  ;;  %v1567_v28 = vsub.f32 0.0, %v1514_v25  ;;  %v1284_v29 = vpop.f32.mrf.mxu0 }
 0x1d4   : > { %v2484_v30 = vpop.eup %2483  ;;  %2497 = vpow2.f32 %v1662_v24  ;;  %v1516_v31 = vpop.f32.mrf.mxu1 }
 0x1d5   : > { %v2486_v32 = vpop.eup %2485  ;;  %1853 = vst [vmem:[%s2749_s24 + $0x140] sm:$0xff] %v2484_v30  ;;  %v1664_v33 = vmul.f32 1.442695, %v1567_v28  ;;  %v1285_v34 = vpop.f32.mrf.mxu0 }
 0x1d6   : > { %v1710_v35 = vadd.f32 1.0, %v2486_v32  ;;  %v1517_v36 = vpop.f32.mrf.mxu1 }
 0x1d7   : > { %2499 = vpow2.f32 %v1664_v33 }
 0x1d8   : > { %v2488_v37 = vpop.eup %2487  ;;  %2501 = vrcp.f32 %v1710_v35 }
 0x1d9   : > { %v2490_v38 = vpop.eup %2489  ;;  %1854 = vst [vmem:[%s2749_s24 + $0x148] sm:$0xff] %v2488_v37 }
 0x1da   : > { %v1711_v39 = vadd.f32 1.0, %v2490_v38 }
 0x1dc   : > { %v2492_v40 = vpop.eup %2491  ;;  %2503 = vrcp.f32 %v1711_v39 }
 0x1dd   : > { %v2494_v41 = vpop.eup %2493  ;;  %1855 = vst [vmem:[%s2749_s24 + $0x150] sm:$0xff] %v2492_v40 }
 0x1de   : > { %v1712_v42 = vadd.f32 1.0, %v2494_v41 }
 0x1e0   : > { %v2496_v43 = vpop.eup %2495  ;;  %2505 = vrcp.f32 %v1712_v42 }
 0x1e1   : > { %v2498_v44 = vpop.eup %2497  ;;  %1856 = vst [vmem:[%s2749_s24 + $0x158] sm:$0xff] %v2496_v43 }
 0x1e2   : > { %v1713_v45 = vadd.f32 1.0, %v2498_v44 }
 0x1e4   : > { %v2500_v46 = vpop.eup %2499  ;;  %2507 = vrcp.f32 %v1713_v45 }
 0x1e5   : > { %v2502_v47 = vpop.eup %2501  ;;  %v1714_v48 = vadd.f32 1.0, %v2500_v46 }
 0x1e6   : > { %1857 = vst [vmem:[%s2749_s24 + $0x160] sm:$0xff] %v2502_v47 }
 0x1e7   : > { %2509 = vrcp.f32 %v1714_v48 }
 0x1e9   : > { %v2504_v49 = vpop.eup %2503 }
 0x1ea   : > { %1858 = vst [vmem:[%s2749_s24 + $0x168] sm:$0xff] %v2504_v49 }
 0x1ed   : > { %v2506_v50 = vpop.eup %2505 }
 0x1ee   : > { %1859 = vst [vmem:[%s2749_s24 + $0x170] sm:$0xff] %v2506_v50 }
 0x1f1   : > { %v2508_v51 = vpop.eup %2507 }
 0x1f2   : > { %1860 = vst [vmem:[%s2749_s24 + $0x178] sm:$0xff] %v2508_v51 }
 0x1f4   : > { %v2510_v52 = vpop.eup %2509 }
 0x1f5   : > { %1861 = vst [vmem:[%s2749_s24 + $0x180] sm:$0xff] %v2510_v52 }
 0x1f6 PF: > { %s12_s11 = sadd.s32 1, %s2533_s11   ;;  %s2812_s9 = smov %s2529_s10 }
 0x1f7   : > { %p9_p5 = scmp.ge.s32.totalorder %s12_s11, 6   ;;  %s2813_s10 = smov %s2815_s12 }
 0x1f9   :  { %11 = sbr.rel (!%p9_p5) target bundleno = 2 (0x2), region = 61 }

</bundles_post_ra>
